<compile_context>
chip_gen: v5e
topology: v5e:2x2
jax: 0.10.0
libtpu: 0.0.40
codegen_flags: <defaults>
</compile_context>

<pallas_src>
import functools

import jax
import jax.numpy as jnp
from jax.experimental import pallas as pl
from jax.experimental.pallas import tpu as pltpu

CP = 128  # lane-dense channel padding (one full vreg lane dimension)


# ----------------------------- Pallas kernel --------------------------------

def _layer_kernel(*refs, B, Ho, Wo, Cp, stride0, shortcut_flags):
    """All BasicBlocks of one _make_layer for B images; activations stay in VMEM.

    refs = x (1 ref, or 4 phase refs if stride0==2)
           + per block [w1cat, b1, w2cat, b2, (ws, bs)]
           + [o_ref] + [apad scratch]
    """
    f32 = jnp.float32
    bf16 = jnp.bfloat16
    M = B * Ho * Wo

    it = iter(refs)
    n_x = 4 if stride0 == 2 else 1
    x_refs = [next(it) for _ in range(n_x)]
    blk = []
    for has_sc in shortcut_flags:
        w1, b1, w2, b2 = next(it), next(it), next(it), next(it)
        ws, bs = (next(it), next(it)) if has_sc else (None, None)
        blk.append((w1, b1, w2, b2, ws, bs))
    o_ref = next(it)
    apad = next(it)                                     # (B, Ho+2, Wo+2, Cp) bf16

    # Zero only the halo ring of the activation scratch; the interior is always
    # fully overwritten (all Cp lanes) before it is read.  Re-done every grid
    # step so it stays correct when the grid is split across TensorCores.
    zrow = jnp.zeros((B, 1, Wo + 2, Cp), bf16)
    zcol = jnp.zeros((B, Ho + 2, 1, Cp), bf16)
    apad[:, 0:1, :, :] = zrow
    apad[:, Ho + 1:Ho + 2, :, :] = zrow
    apad[:, :, 0:1, :] = zcol
    apad[:, :, Wo + 1:Wo + 2, :] = zcol

    def conv3x3(taps, w_ref, b_ref):
        # concat-K: one (M, 9*Cp) x (9*Cp, Cp) MXU matmul instead of 9 small dots.
        lhs = jnp.concatenate(taps, axis=-1)            # (M, 9*Cp) bf16
        return jnp.dot(lhs, w_ref[...], preferred_element_type=f32) + b_ref[...]

    def taps_from_apad():
        return [apad[:, kh:kh + Ho, kw:kw + Wo, :].reshape(M, Cp)
                for kh in range(3) for kw in range(3)]

    act = None                                          # block input, (M, Cp) f32
    for bi, has_sc in enumerate(shortcut_flags):
        w1, b1, w2, b2, ws, bs = blk[bi]

        # ---- conv1 taps + the shortcut view of this block's input ----
        if bi == 0:
            if stride0 == 1:
                xr = x_refs[0]                          # (B, Ho+2, Wo+2, Cp)
                taps1 = [xr[:, kh:kh + Ho, kw:kw + Wo, :].reshape(M, Cp)
                         for kh in range(3) for kw in range(3)]
                xc_bf = xr[:, 1:Ho + 1, 1:Wo + 1, :].reshape(M, Cp)
            else:                                       # stride 2: 4 phase refs
                taps1 = []
                for kh in range(3):
                    for kw in range(3):
                        pr = x_refs[2 * (kh % 2) + (kw % 2)]
                        oi, oj = kh // 2, kw // 2
                        taps1.append(pr[:, oi:oi + Ho, oj:oj + Wo, :].reshape(M, Cp))
                xc_bf = x_refs[3][:, 0:Ho, 0:Wo, :].reshape(M, Cp)  # x[2i, 2j]
            xc_f32 = xc_bf.astype(f32)
        else:
            # stage the previous block's output (with zero halo) for this conv1
            apad[:, 1:Ho + 1, 1:Wo + 1, :] = act.reshape(B, Ho, Wo, Cp).astype(bf16)
            taps1 = taps_from_apad()
            xc_f32 = act
            xc_bf = None

        # ---- conv1 (3x3) + folded-BN bias + ReLU, f32 accumulation ----
        out1 = jnp.maximum(conv3x3(taps1, w1, b1), 0.0)   # (M, Cp) f32

        # ---- conv2 (3x3, stride 1) + folded-BN bias: taps of out1 w/ zero halo ----
        apad[:, 1:Ho + 1, 1:Wo + 1, :] = out1.reshape(B, Ho, Wo, Cp).astype(bf16)
        y2 = conv3x3(taps_from_apad(), w2, b2)            # (M, Cp) f32

        # ---- shortcut (1x1 conv + folded BN, or identity) + residual + ReLU ----
        if has_sc:
            if xc_bf is None:
                xc_bf = xc_f32.astype(bf16)
            sc = jnp.dot(xc_bf, ws[...], preferred_element_type=f32) + bs[...]
        else:
            sc = xc_f32
        act = jnp.maximum(y2 + sc, 0.0)                   # (M, Cp) f32

    o_ref[...] = act.reshape(B, Ho, Wo, Cp).astype(o_ref.dtype)


# ------------------------------ layer forward --------------------------------

def make_layer_forward(x_nchw, prepared, layer_th=None, cp=CP, batch_block=None):
    """Whole _make_layer forward as one fused Pallas kernel. x_nchw: (N, Cin, H, W) f32."""
    nblocks = len(prepared)
    if layer_th is not None:
        assert 1 <= layer_th <= nblocks
        blocks = prepared[:layer_th]
    else:
        blocks = prepared
    s0 = blocks[0]["stride"]
    for p in blocks[1:]:
        assert p["stride"] == 1, "_make_layer: only the first block may stride"
    if s0 not in (1, 2):
        raise NotImplementedError("BasicBlock strides other than 1/2")  # TODO(synk)

    N, cin, Hi, Wi = x_nchw.shape
    assert cin == blocks[0]["cin"]
    Ho = (Hi - 1) // s0 + 1
    Wo = (Wi - 1) // s0 + 1
    planes = blocks[-1]["planes"]

    # ---- one-time input prep (single small pass; no per-block wrapper pads) ----
    x = jnp.transpose(x_nchw, (0, 2, 3, 1)).astype(jnp.bfloat16)       # NCHW -> NHWC
    x = jnp.pad(x, ((0, 0), (1, 1), (1, 1), (0, cp - cin)))            # halo + lane pad

    # batch several images per grid step so M = B*Ho*Wo amortises the ~0.35us
    # per-step overhead and fills the MXU.
    if batch_block is None:
        batch_block = max(1, min(N, 1024 // (Ho * Wo)))
    B = batch_block
    Np = -(-N // B) * B
    if Np != N:
        x = jnp.pad(x, ((0, Np - N), (0, 0), (0, 0), (0, 0)))

    if s0 == 1:
        xs = [x]
        x_specs = [pl.BlockSpec((B, Hi + 2, Wi + 2, cp), lambda n: (n, 0, 0, 0))]
    else:
        He, We = Hi + 2, Wi + 2
        if He % 2:
            x = jnp.pad(x, ((0, 0), (0, 1), (0, 0), (0, 0))); He += 1
        if We % 2:
            x = jnp.pad(x, ((0, 0), (0, 0), (0, 1), (0, 0))); We += 1
        Hh, Wh = He // 2, We // 2
        # space-to-depth phase split so every stride-2 tap is a unit-stride slice:
        # xs[2a+b][n, i, j, :] = xpad[n, 2i+a, 2j+b, :]
        xs = [x[:, a::2, b::2, :] for a in (0, 1) for b in (0, 1)]
        x_specs = [pl.BlockSpec((B, Hh, Wh, cp), lambda n: (n, 0, 0, 0))
                   for _ in range(4)]

    ins = list(xs)
    in_specs = list(x_specs)
    for p in blocks:
        ins += [p["w1"], p["b1"], p["w2"], p["b2"]]
        in_specs += [pl.BlockSpec((9 * cp, cp), lambda n: (0, 0)),   # conv1 weight (concat-K)
                     pl.BlockSpec((1, cp), lambda n: (0, 0)),        # conv1 bias (f32)
                     pl.BlockSpec((9 * cp, cp), lambda n: (0, 0)),   # conv2 weight
                     pl.BlockSpec((1, cp), lambda n: (0, 0))]        # conv2 bias
        if p["has_shortcut"]:
            ins += [p["ws"], p["bs"]]
            in_specs += [pl.BlockSpec((cp, cp), lambda n: (0, 0)),
                         pl.BlockSpec((1, cp), lambda n: (0, 0))]

    shortcut_flags = tuple(bool(p["has_shortcut"]) for p in blocks)
    kernel = functools.partial(_layer_kernel, B=B, Ho=Ho, Wo=Wo, Cp=cp,
                               stride0=s0, shortcut_flags=shortcut_flags)

    # advisory cost hint so XLA overlaps this sub-microsecond kernel with neighbours
    Mtot = Np * Ho * Wo
    flops = 0
    for p in blocks:
        flops += 2 * 2 * Mtot * (9 * cp) * cp            # conv1 + conv2
        if p["has_shortcut"]:
            flops += 2 * Mtot * cp * cp
    bytes_accessed = (sum(int(a.size) * a.dtype.itemsize for a in ins)
                      + Np * Ho * Wo * cp * 2)

    out = pl.pallas_call(
        kernel,
        out_shape=jax.ShapeDtypeStruct((Np, Ho, Wo, cp), jnp.bfloat16),
        grid_spec=pltpu.PrefetchScalarGridSpec(
            num_scalar_prefetch=0,
            grid=(Np // B,),
            in_specs=in_specs,
            out_specs=pl.BlockSpec((B, Ho, Wo, cp), lambda n: (n, 0, 0, 0)),
            scratch_shapes=[pltpu.VMEM((B, Ho + 2, Wo + 2, cp), jnp.bfloat16)]),
        compiler_params=pltpu.CompilerParams(
            dimension_semantics=("parallel",),
            # ~2 MB used at these shapes; raise on v5e/v6e (128 MiB) if B grows,
            # keep <=32 MiB on v7x (64 MiB physical per TensorCore).
            vmem_limit_bytes=32 * 1024 * 1024),
        cost_estimate=pl.CostEstimate(flops=int(flops), transcendentals=0,
                                      bytes_accessed=int(bytes_accessed)),
    )(*ins)

    out = out[:N, :, :, :planes].astype(jnp.float32)
    return jnp.transpose(out, (0, 3, 1, 2))                          # NHWC -> NCHW


# ------------------ one-time weight preparation (hoisted) --------------------

def fold_bn(bn, eps=1e-5):
    scale = bn["gamma"] / jnp.sqrt(bn["var"] + eps)
    bias = bn["beta"] - bn["mean"] * scale
    return scale, bias


def prepare_block_params(p, cp=CP, eps=1e-5):
    """Fold BN into weights, pad channels to cp, flatten K for concat-K matmuls."""
    planes, cin = p["w1"].shape[0], p["w1"].shape[1]
    assert planes <= cp and cin <= cp, "TODO(synk): Cout/K tiling needed for >128 channels"
    s1, b1 = fold_bn(p["bn1"], eps)
    s2, b2 = fold_bn(p["bn2"], eps)

    def conv_w_cat(w, scale, ci, co):
        # (Cout, Cin, 3, 3) -> (kh, kw, Cin, Cout) -> (9, Cin, Cout), fold BN scale,
        # zero-pad channels to cp, flatten K = 9*cp to match the in-kernel tap concat.
        wt = jnp.transpose(w, (2, 3, 1, 0)).reshape(9, ci, co) * scale[None, None, :]
        wt = jnp.pad(wt, ((0, 0), (0, cp - ci), (0, cp - co)))
        return wt.reshape(9 * cp, cp).astype(jnp.bfloat16)

    out = dict(
        stride=p["stride"], has_shortcut=p["has_shortcut"], planes=planes, cin=cin,
        w1=conv_w_cat(p["w1"], s1, cin, planes),
        b1=jnp.pad(b1, (0, cp - planes)).reshape(1, cp).astype(jnp.float32),
        w2=conv_w_cat(p["w2"], s2, planes, planes),
        b2=jnp.pad(b2, (0, cp - planes)).reshape(1, cp).astype(jnp.float32),
    )
    if p["has_shortcut"]:
        ss, bs = fold_bn(p["bns"], eps)
        ws = p["ws"][:, :, 0, 0].T * ss[None, :]                     # (Cin, Cout)
        out["ws"] = jnp.pad(ws, ((0, cp - cin), (0, cp - planes))).astype(jnp.bfloat16)
        out["bs"] = jnp.pad(bs, (0, cp - planes)).reshape(1, cp).astype(jnp.float32)
    return out


def prepare_layer_params(raw_params, cp=CP, eps=1e-5):
    return [prepare_block_params(p, cp=cp, eps=eps) for p in raw_params]


# --------------------------- parameter init ----------------------------------

def _bn_params(key, c):
    k1, k2, k3, k4 = jax.random.split(key, 4)
    return dict(
        gamma=1.0 + 0.1 * jax.random.normal(k1, (c,), jnp.float32),
        beta=0.1 * jax.random.normal(k2, (c,), jnp.float32),
        mean=0.1 * jax.random.normal(k3, (c,), jnp.float32),
        var=1.0 + 0.5 * jax.random.uniform(k4, (c,), jnp.float32),
    )


def _conv_w(key, cout, cin, kh, kw):
    fan_in = cin * kh * kw
    return jax.random.normal(key, (cout, cin, kh, kw), jnp.float32) / jnp.sqrt(fan_in)


def init_block_params(key, in_planes, planes, stride, expansion=1):
    ks = jax.random.split(key, 6)
    has_shortcut = (stride != 1) or (in_planes != planes * expansion)
    p = dict(
        stride=stride,
        has_shortcut=has_shortcut,
        w1=_conv_w(ks[0], planes, in_planes, 3, 3),
        bn1=_bn_params(ks[1], planes),
        w2=_conv_w(ks[2], planes, planes, 3, 3),
        bn2=_bn_params(ks[3], planes),
    )
    if has_shortcut:
        p["ws"] = _conv_w(ks[4], planes, in_planes, 1, 1)
        p["bns"] = _bn_params(ks[5], planes)
    return p


def init_layer_params(key, in_planes, planes, num_blocks, stride, expansion=1):
    strides = [stride] + [1] * (num_blocks - 1)
    params = []
    for s in strides:
        key, sub = jax.random.split(key)
        params.append(init_block_params(sub, in_planes, planes, s, expansion))
        in_planes = planes * expansion
    return params


# ----------------------------- pure-JAX reference ----------------------------

def _conv_ref(x, w, stride, padding):
    return jax.lax.conv_general_dilated(
        x, jnp.transpose(w, (2, 3, 1, 0)), (stride, stride), padding,
        dimension_numbers=("NHWC", "HWIO", "NHWC"))


def _bn_ref(x, bn, eps=1e-5):
    return (x - bn["mean"]) / jnp.sqrt(bn["var"] + eps) * bn["gamma"] + bn["beta"]


def block_forward_ref(x, p):
    out = jax.nn.relu(_bn_ref(_conv_ref(x, p["w1"], p["stride"], [(1, 1), (1, 1)]), p["bn1"]))
    out = _bn_ref(_conv_ref(out, p["w2"], 1, [(1, 1), (1, 1)]), p["bn2"])
    if p["has_shortcut"]:
        sc = _bn_ref(_conv_ref(x, p["ws"], p["stride"], [(0, 0), (0, 0)]), p["bns"])
    else:
        sc = x
    return jax.nn.relu(out + sc)


# --------------------------------- main ---------------------------------------

if __name__ == "__main__":
    key = jax.random.PRNGKey(0)
    kx, kp = jax.random.split(key)

    # _make_layer(block=BasicBlock, in_planes=4, planes=8, num_blocks=2, stride=2)
    in_planes, planes, num_blocks, stride = 4, 8, 2, 2
    x = jax.random.normal(kx, (2, in_planes, 16, 16), jnp.float32)   # NCHW (PyTorch convention)

    raw_params = init_layer_params(kp, in_planes, planes, num_blocks, stride)
    prepared = prepare_layer_params(raw_params)        # hoisted: BN fold, pad, concat-K, bf16

    out = make_layer_forward(x, prepared)              # fused Pallas path (1 pallas_call)
    out = jax.block_until_ready(out)

    # Reference check (pure JAX/XLA, f32, eval-mode BN)
    ref = jnp.transpose(x, (0, 2, 3, 1))
    for p in raw_params:
        ref = block_forward_ref(ref, p)
    ref = jnp.transpose(ref, (0, 3, 1, 2))

    assert out.shape == ref.shape == (2, planes, 8, 8), (out.shape, ref.shape)
    max_err = float(jnp.max(jnp.abs(out - ref)))
    ref_scale = float(jnp.max(jnp.abs(ref)))
    tol = 5e-2 * max(1.0, ref_scale)   # bf16 activations/weights through two residual blocks
    if max_err > tol:
        raise AssertionError(f"Pallas/reference mismatch, max abs err = {max_err} > tol {tol}")

    print("KERNEL_OK")
</pallas_src>

<mosaic_0001>
module attributes {stable_mosaic.version = 11 : i64} {
  func.func @_layer_kernel(%arg0: i32, %arg1: memref<2x9x9x128xbf16, #tpu.memory_space<vmem>>, %arg2: memref<2x9x9x128xbf16, #tpu.memory_space<vmem>>, %arg3: memref<2x9x9x128xbf16, #tpu.memory_space<vmem>>, %arg4: memref<2x9x9x128xbf16, #tpu.memory_space<vmem>>, %arg5: memref<1152x128xbf16, #tpu.memory_space<vmem>>, %arg6: memref<1x128xf32, #tpu.memory_space<vmem>>, %arg7: memref<1152x128xbf16, #tpu.memory_space<vmem>>, %arg8: memref<1x128xf32, #tpu.memory_space<vmem>>, %arg9: memref<128x128xbf16, #tpu.memory_space<vmem>>, %arg10: memref<1x128xf32, #tpu.memory_space<vmem>>, %arg11: memref<1152x128xbf16, #tpu.memory_space<vmem>>, %arg12: memref<1x128xf32, #tpu.memory_space<vmem>>, %arg13: memref<1152x128xbf16, #tpu.memory_space<vmem>>, %arg14: memref<1x128xf32, #tpu.memory_space<vmem>>, %arg15: memref<2x8x8x128xbf16, #tpu.memory_space<vmem>>, %arg16: memref<2x10x10x128xbf16, #tpu.memory_space<vmem>>) attributes {dimension_semantics = [#tpu.dimension_semantics<parallel>], iteration_bounds = array<i64: 1>, scalar_prefetch = 0 : i64, scratch_operands = 1 : i64, tpu.core_type = #tpu.core_type<tc>, window_params = [{transform_indices = @transform_0, window_bounds = array<i64: 2, 9, 9, 128>}, {transform_indices = @transform_1, window_bounds = array<i64: 2, 9, 9, 128>}, {transform_indices = @transform_2, window_bounds = array<i64: 2, 9, 9, 128>}, {transform_indices = @transform_3, window_bounds = array<i64: 2, 9, 9, 128>}, {pipeline_mode = #tpu.pipeline_mode<synchronous>, transform_indices = @transform_4, window_bounds = array<i64: 1152, 128>}, {pipeline_mode = #tpu.pipeline_mode<synchronous>, transform_indices = @transform_5, window_bounds = array<i64: 1, 128>}, {pipeline_mode = #tpu.pipeline_mode<synchronous>, transform_indices = @transform_6, window_bounds = array<i64: 1152, 128>}, {pipeline_mode = #tpu.pipeline_mode<synchronous>, transform_indices = @transform_7, window_bounds = array<i64: 1, 128>}, {pipeline_mode = #tpu.pipeline_mode<synchronous>, transform_indices = @transform_8, window_bounds = array<i64: 128, 128>}, {pipeline_mode = #tpu.pipeline_mode<synchronous>, transform_indices = @transform_9, window_bounds = array<i64: 1, 128>}, {pipeline_mode = #tpu.pipeline_mode<synchronous>, transform_indices = @transform_10, window_bounds = array<i64: 1152, 128>}, {pipeline_mode = #tpu.pipeline_mode<synchronous>, transform_indices = @transform_11, window_bounds = array<i64: 1, 128>}, {pipeline_mode = #tpu.pipeline_mode<synchronous>, transform_indices = @transform_12, window_bounds = array<i64: 1152, 128>}, {pipeline_mode = #tpu.pipeline_mode<synchronous>, transform_indices = @transform_13, window_bounds = array<i64: 1, 128>}, {transform_indices = @transform_14, window_bounds = array<i64: 2, 8, 8, 128>}]} {
    %cst = arith.constant 0.000000e+00 : bf16
    %0 = vector.broadcast %cst : bf16 to vector<2x1x10x128xbf16>
    %cst_0 = arith.constant 0.000000e+00 : bf16
    %1 = vector.broadcast %cst_0 : bf16 to vector<2x10x1x128xbf16>
    %c0 = arith.constant 0 : index
    %c0_1 = arith.constant 0 : index
    %c0_2 = arith.constant 0 : index
    %c0_3 = arith.constant 0 : index
    %2 = vector.load %arg16[%c0, %c0_1, %c0_2, %c0_3] : memref<2x10x10x128xbf16, #tpu.memory_space<vmem>>, vector<2x1x10x128xbf16>
    tpu.vector_store %arg16[%c0, %c0_1, %c0_2, %c0_3], %0 {strides = array<i32>} : memref<2x10x10x128xbf16, #tpu.memory_space<vmem>>, vector<2x1x10x128xbf16>,
    %c0_4 = arith.constant 0 : index
    %c9 = arith.constant 9 : index
    %c0_5 = arith.constant 0 : index
    %c0_6 = arith.constant 0 : index
    %3 = vector.load %arg16[%c0_4, %c9, %c0_5, %c0_6] : memref<2x10x10x128xbf16, #tpu.memory_space<vmem>>, vector<2x1x10x128xbf16>
    tpu.vector_store %arg16[%c0_4, %c9, %c0_5, %c0_6], %0 {strides = array<i32>} : memref<2x10x10x128xbf16, #tpu.memory_space<vmem>>, vector<2x1x10x128xbf16>,
    %c0_7 = arith.constant 0 : index
    %c0_8 = arith.constant 0 : index
    %c0_9 = arith.constant 0 : index
    %c0_10 = arith.constant 0 : index
    %4 = vector.load %arg16[%c0_7, %c0_8, %c0_9, %c0_10] : memref<2x10x10x128xbf16, #tpu.memory_space<vmem>>, vector<2x10x1x128xbf16>
    tpu.vector_store %arg16[%c0_7, %c0_8, %c0_9, %c0_10], %1 {strides = array<i32>} : memref<2x10x10x128xbf16, #tpu.memory_space<vmem>>, vector<2x10x1x128xbf16>,
    %c0_11 = arith.constant 0 : index
    %c0_12 = arith.constant 0 : index
    %c9_13 = arith.constant 9 : index
    %c0_14 = arith.constant 0 : index
    %5 = vector.load %arg16[%c0_11, %c0_12, %c9_13, %c0_14] : memref<2x10x10x128xbf16, #tpu.memory_space<vmem>>, vector<2x10x1x128xbf16>
    tpu.vector_store %arg16[%c0_11, %c0_12, %c9_13, %c0_14], %1 {strides = array<i32>} : memref<2x10x10x128xbf16, #tpu.memory_space<vmem>>, vector<2x10x1x128xbf16>,
    %c0_15 = arith.constant 0 : index
    %c0_16 = arith.constant 0 : index
    %c0_17 = arith.constant 0 : index
    %c0_18 = arith.constant 0 : index
    %6 = vector.load %arg1[%c0_15, %c0_16, %c0_17, %c0_18] : memref<2x9x9x128xbf16, #tpu.memory_space<vmem>>, vector<2x8x8x128xbf16>
    %7 = vector.shape_cast %6 : vector<2x8x8x128xbf16> to vector<128x128xbf16>
    %c0_19 = arith.constant 0 : index
    %c0_20 = arith.constant 0 : index
    %c0_21 = arith.constant 0 : index
    %c0_22 = arith.constant 0 : index
    %8 = vector.load %arg2[%c0_19, %c0_20, %c0_21, %c0_22] : memref<2x9x9x128xbf16, #tpu.memory_space<vmem>>, vector<2x8x8x128xbf16>
    %9 = vector.shape_cast %8 : vector<2x8x8x128xbf16> to vector<128x128xbf16>
    %c0_23 = arith.constant 0 : index
    %c0_24 = arith.constant 0 : index
    %c1 = arith.constant 1 : index
    %c0_25 = arith.constant 0 : index
    %10 = vector.load %arg1[%c0_23, %c0_24, %c1, %c0_25] : memref<2x9x9x128xbf16, #tpu.memory_space<vmem>>, vector<2x8x8x128xbf16>
    %11 = vector.shape_cast %10 : vector<2x8x8x128xbf16> to vector<128x128xbf16>
    %c0_26 = arith.constant 0 : index
    %c0_27 = arith.constant 0 : index
    %c0_28 = arith.constant 0 : index
    %c0_29 = arith.constant 0 : index
    %12 = vector.load %arg3[%c0_26, %c0_27, %c0_28, %c0_29] : memref<2x9x9x128xbf16, #tpu.memory_space<vmem>>, vector<2x8x8x128xbf16>
    %13 = vector.shape_cast %12 : vector<2x8x8x128xbf16> to vector<128x128xbf16>
    %c0_30 = arith.constant 0 : index
    %c0_31 = arith.constant 0 : index
    %c0_32 = arith.constant 0 : index
    %c0_33 = arith.constant 0 : index
    %14 = vector.load %arg4[%c0_30, %c0_31, %c0_32, %c0_33] : memref<2x9x9x128xbf16, #tpu.memory_space<vmem>>, vector<2x8x8x128xbf16>
    %15 = vector.shape_cast %14 : vector<2x8x8x128xbf16> to vector<128x128xbf16>
    %c0_34 = arith.constant 0 : index
    %c0_35 = arith.constant 0 : index
    %c1_36 = arith.constant 1 : index
    %c0_37 = arith.constant 0 : index
    %16 = vector.load %arg3[%c0_34, %c0_35, %c1_36, %c0_37] : memref<2x9x9x128xbf16, #tpu.memory_space<vmem>>, vector<2x8x8x128xbf16>
    %17 = vector.shape_cast %16 : vector<2x8x8x128xbf16> to vector<128x128xbf16>
    %c0_38 = arith.constant 0 : index
    %c1_39 = arith.constant 1 : index
    %c0_40 = arith.constant 0 : index
    %c0_41 = arith.constant 0 : index
    %18 = vector.load %arg1[%c0_38, %c1_39, %c0_40, %c0_41] : memref<2x9x9x128xbf16, #tpu.memory_space<vmem>>, vector<2x8x8x128xbf16>
    %19 = vector.shape_cast %18 : vector<2x8x8x128xbf16> to vector<128x128xbf16>
    %c0_42 = arith.constant 0 : index
    %c1_43 = arith.constant 1 : index
    %c0_44 = arith.constant 0 : index
    %c0_45 = arith.constant 0 : index
    %20 = vector.load %arg2[%c0_42, %c1_43, %c0_44, %c0_45] : memref<2x9x9x128xbf16, #tpu.memory_space<vmem>>, vector<2x8x8x128xbf16>
    %21 = vector.shape_cast %20 : vector<2x8x8x128xbf16> to vector<128x128xbf16>
    %c0_46 = arith.constant 0 : index
    %c1_47 = arith.constant 1 : index
    %c1_48 = arith.constant 1 : index
    %c0_49 = arith.constant 0 : index
    %22 = vector.load %arg1[%c0_46, %c1_47, %c1_48, %c0_49] : memref<2x9x9x128xbf16, #tpu.memory_space<vmem>>, vector<2x8x8x128xbf16>
    %23 = vector.shape_cast %22 : vector<2x8x8x128xbf16> to vector<128x128xbf16>
    %c0_50 = arith.constant 0 : index
    %c0_51 = arith.constant 0 : index
    %c0_52 = arith.constant 0 : index
    %c0_53 = arith.constant 0 : index
    %24 = vector.load %arg4[%c0_50, %c0_51, %c0_52, %c0_53] : memref<2x9x9x128xbf16, #tpu.memory_space<vmem>>, vector<2x8x8x128xbf16>
    %25 = vector.shape_cast %24 : vector<2x8x8x128xbf16> to vector<128x128xbf16>
    %26 = tpu.concatenate %7, %9, %11, %13, %15, %17, %19, %21, %23 in 1 : vector<128x128xbf16>, vector<128x128xbf16>, vector<128x128xbf16>, vector<128x128xbf16>, vector<128x128xbf16>, vector<128x128xbf16>, vector<128x128xbf16>, vector<128x128xbf16>, vector<128x128xbf16> -> vector<128x1152xbf16>
    %c0_54 = arith.constant 0 : index
    %c0_55 = arith.constant 0 : index
    %27 = vector.load %arg5[%c0_54, %c0_55] : memref<1152x128xbf16, #tpu.memory_space<vmem>>, vector<1152x128xbf16>
    %cst_56 = arith.constant dense<0.000000e+00> : vector<128x128xf32>
    %28 = tpu.matmul %26, %27, %cst_56 {dimension_numbers = #tpu.dot_dimension_numbers<[1], [0], [0], [1], [0, 0, 1, 1], [], []>} : vector<128x1152xbf16>, vector<1152x128xbf16>, vector<128x128xf32> -> vector<128x128xf32>
    %c0_57 = arith.constant 0 : index
    %c0_58 = arith.constant 0 : index
    %29 = vector.load %arg6[%c0_57, %c0_58] : memref<1x128xf32, #tpu.memory_space<vmem>>, vector<1x128xf32>
    %30 = vector.broadcast %29 : vector<1x128xf32> to vector<128x128xf32>
    %31 = arith.addf %28, %30 : vector<128x128xf32>
    %cst_59 = arith.constant 0.000000e+00 : f32
    %32 = vector.broadcast %cst_59 : f32 to vector<128x128xf32>
    %33 = arith.maximumf %31, %32 : vector<128x128xf32>
    %34 = vector.shape_cast %33 : vector<128x128xf32> to vector<2x8x8x128xf32>
    %35 = arith.truncf %34 : vector<2x8x8x128xf32> to vector<2x8x8x128xbf16>
    %c0_60 = arith.constant 0 : index
    %c1_61 = arith.constant 1 : index
    %c1_62 = arith.constant 1 : index
    %c0_63 = arith.constant 0 : index
    %36 = vector.load %arg16[%c0_60, %c1_61, %c1_62, %c0_63] : memref<2x10x10x128xbf16, #tpu.memory_space<vmem>>, vector<2x8x8x128xbf16>
    tpu.vector_store %arg16[%c0_60, %c1_61, %c1_62, %c0_63], %35 {strides = array<i32>} : memref<2x10x10x128xbf16, #tpu.memory_space<vmem>>, vector<2x8x8x128xbf16>,
    %c0_64 = arith.constant 0 : index
    %c0_65 = arith.constant 0 : index
    %c0_66 = arith.constant 0 : index
    %c0_67 = arith.constant 0 : index
    %37 = vector.load %arg16[%c0_64, %c0_65, %c0_66, %c0_67] : memref<2x10x10x128xbf16, #tpu.memory_space<vmem>>, vector<2x8x8x128xbf16>
    %38 = vector.shape_cast %37 : vector<2x8x8x128xbf16> to vector<128x128xbf16>
    %c0_68 = arith.constant 0 : index
    %c0_69 = arith.constant 0 : index
    %c1_70 = arith.constant 1 : index
    %c0_71 = arith.constant 0 : index
    %39 = vector.load %arg16[%c0_68, %c0_69, %c1_70, %c0_71] : memref<2x10x10x128xbf16, #tpu.memory_space<vmem>>, vector<2x8x8x128xbf16>
    %40 = vector.shape_cast %39 : vector<2x8x8x128xbf16> to vector<128x128xbf16>
    %c0_72 = arith.constant 0 : index
    %c0_73 = arith.constant 0 : index
    %c2 = arith.constant 2 : index
    %c0_74 = arith.constant 0 : index
    %41 = vector.load %arg16[%c0_72, %c0_73, %c2, %c0_74] : memref<2x10x10x128xbf16, #tpu.memory_space<vmem>>, vector<2x8x8x128xbf16>
    %42 = vector.shape_cast %41 : vector<2x8x8x128xbf16> to vector<128x128xbf16>
    %c0_75 = arith.constant 0 : index
    %c1_76 = arith.constant 1 : index
    %c0_77 = arith.constant 0 : index
    %c0_78 = arith.constant 0 : index
    %43 = vector.load %arg16[%c0_75, %c1_76, %c0_77, %c0_78] : memref<2x10x10x128xbf16, #tpu.memory_space<vmem>>, vector<2x8x8x128xbf16>
    %44 = vector.shape_cast %43 : vector<2x8x8x128xbf16> to vector<128x128xbf16>
    %c0_79 = arith.constant 0 : index
    %c1_80 = arith.constant 1 : index
    %c1_81 = arith.constant 1 : index
    %c0_82 = arith.constant 0 : index
    %45 = vector.load %arg16[%c0_79, %c1_80, %c1_81, %c0_82] : memref<2x10x10x128xbf16, #tpu.memory_space<vmem>>, vector<2x8x8x128xbf16>
    %46 = vector.shape_cast %45 : vector<2x8x8x128xbf16> to vector<128x128xbf16>
    %c0_83 = arith.constant 0 : index
    %c1_84 = arith.constant 1 : index
    %c2_85 = arith.constant 2 : index
    %c0_86 = arith.constant 0 : index
    %47 = vector.load %arg16[%c0_83, %c1_84, %c2_85, %c0_86] : memref<2x10x10x128xbf16, #tpu.memory_space<vmem>>, vector<2x8x8x128xbf16>
    %48 = vector.shape_cast %47 : vector<2x8x8x128xbf16> to vector<128x128xbf16>
    %c0_87 = arith.constant 0 : index
    %c2_88 = arith.constant 2 : index
    %c0_89 = arith.constant 0 : index
    %c0_90 = arith.constant 0 : index
    %49 = vector.load %arg16[%c0_87, %c2_88, %c0_89, %c0_90] : memref<2x10x10x128xbf16, #tpu.memory_space<vmem>>, vector<2x8x8x128xbf16>
    %50 = vector.shape_cast %49 : vector<2x8x8x128xbf16> to vector<128x128xbf16>
    %c0_91 = arith.constant 0 : index
    %c2_92 = arith.constant 2 : index
    %c1_93 = arith.constant 1 : index
    %c0_94 = arith.constant 0 : index
    %51 = vector.load %arg16[%c0_91, %c2_92, %c1_93, %c0_94] : memref<2x10x10x128xbf16, #tpu.memory_space<vmem>>, vector<2x8x8x128xbf16>
    %52 = vector.shape_cast %51 : vector<2x8x8x128xbf16> to vector<128x128xbf16>
    %c0_95 = arith.constant 0 : index
    %c2_96 = arith.constant 2 : index
    %c2_97 = arith.constant 2 : index
    %c0_98 = arith.constant 0 : index
    %53 = vector.load %arg16[%c0_95, %c2_96, %c2_97, %c0_98] : memref<2x10x10x128xbf16, #tpu.memory_space<vmem>>, vector<2x8x8x128xbf16>
    %54 = vector.shape_cast %53 : vector<2x8x8x128xbf16> to vector<128x128xbf16>
    %55 = tpu.concatenate %38, %40, %42, %44, %46, %48, %50, %52, %54 in 1 : vector<128x128xbf16>, vector<128x128xbf16>, vector<128x128xbf16>, vector<128x128xbf16>, vector<128x128xbf16>, vector<128x128xbf16>, vector<128x128xbf16>, vector<128x128xbf16>, vector<128x128xbf16> -> vector<128x1152xbf16>
    %c0_99 = arith.constant 0 : index
    %c0_100 = arith.constant 0 : index
    %56 = vector.load %arg7[%c0_99, %c0_100] : memref<1152x128xbf16, #tpu.memory_space<vmem>>, vector<1152x128xbf16>
    %cst_101 = arith.constant dense<0.000000e+00> : vector<128x128xf32>
    %57 = tpu.matmul %55, %56, %cst_101 {dimension_numbers = #tpu.dot_dimension_numbers<[1], [0], [0], [1], [0, 0, 1, 1], [], []>} : vector<128x1152xbf16>, vector<1152x128xbf16>, vector<128x128xf32> -> vector<128x128xf32>
    %c0_102 = arith.constant 0 : index
    %c0_103 = arith.constant 0 : index
    %58 = vector.load %arg8[%c0_102, %c0_103] : memref<1x128xf32, #tpu.memory_space<vmem>>, vector<1x128xf32>
    %59 = vector.broadcast %58 : vector<1x128xf32> to vector<128x128xf32>
    %60 = arith.addf %57, %59 : vector<128x128xf32>
    %c0_104 = arith.constant 0 : index
    %c0_105 = arith.constant 0 : index
    %61 = vector.load %arg9[%c0_104, %c0_105] : memref<128x128xbf16, #tpu.memory_space<vmem>>, vector<128x128xbf16>
    %cst_106 = arith.constant dense<0.000000e+00> : vector<128x128xf32>
    %62 = tpu.matmul %25, %61, %cst_106 {dimension_numbers = #tpu.dot_dimension_numbers<[1], [0], [0], [1], [0, 0, 1, 1], [], []>} : vector<128x128xbf16>, vector<128x128xbf16>, vector<128x128xf32> -> vector<128x128xf32>
    %c0_107 = arith.constant 0 : index
    %c0_108 = arith.constant 0 : index
    %63 = vector.load %arg10[%c0_107, %c0_108] : memref<1x128xf32, #tpu.memory_space<vmem>>, vector<1x128xf32>
    %64 = vector.broadcast %63 : vector<1x128xf32> to vector<128x128xf32>
    %65 = arith.addf %62, %64 : vector<128x128xf32>
    %66 = arith.addf %60, %65 : vector<128x128xf32>
    %cst_109 = arith.constant 0.000000e+00 : f32
    %67 = vector.broadcast %cst_109 : f32 to vector<128x128xf32>
    %68 = arith.maximumf %66, %67 : vector<128x128xf32>
    %69 = vector.shape_cast %68 : vector<128x128xf32> to vector<2x8x8x128xf32>
    %70 = arith.truncf %69 : vector<2x8x8x128xf32> to vector<2x8x8x128xbf16>
    %c0_110 = arith.constant 0 : index
    %c1_111 = arith.constant 1 : index
    %c1_112 = arith.constant 1 : index
    %c0_113 = arith.constant 0 : index
    %71 = vector.load %arg16[%c0_110, %c1_111, %c1_112, %c0_113] : memref<2x10x10x128xbf16, #tpu.memory_space<vmem>>, vector<2x8x8x128xbf16>
    tpu.vector_store %arg16[%c0_110, %c1_111, %c1_112, %c0_113], %70 {strides = array<i32>} : memref<2x10x10x128xbf16, #tpu.memory_space<vmem>>, vector<2x8x8x128xbf16>,
    %c0_114 = arith.constant 0 : index
    %c0_115 = arith.constant 0 : index
    %c0_116 = arith.constant 0 : index
    %c0_117 = arith.constant 0 : index
    %72 = vector.load %arg16[%c0_114, %c0_115, %c0_116, %c0_117] : memref<2x10x10x128xbf16, #tpu.memory_space<vmem>>, vector<2x8x8x128xbf16>
    %73 = vector.shape_cast %72 : vector<2x8x8x128xbf16> to vector<128x128xbf16>
    %c0_118 = arith.constant 0 : index
    %c0_119 = arith.constant 0 : index
    %c1_120 = arith.constant 1 : index
    %c0_121 = arith.constant 0 : index
    %74 = vector.load %arg16[%c0_118, %c0_119, %c1_120, %c0_121] : memref<2x10x10x128xbf16, #tpu.memory_space<vmem>>, vector<2x8x8x128xbf16>
    %75 = vector.shape_cast %74 : vector<2x8x8x128xbf16> to vector<128x128xbf16>
    %c0_122 = arith.constant 0 : index
    %c0_123 = arith.constant 0 : index
    %c2_124 = arith.constant 2 : index
    %c0_125 = arith.constant 0 : index
    %76 = vector.load %arg16[%c0_122, %c0_123, %c2_124, %c0_125] : memref<2x10x10x128xbf16, #tpu.memory_space<vmem>>, vector<2x8x8x128xbf16>
    %77 = vector.shape_cast %76 : vector<2x8x8x128xbf16> to vector<128x128xbf16>
    %c0_126 = arith.constant 0 : index
    %c1_127 = arith.constant 1 : index
    %c0_128 = arith.constant 0 : index
    %c0_129 = arith.constant 0 : index
    %78 = vector.load %arg16[%c0_126, %c1_127, %c0_128, %c0_129] : memref<2x10x10x128xbf16, #tpu.memory_space<vmem>>, vector<2x8x8x128xbf16>
    %79 = vector.shape_cast %78 : vector<2x8x8x128xbf16> to vector<128x128xbf16>
    %c0_130 = arith.constant 0 : index
    %c1_131 = arith.constant 1 : index
    %c1_132 = arith.constant 1 : index
    %c0_133 = arith.constant 0 : index
    %80 = vector.load %arg16[%c0_130, %c1_131, %c1_132, %c0_133] : memref<2x10x10x128xbf16, #tpu.memory_space<vmem>>, vector<2x8x8x128xbf16>
    %81 = vector.shape_cast %80 : vector<2x8x8x128xbf16> to vector<128x128xbf16>
    %c0_134 = arith.constant 0 : index
    %c1_135 = arith.constant 1 : index
    %c2_136 = arith.constant 2 : index
    %c0_137 = arith.constant 0 : index
    %82 = vector.load %arg16[%c0_134, %c1_135, %c2_136, %c0_137] : memref<2x10x10x128xbf16, #tpu.memory_space<vmem>>, vector<2x8x8x128xbf16>
    %83 = vector.shape_cast %82 : vector<2x8x8x128xbf16> to vector<128x128xbf16>
    %c0_138 = arith.constant 0 : index
    %c2_139 = arith.constant 2 : index
    %c0_140 = arith.constant 0 : index
    %c0_141 = arith.constant 0 : index
    %84 = vector.load %arg16[%c0_138, %c2_139, %c0_140, %c0_141] : memref<2x10x10x128xbf16, #tpu.memory_space<vmem>>, vector<2x8x8x128xbf16>
    %85 = vector.shape_cast %84 : vector<2x8x8x128xbf16> to vector<128x128xbf16>
    %c0_142 = arith.constant 0 : index
    %c2_143 = arith.constant 2 : index
    %c1_144 = arith.constant 1 : index
    %c0_145 = arith.constant 0 : index
    %86 = vector.load %arg16[%c0_142, %c2_143, %c1_144, %c0_145] : memref<2x10x10x128xbf16, #tpu.memory_space<vmem>>, vector<2x8x8x128xbf16>
    %87 = vector.shape_cast %86 : vector<2x8x8x128xbf16> to vector<128x128xbf16>
    %c0_146 = arith.constant 0 : index
    %c2_147 = arith.constant 2 : index
    %c2_148 = arith.constant 2 : index
    %c0_149 = arith.constant 0 : index
    %88 = vector.load %arg16[%c0_146, %c2_147, %c2_148, %c0_149] : memref<2x10x10x128xbf16, #tpu.memory_space<vmem>>, vector<2x8x8x128xbf16>
    %89 = vector.shape_cast %88 : vector<2x8x8x128xbf16> to vector<128x128xbf16>
    %90 = tpu.concatenate %73, %75, %77, %79, %81, %83, %85, %87, %89 in 1 : vector<128x128xbf16>, vector<128x128xbf16>, vector<128x128xbf16>, vector<128x128xbf16>, vector<128x128xbf16>, vector<128x128xbf16>, vector<128x128xbf16>, vector<128x128xbf16>, vector<128x128xbf16> -> vector<128x1152xbf16>
    %c0_150 = arith.constant 0 : index
    %c0_151 = arith.constant 0 : index
    %91 = vector.load %arg11[%c0_150, %c0_151] : memref<1152x128xbf16, #tpu.memory_space<vmem>>, vector<1152x128xbf16>
    %cst_152 = arith.constant dense<0.000000e+00> : vector<128x128xf32>
    %92 = tpu.matmul %90, %91, %cst_152 {dimension_numbers = #tpu.dot_dimension_numbers<[1], [0], [0], [1], [0, 0, 1, 1], [], []>} : vector<128x1152xbf16>, vector<1152x128xbf16>, vector<128x128xf32> -> vector<128x128xf32>
    %c0_153 = arith.constant 0 : index
    %c0_154 = arith.constant 0 : index
    %93 = vector.load %arg12[%c0_153, %c0_154] : memref<1x128xf32, #tpu.memory_space<vmem>>, vector<1x128xf32>
    %94 = vector.broadcast %93 : vector<1x128xf32> to vector<128x128xf32>
    %95 = arith.addf %92, %94 : vector<128x128xf32>
    %cst_155 = arith.constant 0.000000e+00 : f32
    %96 = vector.broadcast %cst_155 : f32 to vector<128x128xf32>
    %97 = arith.maximumf %95, %96 : vector<128x128xf32>
    %98 = vector.shape_cast %97 : vector<128x128xf32> to vector<2x8x8x128xf32>
    %99 = arith.truncf %98 : vector<2x8x8x128xf32> to vector<2x8x8x128xbf16>
    %c0_156 = arith.constant 0 : index
    %c1_157 = arith.constant 1 : index
    %c1_158 = arith.constant 1 : index
    %c0_159 = arith.constant 0 : index
    %100 = vector.load %arg16[%c0_156, %c1_157, %c1_158, %c0_159] : memref<2x10x10x128xbf16, #tpu.memory_space<vmem>>, vector<2x8x8x128xbf16>
    tpu.vector_store %arg16[%c0_156, %c1_157, %c1_158, %c0_159], %99 {strides = array<i32>} : memref<2x10x10x128xbf16, #tpu.memory_space<vmem>>, vector<2x8x8x128xbf16>,
    %c0_160 = arith.constant 0 : index
    %c0_161 = arith.constant 0 : index
    %c0_162 = arith.constant 0 : index
    %c0_163 = arith.constant 0 : index
    %101 = vector.load %arg16[%c0_160, %c0_161, %c0_162, %c0_163] : memref<2x10x10x128xbf16, #tpu.memory_space<vmem>>, vector<2x8x8x128xbf16>
    %102 = vector.shape_cast %101 : vector<2x8x8x128xbf16> to vector<128x128xbf16>
    %c0_164 = arith.constant 0 : index
    %c0_165 = arith.constant 0 : index
    %c1_166 = arith.constant 1 : index
    %c0_167 = arith.constant 0 : index
    %103 = vector.load %arg16[%c0_164, %c0_165, %c1_166, %c0_167] : memref<2x10x10x128xbf16, #tpu.memory_space<vmem>>, vector<2x8x8x128xbf16>
    %104 = vector.shape_cast %103 : vector<2x8x8x128xbf16> to vector<128x128xbf16>
    %c0_168 = arith.constant 0 : index
    %c0_169 = arith.constant 0 : index
    %c2_170 = arith.constant 2 : index
    %c0_171 = arith.constant 0 : index
    %105 = vector.load %arg16[%c0_168, %c0_169, %c2_170, %c0_171] : memref<2x10x10x128xbf16, #tpu.memory_space<vmem>>, vector<2x8x8x128xbf16>
    %106 = vector.shape_cast %105 : vector<2x8x8x128xbf16> to vector<128x128xbf16>
    %c0_172 = arith.constant 0 : index
    %c1_173 = arith.constant 1 : index
    %c0_174 = arith.constant 0 : index
    %c0_175 = arith.constant 0 : index
    %107 = vector.load %arg16[%c0_172, %c1_173, %c0_174, %c0_175] : memref<2x10x10x128xbf16, #tpu.memory_space<vmem>>, vector<2x8x8x128xbf16>
    %108 = vector.shape_cast %107 : vector<2x8x8x128xbf16> to vector<128x128xbf16>
    %c0_176 = arith.constant 0 : index
    %c1_177 = arith.constant 1 : index
    %c1_178 = arith.constant 1 : index
    %c0_179 = arith.constant 0 : index
    %109 = vector.load %arg16[%c0_176, %c1_177, %c1_178, %c0_179] : memref<2x10x10x128xbf16, #tpu.memory_space<vmem>>, vector<2x8x8x128xbf16>
    %110 = vector.shape_cast %109 : vector<2x8x8x128xbf16> to vector<128x128xbf16>
    %c0_180 = arith.constant 0 : index
    %c1_181 = arith.constant 1 : index
    %c2_182 = arith.constant 2 : index
    %c0_183 = arith.constant 0 : index
    %111 = vector.load %arg16[%c0_180, %c1_181, %c2_182, %c0_183] : memref<2x10x10x128xbf16, #tpu.memory_space<vmem>>, vector<2x8x8x128xbf16>
    %112 = vector.shape_cast %111 : vector<2x8x8x128xbf16> to vector<128x128xbf16>
    %c0_184 = arith.constant 0 : index
    %c2_185 = arith.constant 2 : index
    %c0_186 = arith.constant 0 : index
    %c0_187 = arith.constant 0 : index
    %113 = vector.load %arg16[%c0_184, %c2_185, %c0_186, %c0_187] : memref<2x10x10x128xbf16, #tpu.memory_space<vmem>>, vector<2x8x8x128xbf16>
    %114 = vector.shape_cast %113 : vector<2x8x8x128xbf16> to vector<128x128xbf16>
    %c0_188 = arith.constant 0 : index
    %c2_189 = arith.constant 2 : index
    %c1_190 = arith.constant 1 : index
    %c0_191 = arith.constant 0 : index
    %115 = vector.load %arg16[%c0_188, %c2_189, %c1_190, %c0_191] : memref<2x10x10x128xbf16, #tpu.memory_space<vmem>>, vector<2x8x8x128xbf16>
    %116 = vector.shape_cast %115 : vector<2x8x8x128xbf16> to vector<128x128xbf16>
    %c0_192 = arith.constant 0 : index
    %c2_193 = arith.constant 2 : index
    %c2_194 = arith.constant 2 : index
    %c0_195 = arith.constant 0 : index
    %117 = vector.load %arg16[%c0_192, %c2_193, %c2_194, %c0_195] : memref<2x10x10x128xbf16, #tpu.memory_space<vmem>>, vector<2x8x8x128xbf16>
    %118 = vector.shape_cast %117 : vector<2x8x8x128xbf16> to vector<128x128xbf16>
    %119 = tpu.concatenate %102, %104, %106, %108, %110, %112, %114, %116, %118 in 1 : vector<128x128xbf16>, vector<128x128xbf16>, vector<128x128xbf16>, vector<128x128xbf16>, vector<128x128xbf16>, vector<128x128xbf16>, vector<128x128xbf16>, vector<128x128xbf16>, vector<128x128xbf16> -> vector<128x1152xbf16>
    %c0_196 = arith.constant 0 : index
    %c0_197 = arith.constant 0 : index
    %120 = vector.load %arg13[%c0_196, %c0_197] : memref<1152x128xbf16, #tpu.memory_space<vmem>>, vector<1152x128xbf16>
    %cst_198 = arith.constant dense<0.000000e+00> : vector<128x128xf32>
    %121 = tpu.matmul %119, %120, %cst_198 {dimension_numbers = #tpu.dot_dimension_numbers<[1], [0], [0], [1], [0, 0, 1, 1], [], []>} : vector<128x1152xbf16>, vector<1152x128xbf16>, vector<128x128xf32> -> vector<128x128xf32>
    %c0_199 = arith.constant 0 : index
    %c0_200 = arith.constant 0 : index
    %122 = vector.load %arg14[%c0_199, %c0_200] : memref<1x128xf32, #tpu.memory_space<vmem>>, vector<1x128xf32>
    %123 = vector.broadcast %122 : vector<1x128xf32> to vector<128x128xf32>
    %124 = arith.addf %121, %123 : vector<128x128xf32>
    %125 = arith.addf %124, %68 : vector<128x128xf32>
    %cst_201 = arith.constant 0.000000e+00 : f32
    %126 = vector.broadcast %cst_201 : f32 to vector<128x128xf32>
    %127 = arith.maximumf %125, %126 : vector<128x128xf32>
    %128 = vector.shape_cast %127 : vector<128x128xf32> to vector<2x8x8x128xf32>
    %129 = arith.truncf %128 : vector<2x8x8x128xf32> to vector<2x8x8x128xbf16>
    %c0_202 = arith.constant 0 : index
    %c0_203 = arith.constant 0 : index
    %c0_204 = arith.constant 0 : index
    %c0_205 = arith.constant 0 : index
    %130 = vector.load %arg15[%c0_202, %c0_203, %c0_204, %c0_205] : memref<2x8x8x128xbf16, #tpu.memory_space<vmem>>, vector<2x8x8x128xbf16>
    tpu.vector_store %arg15[%c0_202, %c0_203, %c0_204, %c0_205], %129 {strides = array<i32>} : memref<2x8x8x128xbf16, #tpu.memory_space<vmem>>, vector<2x8x8x128xbf16>,
    return
  }
  func.func @transform_0(%arg0: i32) -> (i32, i32, i32, i32) {
    %c0_i32 = arith.constant 0 : i32
    %c0_i32_0 = arith.constant 0 : i32
    %c0_i32_1 = arith.constant 0 : i32
    %c0_i32_2 = arith.constant 0 : i32
    return %arg0, %c0_i32, %c0_i32_0, %c0_i32_1 : i32, i32, i32, i32
  }
  func.func @transform_1(%arg0: i32) -> (i32, i32, i32, i32) {
    %c0_i32 = arith.constant 0 : i32
    %c0_i32_0 = arith.constant 0 : i32
    %c0_i32_1 = arith.constant 0 : i32
    %c0_i32_2 = arith.constant 0 : i32
    return %arg0, %c0_i32, %c0_i32_0, %c0_i32_1 : i32, i32, i32, i32
  }
  func.func @transform_2(%arg0: i32) -> (i32, i32, i32, i32) {
    %c0_i32 = arith.constant 0 : i32
    %c0_i32_0 = arith.constant 0 : i32
    %c0_i32_1 = arith.constant 0 : i32
    %c0_i32_2 = arith.constant 0 : i32
    return %arg0, %c0_i32, %c0_i32_0, %c0_i32_1 : i32, i32, i32, i32
  }
  func.func @transform_3(%arg0: i32) -> (i32, i32, i32, i32) {
    %c0_i32 = arith.constant 0 : i32
    %c0_i32_0 = arith.constant 0 : i32
    %c0_i32_1 = arith.constant 0 : i32
    %c0_i32_2 = arith.constant 0 : i32
    return %arg0, %c0_i32, %c0_i32_0, %c0_i32_1 : i32, i32, i32, i32
  }
  func.func @transform_4(%arg0: i32) -> (i32, i32) {
    %c0_i32 = arith.constant 0 : i32
    %c0_i32_0 = arith.constant 0 : i32
    %c0_i32_1 = arith.constant 0 : i32
    return %c0_i32, %c0_i32_0 : i32, i32
  }
  func.func @transform_5(%arg0: i32) -> (i32, i32) {
    %c0_i32 = arith.constant 0 : i32
    %c0_i32_0 = arith.constant 0 : i32
    %c0_i32_1 = arith.constant 0 : i32
    return %c0_i32, %c0_i32_0 : i32, i32
  }
  func.func @transform_6(%arg0: i32) -> (i32, i32) {
    %c0_i32 = arith.constant 0 : i32
    %c0_i32_0 = arith.constant 0 : i32
    %c0_i32_1 = arith.constant 0 : i32
    return %c0_i32, %c0_i32_0 : i32, i32
  }
  func.func @transform_7(%arg0: i32) -> (i32, i32) {
    %c0_i32 = arith.constant 0 : i32
    %c0_i32_0 = arith.constant 0 : i32
    %c0_i32_1 = arith.constant 0 : i32
    return %c0_i32, %c0_i32_0 : i32, i32
  }
  func.func @transform_8(%arg0: i32) -> (i32, i32) {
    %c0_i32 = arith.constant 0 : i32
    %c0_i32_0 = arith.constant 0 : i32
    %c0_i32_1 = arith.constant 0 : i32
    return %c0_i32, %c0_i32_0 : i32, i32
  }
  func.func @transform_9(%arg0: i32) -> (i32, i32) {
    %c0_i32 = arith.constant 0 : i32
    %c0_i32_0 = arith.constant 0 : i32
    %c0_i32_1 = arith.constant 0 : i32
    return %c0_i32, %c0_i32_0 : i32, i32
  }
  func.func @transform_10(%arg0: i32) -> (i32, i32) {
    %c0_i32 = arith.constant 0 : i32
    %c0_i32_0 = arith.constant 0 : i32
    %c0_i32_1 = arith.constant 0 : i32
    return %c0_i32, %c0_i32_0 : i32, i32
  }
  func.func @transform_11(%arg0: i32) -> (i32, i32) {
    %c0_i32 = arith.constant 0 : i32
    %c0_i32_0 = arith.constant 0 : i32
    %c0_i32_1 = arith.constant 0 : i32
    return %c0_i32, %c0_i32_0 : i32, i32
  }
  func.func @transform_12(%arg0: i32) -> (i32, i32) {
    %c0_i32 = arith.constant 0 : i32
    %c0_i32_0 = arith.constant 0 : i32
    %c0_i32_1 = arith.constant 0 : i32
    return %c0_i32, %c0_i32_0 : i32, i32
  }
  func.func @transform_13(%arg0: i32) -> (i32, i32) {
    %c0_i32 = arith.constant 0 : i32
    %c0_i32_0 = arith.constant 0 : i32
    %c0_i32_1 = arith.constant 0 : i32
    return %c0_i32, %c0_i32_0 : i32, i32
  }
  func.func @transform_14(%arg0: i32) -> (i32, i32, i32, i32) {
    %c0_i32 = arith.constant 0 : i32
    %c0_i32_0 = arith.constant 0 : i32
    %c0_i32_1 = arith.constant 0 : i32
    %c0_i32_2 = arith.constant 0 : i32
    return %arg0, %c0_i32, %c0_i32_0, %c0_i32_1 : i32, i32, i32, i32
  }
}

</mosaic_0001>

<bundles_post_ra>
// kernel: tpu_custom_call.1
= control target key start
LH: loop header
LB: loop body
LE: loop exit
PB: predicated region body
PF: predicated region fallthrough
CT: control target
= control target key end

     0   :  { %19 = vsyncpa [#allocation4], 0  ;;  %s16833_s0 = inlined_call_operand.vmem [shape: bf16[2,9,9,128], index: 0, kind: input, shape index: {}]   ;;  %s16834_s1 = inlined_call_operand.vmem [shape: bf16[2,9,9,128], index: 1, kind: input, shape index: {}]   ;;  %s16835_s2 = inlined_call_operand.vmem [shape: bf16[2,9,9,128], index: 2, kind: input, shape index: {}]   ;;  %s16836_s3 = inlined_call_operand.vmem [shape: bf16[2,9,9,128], index: 3, kind: input, shape index: {}]   ;;  %s16837_s4 = inlined_call_operand.vmem [shape: bf16[1152,128], index: 4, kind: input, shape index: {}]   ;;  %s16838_s5 = inlined_call_operand.vmem [shape: f32[1,128], index: 5, kind: input, shape index: {}]   ;;  %s16839_s6 = inlined_call_operand.hbm [shape: bf16[1152,128], index: 6, kind: input, shape index: {}]   ;;  %s16840_s7 = inlined_call_operand.vmem [shape: f32[1,128], index: 7, kind: input, shape index: {}]   ;;  %s16841_s8 = inlined_call_operand.vmem [shape: bf16[128,128], index: 8, kind: input, shape index: {}]   ;;  %s16842_s9 = inlined_call_operand.vmem [shape: f32[1,128], index: 9, kind: input, shape index: {}]   ;;  %s16843_s10 = inlined_call_operand.hbm [shape: bf16[1152,128], index: 10, kind: input, shape index: {}]   ;;  %s16844_s11 = inlined_call_operand.vmem [shape: f32[1,128], index: 11, kind: input, shape index: {}]   ;;  %s16845_s12 = inlined_call_operand.hbm [shape: bf16[1152,128], index: 12, kind: input, shape index: {}]   ;;  %s16846_s13 = inlined_call_operand.vmem [shape: f32[1,128], index: 13, kind: input, shape index: {}]   ;;  %s16847_s14 = inlined_call_operand.hbm [shape: bf16[2,8,8,128], index: 14, kind: output, shape index: {}]  }
   0x1   :  { %20 = vsyncpa [#allocation7], 0 }
   0x2   :  { %21 = vsyncpa [#allocation5], 0  ;;  %s57_s15 = sshll.u32 %s16843_s10, 4  ;;  %s13407_s16 = smov [#allocation6]   ;;  %s58_s15 = int_to_ptr.hbm [resolvable:$true] %s57_s15 }
   0x3   :  { %s59_s17 = sshll.u32 %s13407_s16, 4  ;;  %s38_s20 = sshll.u32 %s16839_s6, 4  ;;  %s60_s17 = int_to_ptr.vmem [resolvable:$true] %s59_s17  ;;  %s39_s20 = int_to_ptr.hbm [resolvable:$true] %s38_s20 }
   0x4   :  { %s13408_s21 = smov 64   ;;  %s13409_s22 = smov 4  }
   0x5   :  { %65 = dma.hbm_to_vmem [thread:$0]  %s58_s15, 9216, %s60_s17, [#allocation7], %s13408_s21, %s13408_s21, %s13409_s22  }
   0x6   :  { %s13410_s23 = smov [#allocation3]   ;;  %s72_s10 = sshll.u32 %s16845_s12, 4  ;;  %s73_s10 = int_to_ptr.hbm [resolvable:$true] %s72_s10 }
   0x7   :  { %s40_s24 = sshll.u32 %s13410_s23, 4  ;;  %s13411_s6 = smov [#allocation8]   ;;  %s41_s24 = int_to_ptr.vmem [resolvable:$true] %s40_s24 }
   0x8   :  { %46 = dma.hbm_to_vmem [thread:$0]  %s39_s20, 9216, %s41_s24, [#allocation4], %s13408_s21, %s13408_s21, %s13409_s22  }
   0x9   :  { %s74_s27 = sshll.u32 %s13411_s6, 4  ;;  %s75_s27 = int_to_ptr.vmem [resolvable:$true] %s74_s27 }
   0xa   :  { %80 = dma.hbm_to_vmem [thread:$0]  %s73_s10, 9216, %s75_s27, [#allocation7], %s13408_s21, %s13408_s21, %s13409_s22  }
   0xb   :  { %13401 = dma.done.wait [#allocation4], 9216  }
   0xc   :  { %13402 = vsyncadd [#allocation4], 4294958080 }
   0xd   :  { %13403 = dma.done.wait [#allocation7], 18432  }
   0xe   :  { %13404 = vsyncadd [#allocation7], 4294948864  ;;  %v12836_v0 = vld [vmem:[%s16837_s4 + $0x38] sm:$0xff]  ;;  %v12835_v1 = vld [vmem:[%s16837_s4 + $0x30] sm:$0xff]  ;;  %vm278_vm0 = vsmask.f32 3328 }
   0xf   :  { %13244 = vmatpush.bf16.msra.mxu1 %v12836_v0  ;;  %13245 = vmatpush.bf16.msra.mxu2 %v12836_v0  ;;  %v12834_v2 = vld [vmem:[%s16837_s4 + $0x28] sm:$0xff]  ;;  %v12833_v3 = vld [vmem:[%s16837_s4 + $0x20] sm:$0xff]  ;;  %v12832_v4 = vld [vmem:[%s16837_s4 + $0x18] sm:$0xff]  ;;  %vm279_vm1 = vsmask.f32 7440  ;;  %vm105_vm3 = vcmask 1040384  }
  0x10   :  { %13246 = vmatpush.bf16.msra.mxu3 %v12836_v0  ;;  %2015 = vmatpush.bf16.msra.mxu0 %v12836_v0  ;;  %v12831_v5 = vld [vmem:[%s16837_s4 + $0x10] sm:$0xff]  ;;  %v12830_v6 = vld [vmem:[%s16837_s4 + $0x8] sm:$0xff]  ;;  %v12829_v7 = vld [vmem:[%s16837_s4] sm:$0xff]  ;;  %vm106_vm4 = vsmask.f32 256  ;;  %vm2649_vm8 = vcmask 1043456  }
  0x11   :  { %v10983_v8 = vld [vmem:[%s16833_s0 + $0x20] sm:$0xf]  ;;  %v12783_v9 = vld [vmem:[%s16833_s0 + $0x24] sm:$0xf0]  ;;  %v12785_v11 = vld [vmem:[%s16833_s0 + $0x4c] sm:$0xf0] }
  0x12   :  { %v10991_v10 = vld [vmem:[%s16833_s0 + $0x48] sm:$0xf]  ;;  %v12787_v13 = vld [vmem:[%s16833_s0 + $0x6c] sm:$0xf0]  ;;  %v10975_v14 = vld [vmem:[%s16833_s0] sm:$0xf]  ;;  %v10984_v18 = vor.u32 %v12783_v9, %v10983_v8 }
  0x13   :  { %13247 = vmatpush.bf16.msra.mxu1 %v12835_v1  ;;  %13248 = vmatpush.bf16.msra.mxu2 %v12835_v1  ;;  %v10999_v12 = vld [vmem:[%s16833_s0 + $0x68] sm:$0xf]  ;;  %v12852_v16 = vld [vmem:[%s16837_s4 + $0xb8] sm:$0xff]  ;;  %v10992_v19 = vor.u32 %v12785_v11, %v10991_v10  ;;  %v12851_v24 = vld [vmem:[%s16837_s4 + $0xb0] sm:$0xff]  ;;  %vm168_vm6 = vsmask.f32 7938 }
  0x14   :  { %13249 = vmatpush.bf16.msra.mxu3 %v12835_v1  ;;  %2016 = vmatpush.bf16.msra.mxu0 %v12835_v1  ;;  %v12781_v15 = vld [vmem:[%s16833_s0 + $0x4] sm:$0xf0]  ;;  %v12844_v17 = vld [vmem:[%s16837_s4 + $0x78] sm:$0xff]  ;;  %v11000_v20 = vor.u32 %v12787_v13, %v10999_v12  ;;  %v12843_v25 = vld [vmem:[%s16837_s4 + $0x70] sm:$0xff]  ;;  %vm3051_vm10 = vcmask 1042432   ;;  %vm3052_vm11 = vcmask 1046532  }
  0x15   :  { %v10976_v21 = vor.u32 %v12781_v15, %v10975_v14  ;;  %v12860_v22 = vld [vmem:[%s16837_s4 + $0xf8] sm:$0xff]  ;;  %v230_v26 = vld [vmem:[%s16833_s0] sm:$0xf]  ;;  %v231_v27 = vld [vmem:[%s16833_s0 + $0x8] sm:$0xf]  ;;  %s10911_s25 = sshll.u32 %s16847_s14, 4  ;;  %s10912_s25 = int_to_ptr.hbm [resolvable:$true] %s10911_s25 }
  0x16   :  { %v12868_v23 = vld [vmem:[%s16837_s4 + $0x138] sm:$0xff]  ;;  %v12859_v28 = vld [vmem:[%s16837_s4 + $0xf0] sm:$0xff]  ;;  %v12850_v30 = vld [vmem:[%s16837_s4 + $0xa8] sm:$0xff]  ;;  %v282_v32 = vshrl.u32 %v230_v26, 16  ;;  %v285_v33 = vshll.u32 %v230_v26, 16  ;;  %v296_v34 = vshrl.u32 %v231_v27, 16 }
  0x17   :  { %13250 = vmatpush.bf16.msra.mxu1 %v12834_v2  ;;  %13251 = vmatpush.bf16.msra.mxu2 %v12834_v2  ;;  %v12867_v29 = vld [vmem:[%s16837_s4 + $0x130] sm:$0xff]  ;;  %v12842_v31 = vld [vmem:[%s16837_s4 + $0x68] sm:$0xff]  ;;  %v299_v35 = vshll.u32 %v231_v27, 16  ;;  %v12849_v38 = vld [vmem:[%s16837_s4 + $0xa0] sm:$0xff] }
  0x18   :  { %13252 = vmatpush.bf16.msra.mxu3 %v12834_v2  ;;  %2017 = vmatpush.bf16.msra.mxu0 %v12834_v2  ;;  %v12858_v36 = vld [vmem:[%s16837_s4 + $0xe8] sm:$0xff]  ;;  %v12841_v39 = vld [vmem:[%s16837_s4 + $0x60] sm:$0xff]  ;;  %v10987_v40 = vld [vmem:[%s16833_s0 + $0x30] sm:$0xf]  ;;  %v284_v46 = vrot.slane %v282_v32, 4  ;;  %v287_v47 = vrot.slane %v285_v33, 5 }
  0x19   :  { %v12866_v37 = vld [vmem:[%s16837_s4 + $0x128] sm:$0xff]  ;;  %v12784_v41 = vld [vmem:[%s16833_s0 + $0x34] sm:$0xf0]  ;;  %v12857_v43 = vld [vmem:[%s16837_s4 + $0xe0] sm:$0xff]  ;;  %v298_v48 = vrot.slane %v296_v34, 4  ;;  %v301_v49 = vrot.slane %v299_v35, 5 }
  0x1a   :  { %v10995_v42 = vld [vmem:[%s16833_s0 + $0x58] sm:$0xf]  ;;  %v12865_v44 = vld [vmem:[%s16837_s4 + $0x120] sm:$0xff]  ;;  %v263_v52 = vld [vmem:[%s16833_s0 + $0xc] sm:$0x1]  ;;  %v10988_v56 = vor.u32 %v12784_v41, %v10987_v40  ;;  %v288_v60 = vor.u32 %v287_v47, %v284_v46 }
  0x1b   :  { %13253 = vmatpush.bf16.msra.mxu1 %v12833_v3  ;;  %13254 = vmatpush.bf16.msra.mxu2 %v12833_v3  ;;  %v12786_v45 = vld [vmem:[%s16833_s0 + $0x5c] sm:$0xf0]  ;;  %v11003_v50 = vld [vmem:[%s16833_s0 + $0x78] sm:$0xf]  ;;  %v262_v51 = vld [vmem:[%s16833_s0 + $0x4] sm:$0x1]  ;;  %v302_v62 = vor.u32 %v301_v49, %v298_v48 }
  0x1c   :  { %13255 = vmatpush.bf16.msra.mxu3 %v12833_v3  ;;  %2018 = vmatpush.bf16.msra.mxu0 %v12833_v3  ;;  %v12788_v53 = vld [vmem:[%s16833_s0 + $0x7c] sm:$0xf0]  ;;  %v10979_v54 = vld [vmem:[%s16833_s0 + $0x10] sm:$0xf]  ;;  %v12782_v55 = vld [vmem:[%s16833_s0 + $0x14] sm:$0xf0]  ;;  %v10996_v57 = vor.u32 %v12786_v45, %v10995_v42 }
  0x1d   :  { %v12848_v58 = vld [vmem:[%s16837_s4 + $0x98] sm:$0xff]  ;;  %v291_v61 = vshll.u32 %v262_v51, 16  ;;  %v305_v63 = vshll.u32 %v263_v52, 16  ;;  %v11004_v0 = vor.u32 %v12788_v53, %v11003_v50  ;;  %v10980_v1 = vor.u32 %v12782_v55, %v10979_v54  ;;  %v12855_v10 = vld [vmem:[%s16837_s4 + $0xd0] sm:$0xff]  ;;  %vm13661_vm2 = vmor %vm278_vm0, %vm279_vm1 }
  0x1e   :  { %v12840_v59 = vld [vmem:[%s16837_s4 + $0x58] sm:$0xff]  ;;  %v303_v8 = vrot.slane %v302_v62, 4  ;;  %v12863_v12 = vld [vmem:[%s16837_s4 + $0x110] sm:$0xff]  ;;  %v12846_v15 = vld [vmem:[%s16837_s4 + $0x88] sm:$0xff] }
  0x1f   :  { %13256 = vmatpush.bf16.msra.mxu1 %v12832_v4  ;;  %13257 = vmatpush.bf16.msra.mxu2 %v12832_v4  ;;  %v12856_v2 = vld [vmem:[%s16837_s4 + $0xd8] sm:$0xff]  ;;  %v307_v9 = vrot.slane %v305_v63, 5  ;;  %v232_v13 = vld [vmem:[%s16833_s0 + $0x10] sm:$0xf]  ;;  %v12837_v26 = vld [vmem:[%s16837_s4 + $0x40] sm:$0xff] }
  0x20   :  { %13258 = vmatpush.bf16.msra.mxu3 %v12832_v4  ;;  %2019 = vmatpush.bf16.msra.mxu0 %v12832_v4  ;;  %v12864_v3 = vld [vmem:[%s16837_s4 + $0x118] sm:$0xff]  ;;  %v12847_v4 = vld [vmem:[%s16837_s4 + $0x90] sm:$0xff]  ;;  %v11007_v27 = vld [vmem:[%s16834_s1] sm:$0xf] }
  0x21   :  { %v233_v14 = vld [vmem:[%s16833_s0 + $0x18] sm:$0xf]  ;;  %v11071_v35 = vld [vmem:[%s16836_s3] sm:$0xf]  ;;  %v12883_v55 = vld [vmem:[%s16837_s4 + $0x1b0] sm:$0xff] }
  0x22   :  { %v12884_v34 = vld [vmem:[%s16837_s4 + $0x1b8] sm:$0xff]  ;;  %v12861_v42 = vld [vmem:[%s16837_s4 + $0x100] sm:$0xff]  ;;  %vm14511_vm5 = vmand %vm105_vm3, %vm106_vm4 }
  0x23   :  { %13259 = vmatpush.bf16.msra.mxu1 %v12831_v5  ;;  %13260 = vmatpush.bf16.msra.mxu2 %v12831_v5  ;;  %v12892_v46 = vld [vmem:[%s16837_s4 + $0x1f8] sm:$0xff]  ;;  %v234_v63 = vld [vmem:[%s16833_s0 + $0x20] sm:$0xf]  ;;  %vm14525_vm7 = vmand %vm105_vm3, %vm168_vm6 }
  0x24   :  { %13261 = vmatpush.bf16.msra.mxu3 %v12831_v5  ;;  %2020 = vmatpush.bf16.msra.mxu0 %v12831_v5  ;;  %v12839_v5 = vld [vmem:[%s16837_s4 + $0x50] sm:$0xff]  ;;  %v12900_v47 = vld [vmem:[%s16837_s4 + $0x238] sm:$0xff]  ;;  %vm14583_vm9 = vmand %vm2649_vm8, %vm168_vm6 }
  0x25   :  { %vm14599_vm12 = vmor %vm3051_vm10, %vm3052_vm11 }
  0x27   :  { %13262 = vmatpush.bf16.msra.mxu1 %v12830_v6  ;;  %13263 = vmatpush.bf16.msra.mxu2 %v12830_v6 }
  0x28   :  { %13264 = vmatpush.bf16.msra.mxu3 %v12830_v6  ;;  %2021 = vmatpush.bf16.msra.mxu0 %v12830_v6  ;;  %v289_v6 = vrot.slane %v288_v60, 4 }
  0x2b   :  { %13265 = vmatpush.bf16.msra.mxu1 %v12829_v7  ;;  %13266 = vmatpush.bf16.msra.mxu2 %v12829_v7 }
  0x2c   :  { %13267 = vmatpush.bf16.msra.mxu3 %v12829_v7  ;;  %2022 = vmatpush.bf16.msra.mxu0 %v12829_v7  ;;  %v293_v7 = vrot.slane %v291_v61, 5 }
  0x2e   :  { %2033 = vmatmul.bf16.vlgmr.msra.gmra.mxu1 %v10984_v18  ;;  %2043 = vmatmul.bf16.vlgmr.msra.gmra.mxu2 %v10992_v19  ;;  %v308_v18 = vsel %vm13661_vm2, %v303_v8, %v307_v9  ;;  %v12854_v19 = vld [vmem:[%s16837_s4 + $0xc8] sm:$0xff] }
  0x2f   :  { %2113 = vmatpush.bf16.msrb.mxu2 %v12852_v16  ;;  %2064 = vmatpush.bf16.msrb.mxu1 %v12844_v17  ;;  %v12838_v16 = vld [vmem:[%s16837_s4 + $0x48] sm:$0xff]  ;;  %v294_v17 = vsel %vm13661_vm2, %v289_v6, %v293_v7  ;;  %v1148_v33 = vunpack.c.l.b16 %v308_v18  ;;  %v341_v6 = vshll.u32 %v234_v63, 16 }
  0x30   :  { %2053 = vmatmul.bf16.vlgmr.msra.gmra.mxu3 %v11000_v20  ;;  %2023 = vmatmul.bf16.vlgmr.msra.gmra.mxu0 %v10976_v21  ;;  %v12862_v20 = vld [vmem:[%s16837_s4 + $0x108] sm:$0xff]  ;;  %v310_v21 = vshrl.u32 %v232_v13, 16  ;;  %v1147_v32 = vunpack.c.l.b16 %v294_v17 }
  0x31   :  { %2162 = vmatpush.bf16.msrb.mxu3 %v12860_v22  ;;  %2211 = vmatpush.bf16.msrb.mxu0 %v12868_v23  ;;  %v313_v22 = vshll.u32 %v232_v13, 16  ;;  %v324_v23 = vshrl.u32 %v233_v14, 16  ;;  %v12790_v13 = vld [vmem:[%s16834_s1 + $0x14] sm:$0xf0]  ;;  %v343_v18 = vrot.slane %v341_v6, 5 }
  0x32   :  { %v1163_v48 = vpack.c.b16 %v1148_v33, %v1147_v32 }
  0x33   :  { %2114 = vmatpush.bf16.msrb.mxu2 %v12851_v24  ;;  %2065 = vmatpush.bf16.msrb.mxu1 %v12843_v25  ;;  %v327_v24 = vshll.u32 %v233_v14, 16  ;;  %v12845_v25 = vld [vmem:[%s16837_s4 + $0x80] sm:$0xff]  ;;  %v326_v40 = vrot.slane %v324_v23, 4  ;;  %v12806_v23 = vld [vmem:[%s16836_s3 + $0x14] sm:$0xf0] }
  0x35   :  { %2163 = vmatpush.bf16.msrb.mxu3 %v12859_v28  ;;  %2212 = vmatpush.bf16.msrb.mxu0 %v12867_v29  ;;  %v12789_v28 = vld [vmem:[%s16834_s1 + $0x4] sm:$0xf0]  ;;  %v11039_v29 = vld [vmem:[%s16835_s2] sm:$0xf]  ;;  %v329_v41 = vrot.slane %v327_v24, 5 }
  0x36   :  { %v11008_v45 = vor.u32 %v12789_v28, %v11007_v27  ;;  %v266_v24 = vld [vmem:[%s16833_s0 + $0x24] sm:$0x1] }
  0x37   :  { %2115 = vmatpush.bf16.msrb.mxu2 %v12850_v30  ;;  %2066 = vmatpush.bf16.msrb.mxu1 %v12842_v31  ;;  %v12797_v30 = vld [vmem:[%s16835_s2 + $0x4] sm:$0xf0]  ;;  %v12853_v31 = vld [vmem:[%s16837_s4 + $0xc0] sm:$0xff]  ;;  %v330_v53 = vor.u32 %v329_v41, %v326_v40 }
  0x38   :  { %v11040_v49 = vor.u32 %v12797_v30, %v11039_v29  ;;  %v12889_v40 = vld [vmem:[%s16837_s4 + $0x1e0] sm:$0xff] }
  0x39   :  { %2164 = vmatpush.bf16.msrb.mxu3 %v12858_v36  ;;  %2213 = vmatpush.bf16.msrb.mxu0 %v12866_v37  ;;  %v12876_v36 = vld [vmem:[%s16837_s4 + $0x178] sm:$0xff]  ;;  %v12805_v37 = vld [vmem:[%s16836_s3 + $0x4] sm:$0xf0]  ;;  %v331_v61 = vrot.slane %v330_v53, 4  ;;  %v12873_v41 = vld [vmem:[%s16837_s4 + $0x160] sm:$0xff] }
  0x3a   :  { %v13738_v50 = vor.u32 %v12805_v37, %v11071_v35  ;;  %v236_v35 = vld [vmem:[%s16833_s0 + $0x30] sm:$0xf] }
  0x3b   :  { %2116 = vmatpush.bf16.msrb.mxu2 %v12849_v38  ;;  %2067 = vmatpush.bf16.msrb.mxu1 %v12841_v39  ;;  %v312_v38 = vrot.slane %v310_v21, 4  ;;  %v315_v39 = vrot.slane %v313_v22, 5 }
  0x3d   :  { %2165 = vmatpush.bf16.msrb.mxu3 %v12857_v43  ;;  %2214 = vmatpush.bf16.msrb.mxu0 %v12865_v44  ;;  %v264_v43 = vld [vmem:[%s16833_s0 + $0x14] sm:$0x1]  ;;  %v265_v44 = vld [vmem:[%s16833_s0 + $0x1c] sm:$0x1]  ;;  %v316_v51 = vor.u32 %v315_v39, %v312_v38  ;;  %v12881_v39 = vld [vmem:[%s16837_s4 + $0x1a0] sm:$0xff] }
  0x3e   :  { %2038 = vmatmul.bf16.gmra.mxu1 %v10988_v56  ;;  %2048 = vmatmul.bf16.gmra.mxu2 %v10996_v57  ;;  %v319_v52 = vshll.u32 %v264_v43, 16  ;;  %v333_v54 = vshll.u32 %v265_v44, 16  ;;  %v12875_v56 = vld [vmem:[%s16837_s4 + $0x170] sm:$0xff]  ;;  %v12897_v43 = vld [vmem:[%s16837_s4 + $0x220] sm:$0xff]  ;;  %v366_v44 = vshrl.u32 %v236_v35, 16 }
  0x3f   :  { %2117 = vmatpush.bf16.msrb.mxu2 %v12848_v58  ;;  %2068 = vmatpush.bf16.msrb.mxu1 %v12840_v59  ;;  %v12891_v57 = vld [vmem:[%s16837_s4 + $0x1f0] sm:$0xff]  ;;  %v317_v59 = vrot.slane %v316_v51, 4  ;;  %v11015_v51 = vld [vmem:[%s16834_s1 + $0x20] sm:$0xf] }
  0x40   :  { %2058 = vmatmul.bf16.gmra.mxu3 %v11004_v0  ;;  %2028 = vmatmul.bf16.gmra.mxu0 %v10980_v1  ;;  %v12899_v58 = vld [vmem:[%s16837_s4 + $0x230] sm:$0xff]  ;;  %v321_v60 = vrot.slane %v319_v52, 5  ;;  %v335_v62 = vrot.slane %v333_v54, 5  ;;  %v235_v0 = vld [vmem:[%s16833_s0 + $0x28] sm:$0xf] }
  0x41   :  { %2166 = vmatpush.bf16.msrb.mxu3 %v12856_v2  ;;  %2215 = vmatpush.bf16.msrb.mxu0 %v12864_v3  ;;  %v12882_v1 = vld [vmem:[%s16837_s4 + $0x1a8] sm:$0xff]  ;;  %v352_v9 = vshrl.u32 %v235_v0, 16 }
  0x42   :  { %v12874_v2 = vld [vmem:[%s16837_s4 + $0x168] sm:$0xff]  ;;  %v322_v7 = vsel %vm13661_vm2, %v317_v59, %v321_v60  ;;  %v336_v8 = vsel %vm13661_vm2, %v331_v61, %v335_v62  ;;  %v11079_v59 = vld [vmem:[%s16836_s3 + $0x20] sm:$0xf] }
  0x43   :  { %2118 = vmatpush.bf16.msrb.mxu2 %v12847_v4  ;;  %2069 = vmatpush.bf16.msrb.mxu1 %v12839_v5  ;;  %v12890_v3 = vld [vmem:[%s16837_s4 + $0x1e8] sm:$0xff]  ;;  %v338_v5 = vshrl.u32 %v234_v63, 16  ;;  %v1149_v14 = vunpack.c.l.b16 %v322_v7  ;;  %v354_v21 = vrot.slane %v352_v9, 4  ;;  %v268_v63 = vld [vmem:[%s16833_s0 + $0x34] sm:$0x1] }
  0x44   :  { %v12898_v4 = vld [vmem:[%s16837_s4 + $0x228] sm:$0xff]  ;;  %v375_v6 = vshll.u32 %v268_v63, 16 }
  0x45   :  { %2167 = vmatpush.bf16.msrb.mxu3 %v12855_v10  ;;  %2216 = vmatpush.bf16.msrb.mxu0 %v12863_v12  ;;  %v355_v10 = vshll.u32 %v235_v0, 16  ;;  %v11011_v12 = vld [vmem:[%s16834_s1 + $0x10] sm:$0xf]  ;;  %v340_v17 = vrot.slane %v338_v5, 4  ;;  %v12791_v52 = vld [vmem:[%s16834_s1 + $0x24] sm:$0xf0] }
  0x46   :  { %v12807_v62 = vld [vmem:[%s16836_s3 + $0x24] sm:$0xf0]  ;;  %v269_v0 = vld [vmem:[%s16833_s0 + $0x3c] sm:$0x1] }
  0x47   :  { %2119 = vmatpush.bf16.msrb.mxu2 %v12846_v15  ;;  %2070 = vmatpush.bf16.msrb.mxu1 %v12838_v16  ;;  %v1150_v15 = vunpack.c.l.b16 %v336_v8  ;;  %v11043_v16 = vld [vmem:[%s16835_s2 + $0x10] sm:$0xf]  ;;  %v357_v22 = vrot.slane %v355_v10, 5  ;;  %v344_v29 = vor.u32 %v343_v18, %v340_v17  ;;  %v13848_v5 = vor.u32 %v12807_v62, %v11079_v59  ;;  %v238_v10 = vld [vmem:[%s16833_s0 + $0x48] sm:$0xf]  ;;  %v12872_v17 = vld [vmem:[%s16837_s4 + $0x158] sm:$0xff] }
  0x48   :  { %v389_v8 = vshll.u32 %v269_v0, 16  ;;  %v239_v18 = vld [vmem:[%s16833_s0 + $0x50] sm:$0xf] }
  0x49   :  { %2168 = vmatpush.bf16.msrb.mxu3 %v12854_v19  ;;  %2217 = vmatpush.bf16.msrb.mxu0 %v12862_v20  ;;  %v12798_v19 = vld [vmem:[%s16835_s2 + $0x14] sm:$0xf0]  ;;  %v11075_v20 = vld [vmem:[%s16836_s3 + $0x10] sm:$0xf]  ;;  %v1164_v27 = vpack.c.b16 %v1150_v15, %v1149_v14  ;;  %v358_v32 = vor.u32 %v357_v22, %v354_v21  ;;  %v397_v21 = vshll.u32 %v238_v10, 16 }
  0x4a   :  { %v11044_v28 = vor.u32 %v12798_v19, %v11043_v16  ;;  %v13799_v30 = vor.u32 %v12806_v23, %v11075_v20  ;;  %v391_v14 = vrot.slane %v389_v8, 5  ;;  %v12880_v15 = vld [vmem:[%s16837_s4 + $0x198] sm:$0xff]  ;;  %v394_v20 = vshrl.u32 %v238_v10, 16  ;;  %v12895_v59 = vld [vmem:[%s16837_s4 + $0x210] sm:$0xff]  ;;  %v273_v10 = vld [vmem:[%s16833_s0 + $0x64] sm:$0x1] }
  0x4b   :  { %2120 = vmatpush.bf16.msrb.mxu2 %v12845_v25  ;;  %2071 = vmatpush.bf16.msrb.mxu1 %v12837_v26  ;;  %v267_v25 = vld [vmem:[%s16833_s0 + $0x2c] sm:$0x1]  ;;  %v11012_v26 = vor.u32 %v12790_v13, %v11011_v12  ;;  %v359_v37 = vrot.slane %v358_v32, 4  ;;  %v377_v12 = vrot.slane %v375_v6, 5  ;;  %v12888_v16 = vld [vmem:[%s16837_s4 + $0x1d8] sm:$0xff] }
  0x4c   :  { %v361_v33 = vshll.u32 %v267_v25, 16  ;;  %v12896_v19 = vld [vmem:[%s16837_s4 + $0x218] sm:$0xff]  ;;  %v411_v25 = vshll.u32 %v239_v18, 16  ;;  %v396_v32 = vrot.slane %v394_v20, 4 }
  0x4d   :  { %2169 = vmatpush.bf16.msrb.mxu3 %v12853_v31  ;;  %2218 = vmatpush.bf16.msrb.mxu0 %v12861_v42  ;;  %v347_v31 = vshll.u32 %v266_v24, 16  ;;  %v237_v42 = vld [vmem:[%s16833_s0 + $0x38] sm:$0xf]  ;;  %v408_v24 = vshrl.u32 %v239_v18, 16 }
  0x4e   :  { %2072 = vmatmul.bf16.vlgmr.msrb.gmra.mxu1 %v11008_v45  ;;  %2121 = vmatmul.bf16.vlgmr.msrb.gmra.mxu2 %v1163_v48  ;;  %v363_v38 = vrot.slane %v361_v33, 5  ;;  %v369_v45 = vshll.u32 %v236_v35, 16  ;;  %v380_v48 = vshrl.u32 %v237_v42, 16  ;;  %v399_v33 = vrot.slane %v397_v21, 5  ;;  %v11083_v35 = vld [vmem:[%s16836_s3 + $0x30] sm:$0xf] }
  0x4f   :  { %2309 = vmatpush.bf16.msra.mxu2 %v12884_v34  ;;  %2260 = vmatpush.bf16.msra.mxu1 %v12876_v36  ;;  %v345_v34 = vrot.slane %v344_v29, 4  ;;  %v349_v36 = vrot.slane %v347_v31, 5  ;;  %v11051_v31 = vld [vmem:[%s16835_s2 + $0x30] sm:$0xf]  ;;  %v445_v21 = vshll.u32 %v273_v10, 16 }
  0x50   :  { %2170 = vmatmul.bf16.vlgmr.msrb.gmra.mxu3 %v11040_v49  ;;  %2219 = vmatmul.bf16.vlgmr.msrb.gmra.mxu0 %v13738_v50  ;;  %v383_v49 = vshll.u32 %v237_v42, 16  ;;  %v382_v60 = vrot.slane %v380_v48, 4  ;;  %v244_v10 = vld [vmem:[%s16833_s0 + $0x78] sm:$0xf] }
  0x51   :  { %2358 = vmatpush.bf16.msra.mxu3 %v12892_v46  ;;  %2407 = vmatpush.bf16.msra.mxu0 %v12900_v47  ;;  %v350_v46 = vsel %vm13661_vm2, %v345_v34, %v349_v36  ;;  %v364_v47 = vsel %vm13661_vm2, %v359_v37, %v363_v38  ;;  %v12800_v34 = vld [vmem:[%s16835_s2 + $0x34] sm:$0xf0]  ;;  %v410_v36 = vrot.slane %v408_v24, 4  ;;  %v413_v37 = vrot.slane %v411_v25, 5 }
  0x52   :  { %v1151_v53 = vunpack.c.l.b16 %v350_v46  ;;  %v1152_v54 = vunpack.c.l.b16 %v364_v47  ;;  %v385_v61 = vrot.slane %v383_v49, 5  ;;  %v12808_v38 = vld [vmem:[%s16836_s3 + $0x34] sm:$0xf0] }
  0x53   :  { %2310 = vmatpush.bf16.msra.mxu2 %v12883_v55  ;;  %2261 = vmatpush.bf16.msra.mxu1 %v12875_v56  ;;  %v11047_v55 = vld [vmem:[%s16835_s2 + $0x20] sm:$0xf]  ;;  %v368_v56 = vrot.slane %v366_v44, 4  ;;  %v400_v44 = vor.u32 %v399_v33, %v396_v32  ;;  %v414_v47 = vor.u32 %v413_v37, %v410_v36  ;;  %v243_v32 = vld [vmem:[%s16833_s0 + $0x70] sm:$0xf]  ;;  %v12878_v33 = vld [vmem:[%s16837_s4 + $0x188] sm:$0xff] }
  0x54   :  { %v386_v7 = vor.u32 %v385_v61, %v382_v60 }
  0x55   :  { %2359 = vmatpush.bf16.msra.mxu3 %v12891_v57  ;;  %2408 = vmatpush.bf16.msra.mxu0 %v12899_v58  ;;  %v371_v57 = vrot.slane %v369_v45, 5  ;;  %v12799_v58 = vld [vmem:[%s16835_s2 + $0x24] sm:$0xf0]  ;;  %v13897_v45 = vor.u32 %v12808_v38, %v11083_v35  ;;  %v401_v49 = vrot.slane %v400_v44, 4 }
  0x56   :  { %v387_v13 = vrot.slane %v386_v7, 4 }
  0x57   :  { %2311 = vmatpush.bf16.msra.mxu2 %v12882_v1  ;;  %2262 = vmatpush.bf16.msra.mxu1 %v12874_v2  ;;  %v11016_v1 = vor.u32 %v12791_v52, %v11015_v51  ;;  %v1165_v2 = vpack.c.b16 %v1152_v54, %v1151_v53  ;;  %16873 = vst [vmem:[#allocation13_spill] sm:$0xff] %v13897_v45  ;;  %v240_v51 = vld [vmem:[%s16833_s0 + $0x58] sm:$0xf]  ;;  %v241_v52 = vld [vmem:[%s16833_s0 + $0x60] sm:$0xf]  ;;  %v415_v54 = vrot.slane %v414_v47, 4 }
  0x58   :  { %v392_v23 = vsel %vm13661_vm2, %v387_v13, %v391_v14  ;;  %v422_v60 = vshrl.u32 %v240_v51, 16  ;;  %v425_v61 = vshll.u32 %v240_v51, 16  ;;  %v436_v62 = vshrl.u32 %v241_v52, 16  ;;  %v12793_v13 = vld [vmem:[%s16834_s1 + $0x4c] sm:$0xf0] }
  0x59   :  { %2360 = vmatpush.bf16.msra.mxu3 %v12890_v3  ;;  %2409 = vmatpush.bf16.msra.mxu0 %v12898_v4  ;;  %v11048_v3 = vor.u32 %v12799_v58, %v11047_v55  ;;  %v372_v4 = vor.u32 %v371_v57, %v368_v56  ;;  %v1154_v29 = vunpack.c.l.b16 %v392_v23  ;;  %v12879_v56 = vld [vmem:[%s16837_s4 + $0x190] sm:$0xff]  ;;  %v439_v63 = vshll.u32 %v241_v52, 16  ;;  %v11055_v14 = vld [vmem:[%s16835_s2 + $0x48] sm:$0xf]  ;;  %v12794_v47 = vld [vmem:[%s16834_s1 + $0x5c] sm:$0xf0] }
  0x5a   :  { %v12887_v57 = vld [vmem:[%s16837_s4 + $0x1d0] sm:$0xff] }
  0x5b   :  { %2312 = vmatpush.bf16.msra.mxu2 %v12881_v39  ;;  %2263 = vmatpush.bf16.msra.mxu1 %v12873_v41  ;;  %v373_v9 = vrot.slane %v372_v4, 4  ;;  %v270_v39 = vld [vmem:[%s16833_s0 + $0x4c] sm:$0x1]  ;;  %v12871_v58 = vld [vmem:[%s16837_s4 + $0x150] sm:$0xff]  ;;  %v438_v4 = vrot.slane %v436_v62, 4  ;;  %v441_v6 = vrot.slane %v439_v63, 5 }
  0x5c   :  { %v403_v46 = vshll.u32 %v270_v39, 16  ;;  %v464_v39 = vshrl.u32 %v243_v32, 16 }
  0x5d   :  { %2361 = vmatpush.bf16.msra.mxu3 %v12889_v40  ;;  %2410 = vmatpush.bf16.msra.mxu0 %v12897_v43  ;;  %v378_v22 = vsel %vm13661_vm2, %v373_v9, %v377_v12  ;;  %v271_v40 = vld [vmem:[%s16833_s0 + $0x54] sm:$0x1]  ;;  %v11052_v43 = vor.u32 %v12800_v34, %v11051_v31  ;;  %v272_v9 = vld [vmem:[%s16833_s0 + $0x5c] sm:$0x1]  ;;  %v11023_v12 = vld [vmem:[%s16834_s1 + $0x48] sm:$0xf]  ;;  %v442_v20 = vor.u32 %v441_v6, %v438_v4 }
  0x5e   :  { %2077 = vmatmul.bf16.gmra.mxu1 %v11012_v26  ;;  %2126 = vmatmul.bf16.gmra.mxu2 %v1164_v27  ;;  %v11019_v26 = vld [vmem:[%s16834_s1 + $0x30] sm:$0xf]  ;;  %v12792_v27 = vld [vmem:[%s16834_s1 + $0x34] sm:$0xf0]  ;;  %v417_v48 = vshll.u32 %v271_v40, 16  ;;  %v405_v53 = vrot.slane %v403_v46, 5 }
  0x5f   :  { %2313 = vmatpush.bf16.msra.mxu2 %v12880_v15  ;;  %2264 = vmatpush.bf16.msra.mxu1 %v12872_v17  ;;  %v11020_v41 = vor.u32 %v12792_v27, %v11019_v26  ;;  %v12801_v15 = vld [vmem:[%s16835_s2 + $0x4c] sm:$0xf0]  ;;  %v242_v31 = vld [vmem:[%s16833_s0 + $0x68] sm:$0xf]  ;;  %v467_v40 = vshll.u32 %v243_v32, 16  ;;  %v466_v51 = vrot.slane %v464_v39, 4 }
  0x60   :  { %2175 = vmatmul.bf16.gmra.mxu3 %v11044_v28  ;;  %2224 = vmatmul.bf16.gmra.mxu0 %v13799_v30  ;;  %v1153_v28 = vunpack.c.l.b16 %v378_v22  ;;  %v419_v55 = vrot.slane %v417_v48, 5  ;;  %v406_v0 = vsel %vm13661_vm2, %v401_v49, %v405_v53  ;;  %v12809_v17 = vld [vmem:[%s16836_s3 + $0x4c] sm:$0xf0]  ;;  %v11024_v22 = vor.u32 %v12793_v13, %v11023_v12  ;;  %v12886_v34 = vld [vmem:[%s16837_s4 + $0x1c8] sm:$0xff]  ;;  %v11059_v53 = vld [vmem:[%s16835_s2 + $0x58] sm:$0xf] }
  0x61   :  { %2362 = vmatpush.bf16.msra.mxu3 %v12888_v16  ;;  %2411 = vmatpush.bf16.msra.mxu0 %v12896_v19  ;;  %v1155_v7 = vunpack.c.l.b16 %v406_v0  ;;  %v11087_v16 = vld [vmem:[%s16836_s3 + $0x48] sm:$0xf]  ;;  %v431_v19 = vshll.u32 %v272_v9, 16  ;;  %v11056_v24 = vor.u32 %v12801_v15, %v11055_v14  ;;  %v450_v37 = vshrl.u32 %v242_v31, 16  ;;  %v12885_v9 = vld [vmem:[%s16837_s4 + $0x1c0] sm:$0xff] }
  0x62   :  { %v1166_v42 = vpack.c.b16 %v1154_v29, %v1153_v28  ;;  %v13946_v25 = vor.u32 %v12809_v17, %v11087_v16  ;;  %v443_v28 = vrot.slane %v442_v20, 4  ;;  %v447_v29 = vrot.slane %v445_v21, 5  ;;  %v12894_v46 = vld [vmem:[%s16837_s4 + $0x208] sm:$0xff]  ;;  %v245_v12 = vld [vmem:[%s16833_s0 + $0x80] sm:$0xf] }
  0x63   :  { %2314 = vmatpush.bf16.msra.mxu2 %v12879_v56  ;;  %2265 = vmatpush.bf16.msra.mxu1 %v12871_v58  ;;  %v433_v27 = vrot.slane %v431_v19, 5  ;;  %v453_v38 = vshll.u32 %v242_v31, 16  ;;  %v452_v48 = vrot.slane %v450_v37, 4  ;;  %v469_v52 = vrot.slane %v467_v40, 5  ;;  %v12802_v56 = vld [vmem:[%s16835_s2 + $0x5c] sm:$0xf0] }
  0x64   :  { %16874 = vst [vmem:[#allocation14_spill] sm:$0xff] %v13946_v25  ;;  %v448_v36 = vsel %vm13661_vm2, %v443_v28, %v447_v29  ;;  %v12810_v58 = vld [vmem:[%s16836_s3 + $0x5c] sm:$0xf0]  ;;  %v478_v15 = vshrl.u32 %v244_v10, 16  ;;  %v481_v16 = vshll.u32 %v244_v10, 16  ;;  %v492_v17 = vshrl.u32 %v245_v12, 16 }
  0x65   :  { %2363 = vmatpush.bf16.msra.mxu3 %v12887_v57  ;;  %2412 = vmatpush.bf16.msra.mxu0 %v12895_v59  ;;  %v1158_v44 = vunpack.c.l.b16 %v448_v36  ;;  %v455_v49 = vrot.slane %v453_v38, 5  ;;  %v11091_v57 = vld [vmem:[%s16836_s3 + $0x58] sm:$0xf]  ;;  %v470_v63 = vor.u32 %v469_v52, %v466_v51  ;;  %v12869_v19 = vld [vmem:[%s16837_s4 + $0x140] sm:$0xff]  ;;  %v11031_v20 = vld [vmem:[%s16834_s1 + $0x68] sm:$0xf] }
  0x66   :  { %v12795_v21 = vld [vmem:[%s16834_s1 + $0x6c] sm:$0xf0]  ;;  %v11095_v28 = vld [vmem:[%s16836_s3 + $0x68] sm:$0xf]  ;;  %v480_v31 = vrot.slane %v478_v15, 4  ;;  %v483_v32 = vrot.slane %v481_v16, 5 }
  0x67   :  { %2315 = vmatpush.bf16.msra.mxu2 %v12878_v33  ;;  %v471_v6 = vrot.slane %v470_v63, 4  ;;  %v12811_v29 = vld [vmem:[%s16836_s3 + $0x6c] sm:$0xf0]  ;;  %v494_v33 = vrot.slane %v492_v17, 4  ;;  %v277_v36 = vld [vmem:[%s16833_s0 + $0x84] sm:$0x1]  ;;  %v11032_v37 = vor.u32 %v12795_v21, %v11031_v20 }
  0x68   :  { %v14044_v40 = vor.u32 %v12811_v29, %v11095_v28  ;;  %v10925_v51 = vld [vmem:[%s16833_s0 + $0x8] sm:$0xf]  ;;  %v11067_v29 = vld [vmem:[%s16835_s2 + $0x78] sm:$0xf] }
  0x69   :  { %2364 = vmatpush.bf16.msra.mxu3 %v12886_v34  ;;  %2413 = vmatpush.bf16.msra.mxu0 %v12894_v46  ;;  %v501_v46 = vshll.u32 %v277_v36, 16  ;;  %v828_v63 = vshrl.u32 %v10925_v51, 16 }
  0x6a   :  { %16876 = vst [vmem:[#allocation16_spill] sm:$0xff] %v14044_v40 }
  0x6b   :  { %v830_v20 = vrot.slane %v828_v63, 4 }
  0x6d   :  { %2365 = vmatpush.bf16.msra.mxu3 %v12885_v9 }
  0x6e   :  { %2082 = vmatmul.bf16.gmra.mxu1 %v11016_v1  ;;  %2131 = vmatmul.bf16.gmra.mxu2 %v1165_v2  ;;  %v420_v1 = vsel %vm13661_vm2, %v415_v54, %v419_v55  ;;  %v424_v2 = vrot.slane %v422_v60, 4  ;;  %v274_v54 = vld [vmem:[%s16833_s0 + $0x6c] sm:$0x1]  ;;  %v275_v55 = vld [vmem:[%s16833_s0 + $0x74] sm:$0x1] }
  0x6f   :  { %v1156_v8 = vunpack.c.l.b16 %v420_v1  ;;  %v459_v62 = vshll.u32 %v274_v54, 16  ;;  %v473_v0 = vshll.u32 %v275_v55, 16  ;;  %v11060_v1 = vor.u32 %v12802_v56, %v11059_v53  ;;  %v10926_v56 = vld [vmem:[%s16833_s0 + $0x10] sm:$0xf] }
  0x70   :  { %2180 = vmatmul.bf16.gmra.mxu3 %v11048_v3  ;;  %2229 = vmatmul.bf16.gmra.mxu0 %v13848_v5  ;;  %v427_v3 = vrot.slane %v425_v61, 5  ;;  %v456_v61 = vor.u32 %v455_v49, %v452_v48  ;;  %v505_v48 = vld [vmem:[%s16835_s2] sm:$0xf]  ;;  %v506_v49 = vld [vmem:[%s16835_s2 + $0x8] sm:$0xf]  ;;  %v503_v55 = vrot.slane %v501_v46, 5 }
  0x71   :  { %v1167_v23 = vpack.c.b16 %v1156_v8, %v1155_v7  ;;  %v461_v4 = vrot.slane %v459_v62, 5  ;;  %v475_v7 = vrot.slane %v473_v0, 5  ;;  %v12877_v8 = vld [vmem:[%s16837_s4 + $0x180] sm:$0xff]  ;;  %v831_v0 = vshll.u32 %v10925_v51, 16 }
  0x72   :  { %v428_v18 = vor.u32 %v427_v3, %v424_v2  ;;  %v13995_v2 = vor.u32 %v12810_v58, %v11091_v57  ;;  %v457_v3 = vrot.slane %v456_v61, 4  ;;  %2316 = vmatpush.bf16.msra.mxu2 %v12877_v8  ;;  %v14066_v57 = vld [vmem:[%s16838_s5] ss:$0 sm:$0xff]  ;;  %v554_v58 = vshrl.u32 %v505_v48, 16 }
  0x73   :  { %v476_v14 = vsel %vm13661_vm2, %v471_v6, %v475_v7  ;;  %v571_v61 = vshll.u32 %v506_v49, 16  ;;  %v845_v6 = vshll.u32 %v10926_v56, 16  ;;  %v833_v21 = vrot.slane %v831_v0, 5 }
  0x74   :  { %v429_v26 = vrot.slane %v428_v18, 4  ;;  %16875 = vst [vmem:[#allocation15_spill] sm:$0xff] %v13995_v2  ;;  %v462_v13 = vsel %vm13661_vm2, %v457_v3, %v461_v4  ;;  %v495_v18 = vshll.u32 %v245_v12, 16  ;;  %v842_v4 = vshrl.u32 %v10926_v56, 16 }
  0x75   :  { %v573_v17 = vrot.slane %v571_v61, 5  ;;  %v847_v28 = vrot.slane %v845_v6, 5  ;;  %v507_v6 = vld [vmem:[%s16835_s2 + $0x10] sm:$0xf] }
  0x76   :  { %v434_v35 = vsel %vm13661_vm2, %v429_v26, %v433_v27  ;;  %v11063_v26 = vld [vmem:[%s16835_s2 + $0x68] sm:$0xf]  ;;  %v12803_v27 = vld [vmem:[%s16835_s2 + $0x6c] sm:$0xf0]  ;;  %v497_v34 = vrot.slane %v495_v18, 5 }
  0x77   :  { %v11064_v39 = vor.u32 %v12803_v27, %v11063_v26  ;;  %v537_v18 = vld [vmem:[%s16835_s2 + $0x4] sm:$0x1]  ;;  %v10957_v26 = vld [vmem:[%s16833_s0 + $0xc] sm:$0x1]  ;;  %v844_v27 = vrot.slane %v842_v4, 4 }
  0x78   :  { %v563_v36 = vshll.u32 %v537_v18, 16  ;;  %v582_v18 = vshrl.u32 %v507_v6, 16 }
  0x79   :  { %v848_v51 = vor.u32 %v847_v28, %v844_v27 }
  0x7e   :  { %2087 = vmatmul.bf16.gmra.mxu1 %v11020_v41  ;;  %2136 = vmatmul.bf16.gmra.mxu2 %v1166_v42  ;;  %v12870_v41 = vld [vmem:[%s16837_s4 + $0x148] sm:$0xff]  ;;  %v11027_v42 = vld [vmem:[%s16834_s1 + $0x58] sm:$0xf] }
  0x7f   :  { %2266 = vmatpush.bf16.msra.mxu1 %v12870_v41  ;;  %v11028_v59 = vor.u32 %v12794_v47, %v11027_v42  ;;  %v484_v42 = vor.u32 %v483_v32, %v480_v31  ;;  %v12804_v31 = vld [vmem:[%s16835_s2 + $0x7c] sm:$0xf0]  ;;  %v10958_v32 = vld [vmem:[%s16833_s0 + $0x14] sm:$0x1] }
  0x80   :  { %2185 = vmatmul.bf16.gmra.mxu3 %v11052_v43  ;;  %2234 = vmatmul.bf16.gmra.mxu0 %v13897_v45  ;;  %v1157_v43 = vunpack.c.l.b16 %v434_v35  ;;  %v276_v35 = vld [vmem:[%s16833_s0 + $0x7c] sm:$0x1] }
  0x81   :  { %v485_v52 = vrot.slane %v484_v42, 4 }
  0x82   :  { %v1168_v60 = vpack.c.b16 %v1158_v44, %v1157_v43  ;;  %v487_v43 = vshll.u32 %v276_v35, 16  ;;  %v498_v44 = vor.u32 %v497_v34, %v494_v33  ;;  %v11099_v33 = vld [vmem:[%s16836_s3 + $0x78] sm:$0xf]  ;;  %v12812_v34 = vld [vmem:[%s16836_s3 + $0x7c] sm:$0xf0] }
  0x83   :  { %2267 = vmatpush.bf16.msra.mxu1 %v12869_v19  ;;  %v538_v19 = vld [vmem:[%s16835_s2 + $0xc] sm:$0x1]  ;;  %v14120_v56 = vor.u32 %v12812_v34, %v11099_v33 }
  0x84   :  { %v489_v53 = vrot.slane %v487_v43, 5  ;;  %v499_v54 = vrot.slane %v498_v44, 4  ;;  %v834_v43 = vor.u32 %v833_v21, %v830_v20  ;;  %v837_v44 = vshll.u32 %v10957_v26, 16 }
  0x85   :  { %16877 = vst [vmem:[#allocation17_spill] sm:$0xff] %v14120_v56 }
  0x86   :  { %v490_v9 = vsel %vm13661_vm2, %v485_v52, %v489_v53  ;;  %v504_v10 = vsel %vm13661_vm2, %v499_v54, %v503_v55  ;;  %v851_v52 = vshll.u32 %v10958_v32, 16  ;;  %v11068_v55 = vor.u32 %v12804_v31, %v11067_v29 }
  0x87   :  { %v835_v63 = vrot.slane %v834_v43, 4  ;;  %v839_v0 = vrot.slane %v837_v44, 5 }
  0x88   :  { %v853_v4 = vrot.slane %v851_v52, 5 }
  0x8e   :  { %2092 = vmatmul.bf16.gmra.mxu1 %v11024_v22  ;;  %2141 = vmatmul.bf16.gmra.mxu2 %v1167_v23  ;;  %v12893_v22 = vld [vmem:[%s16837_s4 + $0x200] sm:$0xff]  ;;  %v1159_v23 = vunpack.c.l.b16 %v462_v13  ;;  %v11035_v13 = vld [vmem:[%s16834_s1 + $0x78] sm:$0xf] }
  0x8f   :  { %2414 = vmatpush.bf16.msra.mxu0 %v12893_v22  ;;  %v12796_v22 = vld [vmem:[%s16834_s1 + $0x7c] sm:$0xf0] }
  0x90   :  { %2190 = vmatmul.bf16.gmra.mxu3 %v11056_v24  ;;  %2239 = vmatmul.bf16.gmra.mxu0 %v13946_v25  ;;  %v1160_v24 = vunpack.c.l.b16 %v476_v14  ;;  %v556_v14 = vrot.slane %v554_v58, 4  ;;  %v11036_v42 = vor.u32 %v12796_v22, %v11035_v13 }
  0x92   :  { %v1169_v38 = vpack.c.b16 %v1160_v24, %v1159_v23  ;;  %v1161_v23 = vunpack.c.l.b16 %v490_v9  ;;  %v1162_v24 = vunpack.c.l.b16 %v504_v10  ;;  %v508_v9 = vld [vmem:[%s16835_s2 + $0x18] sm:$0xf] }
  0x93   :  { %v10927_v10 = vld [vmem:[%s16833_s0 + $0x18] sm:$0xf]  ;;  %v596_v20 = vshrl.u32 %v508_v9, 16 }
  0x94   :  { %v856_v26 = vshrl.u32 %v10927_v10, 16  ;;  %v859_v29 = vshll.u32 %v10927_v10, 16 }
  0x95   :  { %v598_v52 = vrot.slane %v596_v20, 4 }
  0x9e   :  { %2097 = vmatmul.bf16.gmra.mxu1 %v11028_v59  ;;  %2146 = vmatmul.bf16.gmra.mxu2 %v1168_v60  ;;  %v557_v59 = vshll.u32 %v505_v48, 16  ;;  %v568_v60 = vshrl.u32 %v506_v49, 16  ;;  %v1170_v49 = vpack.c.b16 %v1162_v24, %v1161_v23  ;;  %v599_v24 = vshll.u32 %v508_v9, 16 }
  0xa0   :  { %2195 = vmatmul.bf16.gmra.mxu3 %v11060_v1  ;;  %2244 = vmatmul.bf16.gmra.mxu0 %v13995_v2  ;;  %v559_v15 = vrot.slane %v557_v59, 5  ;;  %v570_v16 = vrot.slane %v568_v60, 4  ;;  %v565_v60 = vrot.slane %v563_v36, 5  ;;  %v11103_v36 = vld [vmem:[%s16833_s0 + $0x8] sm:$0xf] }
  0xa2   :  { %v560_v35 = vor.u32 %v559_v15, %v556_v14  ;;  %v10928_v15 = vld [vmem:[%s16833_s0 + $0x20] sm:$0xf] }
  0xa3   :  { %v870_v31 = vshrl.u32 %v10928_v15, 16  ;;  %v873_v32 = vshll.u32 %v10928_v15, 16 }
  0xa4   :  { %v561_v59 = vrot.slane %v560_v35, 4 }
  0xa6   :  { %v566_v13 = vsel %vm13661_vm2, %v561_v59, %v565_v60  ;;  %v10959_v59 = vld [vmem:[%s16833_s0 + $0x1c] sm:$0x1]  ;;  %v858_v60 = vrot.slane %v856_v26, 4 }
  0xa7   :  { %v1275_v34 = vunpack.c.l.b16 %v566_v13  ;;  %v865_v20 = vshll.u32 %v10959_v59, 16 }
  0xab   :  { %v14046_v41 = vpop.f32.mrf.mxu1 }
  0xad   :  { %v14048_v47 = vpop.f32.mrf.mxu0 }
  0xae   :  { %2102 = vmatmul.bf16.gmra.mxu1 %v11032_v37  ;;  %2151 = vmatmul.bf16.gmra.mxu2 %v1169_v38  ;;  %v574_v37 = vor.u32 %v573_v17, %v570_v16  ;;  %v577_v38 = vshll.u32 %v538_v19, 16  ;;  %v840_v17 = vsel %vm13661_vm2, %v835_v63, %v839_v0  ;;  %v585_v19 = vshll.u32 %v507_v6, 16  ;;  %v10960_v6 = vld [vmem:[%s16833_s0 + $0x24] sm:$0x1] }
  0xaf   :  { %v1403_v44 = vunpack.c.l.b16 %v840_v17  ;;  %v875_v63 = vrot.slane %v873_v32, 5  ;;  %v2025_v0 = vadd.f32 %v14066_v57, %v14048_v47  ;;  %v879_v26 = vshll.u32 %v10960_v6, 16 }
  0xb0   :  { %2200 = vmatmul.bf16.gmra.mxu3 %v11064_v39  ;;  %2249 = vmatmul.bf16.gmra.mxu0 %v14044_v40  ;;  %v575_v61 = vrot.slane %v574_v37, 4  ;;  %v12813_v37 = vld [vmem:[%s16833_s0 + $0xc] sm:$0xf0]  ;;  %v587_v43 = vrot.slane %v585_v19, 5 }
  0xb1   :  { %v2044_v62 = vpop.f32.mrf.mxu2 }
  0xb2   :  { %v14069_v1 = vadd.f32 %v14066_v57, %v2044_v62  ;;  %v579_v62 = vrot.slane %v577_v38, 5  ;;  %v11135_v38 = vld [vmem:[%s16834_s1 + $0x8] sm:$0xf] }
  0xb3   :  { %v2054_v3 = vpop.f32.mrf.mxu3  ;;  %v14074_v8 = vpop.f32.mrf.mxu1 }
  0xb4   :  { %v14072_v7 = vadd.f32 %v14066_v57, %v2054_v3  ;;  %v849_v3 = vrot.slane %v848_v51, 4  ;;  %v580_v14 = vsel %vm13661_vm2, %v575_v61, %v579_v62  ;;  %v540_v51 = vld [vmem:[%s16835_s2 + $0x1c] sm:$0x1]  ;;  %v861_v61 = vrot.slane %v859_v29, 5 }
  0xb5   :  { %v14080_v12 = vpop.f32.mrf.mxu0  ;;  %v1276_v35 = vunpack.c.l.b16 %v580_v14  ;;  %v872_v62 = vrot.slane %v870_v31, 4  ;;  %v605_v15 = vshll.u32 %v540_v51, 16 }
  0xb6   :  { %v854_v23 = vsel %vm13661_vm2, %v849_v3, %v853_v4  ;;  %v11104_v4 = vor.u32 %v12813_v37, %v11103_v36 }
  0xb7   :  { %v1291_v3 = vpack.c.b16 %v1276_v35, %v1275_v34  ;;  %v509_v35 = vld [vmem:[%s16835_s2 + $0x20] sm:$0xf]  ;;  %v607_v37 = vrot.slane %v605_v15, 5 }
  0xb8   :  { %v613_v51 = vshll.u32 %v509_v35, 16 }
  0xb9   :  { %v2046_v39 = vpop.f32.mrf.mxu2 }
  0xba   :  { %v14113_v46 = vadd.f32 %v14066_v57, %v2046_v39  ;;  %v12821_v39 = vld [vmem:[%s16834_s1 + $0xc] sm:$0xf0] }
  0xbb   :  { %v2056_v48 = vpop.f32.mrf.mxu3  ;;  %v14118_v54 = vpop.f32.mrf.mxu1  ;;  %v11136_v10 = vor.u32 %v12821_v39, %v11135_v38  ;;  %v510_v38 = vld [vmem:[%s16835_s2 + $0x28] sm:$0xf] }
  0xbc   :  { %v14116_v53 = vadd.f32 %v14066_v57, %v2056_v48  ;;  %v1404_v48 = vunpack.c.l.b16 %v854_v23  ;;  %v862_v23 = vor.u32 %v861_v61, %v858_v60  ;;  %v10929_v39 = vld [vmem:[%s16833_s0 + $0x28] sm:$0xf]  ;;  %v624_v59 = vshrl.u32 %v510_v38, 16 }
  0xbd   :  { %v14122_v58 = vpop.f32.mrf.mxu0  ;;  %v627_v60 = vshll.u32 %v510_v38, 16  ;;  %v884_v61 = vshrl.u32 %v10929_v39, 16  ;;  %v542_v38 = vld [vmem:[%s16835_s2 + $0x2c] sm:$0x1] }
  0xbe   :  { %2107 = vmatmul.bf16.gmra.mxu1 %v11036_v42  ;;  %2156 = vmatmul.bf16.gmra.mxu2 %v1170_v49  ;;  %v584_v42 = vrot.slane %v582_v18, 4  ;;  %v539_v49 = vld [vmem:[%s16835_s2 + $0x14] sm:$0x1]  ;;  %v1419_v18 = vpack.c.b16 %v1404_v48, %v1403_v44  ;;  %v881_v48 = vrot.slane %v879_v26, 5 }
  0xbf   :  { %v591_v14 = vshll.u32 %v539_v49, 16  ;;  %v610_v49 = vshrl.u32 %v509_v35, 16  ;;  %v629_v26 = vrot.slane %v627_v60, 5 }
  0xc0   :  { %2205 = vmatmul.bf16.gmra.mxu3 %v11068_v55  ;;  %2254 = vmatmul.bf16.gmra.mxu0 %v14120_v56  ;;  %v601_v55 = vrot.slane %v599_v24, 5  ;;  %v588_v13 = vor.u32 %v587_v43, %v584_v42  ;;  %v876_v24 = vor.u32 %v875_v63, %v872_v62  ;;  %v863_v42 = vrot.slane %v862_v23, 4  ;;  %v541_v23 = vld [vmem:[%s16835_s2 + $0x24] sm:$0x1] }
  0xc1   :  { %v2049_v16 = vpop.f32.mrf.mxu2  ;;  %v593_v34 = vrot.slane %v591_v14, 5  ;;  %v867_v43 = vrot.slane %v865_v20, 5  ;;  %v887_v62 = vshll.u32 %v10929_v39, 16  ;;  %v2027_v63 = vadd.f32 %v14066_v57, %v14080_v12  ;;  %v10961_v39 = vld [vmem:[%s16833_s0 + $0x2c] sm:$0x1] }
  0xc2   :  { %v14144_v21 = vadd.f32 %v14066_v57, %v2049_v16  ;;  %v602_v19 = vor.u32 %v601_v55, %v598_v52  ;;  %v589_v32 = vrot.slane %v588_v13, 4  ;;  %v877_v44 = vrot.slane %v876_v24, 4  ;;  %v10930_v52 = vld [vmem:[%s16833_s0 + $0x30] sm:$0xf] }
  0xc3   :  { %v2059_v22 = vpop.f32.mrf.mxu3  ;;  %v14151_v28 = vpop.f32.mrf.mxu1  ;;  %v898_v14 = vshrl.u32 %v10930_v52, 16  ;;  %v901_v15 = vshll.u32 %v10930_v52, 16  ;;  %v615_v20 = vrot.slane %v613_v51, 5  ;;  %v626_v24 = vrot.slane %v624_v59, 4  ;;  %v12822_v59 = vld [vmem:[%s16834_s1 + $0x1c] sm:$0xf0] }
  0xc4   :  { %v14149_v27 = vadd.f32 %v14066_v57, %v2059_v22  ;;  %v603_v36 = vrot.slane %v602_v19, 4  ;;  %v882_v13 = vsel %vm13661_vm2, %v877_v44, %v881_v48  ;;  %v612_v19 = vrot.slane %v610_v49, 4  ;;  %v10962_v44 = vld [vmem:[%s16833_s0 + $0x34] sm:$0x1] }
  0xc5   :  { %v14153_v33 = vpop.f32.mrf.mxu0  ;;  %v900_v48 = vrot.slane %v898_v14, 4  ;;  %v903_v49 = vrot.slane %v901_v15, 5  ;;  %v2030_v52 = vadd.f32 %v14066_v57, %v14122_v58  ;;  %v907_v58 = vshll.u32 %v10962_v44, 16 }
  0xc6   :  { %v608_v6 = vsel %vm13661_vm2, %v603_v36, %v607_v37  ;;  %v11107_v36 = vld [vmem:[%s16833_s0 + $0x18] sm:$0xf]  ;;  %v616_v60 = vor.u32 %v615_v20, %v612_v19 }
  0xc7   :  { %v1278_v35 = vunpack.c.l.b16 %v608_v6 }
  0xc8   :  { %v617_v2 = vrot.slane %v616_v60, 4 }
  0xc9   :  { %v2051_v9 = vpop.f32.mrf.mxu2 }
  0xca   :  { %v14182_v16 = vadd.f32 %v14066_v57, %v2051_v9 }
  0xcb   :  { %v2061_v17 = vpop.f32.mrf.mxu3  ;;  %v2073_v22 = vpop.f32.mrf.mxu1 }
  0xcc   :  { %v14185_v47 = vadd.f32 %v14066_v57, %v2061_v17  ;;  %v2074_v29 = vadd.f32 %v2073_v22, %v2025_v0  ;;  %v12940_v22 = vld [vmem:[#allocation3 + $0x78] sm:$0xff] }
  0xcd   :  { %v2220_v31 = vpop.f32.mrf.mxu0  ;;  %4820 = vmatpush.bf16.msrb.mxu2 %v12940_v22 }
  0xce   :  { %2268 = vmatmul.bf16.vlgmr.msra.gmra.mxu1 %v1291_v3  ;;  %2317 = vmatmul.bf16.vlgmr.msra.gmra.mxu2 %v11104_v4  ;;  %v594_v4 = vsel %vm13661_vm2, %v589_v32, %v593_v34  ;;  %v889_v32 = vrot.slane %v887_v62, 5 }
  0xcf   :  { %v1277_v34 = vunpack.c.l.b16 %v594_v4  ;;  %v893_v4 = vshll.u32 %v10961_v39, 16 }
  0xd0   :  { %2366 = vmatmul.bf16.vlgmr.msra.gmra.mxu3 %v11136_v10  ;;  %2415 = vmatmul.bf16.vlgmr.msra.gmra.mxu0 %v1419_v18  ;;  %v868_v10 = vsel %vm13661_vm2, %v863_v42, %v867_v43  ;;  %v12814_v42 = vld [vmem:[%s16833_s0 + $0x1c] sm:$0xf0]  ;;  %v1406_v43 = vunpack.c.l.b16 %v882_v13 }
  0xd1   :  { %v2122_v55 = vpop.f32.mrf.mxu2  ;;  %v1405_v37 = vunpack.c.l.b16 %v868_v10  ;;  %v11108_v10 = vor.u32 %v12814_v42, %v11107_v36  ;;  %v12932_v36 = vld [vmem:[#allocation3 + $0x38] sm:$0xff] }
  0xd2   :  { %v2123_v0 = vadd.f32 %v2122_v55, %v2074_v29  ;;  %v886_v29 = vrot.slane %v884_v61, 4  ;;  %v11139_v55 = vld [vmem:[%s16834_s1 + $0x18] sm:$0xf]  ;;  %v619_v61 = vshll.u32 %v541_v23, 16  ;;  %4771 = vmatpush.bf16.msrb.mxu1 %v12932_v36 }
  0xd3   :  { %v2171_v3 = vpop.f32.mrf.mxu3  ;;  %v2075_v9 = vpop.f32.mrf.mxu1  ;;  %v11140_v14 = vor.u32 %v12822_v59, %v11139_v55  ;;  %v1420_v15 = vpack.c.b16 %v1406_v43, %v1405_v37  ;;  %v10931_v37 = vld [vmem:[%s16833_s0 + $0x38] sm:$0xf] }
  0xd4   :  { %v2172_v17 = vadd.f32 %v2171_v3, %v2123_v0  ;;  %v2076_v18 = vadd.f32 %v2075_v9, %v2027_v63  ;;  %v630_v63 = vor.u32 %v629_v26, %v626_v24  ;;  %v633_v0 = vshll.u32 %v542_v38, 16 }
  0xd5   :  { %v2222_v12 = vpop.f32.mrf.mxu0  ;;  %v890_v3 = vor.u32 %v889_v32, %v886_v29  ;;  %v1292_v9 = vpack.c.b16 %v1278_v35, %v1277_v34  ;;  %v621_v19 = vrot.slane %v619_v61, 5  ;;  %v895_v26 = vrot.slane %v893_v4, 5  ;;  %v511_v29 = vld [vmem:[%s16835_s2 + $0x30] sm:$0xf]  ;;  %v512_v35 = vld [vmem:[%s16835_s2 + $0x38] sm:$0xf] }
  0xd6   :  { %v14227_v51 = vadd.f32 %v2220_v31, %v2172_v17  ;;  %v904_v17 = vor.u32 %v903_v49, %v900_v48  ;;  %v631_v20 = vrot.slane %v630_v63, 4  ;;  %v635_v23 = vrot.slane %v633_v0, 5 }
  0xd7   :  { %v891_v24 = vrot.slane %v890_v3, 4  ;;  %v2032_v38 = vadd.f32 %v14066_v57, %v14153_v33  ;;  %v622_v39 = vsel %vm13661_vm2, %v617_v2, %v621_v19  ;;  %v638_v48 = vshrl.u32 %v511_v29, 16 }
  0xd8   :  { %v905_v34 = vrot.slane %v904_v17, 4  ;;  %v636_v43 = vsel %vm13661_vm2, %v631_v20, %v635_v23  ;;  %v641_v49 = vshll.u32 %v511_v29, 16  ;;  %v652_v33 = vshrl.u32 %v512_v35, 16  ;;  %v543_v17 = vld [vmem:[%s16835_s2 + $0x34] sm:$0x1] }
  0xd9   :  { %v2124_v62 = vpop.f32.mrf.mxu2  ;;  %v896_v44 = vsel %vm13661_vm2, %v891_v24, %v895_v26  ;;  %v655_v59 = vshll.u32 %v512_v35, 16  ;;  %v912_v60 = vshrl.u32 %v10931_v37, 16  ;;  %v544_v23 = vld [vmem:[%s16835_s2 + $0x3c] sm:$0x1] }
  0xda   :  { %v2125_v31 = vadd.f32 %v2124_v62, %v2076_v18  ;;  %v909_v18 = vrot.slane %v907_v58, 5  ;;  %v915_v62 = vshll.u32 %v10931_v37, 16  ;;  %v1280_v58 = vunpack.c.l.b16 %v636_v43  ;;  %v10963_v29 = vld [vmem:[%s16833_s0 + $0x3c] sm:$0x1] }
  0xdb   :  { %v2173_v6 = vpop.f32.mrf.mxu3  ;;  %v2078_v13 = vpop.f32.mrf.mxu1  ;;  %v643_v19 = vrot.slane %v641_v49, 5  ;;  %v654_v24 = vrot.slane %v652_v33, 4  ;;  %v657_v26 = vrot.slane %v655_v59, 5  ;;  %v661_v49 = vshll.u32 %v544_v23, 16  ;;  %v10934_v23 = vld [vmem:[%s16833_s0 + $0x58] sm:$0xf] }
  0xdc   :  { %v2174_v22 = vadd.f32 %v2173_v6, %v2125_v31  ;;  %v2079_v56 = vadd.f32 %v2078_v13, %v2030_v52  ;;  %v910_v61 = vsel %vm13661_vm2, %v905_v34, %v909_v18  ;;  %v1279_v6 = vunpack.c.l.b16 %v622_v39  ;;  %v11143_v13 = vld [vmem:[%s16834_s1 + $0x28] sm:$0xf] }
  0xdd   :  { %v2225_v40 = vpop.f32.mrf.mxu0  ;;  %v1408_v20 = vunpack.c.l.b16 %v910_v61  ;;  %v914_v18 = vrot.slane %v912_v60, 4  ;;  %v917_v34 = vrot.slane %v915_v62, 5  ;;  %v658_v59 = vor.u32 %v657_v26, %v654_v24 }
  0xde   :  { %2273 = vmatmul.bf16.gmra.mxu1 %v1292_v9  ;;  %2322 = vmatmul.bf16.gmra.mxu2 %v11108_v10  ;;  %v14240_v32 = vadd.f32 %v2222_v12, %v2174_v22  ;;  %v10932_v12 = vld [vmem:[%s16833_s0 + $0x40] sm:$0xf]  ;;  %v11111_v9 = vld [vmem:[%s16833_s0 + $0x28] sm:$0xf]  ;;  %v12939_v10 = vld [vmem:[#allocation3 + $0x70] sm:$0xff]  ;;  %v640_v22 = vrot.slane %v638_v48, 4  ;;  %v1293_v43 = vpack.c.b16 %v1280_v58, %v1279_v6 }
  0xdf   :  { %v926_v63 = vshrl.u32 %v10932_v12, 16  ;;  %v929_v0 = vshll.u32 %v10932_v12, 16  ;;  %4821 = vmatpush.bf16.msrb.mxu2 %v12939_v10  ;;  %v10964_v12 = vld [vmem:[%s16833_s0 + $0x44] sm:$0x1]  ;;  %v647_v48 = vshll.u32 %v543_v17, 16  ;;  %v921_v60 = vshll.u32 %v10963_v29, 16 }
  0xe0   :  { %2371 = vmatmul.bf16.gmra.mxu3 %v11140_v14  ;;  %2420 = vmatmul.bf16.gmra.mxu0 %v1420_v15  ;;  %v12823_v14 = vld [vmem:[%s16834_s1 + $0x2c] sm:$0xf0]  ;;  %v1407_v15 = vunpack.c.l.b16 %v896_v44  ;;  %v644_v44 = vor.u32 %v643_v19, %v640_v22  ;;  %v918_v61 = vor.u32 %v917_v34, %v914_v18  ;;  %v663_v10 = vrot.slane %v661_v49, 5  ;;  %v513_v6 = vld [vmem:[%s16835_s2 + $0x48] sm:$0xf] }
  0xe1   :  { %v2127_v42 = vpop.f32.mrf.mxu2  ;;  %v928_v35 = vrot.slane %v926_v63, 4  ;;  %v931_v36 = vrot.slane %v929_v0, 5  ;;  %v11144_v33 = vor.u32 %v12823_v14, %v11143_v13  ;;  %v923_v58 = vrot.slane %v921_v60, 5  ;;  %v514_v13 = vld [vmem:[%s16835_s2 + $0x50] sm:$0xf] }
  0xe2   :  { %v2128_v52 = vadd.f32 %v2127_v42, %v2079_v56  ;;  %v12815_v56 = vld [vmem:[%s16833_s0 + $0x2c] sm:$0xf0]  ;;  %v919_v17 = vrot.slane %v918_v61, 4  ;;  %v666_v24 = vshrl.u32 %v513_v6, 16  ;;  %v669_v26 = vshll.u32 %v513_v6, 16 }
  0xe3   :  { %v2176_v55 = vpop.f32.mrf.mxu3  ;;  %v2080_v2 = vpop.f32.mrf.mxu1  ;;  %v11112_v39 = vor.u32 %v12815_v56, %v11111_v9  ;;  %v932_v62 = vor.u32 %v931_v36, %v928_v35  ;;  %v645_v9 = vrot.slane %v644_v44, 4  ;;  %v649_v56 = vrot.slane %v647_v48, 5  ;;  %v10933_v14 = vld [vmem:[%s16833_s0 + $0x50] sm:$0xf]  ;;  %v11115_v49 = vld [vmem:[%s16833_s0 + $0x38] sm:$0xf] }
  0xe4   :  { %v2177_v3 = vadd.f32 %v2176_v55, %v2128_v52  ;;  %v2081_v4 = vadd.f32 %v2080_v2, %v2032_v38  ;;  %v2035_v38 = vadd.f32 %v14066_v57, %v14046_v41  ;;  %v1421_v2 = vpack.c.b16 %v1408_v20, %v1407_v15  ;;  %v12931_v20 = vld [vmem:[#allocation3 + $0x30] sm:$0xff] }
  0xe5   :  { %v2227_v31 = vpop.f32.mrf.mxu0  ;;  %v935_v41 = vshll.u32 %v10964_v12, 16  ;;  %v933_v22 = vrot.slane %v932_v62, 4  ;;  %v680_v29 = vshrl.u32 %v514_v13, 16  ;;  %v683_v34 = vshll.u32 %v514_v13, 16  ;;  %4772 = vmatpush.bf16.msrb.mxu1 %v12931_v20  ;;  %v12938_v62 = vld [vmem:[#allocation3 + $0x68] sm:$0xff] }
  0xe6   :  { %v14282_v37 = vadd.f32 %v2225_v40, %v2177_v3  ;;  %v940_v35 = vshrl.u32 %v10933_v14, 16  ;;  %v943_v36 = vshll.u32 %v10933_v14, 16  ;;  %v954_v12 = vshrl.u32 %v10934_v23, 16  ;;  %4822 = vmatpush.bf16.msrb.mxu2 %v12938_v62 }
  0xe7   :  { %v937_v19 = vrot.slane %v935_v41, 5  ;;  %v650_v44 = vsel %vm13661_vm2, %v645_v9, %v649_v56  ;;  %v671_v61 = vrot.slane %v669_v26, 5  ;;  %v546_v41 = vld [vmem:[%s16835_s2 + $0x54] sm:$0x1]  ;;  %v2040_v20 = vadd.f32 %v14066_v57, %v14118_v54  ;;  %v12824_v26 = vld [vmem:[%s16834_s1 + $0x3c] sm:$0xf0] }
  0xe8   :  { %v942_v9 = vrot.slane %v940_v35, 4  ;;  %v945_v56 = vrot.slane %v943_v36, 5 }
  0xe9   :  { %v2129_v42 = vpop.f32.mrf.mxu2 }
  0xea   :  { %v2130_v52 = vadd.f32 %v2129_v42, %v2081_v4  ;;  %v659_v4 = vrot.slane %v658_v59, 4  ;;  %v957_v42 = vshll.u32 %v10934_v23, 16 }
  0xeb   :  { %v2178_v55 = vpop.f32.mrf.mxu3  ;;  %v2083_v40 = vpop.f32.mrf.mxu1 }
  0xec   :  { %v2179_v63 = vadd.f32 %v2178_v55, %v2130_v52  ;;  %v2084_v0 = vadd.f32 %v2083_v40, %v2035_v38  ;;  %v664_v48 = vsel %vm13661_vm2, %v659_v4, %v663_v10  ;;  %v12816_v52 = vld [vmem:[%s16833_s0 + $0x3c] sm:$0xf0]  ;;  %v938_v55 = vsel %vm13661_vm2, %v933_v22, %v937_v19  ;;  %v545_v40 = vld [vmem:[%s16835_s2 + $0x4c] sm:$0x1]  ;;  %v10965_v4 = vld [vmem:[%s16833_s0 + $0x54] sm:$0x1] }
  0xed   :  { %v2230_v3 = vpop.f32.mrf.mxu0  ;;  %v1281_v10 = vunpack.c.l.b16 %v650_v44  ;;  %v1282_v6 = vunpack.c.l.b16 %v664_v48  ;;  %v959_v13 = vrot.slane %v957_v42, 5  ;;  %v10966_v22 = vld [vmem:[%s16833_s0 + $0x5c] sm:$0x1]  ;;  %v11116_v23 = vor.u32 %v12816_v52, %v11115_v49 }
  0xee   :  { %2278 = vmatmul.bf16.gmra.mxu1 %v1293_v43  ;;  %2327 = vmatmul.bf16.gmra.mxu2 %v11112_v39  ;;  %v14298_v15 = vadd.f32 %v2227_v31, %v2179_v63  ;;  %v2037_v31 = vadd.f32 %v14066_v57, %v14074_v8  ;;  %v924_v8 = vsel %vm13661_vm2, %v919_v17, %v923_v58  ;;  %v682_v63 = vrot.slane %v680_v29, 4 }
  0xef   :  { %v956_v58 = vrot.slane %v954_v12, 4  ;;  %v1409_v14 = vunpack.c.l.b16 %v924_v8  ;;  %v1410_v17 = vunpack.c.l.b16 %v938_v55  ;;  %v689_v29 = vshll.u32 %v546_v41, 16 }
  0xf0   :  { %2376 = vmatmul.bf16.gmra.mxu3 %v11144_v33  ;;  %2425 = vmatmul.bf16.gmra.mxu0 %v1421_v2  ;;  %v668_v2 = vrot.slane %v666_v24, 4  ;;  %v11147_v24 = vld [vmem:[%s16834_s1 + $0x38] sm:$0xf]  ;;  %v1294_v12 = vpack.c.b16 %v1282_v6, %v1281_v10  ;;  %v963_v42 = vshll.u32 %v10966_v22, 16  ;;  %v12930_v6 = vld [vmem:[#allocation3 + $0x28] sm:$0xff] }
  0xf1   :  { %v2132_v18 = vpop.f32.mrf.mxu2  ;;  %v960_v54 = vor.u32 %v959_v13, %v956_v58  ;;  %v11148_v44 = vor.u32 %v12824_v26, %v11147_v24  ;;  %v1422_v48 = vpack.c.b16 %v1410_v17, %v1409_v14  ;;  %v2042_v58 = vadd.f32 %v14066_v57, %v14151_v28  ;;  %4773 = vmatpush.bf16.msrb.mxu1 %v12930_v6  ;;  %v10936_v22 = vld [vmem:[%s16833_s0 + $0x68] sm:$0xf] }
  0xf2   :  { %v2133_v38 = vadd.f32 %v2132_v18, %v2084_v0  ;;  %v685_v0 = vrot.slane %v683_v34, 5  ;;  %v675_v18 = vshll.u32 %v545_v40, 16  ;;  %v672_v35 = vor.u32 %v671_v61, %v668_v2  ;;  %v515_v40 = vld [vmem:[%s16835_s2 + $0x58] sm:$0xf] }
  0xf3   :  { %v2181_v39 = vpop.f32.mrf.mxu3  ;;  %v2085_v43 = vpop.f32.mrf.mxu1  ;;  %v961_v41 = vrot.slane %v960_v54, 4  ;;  %v697_v10 = vshll.u32 %v515_v40, 16  ;;  %v12937_v54 = vld [vmem:[#allocation3 + $0x60] sm:$0xff] }
  0xf4   :  { %v2182_v33 = vadd.f32 %v2181_v39, %v2133_v38  ;;  %v2086_v59 = vadd.f32 %v2085_v43, %v2037_v31  ;;  %v686_v36 = vor.u32 %v685_v0, %v682_v63  ;;  %v946_v31 = vor.u32 %v945_v56, %v942_v9  ;;  %v516_v9 = vld [vmem:[%s16835_s2 + $0x60] sm:$0xf]  ;;  %4823 = vmatpush.bf16.msrb.mxu2 %v12937_v54 }
  0xf5   :  { %v2232_v60 = vpop.f32.mrf.mxu0  ;;  %v677_v55 = vrot.slane %v675_v18, 5  ;;  %v673_v2 = vrot.slane %v672_v35, 4  ;;  %v965_v63 = vrot.slane %v963_v42, 5  ;;  %v694_v56 = vshrl.u32 %v515_v40, 16  ;;  %v547_v18 = vld [vmem:[%s16835_s2 + $0x5c] sm:$0x1] }
  0xf6   :  { %v14331_v19 = vadd.f32 %v2230_v3, %v2182_v33  ;;  %v949_v3 = vshll.u32 %v10965_v4, 16  ;;  %v691_v33 = vrot.slane %v689_v29, 5  ;;  %v687_v61 = vrot.slane %v686_v36, 4  ;;  %v10935_v4 = vld [vmem:[%s16833_s0 + $0x60] sm:$0xf] }
  0xf7   :  { %v947_v62 = vrot.slane %v946_v31, 4  ;;  %v966_v57 = vsel %vm13661_vm2, %v961_v41, %v965_v63  ;;  %v708_v28 = vshrl.u32 %v516_v9, 16  ;;  %v711_v24 = vshll.u32 %v516_v9, 16 }
  0xf8   :  { %v692_v14 = vsel %vm13661_vm2, %v687_v61, %v691_v33  ;;  %v696_v29 = vrot.slane %v694_v56, 4  ;;  %v968_v35 = vshrl.u32 %v10935_v4, 16  ;;  %v971_v36 = vshll.u32 %v10935_v4, 16  ;;  %v10967_v56 = vld [vmem:[%s16833_s0 + $0x64] sm:$0x1] }
  0xf9   :  { %v2134_v34 = vpop.f32.mrf.mxu2  ;;  %v1412_v33 = vunpack.c.l.b16 %v966_v57  ;;  %v703_v40 = vshll.u32 %v547_v18, 16  ;;  %v713_v61 = vrot.slane %v711_v24, 5  ;;  %v977_v18 = vshll.u32 %v10967_v56, 16 }
  0xfa   :  { %v2135_v38 = vadd.f32 %v2134_v34, %v2086_v59  ;;  %v951_v59 = vrot.slane %v949_v3, 5  ;;  %v699_v34 = vrot.slane %v697_v10, 5  ;;  %v970_v41 = vrot.slane %v968_v35, 4 }
  0xfb   :  { %v2183_v39 = vpop.f32.mrf.mxu3  ;;  %v2088_v43 = vpop.f32.mrf.mxu1  ;;  %v973_v63 = vrot.slane %v971_v36, 5 }
  0xfc   :  { %v2184_v49 = vadd.f32 %v2183_v39, %v2135_v38  ;;  %v2089_v52 = vadd.f32 %v2088_v43, %v2040_v20  ;;  %v952_v17 = vsel %vm13661_vm2, %v947_v62, %v951_v59  ;;  %v982_v39 = vshrl.u32 %v10936_v22, 16  ;;  %v548_v62 = vld [vmem:[%s16835_s2 + $0x64] sm:$0x1] }
  0xfd   :  { %v2235_v8 = vpop.f32.mrf.mxu0  ;;  %v1284_v43 = vunpack.c.l.b16 %v692_v14  ;;  %v700_v59 = vor.u32 %v699_v34, %v696_v29  ;;  %v10968_v14 = vld [vmem:[%s16833_s0 + $0x6c] sm:$0x1] }
  0xfe   :  { %2283 = vmatmul.bf16.gmra.mxu1 %v1294_v12  ;;  %2332 = vmatmul.bf16.gmra.mxu2 %v11116_v23  ;;  %v14344_v0 = vadd.f32 %v2232_v60, %v2184_v49  ;;  %v678_v60 = vsel %vm13661_vm2, %v673_v2, %v677_v55  ;;  %v985_v12 = vshll.u32 %v10936_v22, 16  ;;  %v11151_v49 = vld [vmem:[%s16834_s1 + $0x50] sm:$0xf]  ;;  %v12825_v55 = vld [vmem:[%s16834_s1 + $0x54] sm:$0xf0]  ;;  %v710_v2 = vrot.slane %v708_v28, 4 }
  0xff   :  { %v1283_v42 = vunpack.c.l.b16 %v678_v60  ;;  %v984_v10 = vrot.slane %v982_v39, 4  ;;  %v11152_v60 = vor.u32 %v12825_v55, %v11151_v49  ;;  %v701_v28 = vrot.slane %v700_v59, 4 }
 0x100   :  { %2381 = vmatmul.bf16.gmra.mxu3 %v11148_v44  ;;  %2430 = vmatmul.bf16.gmra.mxu0 %v1422_v48  ;;  %v11119_v44 = vld [vmem:[%s16833_s0 + $0x50] sm:$0xf]  ;;  %v12817_v48 = vld [vmem:[%s16833_s0 + $0x54] sm:$0xf0]  ;;  %v987_v6 = vrot.slane %v985_v12, 5  ;;  %v714_v24 = vor.u32 %v713_v61, %v710_v2 }
 0x101   :  { %v2137_v13 = vpop.f32.mrf.mxu2  ;;  %v518_v12 = vld [vmem:[%s16835_s2 + $0x70] sm:$0xf] }
 0x102   :  { %v2138_v20 = vadd.f32 %v2137_v13, %v2089_v52  ;;  %v1411_v52 = vunpack.c.l.b16 %v952_v17  ;;  %v11120_v13 = vor.u32 %v12817_v48, %v11119_v44  ;;  %v988_v36 = vor.u32 %v987_v6, %v984_v10  ;;  %v12929_v44 = vld [vmem:[#allocation3 + $0x20] sm:$0xff]  ;;  %v10937_v48 = vld [vmem:[%s16833_s0 + $0x70] sm:$0xf] }
 0x103   :  { %v2186_v23 = vpop.f32.mrf.mxu3  ;;  %v2090_v26 = vpop.f32.mrf.mxu1  ;;  %v736_v61 = vshrl.u32 %v518_v12, 16  ;;  %4774 = vmatpush.bf16.msrb.mxu1 %v12929_v44  ;;  %v999_v56 = vshll.u32 %v10937_v48, 16  ;;  %v11155_v44 = vld [vmem:[%s16834_s1 + $0x60] sm:$0xf] }
 0x104   :  { %v2187_v31 = vadd.f32 %v2186_v23, %v2138_v20  ;;  %v2091_v3 = vadd.f32 %v2090_v26, %v2042_v58  ;;  %v1295_v58 = vpack.c.b16 %v1284_v43, %v1283_v42  ;;  %v1423_v20 = vpack.c.b16 %v1412_v33, %v1411_v52 }
 0x105   :  { %v2237_v38 = vpop.f32.mrf.mxu0  ;;  %v705_v23 = vrot.slane %v703_v40, 5  ;;  %v974_v26 = vor.u32 %v973_v63, %v970_v41  ;;  %v715_v42 = vrot.slane %v714_v24, 4  ;;  %v979_v43 = vrot.slane %v977_v18, 5 }
 0x106   :  { %v14383_v9 = vadd.f32 %v2235_v8, %v2187_v31  ;;  %v717_v8 = vshll.u32 %v548_v62, 16  ;;  %v991_v31 = vshll.u32 %v10968_v14, 16  ;;  %v989_v52 = vrot.slane %v988_v36, 4 }
 0x107   :  { %v706_v49 = vsel %vm13661_vm2, %v701_v28, %v705_v23  ;;  %v739_v62 = vshll.u32 %v518_v12, 16  ;;  %v996_v63 = vshrl.u32 %v10937_v48, 16  ;;  %v11123_v23 = vld [vmem:[%s16833_s0 + $0x60] sm:$0xf]  ;;  %v738_v28 = vrot.slane %v736_v61, 4 }
 0x108   :  { %v719_v39 = vrot.slane %v717_v8, 5  ;;  %v993_v55 = vrot.slane %v991_v31, 5  ;;  %v1001_v31 = vrot.slane %v999_v56, 5  ;;  %v10969_v12 = vld [vmem:[%s16833_s0 + $0x74] sm:$0x1] }
 0x109   :  { %v2139_v4 = vpop.f32.mrf.mxu2  ;;  %v741_v24 = vrot.slane %v739_v62, 5  ;;  %v998_v36 = vrot.slane %v996_v63, 4  ;;  %v12826_v48 = vld [vmem:[%s16834_s1 + $0x64] sm:$0xf0] }
 0x10a   :  { %v2140_v17 = vadd.f32 %v2139_v4, %v2091_v3  ;;  %v517_v3 = vld [vmem:[%s16835_s2 + $0x68] sm:$0xf]  ;;  %v720_v6 = vsel %vm13661_vm2, %v715_v42, %v719_v39  ;;  %v11156_v63 = vor.u32 %v12826_v48, %v11155_v44 }
 0x10b   :  { %v2188_v22 = vpop.f32.mrf.mxu3  ;;  %v2093_v57 = vpop.f32.mrf.mxu1  ;;  %v722_v40 = vshrl.u32 %v517_v3, 16  ;;  %v725_v2 = vshll.u32 %v517_v3, 16  ;;  %v12818_v39 = vld [vmem:[%s16833_s0 + $0x64] sm:$0xf0]  ;;  %v1002_v62 = vor.u32 %v1001_v31, %v998_v36 }
 0x10c   :  { %v2189_v29 = vadd.f32 %v2188_v22, %v2140_v17  ;;  %v2094_v34 = vadd.f32 %v2093_v57, %v14069_v1  ;;  %v975_v1 = vrot.slane %v974_v26, 4  ;;  %v1285_v17 = vunpack.c.l.b16 %v706_v49  ;;  %v10970_v49 = vld [vmem:[%s16833_s0 + $0x7c] sm:$0x1]  ;;  %v10940_v31 = vld [vmem:[%s16833_s0 + $0x88] sm:$0xf] }
 0x10d   :  { %v2240_v35 = vpop.f32.mrf.mxu0  ;;  %v994_v22 = vsel %vm13661_vm2, %v989_v52, %v993_v55  ;;  %v724_v8 = vrot.slane %v722_v40, 4  ;;  %v727_v57 = vrot.slane %v725_v2, 5  ;;  %v1286_v26 = vunpack.c.l.b16 %v720_v6 }
 0x10e   :  { %2288 = vmatmul.bf16.gmra.mxu1 %v1295_v58  ;;  %2337 = vmatmul.bf16.gmra.mxu2 %v11120_v13  ;;  %v14398_v54 = vadd.f32 %v2237_v38, %v2189_v29  ;;  %v10938_v38 = vld [vmem:[%s16833_s0 + $0x78] sm:$0xf]  ;;  %v980_v4 = vsel %vm13661_vm2, %v975_v1, %v979_v43  ;;  %v549_v29 = vld [vmem:[%s16835_s2 + $0x6c] sm:$0x1]  ;;  %v1414_v3 = vunpack.c.l.b16 %v994_v22  ;;  %v11124_v61 = vor.u32 %v12818_v39, %v11123_v23 }
 0x10f   :  { %v1010_v58 = vshrl.u32 %v10938_v38, 16  ;;  %v1013_v13 = vshll.u32 %v10938_v38, 16  ;;  %v1413_v18 = vunpack.c.l.b16 %v980_v4  ;;  %v728_v55 = vor.u32 %v727_v57, %v724_v8 }
 0x110   :  { %2386 = vmatmul.bf16.gmra.mxu3 %v11152_v60  ;;  %2435 = vmatmul.bf16.gmra.mxu0 %v1423_v20  ;;  %v12936_v20 = vld [vmem:[#allocation3 + $0x58] sm:$0xff]  ;;  %v731_v38 = vshll.u32 %v549_v29, 16  ;;  %v1296_v2 = vpack.c.b16 %v1286_v26, %v1285_v17  ;;  %v1019_v4 = vshll.u32 %v10970_v49, 16  ;;  %v1003_v57 = vrot.slane %v1002_v62, 4 }
 0x111   :  { %v2142_v33 = vpop.f32.mrf.mxu2  ;;  %4824 = vmatpush.bf16.msrb.mxu2 %v12936_v20  ;;  %v1012_v42 = vrot.slane %v1010_v58, 4  ;;  %v1015_v1 = vrot.slane %v1013_v13, 5  ;;  %v1424_v56 = vpack.c.b16 %v1414_v3, %v1413_v18  ;;  %v12928_v26 = vld [vmem:[#allocation3 + $0x18] sm:$0xff]  ;;  %v10939_v18 = vld [vmem:[%s16833_s0 + $0x80] sm:$0xf]  ;;  %v1041_v62 = vshll.u32 %v10940_v31, 16 }
 0x112   :  { %v2143_v59 = vadd.f32 %v2142_v33, %v2094_v34  ;;  %v550_v34 = vld [vmem:[%s16835_s2 + $0x74] sm:$0x1]  ;;  %v742_v33 = vor.u32 %v741_v24, %v738_v28  ;;  %v733_v22 = vrot.slane %v731_v38, 5  ;;  %v1021_v23 = vrot.slane %v1019_v4, 5  ;;  %v519_v24 = vld [vmem:[%s16835_s2 + $0x78] sm:$0xf]  ;;  %4775 = vmatpush.bf16.msrb.mxu1 %v12928_v26 }
 0x113   :  { %v2191_v41 = vpop.f32.mrf.mxu3  ;;  %v14408_v10 = vpop.f32.mrf.mxu1  ;;  %v745_v40 = vshll.u32 %v550_v34, 16  ;;  %v1016_v6 = vor.u32 %v1015_v1, %v1012_v42  ;;  %v750_v42 = vshrl.u32 %v519_v24, 16  ;;  %v753_v1 = vshll.u32 %v519_v24, 16  ;;  %v11159_v4 = vld [vmem:[%s16834_s1 + $0x70] sm:$0xf] }
 0x114   :  { %v2192_v60 = vadd.f32 %v2191_v41, %v2143_v59  ;;  %v1005_v59 = vshll.u32 %v10969_v12, 16  ;;  %v743_v20 = vrot.slane %v742_v33, 4  ;;  %v1024_v38 = vshrl.u32 %v10939_v18, 16  ;;  %v10971_v26 = vld [vmem:[%s16833_s0 + $0x84] sm:$0x1] }
 0x115   :  { %v14414_v14 = vpop.f32.mrf.mxu0  ;;  %v747_v8 = vrot.slane %v745_v40, 5  ;;  %v1017_v17 = vrot.slane %v1016_v6, 4 }
 0x116   :  { %v14433_v43 = vadd.f32 %v2240_v35, %v2192_v60  ;;  %v729_v60 = vrot.slane %v728_v55, 4  ;;  %v1007_v28 = vrot.slane %v1005_v59, 5  ;;  %v12935_v59 = vld [vmem:[#allocation3 + $0x50] sm:$0xff] }
 0x117   :  { %v748_v36 = vsel %vm13661_vm2, %v743_v20, %v747_v8  ;;  %v1022_v48 = vsel %vm13661_vm2, %v1017_v17, %v1021_v23  ;;  %v551_v20 = vld [vmem:[%s16835_s2 + $0x7c] sm:$0x1]  ;;  %4825 = vmatpush.bf16.msrb.mxu2 %v12935_v59  ;;  %v755_v17 = vrot.slane %v753_v1, 5 }
 0x118   :  { %v734_v34 = vsel %vm13661_vm2, %v729_v60, %v733_v22  ;;  %v1008_v12 = vsel %vm13661_vm2, %v1003_v57, %v1007_v28  ;;  %v1288_v6 = vunpack.c.l.b16 %v748_v36  ;;  %v1416_v22 = vunpack.c.l.b16 %v1022_v48  ;;  %v552_v57 = vld [vmem:[%s16835_s2 + $0x84] sm:$0x1] }
 0x119   :  { %v14444_v52 = vpop.f32.mrf.mxu2  ;;  %v1415_v60 = vunpack.c.l.b16 %v1008_v12  ;;  %v752_v28 = vrot.slane %v750_v42, 4  ;;  %v759_v1 = vshll.u32 %v551_v20, 16 }
 0x11b   :  { %v14446_v35 = vpop.f32.mrf.mxu3  ;;  %v2098_v41 = vpop.f32.mrf.mxu1  ;;  %v1425_v42 = vpack.c.b16 %v1416_v22, %v1415_v60 }
 0x11c   :  { %v2099_v58 = vadd.f32 %v2098_v41, %v14144_v21  ;;  %v520_v21 = vld [vmem:[%s16835_s2 + $0x80] sm:$0xf]  ;;  %v1287_v41 = vunpack.c.l.b16 %v734_v34  ;;  %v1043_v34 = vrot.slane %v1041_v62, 5 }
 0x11d   :  { %v2245_v13 = vpop.f32.mrf.mxu0  ;;  %v764_v49 = vshrl.u32 %v520_v21, 16  ;;  %v767_v55 = vshll.u32 %v520_v21, 16  ;;  %v1026_v21 = vrot.slane %v1024_v38, 4  ;;  %v773_v38 = vshll.u32 %v552_v57, 16 }
 0x11e   :  { %2293 = vmatmul.bf16.gmra.mxu1 %v1296_v2  ;;  %2342 = vmatmul.bf16.gmra.mxu2 %v11124_v61  ;;  %v1027_v2 = vshll.u32 %v10939_v18, 16  ;;  %v1038_v61 = vshrl.u32 %v10940_v31, 16  ;;  %v10972_v31 = vld [vmem:[%s16833_s0 + $0x8c] sm:$0x1] }
 0x11f   :  { %v766_v23 = vrot.slane %v764_v49, 4  ;;  %v769_v24 = vrot.slane %v767_v55, 5  ;;  %v756_v49 = vor.u32 %v755_v17, %v752_v28 }
 0x120   :  { %2391 = vmatmul.bf16.gmra.mxu3 %v11156_v63  ;;  %2440 = vmatmul.bf16.gmra.mxu0 %v1424_v56  ;;  %v11127_v63 = vld [vmem:[%s16833_s0 + $0x70] sm:$0xf]  ;;  %v12819_v56 = vld [vmem:[%s16833_s0 + $0x74] sm:$0xf0]  ;;  %v1029_v18 = vrot.slane %v1027_v2, 5 }
 0x121   :  { %v2147_v29 = vpop.f32.mrf.mxu2  ;;  %v770_v55 = vor.u32 %v769_v24, %v766_v23  ;;  %v111_v23 = vld [vmem:[#allocation2 + $0x8] sm:$0x1]  ;;  %v12948_v24 = vld [vmem:[#allocation3 + $0xb8] sm:$0xff] }
 0x122   :  { %v2148_v39 = vadd.f32 %v2147_v29, %v2099_v58  ;;  %v12827_v58 = vld [vmem:[%s16834_s1 + $0x74] sm:$0xf0]  ;;  %v1040_v29 = vrot.slane %v1038_v61, 4  ;;  %v1030_v62 = vor.u32 %v1029_v18, %v1026_v21  ;;  %4869 = vmatpush.bf16.msrb.mxu3 %v12948_v24 }
 0x123   :  { %v2196_v3 = vpop.f32.mrf.mxu3  ;;  %v14467_v44 = vpop.f32.mrf.mxu1  ;;  %v11160_v12 = vor.u32 %v12827_v58, %v11159_v4  ;;  %v771_v4 = vrot.slane %v770_v55, 4  ;;  %v775_v58 = vrot.slane %v773_v38, 5 }
 0x124   :  { %v2197_v33 = vadd.f32 %v2196_v3, %v2148_v39  ;;  %v1297_v3 = vpack.c.b16 %v1288_v6, %v1287_v41  ;;  %v1044_v59 = vor.u32 %v1043_v34, %v1040_v29  ;;  %v757_v41 = vrot.slane %v756_v49, 4  ;;  %v173_v34 = vld [vmem:[#allocation2 + $0xc] sm:$0x1]  ;;  %v12956_v49 = vld [vmem:[#allocation3 + $0xf8] sm:$0xff] }
 0x125   :  { %v14471_v40 = vpop.f32.mrf.mxu0  ;;  %v761_v6 = vrot.slane %v759_v1, 5  ;;  %v1031_v60 = vrot.slane %v1030_v62, 4  ;;  %v776_v18 = vsel %vm13661_vm2, %v771_v4, %v775_v58  ;;  %v16878_v29 = vmov 0  ;;  %v11131_v62 = vld [vmem:[%s16833_s0 + $0x80] sm:$0xf]  ;;  %4918 = vmatpush.bf16.msrb.mxu0 %v12956_v49  ;;  %v12955_v4 = vld [vmem:[#allocation3 + $0xf0] sm:$0xff] }
 0x126   :  { %v14488_v8 = vadd.f32 %v2245_v13, %v2197_v33  ;;  %v11128_v13 = vor.u32 %v12819_v56, %v11127_v63  ;;  %v1033_v33 = vshll.u32 %v10971_v26, 16  ;;  %v1047_v63 = vshll.u32 %v10972_v31, 16  ;;  %v12927_v56 = vld [vmem:[#allocation3 + $0x10] sm:$0xff]  ;;  %v12953_v49 = vld [vmem:[#allocation3 + $0xe0] sm:$0xff] }
 0x127   :  { %v1045_v20 = vrot.slane %v1044_v59, 4  ;;  %4776 = vmatpush.bf16.msrb.mxu1 %v12927_v56  ;;  %v762_v21 = vsel %vm13661_vm2, %v757_v41, %v761_v6  ;;  %v16879_v29 = vsel %vm14511_vm5, 4294967295, %v16878_v29  ;;  %v1290_v38 = vunpack.c.l.b16 %v776_v18  ;;  %v12820_v59 = vld [vmem:[%s16833_s0 + $0x84] sm:$0xf0]  ;;  %v11163_v41 = vld [vmem:[%s16834_s1 + $0x80] sm:$0xf] }
 0x128   :  { %v1035_v22 = vrot.slane %v1033_v33, 5  ;;  %v1049_v57 = vrot.slane %v1047_v63, 5  ;;  %16880 = vst [vmem:[#allocation18_spill] sm:$0xff] %v16879_v29  ;;  %v1289_v55 = vunpack.c.l.b16 %v762_v21  ;;  %v12947_v33 = vld [vmem:[#allocation3 + $0xb0] sm:$0xff]  ;;  %v12954_v21 = vld [vmem:[#allocation3 + $0xe8] sm:$0xff]  ;;  %v12945_v18 = vld [vmem:[#allocation3 + $0xa0] sm:$0xff] }
 0x129   :  { %v14496_v36 = vpop.f32.mrf.mxu2  ;;  %4870 = vmatpush.bf16.msrb.mxu3 %v12947_v33  ;;  %4919 = vmatpush.bf16.msrb.mxu0 %v12955_v4  ;;  %v12926_v4 = vld [vmem:[#allocation3 + $0x8] sm:$0xff] }
 0x12b   :  { %v14501_v39 = vpop.f32.mrf.mxu3  ;;  %v2103_v48 = vpop.f32.mrf.mxu1  ;;  %4777 = vmatpush.bf16.msrb.mxu1 %v12926_v4 }
 0x12c   :  { %v2104_v2 = vadd.f32 %v2103_v48, %v14072_v7  ;;  %v174_v48 = vsel %vm14525_vm7, 0, %v173_v34 }
 0x12d   :  { %v2250_v61 = vpop.f32.mrf.mxu0  ;;  %175 = vst [vmem:[#allocation2 + $0xc] sm:$0x1] %v174_v48  ;;  %4920 = vmatpush.bf16.msrb.mxu0 %v12954_v21 }
 0x12e   :  { %2298 = vmatmul.bf16.gmra.mxu1 %v1297_v3  ;;  %2347 = vmatmul.bf16.gmra.mxu2 %v11128_v13  ;;  %v1036_v3 = vsel %vm13661_vm2, %v1031_v60, %v1035_v22  ;;  %v1298_v60 = vpack.c.b16 %v1290_v38, %v1289_v55  ;;  %v11132_v22 = vor.u32 %v12820_v59, %v11131_v62  ;;  %v12944_v55 = vld [vmem:[#allocation3 + $0x98] sm:$0xff] }
 0x12f   :  { %v1417_v63 = vunpack.c.l.b16 %v1036_v3  ;;  %v176_v3 = vld [vmem:[#allocation2 + $0x14] sm:$0x1] }
 0x130   :  { %2396 = vmatmul.bf16.gmra.mxu3 %v11160_v12  ;;  %2445 = vmatmul.bf16.gmra.mxu0 %v1425_v42  ;;  %v1050_v12 = vsel %vm13661_vm2, %v1045_v20, %v1049_v57  ;;  %v112_v42 = vsel %vm14511_vm5, 0, %v111_v23  ;;  %v12946_v20 = vld [vmem:[#allocation3 + $0xa8] sm:$0xff]  ;;  %v177_v48 = vsel %vm14525_vm7, 0, %v176_v3 }
 0x131   :  { %v2152_v28 = vpop.f32.mrf.mxu2  ;;  %113 = vst [vmem:[#allocation2 + $0x8] sm:$0x1] %v112_v42  ;;  %v1418_v56 = vunpack.c.l.b16 %v1050_v12  ;;  %4871 = vmatpush.bf16.msrb.mxu3 %v12946_v20  ;;  %4921 = vmatpush.bf16.msrb.mxu0 %v12953_v49  ;;  %v120_v49 = vld [vmem:[#allocation2 + $0x20] sm:$0x1] }
 0x132   :  { %v2153_v7 = vadd.f32 %v2152_v28, %v2104_v2  ;;  %178 = vst [vmem:[#allocation2 + $0x14] sm:$0x1] %v177_v48 }
 0x133   :  { %v2201_v17 = vpop.f32.mrf.mxu3  ;;  %v14504_v26 = vpop.f32.mrf.mxu1 }
 0x134   :  { %v2202_v13 = vadd.f32 %v2201_v17, %v2153_v7  ;;  %v1426_v7 = vpack.c.b16 %v1418_v56, %v1417_v63  ;;  %v13412_v17 = vmov 0   ;;  %v12934_v56 = vld [vmem:[#allocation3 + $0x48] sm:$0xff] }
 0x135   :  { %v14515_v31 = vpop.f32.mrf.mxu0  ;;  %96 = vst [vmem:[#allocation2] sm:$0xf] %v13412_v17  ;;  %4872 = vmatpush.bf16.msrb.mxu3 %v12945_v18  ;;  %4826 = vmatpush.bf16.msrb.mxu2 %v12934_v56 }
 0x136   :  { %v14531_v2 = vadd.f32 %v2250_v61, %v2202_v13  ;;  %v12828_v61 = vld [vmem:[%s16834_s1 + $0x84] sm:$0xf0]  ;;  %97 = vst [vmem:[#allocation2 + $0x4] sm:$0x1] %v13412_v17  ;;  %v114_v13 = vld [vmem:[#allocation2 + $0x10] sm:$0x1] }
 0x137   :  { %v11164_v28 = vor.u32 %v12828_v61, %v11163_v41  ;;  %98 = vst [vmem:[#allocation2 + $0x50] sm:$0xf] %v13412_v17  ;;  %v115_v42 = vsel %vm14511_vm5, 0, %v114_v13 }
 0x138   :  { %99 = vst [vmem:[#allocation2 + $0x54] sm:$0x1] %v13412_v17 }
 0x139   :  { %v14545_v6 = vpop.f32.mrf.mxu2  ;;  %101 = vst [vmem:[#allocation2 + $0x48] sm:$0xf] %v13412_v17  ;;  %4873 = vmatpush.bf16.msrb.mxu3 %v12944_v55  ;;  %v182_v55 = vld [vmem:[#allocation2 + $0x24] sm:$0x1] }
 0x13a   :  { %102 = vst [vmem:[#allocation2 + $0x4c] sm:$0x1] %v13412_v17  ;;  %v183_v56 = vsel %vm14525_vm7, 0, %v182_v55 }
 0x13b   :  { %v14547_v58 = vpop.f32.mrf.mxu3  ;;  %v2108_v57 = vpop.f32.mrf.mxu1  ;;  %103 = vst [vmem:[#allocation2 + $0x98] sm:$0xf] %v13412_v17 }
 0x13c   :  { %v2109_v23 = vadd.f32 %v2108_v57, %v14149_v27  ;;  %116 = vst [vmem:[#allocation2 + $0x10] sm:$0x1] %v115_v42  ;;  %v108_v33 = vld [vmem:[#allocation2] sm:$0x1] }
 0x13d   :  { %v2255_v24 = vpop.f32.mrf.mxu0  ;;  %v170_v62 = vld [vmem:[#allocation2 + $0x4] sm:$0x1]  ;;  %v109_v41 = vsel %vm14511_vm5, 0, %v108_v33  ;;  %104 = vst [vmem:[#allocation2 + $0x9c] sm:$0x1] %v13412_v17  ;;  %v12951_v17 = vld [vmem:[#allocation3 + $0xd0] sm:$0xff] }
 0x13e   :  { %2303 = vmatmul.bf16.gmra.mxu1 %v1298_v60  ;;  %2352 = vmatmul.bf16.gmra.mxu2 %v11132_v22  ;;  %v171_v61 = vsel %vm14525_vm7, 0, %v170_v62  ;;  %v12952_v60 = vld [vmem:[#allocation3 + $0xd8] sm:$0xff]  ;;  %110 = vst [vmem:[#allocation2] sm:$0x1] %v109_v41  ;;  %v12943_v22 = vld [vmem:[#allocation3 + $0x90] sm:$0xff] }
 0x13f   :  { %172 = vst [vmem:[#allocation2 + $0x4] sm:$0x1] %v171_v61  ;;  %4922 = vmatpush.bf16.msrb.mxu0 %v12952_v60  ;;  %4874 = vmatpush.bf16.msrb.mxu3 %v12943_v22  ;;  %v12949_v61 = vld [vmem:[#allocation3 + $0xc0] sm:$0xff] }
 0x140   :  { %2401 = vmatmul.bf16.gmra.mxu3 %v11164_v28  ;;  %2450 = vmatmul.bf16.gmra.mxu0 %v1426_v7  ;;  %v117_v28 = vld [vmem:[#allocation2 + $0x18] sm:$0x1]  ;;  %v179_v7 = vld [vmem:[#allocation2 + $0x1c] sm:$0x1]  ;;  %v12933_v22 = vld [vmem:[#allocation3 + $0x40] sm:$0xff] }
 0x141   :  { %v2157_v34 = vpop.f32.mrf.mxu2  ;;  %v118_v18 = vsel %vm14511_vm5, 0, %v117_v28  ;;  %184 = vst [vmem:[#allocation2 + $0x24] sm:$0x1] %v183_v56  ;;  %4827 = vmatpush.bf16.msrb.mxu2 %v12933_v22  ;;  %v2651_v56 = vld [vmem:[#allocation2 + $0x8] sm:$0xf] }
 0x142   :  { %v2158_v27 = vadd.f32 %v2157_v34, %v2109_v23  ;;  %v12925_v23 = vld [vmem:[#allocation3] sm:$0xff]  ;;  %v180_v34 = vsel %vm14525_vm7, 0, %v179_v7  ;;  %119 = vst [vmem:[#allocation2 + $0x18] sm:$0x1] %v118_v18  ;;  %v123_v18 = vld [vmem:[#allocation2 + $0x28] sm:$0x1] }
 0x143   :  { %v2206_v12 = vpop.f32.mrf.mxu3  ;;  %v14554_v38 = vpop.f32.mrf.mxu1  ;;  %4778 = vmatpush.bf16.msrb.mxu1 %v12925_v23  ;;  %181 = vst [vmem:[#allocation2 + $0x1c] sm:$0x1] %v180_v34  ;;  %4923 = vmatpush.bf16.msrb.mxu0 %v12951_v17  ;;  %v185_v34 = vld [vmem:[#allocation2 + $0x2c] sm:$0x1] }
 0x144   :  { %v2207_v59 = vadd.f32 %v2206_v12, %v2158_v27  ;;  %v12950_v27 = vld [vmem:[#allocation3 + $0xc8] sm:$0xff]  ;;  %v12941_v12 = vld [vmem:[#allocation3 + $0x80] sm:$0xff] }
 0x145   :  { %v14556_v63 = vpop.f32.mrf.mxu0 }
 0x146   :  { %v14562_v20 = vadd.f32 %v2255_v24, %v2207_v59  ;;  %v12942_v24 = vld [vmem:[#allocation3 + $0x88] sm:$0xff]  ;;  %v121_v59 = vsel %vm14511_vm5, 0, %v120_v49 }
 0x147   :  { %4875 = vmatpush.bf16.msrb.mxu3 %v12942_v24  ;;  %4924 = vmatpush.bf16.msrb.mxu0 %v12950_v27  ;;  %122 = vst [vmem:[#allocation2 + $0x20] sm:$0x1] %v121_v59  ;;  %v124_v27 = vsel %vm14511_vm5, 0, %v123_v18 }
 0x148   :  { %125 = vst [vmem:[#allocation2 + $0x28] sm:$0x1] %v124_v27  ;;  %v2763_v27 = vld [vmem:[#allocation2 + $0x4] sm:$0x1] }
 0x149   :  { %v14564_v57 = vpop.f32.mrf.mxu2 }
 0x14b   :  { %v14566_v21 = vpop.f32.mrf.mxu3  ;;  %v2269_v13 = vpop.f32.mrf.mxu1  ;;  %4876 = vmatpush.bf16.msrb.mxu3 %v12941_v12  ;;  %4925 = vmatpush.bf16.msrb.mxu0 %v12949_v61  ;;  %v186_v12 = vsel %vm14525_vm7, 0, %v185_v34 }
 0x14c   :  { %v2270_v42 = vadd.f32 %v2269_v13, %v14227_v51  ;;  %187 = vst [vmem:[#allocation2 + $0x2c] sm:$0x1] %v186_v12  ;;  %v3003_v12 = vld [vmem:[#allocation2] sm:$0xe] }
 0x14d   :  { %v2416_v3 = vpop.f32.mrf.mxu0 }
 0x151   :  { %v2318_v48 = vpop.f32.mrf.mxu2 }
 0x152   :  { %v2319_v33 = vadd.f32 %v2318_v48, %v2270_v42 }
 0x153   :  { %v2367_v62 = vpop.f32.mrf.mxu3  ;;  %v2271_v41 = vpop.f32.mrf.mxu1 }
 0x154   :  { %v2368_v4 = vadd.f32 %v2367_v62, %v2319_v33  ;;  %v2272_v7 = vadd.f32 %v2271_v41, %v14240_v32  ;;  %v2747_v32 = vld [vmem:[#allocation2] sm:$0xf]  ;;  %v2654_v41 = vld [vmem:[#allocation2 + $0xc] sm:$0x1] }
 0x155   :  { %v2418_v60 = vpop.f32.mrf.mxu0  ;;  %v2780_v61 = vshrl.u32 %v2747_v32, 16 }
 0x156   :  { %v2417_v51 = vadd.f32 %v2416_v3, %v2368_v4  ;;  %v2783_v4 = vshll.u32 %v2747_v32, 16 }
 0x158   :  { %v2456_v28 = vmax.f32 %v2417_v51, 0.0 }
 0x159   :  { %v2320_v23 = vpop.f32.mrf.mxu2 }
 0x15a   :  { %v2472_v17 = vpack.c.bf16 %v2456_v28, %v2456_v28  ;;  %v2321_v24 = vadd.f32 %v2320_v23, %v2272_v7  ;;  %v2096_v23 = vadd.f32 %v14408_v10, %v14113_v46  ;;  %v2785_v46 = vrot.slane %v2783_v4, 5  ;;  %v126_v10 = vld [vmem:[#allocation2 + $0x30] sm:$0x1] }
 0x15b   :  { %v2369_v13 = vpop.f32.mrf.mxu3  ;;  %v2274_v42 = vpop.f32.mrf.mxu1 }
 0x15c   :  { %v2489_v48 = vshrl.u32 %v2472_v17, 16  ;;  %v2370_v3 = vadd.f32 %v2369_v13, %v2321_v24  ;;  %v2492_v33 = vshll.u32 %v2472_v17, 16  ;;  %v2275_v7 = vadd.f32 %v2274_v42, %v14282_v37 }
 0x15d   :  { %v2421_v49 = vpop.f32.mrf.mxu0  ;;  %v2782_v42 = vrot.slane %v2780_v61, 4 }
 0x15e   :  { %v2491_v55 = vrot.slane %v2489_v48, 7  ;;  %v2419_v62 = vadd.f32 %v2418_v60, %v2370_v3  ;;  %v2145_v48 = vadd.f32 %v14444_v52, %v2096_v23  ;;  %v2657_v23 = vld [vmem:[#allocation2 + $0x10] sm:$0xf] }
 0x160   :  { %v2494_v22 = vor.u32 %v2492_v33, %v2491_v55  ;;  %v2495_v51 = vrot.slane %v2491_v55, 4  ;;  %v2457_v28 = vmax.f32 %v2419_v62, 0.0  ;;  %v12972_v33 = vld [vmem:[#allocation3 + $0x178] sm:$0xff]  ;;  %v11453_v62 = vrot.slane %v3003_v12, 9 }
 0x161   :  { %v2323_v18 = vpop.f32.mrf.mxu2  ;;  %5016 = vmatpush.bf16.msra.mxu2 %v12972_v33  ;;  %v2194_v4 = vadd.f32 %v14446_v35, %v2145_v48 }
 0x162   :  { %v2652_v60 = vsel %vm14583_vm9, %v2494_v22, %v2651_v56  ;;  %v2655_v34 = vsel %vm14511_vm5, %v2495_v51, %v2654_v41  ;;  %v2473_v17 = vpack.c.bf16 %v2457_v28, %v2457_v28  ;;  %v2324_v24 = vadd.f32 %v2323_v18, %v2275_v7  ;;  %v188_v22 = vld [vmem:[#allocation2 + $0x34] sm:$0x1] }
 0x163   :  { %v2372_v13 = vpop.f32.mrf.mxu3  ;;  %2653 = vst [vmem:[#allocation2 + $0x8] sm:$0xf] %v2652_v60  ;;  %v2276_v37 = vpop.f32.mrf.mxu1  ;;  %v3056_v56 = vrot.slane %v2763_v27, 5  ;;  %v127_v41 = vsel %vm14511_vm5, 0, %v126_v10  ;;  %v189_v61 = vsel %vm14525_vm7, 0, %v188_v22  ;;  %v2786_v60 = vor.u32 %v2785_v46, %v2782_v42 }
 0x164   :  { %2656 = vst [vmem:[#allocation2 + $0xc] sm:$0x1] %v2655_v34  ;;  %v2497_v3 = vshrl.u32 %v2473_v17, 16  ;;  %v2373_v32 = vadd.f32 %v2372_v13, %v2324_v24  ;;  %v2500_v28 = vshll.u32 %v2473_v17, 16  ;;  %v2660_v18 = vld [vmem:[#allocation2 + $0x14] sm:$0x1]  ;;  %v2277_v24 = vadd.f32 %v2276_v37, %v14298_v15 }
 0x165   :  { %v2423_v55 = vpop.f32.mrf.mxu0  ;;  %128 = vst [vmem:[#allocation2 + $0x30] sm:$0x1] %v127_v41  ;;  %v11503_v13 = vld [vmem:[#allocation2] sm:$0xf]  ;;  %v3057_v10 = vsel %vm14599_vm12, %v11453_v62, %v3056_v56 }
 0x166   :  { %v2499_v51 = vrot.slane %v2497_v3, 7  ;;  %v2422_v7 = vadd.f32 %v2421_v49, %v2373_v32  ;;  %190 = vst [vmem:[#allocation2 + $0x34] sm:$0x1] %v189_v61  ;;  %v2789_v3 = vshll.u32 %v2763_v27, 16 }
 0x168   :  { %v2502_v34 = vor.u32 %v2500_v28, %v2499_v51  ;;  %v2503_v17 = vrot.slane %v2499_v51, 4  ;;  %v2458_v49 = vmax.f32 %v2422_v7, 0.0  ;;  %v14614_v28 = vadd.f32 %v14414_v14, %v2194_v4  ;;  %v12964_v4 = vld [vmem:[#allocation3 + $0x138] sm:$0xff] }
 0x169   :  { %v2325_v12 = vpop.f32.mrf.mxu2  ;;  %v3935_v7 = vunpack.c.l.b16 %v3057_v10  ;;  %4967 = vmatpush.bf16.msra.mxu1 %v12964_v4 }
 0x16a   :  { %v2658_v32 = vsel %vm14583_vm9, %v2502_v34, %v2657_v23  ;;  %v2661_v35 = vsel %vm14511_vm5, %v2503_v17, %v2660_v18  ;;  %v2474_v48 = vpack.c.bf16 %v2458_v49, %v2458_v49  ;;  %v2326_v42 = vadd.f32 %v2325_v12, %v2277_v24  ;;  %v12901_v33 = vld [vmem:[#allocation2 + $0x4] sm:$0xf0]  ;;  %v2663_v18 = vld [vmem:[#allocation2 + $0x18] sm:$0xf]  ;;  %v2666_v34 = vld [vmem:[#allocation2 + $0x1c] sm:$0x1] }
 0x16b   :  { %v2374_v46 = vpop.f32.mrf.mxu3  ;;  %v3004_v41 = vld [vmem:[#allocation2 + $0x8] sm:$0xe]  ;;  %2659 = vst [vmem:[#allocation2 + $0x10] sm:$0xf] %v2658_v32  ;;  %v2279_v22 = vpop.f32.mrf.mxu1  ;;  %v11504_v15 = vor.u32 %v12901_v33, %v11503_v13  ;;  %v2764_v37 = vld [vmem:[#allocation2 + $0xc] sm:$0x1] }
 0x16c   :  { %v11454_v51 = vrot.slane %v3004_v41, 9  ;;  %2662 = vst [vmem:[#allocation2 + $0x14] sm:$0x1] %v2661_v35  ;;  %v2505_v27 = vshrl.u32 %v2474_v48, 16  ;;  %v2375_v62 = vadd.f32 %v2374_v46, %v2326_v42  ;;  %v2748_v61 = vld [vmem:[#allocation2 + $0x8] sm:$0xf]  ;;  %v2280_v14 = vadd.f32 %v2279_v22, %v14331_v19 }
 0x16d   :  { %v14616_v56 = vpop.f32.mrf.mxu0  ;;  %v2787_v23 = vrot.slane %v2786_v60, 4  ;;  %4779 = vmatmul.bf16.vlgmr.msrb.gmra.mxu1 %v11504_v15  ;;  %v3060_v17 = vrot.slane %v2764_v37, 5  ;;  %v2791_v49 = vrot.slane %v2789_v3, 5  ;;  %v2794_v24 = vshrl.u32 %v2748_v61, 16  ;;  %v129_v35 = vld [vmem:[#allocation2 + $0x38] sm:$0x1] }
 0x16e   :  { %v2797_v13 = vshll.u32 %v2748_v61, 16  ;;  %v2507_v12 = vrot.slane %v2505_v27, 7  ;;  %v2508_v32 = vshll.u32 %v2474_v48, 16  ;;  %v2424_v33 = vadd.f32 %v2423_v55, %v2375_v62  ;;  %v191_v41 = vld [vmem:[#allocation2 + $0x3c] sm:$0x1] }
 0x16f   :  { %v3061_v42 = vsel %vm14599_vm12, %v11454_v51, %v3060_v17  ;;  %v2796_v10 = vrot.slane %v2794_v24, 4  ;;  %v2803_v60 = vshll.u32 %v2764_v37, 16  ;;  %v2792_v55 = vsel %vm13661_vm2, %v2787_v23, %v2791_v49  ;;  %v11535_v24 = vld [vmem:[#allocation2 + $0x8] sm:$0xf] }
 0x170   :  { %v2799_v46 = vrot.slane %v2797_v13, 5  ;;  %v2510_v25 = vor.u32 %v2508_v32, %v2507_v12  ;;  %v2511_v15 = vrot.slane %v2507_v12, 4  ;;  %v2459_v45 = vmax.f32 %v2424_v33, 0.0 }
 0x171   :  { %v3936_v3 = vunpack.c.l.b16 %v3061_v42  ;;  %v2328_v61 = vpop.f32.mrf.mxu2  ;;  %v130_v19 = vsel %vm14511_vm5, 0, %v129_v35  ;;  %v192_v22 = vsel %vm14525_vm7, 0, %v191_v41  ;;  %v2805_v33 = vrot.slane %v2803_v60, 5 }
 0x172   :  { %v2800_v48 = vor.u32 %v2799_v46, %v2796_v10  ;;  %v2664_v37 = vsel %vm14583_vm9, %v2510_v25, %v2663_v18  ;;  %v2667_v51 = vsel %vm14511_vm5, %v2511_v15, %v2666_v34  ;;  %v2475_v27 = vpack.c.bf16 %v2459_v45, %v2459_v45  ;;  %v12909_v13 = vld [vmem:[#allocation2 + $0xc] sm:$0xf0]  ;;  %131 = vst [vmem:[#allocation2 + $0x38] sm:$0x1] %v130_v19 }
 0x173   :  { %v2329_v62 = vadd.f32 %v2328_v61, %v2280_v14  ;;  %v2377_v17 = vpop.f32.mrf.mxu3  ;;  %2665 = vst [vmem:[#allocation2 + $0x18] sm:$0xf] %v2664_v37  ;;  %v3951_v23 = vpack.c.b16 %v3936_v3, %v3935_v7  ;;  %v2281_v49 = vpop.f32.mrf.mxu1  ;;  %v11536_v12 = vor.u32 %v12909_v13, %v11535_v24  ;;  %v14631_v4 = vld [vmem:[#allocation2 + $0x14] sm:$0x1]  ;;  %v3903_v45 = vunpack.c.l.b16 %v2792_v55  ;;  %v3005_v34 = vld [vmem:[#allocation2 + $0x10] sm:$0xe] }
 0x174   :  { %v2801_v32 = vrot.slane %v2800_v48, 4  ;;  %2668 = vst [vmem:[#allocation2 + $0x1c] sm:$0x1] %v2667_v51  ;;  %v2513_v35 = vshrl.u32 %v2475_v27, 16  ;;  %v2516_v25 = vshll.u32 %v2475_v27, 16  ;;  %v2101_v14 = vadd.f32 %v14467_v44, %v14182_v16  ;;  %v12971_v55 = vld [vmem:[#allocation3 + $0x170] sm:$0xff] }
 0x175   :  { %v2378_v18 = vadd.f32 %v2377_v17, %v2329_v62  ;;  %v14633_v42 = vpop.f32.mrf.mxu0  ;;  %4877 = vmatmul.bf16.vlgmr.msrb.gmra.mxu3 %v3951_v23  ;;  %4926 = vmatmul.bf16.vlgmr.msrb.gmra.mxu0 %v11536_v12  ;;  %193 = vst [vmem:[#allocation2 + $0x3c] sm:$0x1] %v192_v22  ;;  %v11455_v10 = vrot.slane %v3005_v34, 9  ;;  %v3064_v46 = vrot.slane %v14631_v4, 5  ;;  %v2749_v60 = vld [vmem:[#allocation2 + $0x10] sm:$0xf]  ;;  %v2282_v37 = vadd.f32 %v2281_v49, %v14344_v0 }
 0x176   :  { %v2806_v7 = vsel %vm13661_vm2, %v2801_v32, %v2805_v33  ;;  %v2515_v41 = vrot.slane %v2513_v35, 7  ;;  %v2808_v61 = vshrl.u32 %v2749_v60, 16  ;;  %v132_v48 = vld [vmem:[#allocation2 + $0x40] sm:$0x1]  ;;  %v2150_v19 = vadd.f32 %v14496_v36, %v2101_v14  ;;  %v2672_v44 = vld [vmem:[#allocation2 + $0x24] sm:$0x1]  ;;  %5017 = vmatpush.bf16.msra.mxu2 %v12971_v55 }
 0x177   :  { %v2427_v15 = vadd.f32 %v14616_v56, %v2378_v18  ;;  %v3904_v3 = vunpack.c.l.b16 %v2806_v7  ;;  %v2669_v16 = vld [vmem:[#allocation2 + $0x20] sm:$0xf]  ;;  %v2811_v51 = vshll.u32 %v2749_v60, 16  ;;  %v133_v22 = vsel %vm14511_vm5, 0, %v132_v48  ;;  %v194_v56 = vld [vmem:[#allocation2 + $0x44] sm:$0x1] }
 0x178   :  { %v2518_v27 = vor.u32 %v2516_v25, %v2515_v41  ;;  %v2519_v62 = vrot.slane %v2515_v41, 4  ;;  %134 = vst [vmem:[#allocation2 + $0x40] sm:$0x1] %v133_v22  ;;  %v14647_v23 = vsel %vm14599_vm12, %v11455_v10, %v3064_v46  ;;  %v2810_v36 = vrot.slane %v2808_v61, 4  ;;  %v11507_v18 = vld [vmem:[#allocation2 + $0x10] sm:$0xf] }
 0x179   :  { %v2460_v17 = vmax.f32 %v2427_v15, 0.0  ;;  %v3919_v24 = vpack.c.b16 %v3904_v3, %v3903_v45  ;;  %v2330_v13 = vpop.f32.mrf.mxu2  ;;  %v2813_v12 = vrot.slane %v2811_v51, 5  ;;  %v2817_v0 = vshll.u32 %v14631_v4, 16 }
 0x17a   :  { %v2670_v49 = vsel %vm14583_vm9, %v2518_v27, %v2669_v16  ;;  %v2673_v32 = vsel %vm14511_vm5, %v2519_v62, %v2672_v44  ;;  %v2331_v35 = vadd.f32 %v2330_v13, %v2282_v37  ;;  %v12902_v45 = vld [vmem:[#allocation2 + $0x14] sm:$0xf0]  ;;  %v195_v60 = vsel %vm14525_vm7, 0, %v194_v56  ;;  %v2675_v16 = vld [vmem:[#allocation2 + $0x28] sm:$0xf]  ;;  %v12963_v27 = vld [vmem:[#allocation3 + $0x130] sm:$0xff] }
 0x17b   :  { %v2476_v33 = vpack.c.bf16 %v2460_v17, %v2460_v17  ;;  %4828 = vmatmul.bf16.vlgmr.msrb.gmra.mxu2 %v3919_v24  ;;  %v2379_v25 = vpop.f32.mrf.mxu3  ;;  %v3006_v34 = vld [vmem:[#allocation2 + $0x18] sm:$0xe]  ;;  %2671 = vst [vmem:[#allocation2 + $0x20] sm:$0xf] %v2670_v49  ;;  %v2284_v14 = vpop.f32.mrf.mxu1  ;;  %v11508_v7 = vor.u32 %v12902_v45, %v11507_v18  ;;  %v14654_v10 = vld [vmem:[#allocation2 + $0x1c] sm:$0x1]  ;;  %v2814_v4 = vor.u32 %v2813_v12, %v2810_v36  ;;  %v3937_v37 = vunpack.c.l.b16 %v14647_v23 }
 0x17c   :  { %v11456_v46 = vrot.slane %v3006_v34, 9  ;;  %v2199_v41 = vadd.f32 %v14501_v39, %v2150_v19  ;;  %v2106_v15 = vadd.f32 %v14504_v26, %v14116_v53  ;;  %2674 = vst [vmem:[#allocation2 + $0x24] sm:$0x1] %v2673_v32  ;;  %v2380_v61 = vadd.f32 %v2379_v25, %v2331_v35  ;;  %v2750_v51 = vld [vmem:[#allocation2 + $0x18] sm:$0xf]  ;;  %4968 = vmatpush.bf16.msra.mxu1 %v12963_v27 }
 0x17d   :  { %v2521_v3 = vshrl.u32 %v2476_v33, 16  ;;  %v14661_v55 = vpop.f32.mrf.mxu0  ;;  %v2524_v48 = vshll.u32 %v2476_v33, 16  ;;  %4784 = vmatmul.bf16.gmra.mxu1 %v11508_v7  ;;  %v3068_v44 = vrot.slane %v14654_v10, 5  ;;  %v2815_v22 = vrot.slane %v2814_v4, 4  ;;  %196 = vst [vmem:[#allocation2 + $0x44] sm:$0x1] %v195_v60 }
 0x17e   :  { %v2429_v39 = vadd.f32 %v14633_v42, %v2380_v61  ;;  %v2822_v19 = vshrl.u32 %v2750_v51, 16  ;;  %v2825_v53 = vshll.u32 %v2750_v51, 16  ;;  %v2678_v26 = vld [vmem:[#allocation2 + $0x2c] sm:$0x1]  ;;  %v2285_v17 = vadd.f32 %v2284_v14, %v14383_v9  ;;  %v141_v23 = vld [vmem:[#allocation2 + $0x58] sm:$0x1] }
 0x17f   :  { %v2523_v62 = vrot.slane %v2521_v3, 7  ;;  %v3069_v24 = vsel %vm14599_vm12, %v11456_v46, %v3068_v44  ;;  %v2819_v56 = vrot.slane %v2817_v0, 5  ;;  %v2831_v13 = vshll.u32 %v14654_v10, 16  ;;  %v203_v33 = vld [vmem:[#allocation2 + $0x5c] sm:$0x1] }
 0x180   :  { %v2461_v49 = vmax.f32 %v2429_v39, 0.0  ;;  %v3938_v32 = vunpack.c.l.b16 %v3069_v24  ;;  %v2824_v25 = vrot.slane %v2822_v19, 4  ;;  %v2827_v18 = vrot.slane %v2825_v53, 5  ;;  %v11539_v10 = vld [vmem:[#allocation2 + $0x18] sm:$0xf] }
 0x181   :  { %v2526_v36 = vor.u32 %v2524_v48, %v2523_v62  ;;  %v2527_v12 = vrot.slane %v2523_v62, 4  ;;  %v2333_v42 = vpop.f32.mrf.mxu2  ;;  %v2820_v35 = vsel %vm13661_vm2, %v2815_v22, %v2819_v56  ;;  %v142_v9 = vsel %vm14511_vm5, 0, %v141_v23  ;;  %v2681_v19 = vld [vmem:[#allocation2 + $0x30] sm:$0xf] }
 0x182   :  { %v2477_v34 = vpack.c.bf16 %v2461_v49, %v2461_v49  ;;  %v2334_v14 = vadd.f32 %v2333_v42, %v2285_v17  ;;  %v12910_v46 = vld [vmem:[#allocation2 + $0x1c] sm:$0xf0]  ;;  %143 = vst [vmem:[#allocation2 + $0x58] sm:$0x1] %v142_v9  ;;  %v3952_v4 = vpack.c.b16 %v3938_v32, %v3937_v37  ;;  %v2828_v61 = vor.u32 %v2827_v18, %v2824_v25 }
 0x183   :  { %v2676_v0 = vsel %vm14583_vm9, %v2526_v36, %v2675_v16  ;;  %v2679_v45 = vsel %vm14511_vm5, %v2527_v12, %v2678_v26  ;;  %v2382_v7 = vpop.f32.mrf.mxu3  ;;  %v2286_v60 = vpop.f32.mrf.mxu1  ;;  %v11540_v3 = vor.u32 %v12910_v46, %v11539_v10  ;;  %v204_v48 = vsel %vm14525_vm7, 0, %v203_v33  ;;  %v2767_v44 = vld [vmem:[#allocation2 + $0x24] sm:$0x1]  ;;  %v3007_v62 = vld [vmem:[#allocation2 + $0x20] sm:$0xe]  ;;  %v12970_v36 = vld [vmem:[#allocation3 + $0x168] sm:$0xff] }
 0x184   :  { %2677 = vst [vmem:[#allocation2 + $0x28] sm:$0xf] %v2676_v0  ;;  %v2155_v16 = vadd.f32 %v14545_v6, %v2106_v15  ;;  %v2529_v51 = vshrl.u32 %v2477_v34, 16  ;;  %v2383_v22 = vadd.f32 %v2382_v7, %v2334_v14  ;;  %v14684_v39 = vadd.f32 %v14471_v40, %v2199_v41  ;;  %v2751_v23 = vld [vmem:[#allocation2 + $0x20] sm:$0xf]  ;;  %5018 = vmatpush.bf16.msra.mxu2 %v12970_v36 }
 0x185   :  { %2680 = vst [vmem:[#allocation2 + $0x2c] sm:$0x1] %v2679_v45  ;;  %v14681_v27 = vpop.f32.mrf.mxu0  ;;  %4882 = vmatmul.bf16.gmra.mxu3 %v3952_v4  ;;  %4931 = vmatmul.bf16.gmra.mxu0 %v11540_v3  ;;  %v2829_v37 = vrot.slane %v2828_v61, 4  ;;  %v2833_v53 = vrot.slane %v2831_v13, 5  ;;  %v3905_v26 = vunpack.c.l.b16 %v2820_v35  ;;  %v11457_v17 = vrot.slane %v3007_v62, 9 }
 0x186   :  { %205 = vst [vmem:[#allocation2 + $0x5c] sm:$0x1] %v204_v48  ;;  %v2531_v24 = vrot.slane %v2529_v51, 7  ;;  %v2532_v56 = vshll.u32 %v2477_v34, 16  ;;  %v2432_v6 = vadd.f32 %v14661_v55, %v2383_v22  ;;  %v3072_v15 = vrot.slane %v2767_v44, 5 }
 0x187   :  { %v2684_v12 = vld [vmem:[#allocation2 + $0x34] sm:$0x1]  ;;  %v2834_v40 = vsel %vm13661_vm2, %v2829_v37, %v2833_v53  ;;  %v2836_v41 = vshrl.u32 %v2751_v23, 16  ;;  %v2839_v49 = vshll.u32 %v2751_v23, 16  ;;  %v2845_v32 = vshll.u32 %v2767_v44, 16 }
 0x188   :  { %v2534_v33 = vor.u32 %v2532_v56, %v2531_v24  ;;  %v2535_v42 = vrot.slane %v2531_v24, 4  ;;  %v2462_v13 = vmax.f32 %v2432_v6, 0.0  ;;  %v3906_v35 = vunpack.c.l.b16 %v2834_v40  ;;  %v11511_v9 = vld [vmem:[#allocation2 + $0x20] sm:$0xf] }
 0x189   :  { %v2287_v25 = vadd.f32 %v2286_v60, %v14398_v54  ;;  %v2335_v18 = vpop.f32.mrf.mxu2  ;;  %v3073_v55 = vsel %vm14599_vm12, %v11457_v17, %v3072_v15  ;;  %v2838_v0 = vrot.slane %v2836_v41, 4  ;;  %v2841_v45 = vrot.slane %v2839_v49, 5  ;;  %v144_v61 = vld [vmem:[#allocation2 + $0x60] sm:$0x1]  ;;  %v206_v17 = vld [vmem:[#allocation2 + $0x64] sm:$0x1] }
 0x18a   :  { %v2682_v34 = vsel %vm14583_vm9, %v2534_v33, %v2681_v19  ;;  %v2685_v14 = vsel %vm14511_vm5, %v2535_v42, %v2684_v12  ;;  %v2478_v7 = vpack.c.bf16 %v2462_v13, %v2462_v13  ;;  %v3920_v10 = vpack.c.b16 %v3906_v35, %v3905_v26  ;;  %v12962_v15 = vld [vmem:[#allocation3 + $0x128] sm:$0xff]  ;;  %v2687_v41 = vld [vmem:[#allocation2 + $0x38] sm:$0xf]  ;;  %v2690_v49 = vld [vmem:[#allocation2 + $0x3c] sm:$0x1] }
 0x18b   :  { %v2384_v46 = vpop.f32.mrf.mxu3  ;;  %v12903_v4 = vld [vmem:[#allocation2 + $0x24] sm:$0xf0]  ;;  %v14697_v54 = vadd.f32 %v14547_v58, %v2155_v16  ;;  %2683 = vst [vmem:[#allocation2 + $0x30] sm:$0xf] %v2682_v34  ;;  %v2336_v60 = vadd.f32 %v2335_v18, %v2287_v25  ;;  %v2289_v48 = vpop.f32.mrf.mxu1  ;;  %v3939_v37 = vunpack.c.l.b16 %v3073_v55  ;;  %v2842_v53 = vor.u32 %v2841_v45, %v2838_v0  ;;  %4969 = vmatpush.bf16.msra.mxu1 %v12962_v15 }
 0x18c   :  { %v3008_v3 = vld [vmem:[#allocation2 + $0x28] sm:$0xe]  ;;  %v11512_v44 = vor.u32 %v12903_v4, %v11511_v9  ;;  %v2768_v51 = vld [vmem:[#allocation2 + $0x2c] sm:$0x1]  ;;  %2686 = vst [vmem:[#allocation2 + $0x34] sm:$0x1] %v2685_v14  ;;  %4833 = vmatmul.bf16.gmra.mxu2 %v3920_v10 }
 0x18d   :  { %v11458_v22 = vrot.slane %v3008_v3, 9  ;;  %v2537_v62 = vshrl.u32 %v2478_v7, 16  ;;  %v14699_v19 = vpop.f32.mrf.mxu0  ;;  %v2847_v26 = vrot.slane %v2845_v32, 5  ;;  %v2540_v24 = vshll.u32 %v2478_v7, 16  ;;  %v2752_v16 = vld [vmem:[#allocation2 + $0x28] sm:$0xf] }
 0x18e   :  { %v2385_v56 = vadd.f32 %v2384_v46, %v2336_v60  ;;  %4789 = vmatmul.bf16.gmra.mxu1 %v11512_v44  ;;  %v3076_v58 = vrot.slane %v2768_v51, 5  ;;  %v145_v6 = vsel %vm14511_vm5, 0, %v144_v61  ;;  %v2843_v36 = vrot.slane %v2842_v53, 4  ;;  %v147_v55 = vld [vmem:[#allocation2 + $0x68] sm:$0x1] }
 0x18f   :  { %v2539_v23 = vrot.slane %v2537_v62, 7  ;;  %v2850_v12 = vshrl.u32 %v2752_v16, 16  ;;  %v2853_v40 = vshll.u32 %v2752_v16, 16  ;;  %146 = vst [vmem:[#allocation2 + $0x60] sm:$0x1] %v145_v6  ;;  %v2290_v32 = vadd.f32 %v2289_v48, %v14433_v43 }
 0x190   :  { %v2434_v33 = vadd.f32 %v14681_v27, %v2385_v56  ;;  %v3077_v42 = vsel %vm14599_vm12, %v11458_v22, %v3076_v58  ;;  %v207_v13 = vsel %vm14525_vm7, 0, %v206_v17  ;;  %v2859_v9 = vshll.u32 %v2768_v51, 16  ;;  %v209_v14 = vld [vmem:[#allocation2 + $0x6c] sm:$0x1]  ;;  %v11543_v61 = vld [vmem:[#allocation2 + $0x28] sm:$0xf] }
 0x191   :  { %v2542_v35 = vor.u32 %v2540_v24, %v2539_v23  ;;  %v2543_v25 = vrot.slane %v2539_v23, 4  ;;  %v3940_v18 = vunpack.c.l.b16 %v3077_v42  ;;  %208 = vst [vmem:[#allocation2 + $0x64] sm:$0x1] %v207_v13  ;;  %v2338_v45 = vpop.f32.mrf.mxu2  ;;  %v2848_v27 = vsel %vm13661_vm2, %v2843_v36, %v2847_v26  ;;  %v138_v53 = vld [vmem:[#allocation2 + $0x50] sm:$0x1] }
 0x192   :  { %v2463_v0 = vmax.f32 %v2434_v33, 0.0  ;;  %v2852_v34 = vrot.slane %v2850_v12, 4  ;;  %v2855_v43 = vrot.slane %v2853_v40, 5  ;;  %v2339_v46 = vadd.f32 %v2338_v45, %v2290_v32  ;;  %v12911_v60 = vld [vmem:[#allocation2 + $0x2c] sm:$0xf0]  ;;  %v12969_v32 = vld [vmem:[#allocation3 + $0x160] sm:$0xff] }
 0x193   :  { %v2688_v7 = vsel %vm14583_vm9, %v2542_v35, %v2687_v41  ;;  %v2691_v10 = vsel %vm14511_vm5, %v2543_v25, %v2690_v49  ;;  %v2387_v4 = vpop.f32.mrf.mxu3  ;;  %v3953_v3 = vpack.c.b16 %v3940_v18, %v3939_v37  ;;  %v2291_v44 = vpop.f32.mrf.mxu1  ;;  %v11544_v51 = vor.u32 %v12911_v60, %v11543_v61  ;;  %v2753_v37 = vld [vmem:[#allocation2 + $0x30] sm:$0xf]  ;;  %v14729_v36 = vld [vmem:[#allocation2 + $0x34] sm:$0x1]  ;;  %v2693_v40 = vld [vmem:[#allocation2 + $0x40] sm:$0xf]  ;;  %5019 = vmatpush.bf16.msra.mxu2 %v12969_v32 }
 0x194   :  { %2689 = vst [vmem:[#allocation2 + $0x38] sm:$0xf] %v2688_v7  ;;  %v2479_v48 = vpack.c.bf16 %v2463_v0, %v2463_v0  ;;  %v2856_v22 = vor.u32 %v2855_v43, %v2852_v34  ;;  %v148_v62 = vsel %vm14511_vm5, 0, %v147_v55  ;;  %v2388_v26 = vadd.f32 %v2387_v4, %v2339_v46  ;;  %v3009_v12 = vld [vmem:[#allocation2 + $0x30] sm:$0xe] }
 0x195   :  { %2692 = vst [vmem:[#allocation2 + $0x3c] sm:$0x1] %v2691_v10  ;;  %v14717_v17 = vpop.f32.mrf.mxu0  ;;  %v2861_v24 = vrot.slane %v2859_v9, 5  ;;  %v210_v56 = vsel %vm14525_vm7, 0, %v209_v14  ;;  %v14723_v58 = vadd.f32 %v14515_v31, %v14697_v54  ;;  %v14727_v16 = vadd.f32 %v14554_v38, %v14185_v47  ;;  %4887 = vmatmul.bf16.gmra.mxu3 %v3953_v3  ;;  %4936 = vmatmul.bf16.gmra.mxu0 %v11544_v51  ;;  %v2696_v41 = vld [vmem:[#allocation2 + $0x44] sm:$0x1] }
 0x196   :  { %v2545_v6 = vshrl.u32 %v2479_v48, 16  ;;  %v2857_v15 = vrot.slane %v2856_v22, 4  ;;  %v3907_v23 = vunpack.c.l.b16 %v2848_v27  ;;  %v2437_v49 = vadd.f32 %v14699_v19, %v2388_v26  ;;  %149 = vst [vmem:[#allocation2 + $0x68] sm:$0x1] %v148_v62  ;;  %v11515_v18 = vld [vmem:[#allocation2 + $0x30] sm:$0xf] }
 0x197   :  { %v2292_v33 = vadd.f32 %v2291_v44, %v14614_v28  ;;  %v2864_v31 = vshrl.u32 %v2753_v37, 16  ;;  %v2867_v54 = vshll.u32 %v2753_v37, 16  ;;  %v2548_v38 = vshll.u32 %v2479_v48, 16  ;;  %211 = vst [vmem:[#allocation2 + $0x6c] sm:$0x1] %v210_v56 }
 0x198   :  { %v2547_v47 = vrot.slane %v2545_v6, 7  ;;  %v2862_v42 = vsel %vm13661_vm2, %v2857_v15, %v2861_v24  ;;  %v139_v13 = vsel %vm14511_vm5, 0, %v138_v53  ;;  %v2464_v35 = vmax.f32 %v2437_v49, 0.0  ;;  %v150_v37 = vld [vmem:[#allocation2 + $0x70] sm:$0x1] }
 0x199   :  { %v3908_v25 = vunpack.c.l.b16 %v2862_v42  ;;  %v11459_v9 = vrot.slane %v3009_v12, 9  ;;  %v3080_v19 = vrot.slane %v14729_v36, 5  ;;  %v2340_v0 = vpop.f32.mrf.mxu2  ;;  %v2866_v45 = vrot.slane %v2864_v31, 4  ;;  %140 = vst [vmem:[#allocation2 + $0x50] sm:$0x1] %v139_v13 }
 0x19a   :  { %v2550_v28 = vor.u32 %v2548_v38, %v2547_v47  ;;  %v2551_v55 = vrot.slane %v2547_v47, 4  ;;  %v2869_v27 = vrot.slane %v2867_v54, 5  ;;  %v2480_v34 = vpack.c.bf16 %v2464_v35, %v2464_v35  ;;  %v2699_v6 = vld [vmem:[#allocation2 + $0x58] sm:$0xf]  ;;  %v212_v31 = vld [vmem:[#allocation2 + $0x74] sm:$0x1] }
 0x19b   :  { %v3921_v43 = vpack.c.b16 %v3908_v25, %v3907_v23  ;;  %v2341_v14 = vadd.f32 %v2340_v0, %v2292_v33  ;;  %v2389_v7 = vpop.f32.mrf.mxu3  ;;  %v12904_v10 = vld [vmem:[#allocation2 + $0x34] sm:$0xf0]  ;;  %v2873_v4 = vshll.u32 %v14729_v36, 16  ;;  %v2294_v60 = vpop.f32.mrf.mxu1  ;;  %v3081_v56 = vsel %vm14599_vm12, %v11459_v9, %v3080_v19  ;;  %v12961_v54 = vld [vmem:[#allocation3 + $0x120] sm:$0xff]  ;;  %v14753_v32 = vld [vmem:[#allocation2 + $0x8] sm:$0xf] }
 0x19c   :  { %v3010_v46 = vld [vmem:[#allocation2 + $0x38] sm:$0xe]  ;;  %v2694_v3 = vsel %vm14583_vm9, %v2550_v28, %v2693_v40  ;;  %v2697_v61 = vsel %vm14511_vm5, %v2551_v55, %v2696_v41  ;;  %v11516_v48 = vor.u32 %v12904_v10, %v11515_v18  ;;  %v14743_v44 = vld [vmem:[#allocation2 + $0x3c] sm:$0x1]  ;;  %v2553_v62 = vshrl.u32 %v2480_v34, 16  ;;  %4970 = vmatpush.bf16.msra.mxu1 %v12961_v54 }
 0x19d   :  { %v11460_v51 = vrot.slane %v3010_v46, 9  ;;  %v2754_v22 = vld [vmem:[#allocation2 + $0x38] sm:$0xf]  ;;  %2695 = vst [vmem:[#allocation2 + $0x40] sm:$0xf] %v2694_v3  ;;  %v2556_v53 = vshll.u32 %v2480_v34, 16  ;;  %4838 = vmatmul.bf16.gmra.mxu2 %v3921_v43  ;;  %v2390_v26 = vadd.f32 %v2389_v7, %v2341_v14  ;;  %v14745_v24 = vpop.f32.mrf.mxu0  ;;  %v2295_v15 = vadd.f32 %v2294_v60, %v14488_v8 }
 0x19e   :  { %2698 = vst [vmem:[#allocation2 + $0x44] sm:$0x1] %v2697_v61  ;;  %4794 = vmatmul.bf16.gmra.mxu1 %v11516_v48  ;;  %v3084_v23 = vrot.slane %v14743_v44, 5  ;;  %v2870_v36 = vor.u32 %v2869_v27, %v2866_v45  ;;  %v2878_v12 = vshrl.u32 %v2754_v22, 16  ;;  %v2555_v40 = vrot.slane %v2553_v62, 7 }
 0x19f   :  { %v2439_v41 = vadd.f32 %v14717_v17, %v2390_v26  ;;  %v2881_v49 = vshll.u32 %v2754_v22, 16  ;;  %v2887_v33 = vshll.u32 %v14743_v44, 16  ;;  %v2702_v47 = vld [vmem:[#allocation2 + $0x5c] sm:$0x1]  ;;  %v151_v13 = vsel %vm14511_vm5, 0, %v150_v37 }
 0x1a0   :  { %v3085_v38 = vsel %vm14599_vm12, %v11460_v51, %v3084_v23  ;;  %v2871_v8 = vrot.slane %v2870_v36, 4  ;;  %v2880_v42 = vrot.slane %v2878_v12, 4  ;;  %v2558_v35 = vor.u32 %v2556_v53, %v2555_v40  ;;  %152 = vst [vmem:[#allocation2 + $0x70] sm:$0x1] %v151_v13  ;;  %v153_v9 = vld [vmem:[#allocation2 + $0x78] sm:$0x1] }
 0x1a1   :  { %v2559_v25 = vrot.slane %v2555_v40, 4  ;;  %v2465_v18 = vmax.f32 %v2439_v41, 0.0  ;;  %v3942_v17 = vunpack.c.l.b16 %v3085_v38  ;;  %v2343_v19 = vpop.f32.mrf.mxu2  ;;  %v3941_v28 = vunpack.c.l.b16 %v3081_v56  ;;  %v200_v27 = vld [vmem:[#allocation2 + $0x54] sm:$0x1]  ;;  %v11547_v46 = vld [vmem:[#allocation2 + $0x38] sm:$0xf] }
 0x1a2   :  { %v2875_v55 = vrot.slane %v2873_v4, 5  ;;  %v2883_v0 = vrot.slane %v2881_v49, 5  ;;  %v213_v45 = vsel %vm14525_vm7, 0, %v212_v31  ;;  %v2700_v34 = vsel %vm14583_vm9, %v2558_v35, %v2699_v6  ;;  %v215_v3 = vld [vmem:[#allocation2 + $0x7c] sm:$0x1] }
 0x1a3   :  { %v2703_v43 = vsel %vm14511_vm5, %v2559_v25, %v2702_v47  ;;  %v2481_v14 = vpack.c.bf16 %v2465_v18, %v2465_v18  ;;  %v2344_v7 = vadd.f32 %v2343_v19, %v2295_v15  ;;  %v2392_v10 = vpop.f32.mrf.mxu3  ;;  %214 = vst [vmem:[#allocation2 + $0x74] sm:$0x1] %v213_v45  ;;  %v14765_v61 = vld [vmem:[#allocation2 + $0x50] sm:$0xe]  ;;  %v3954_v60 = vpack.c.b16 %v3942_v17, %v3941_v28  ;;  %v2296_v48 = vpop.f32.mrf.mxu1  ;;  %v12968_v6 = vld [vmem:[#allocation3 + $0x158] sm:$0xff] }
 0x1a4   :  { %v2755_v4 = vld [vmem:[#allocation2 + $0x50] sm:$0xf]  ;;  %2701 = vst [vmem:[#allocation2 + $0x58] sm:$0xf] %v2700_v34  ;;  %v12912_v44 = vld [vmem:[#allocation2 + $0x3c] sm:$0xf0]  ;;  %v2884_v51 = vor.u32 %v2883_v0, %v2880_v42  ;;  %v2876_v56 = vsel %vm13661_vm2, %v2871_v8, %v2875_v55  ;;  %5020 = vmatpush.bf16.msra.mxu2 %v12968_v6  ;;  %v2297_v19 = vadd.f32 %v2296_v48, %v14684_v39 }
 0x1a5   :  { %v154_v22 = vsel %vm14511_vm5, 0, %v153_v9  ;;  %v3151_v62 = vshrl.u32 %v14753_v32, 16  ;;  %2704 = vst [vmem:[#allocation2 + $0x5c] sm:$0x1] %v2703_v43  ;;  %v2561_v53 = vshrl.u32 %v2481_v14, 16  ;;  %v2393_v26 = vadd.f32 %v2392_v10, %v2344_v7  ;;  %4892 = vmatmul.bf16.gmra.mxu3 %v3954_v60  ;;  %v2443_v54 = vpop.f32.mrf.mxu0 }
 0x1a6   :  { %v2889_v37 = vrot.slane %v2887_v33, 5  ;;  %v2705_v15 = vld [vmem:[#allocation2 + $0x60] sm:$0xf]  ;;  %v11548_v23 = vor.u32 %v12912_v44, %v11547_v46  ;;  %v2885_v36 = vrot.slane %v2884_v51, 4  ;;  %155 = vst [vmem:[#allocation2 + $0x78] sm:$0x1] %v154_v22  ;;  %v3909_v8 = vunpack.c.l.b16 %v2876_v56 }
 0x1a7   :  { %v216_v12 = vsel %vm14525_vm7, 0, %v215_v3  ;;  %v201_v40 = vsel %vm14525_vm7, 0, %v200_v27  ;;  %v2563_v41 = vrot.slane %v2561_v53, 7  ;;  %v2564_v49 = vshll.u32 %v2481_v14, 16  ;;  %v2708_v33 = vld [vmem:[#allocation2 + $0x64] sm:$0x1] }
 0x1a8   :  { %v2442_v31 = vadd.f32 %v14745_v24, %v2393_v26  ;;  %217 = vst [vmem:[#allocation2 + $0x7c] sm:$0x1] %v216_v12  ;;  %v2892_v47 = vshrl.u32 %v2755_v4, 16  ;;  %4941 = vmatmul.bf16.gmra.mxu0 %v11548_v23  ;;  %v2890_v38 = vsel %vm13661_vm2, %v2885_v36, %v2889_v37  ;;  %v11461_v42 = vrot.slane %v14765_v61, 9  ;;  %v11519_v9 = vld [vmem:[#allocation2 + $0x50] sm:$0xf] }
 0x1a9   :  { %202 = vst [vmem:[#allocation2 + $0x54] sm:$0x1] %v201_v40  ;;  %v2895_v13 = vshll.u32 %v2755_v4, 16  ;;  %v2566_v35 = vor.u32 %v2564_v49, %v2563_v41  ;;  %v2567_v25 = vrot.slane %v2563_v41, 4  ;;  %v3910_v17 = vunpack.c.l.b16 %v2890_v38  ;;  %v2345_v28 = vpop.f32.mrf.mxu2  ;;  %v156_v45 = vld [vmem:[#allocation2 + $0x80] sm:$0x1] }
 0x1aa   :  { %v2466_v18 = vmax.f32 %v2442_v31, 0.0  ;;  %v14782_v24 = vadd.f32 %v14564_v57, %v14727_v16  ;;  %v2894_v55 = vrot.slane %v2892_v47, 4  ;;  %v218_v27 = vld [vmem:[#allocation2 + $0x84] sm:$0x1]  ;;  %v2346_v57 = vadd.f32 %v2345_v28, %v2297_v19  ;;  %v2711_v53 = vld [vmem:[#allocation2 + $0x68] sm:$0xf] }
 0x1ab   :  { %v2897_v0 = vrot.slane %v2895_v13, 5  ;;  %v2706_v34 = vsel %vm14583_vm9, %v2566_v35, %v2705_v15  ;;  %v2709_v43 = vsel %vm14511_vm5, %v2567_v25, %v2708_v33  ;;  %v3922_v7 = vpack.c.b16 %v3910_v17, %v3909_v8  ;;  %v2394_v10 = vpop.f32.mrf.mxu3  ;;  %v12905_v46 = vld [vmem:[#allocation2 + $0x54] sm:$0xf0]  ;;  %v2299_v16 = vpop.f32.mrf.mxu1  ;;  %v2714_v26 = vld [vmem:[#allocation2 + $0x6c] sm:$0x1] }
 0x1ac   :  { %v2482_v14 = vpack.c.bf16 %v2466_v18, %v2466_v18  ;;  %v3012_v3 = vld [vmem:[#allocation2 + $0x58] sm:$0xe]  ;;  %2707 = vst [vmem:[#allocation2 + $0x60] sm:$0xf] %v2706_v34  ;;  %v11520_v39 = vor.u32 %v12905_v46, %v11519_v9  ;;  %v14789_v61 = vld [vmem:[#allocation2 + $0x5c] sm:$0x1]  ;;  %v2395_v56 = vadd.f32 %v2394_v10, %v2346_v57  ;;  %v2300_v37 = vadd.f32 %v2299_v16, %v14531_v2 }
 0x1ad   :  { %v11462_v4 = vrot.slane %v3012_v3, 9  ;;  %v2898_v60 = vor.u32 %v2897_v0, %v2894_v55  ;;  %2710 = vst [vmem:[#allocation2 + $0x64] sm:$0x1] %v2709_v43  ;;  %4843 = vmatmul.bf16.gmra.mxu2 %v3922_v7  ;;  %v157_v51 = vsel %vm14511_vm5, 0, %v156_v45  ;;  %v219_v22 = vsel %vm14525_vm7, 0, %v218_v27  ;;  %v12960_v8 = vld [vmem:[#allocation3 + $0x118] sm:$0xff]  ;;  %v2446_v35 = vpop.f32.mrf.mxu0 }
 0x1ae   :  { %v2569_v48 = vshrl.u32 %v2482_v14, 16  ;;  %v2572_v44 = vshll.u32 %v2482_v14, 16  ;;  %4799 = vmatmul.bf16.gmra.mxu1 %v11520_v39  ;;  %v3092_v6 = vrot.slane %v14789_v61, 5  ;;  %v2756_v15 = vld [vmem:[#allocation2 + $0x58] sm:$0xf]  ;;  %v2915_v49 = vshll.u32 %v14789_v61, 16 }
 0x1af   :  { %v2899_v23 = vrot.slane %v2898_v60, 4  ;;  %v2906_v40 = vshrl.u32 %v2756_v15, 16  ;;  %v2909_v41 = vshll.u32 %v2756_v15, 16  ;;  %v2444_v31 = vadd.f32 %v2443_v54, %v2395_v56  ;;  %158 = vst [vmem:[#allocation2 + $0x80] sm:$0x1] %v157_v51  ;;  %4971 = vmatpush.bf16.msra.mxu1 %v12960_v8 }
 0x1b0   :  { %v2571_v36 = vrot.slane %v2569_v48, 7  ;;  %v2771_v12 = vld [vmem:[#allocation2 + $0x54] sm:$0x1]  ;;  %v3093_v33 = vsel %vm14599_vm12, %v11462_v4, %v3092_v6  ;;  %220 = vst [vmem:[#allocation2 + $0x84] sm:$0x1] %v219_v22  ;;  %v14810_v61 = vadd.f32 %v14566_v21, %v14782_v24  ;;  %v3154_v51 = vshll.u32 %v14753_v32, 16 }
 0x1b1   :  { %v3088_v47 = vrot.slane %v2771_v12, 5  ;;  %v2901_v38 = vshll.u32 %v2771_v12, 16  ;;  %v3944_v25 = vunpack.c.l.b16 %v3093_v33  ;;  %v2908_v18 = vrot.slane %v2906_v40, 4  ;;  %v2348_v9 = vpop.f32.mrf.mxu2  ;;  %v11551_v43 = vld [vmem:[#allocation2 + $0x58] sm:$0xf] }
 0x1b2   :  { %v2574_v2 = vor.u32 %v2572_v44, %v2571_v36  ;;  %v2575_v13 = vrot.slane %v2571_v36, 4  ;;  %v2467_v17 = vmax.f32 %v2444_v31, 0.0  ;;  %v2911_v54 = vrot.slane %v2909_v41, 5  ;;  %v159_v7 = vld [vmem:[#allocation2 + $0x88] sm:$0x1]  ;;  %v12967_v44 = vld [vmem:[#allocation3 + $0x150] sm:$0xff] }
 0x1b3   :  { %v3089_v19 = vsel %vm14599_vm12, %v11461_v42, %v3088_v47  ;;  %v2903_v28 = vrot.slane %v2901_v38, 5  ;;  %v2349_v45 = vadd.f32 %v2348_v9, %v2300_v37  ;;  %v2397_v27 = vpop.f32.mrf.mxu3  ;;  %v12913_v14 = vld [vmem:[#allocation2 + $0x5c] sm:$0xf0]  ;;  %v2301_v46 = vpop.f32.mrf.mxu1  ;;  %v221_v16 = vld [vmem:[#allocation2 + $0x8c] sm:$0x1]  ;;  %5021 = vmatpush.bf16.msra.mxu2 %v12967_v44 }
 0x1b4   :  { %v2712_v55 = vsel %vm14583_vm9, %v2574_v2, %v2711_v53  ;;  %v2715_v0 = vsel %vm14511_vm5, %v2575_v13, %v2714_v26  ;;  %v3943_v34 = vunpack.c.l.b16 %v3089_v19  ;;  %v2483_v10 = vpack.c.bf16 %v2467_v17, %v2467_v17  ;;  %v3013_v39 = vld [vmem:[#allocation2 + $0x60] sm:$0xe]  ;;  %v2773_v48 = vld [vmem:[#allocation2 + $0x64] sm:$0x1]  ;;  %v2717_v6 = vld [vmem:[#allocation2 + $0x70] sm:$0xf] }
 0x1b5   :  { %2713 = vst [vmem:[#allocation2 + $0x68] sm:$0xf] %v2712_v55  ;;  %v11552_v3 = vor.u32 %v12913_v14, %v11551_v43  ;;  %v2904_v42 = vsel %vm13661_vm2, %v2899_v23, %v2903_v28  ;;  %v2912_v57 = vor.u32 %v2911_v54, %v2908_v18  ;;  %v2398_v4 = vadd.f32 %v2397_v27, %v2349_v45  ;;  %v2757_v37 = vld [vmem:[#allocation2 + $0x60] sm:$0xf]  ;;  %v2448_v17 = vpop.f32.mrf.mxu0 }
 0x1b6   :  { %2716 = vst [vmem:[#allocation2 + $0x6c] sm:$0x1] %v2715_v0  ;;  %v3955_v60 = vpack.c.b16 %v3944_v25, %v3943_v34  ;;  %v2577_v22 = vshrl.u32 %v2483_v10, 16  ;;  %v2917_v26 = vrot.slane %v2915_v49, 5  ;;  %v3911_v56 = vunpack.c.l.b16 %v2904_v42  ;;  %v2720_v49 = vld [vmem:[#allocation2 + $0x74] sm:$0x1] }
 0x1b7   :  { %v2913_v53 = vrot.slane %v2912_v57, 4  ;;  %v2447_v15 = vadd.f32 %v2446_v35, %v2398_v4  ;;  %v160_v23 = vsel %vm14511_vm5, 0, %v159_v7  ;;  %v222_v21 = vsel %vm14525_vm7, 0, %v221_v16  ;;  %v11523_v54 = vld [vmem:[#allocation2 + $0x60] sm:$0xf] }
 0x1b8   :  { %4897 = vmatmul.bf16.gmra.mxu3 %v3955_v60  ;;  %v11463_v24 = vrot.slane %v3013_v39, 9  ;;  %v2579_v36 = vrot.slane %v2577_v22, 7  ;;  %v2580_v12 = vshll.u32 %v2483_v10, 16  ;;  %4946 = vmatmul.bf16.gmra.mxu0 %v11552_v3  ;;  %161 = vst [vmem:[#allocation2 + $0x88] sm:$0x1] %v160_v23  ;;  %v3096_v41 = vrot.slane %v2773_v48, 5 }
 0x1b9   :  { %v2918_v40 = vsel %vm13661_vm2, %v2913_v53, %v2917_v26  ;;  %v2468_v31 = vmax.f32 %v2447_v15, 0.0  ;;  %v2302_v47 = vadd.f32 %v2301_v46, %v14723_v58  ;;  %223 = vst [vmem:[#allocation2 + $0x8c] sm:$0x1] %v222_v21  ;;  %v2920_v38 = vshrl.u32 %v2757_v37, 16  ;;  %v2350_v13 = vpop.f32.mrf.mxu2  ;;  %v12980_v46 = vld [vmem:[#allocation3 + $0x1b8] sm:$0xff]  ;;  %v12959_v15 = vld [vmem:[#allocation3 + $0x110] sm:$0xff] }
 0x1ba   :  { %v3912_v33 = vunpack.c.l.b16 %v2918_v40  ;;  %v2582_v8 = vor.u32 %v2580_v12, %v2579_v36  ;;  %v2583_v2 = vrot.slane %v2579_v36, 4  ;;  %v2923_v35 = vshll.u32 %v2757_v37, 16  ;;  %v162_v39 = vld [vmem:[#allocation2 + $0x90] sm:$0x1]  ;;  %v2723_v4 = vld [vmem:[#allocation2 + $0x78] sm:$0xf]  ;;  %5065 = vmatpush.bf16.msra.mxu3 %v12980_v46  ;;  %4972 = vmatpush.bf16.msra.mxu1 %v12959_v15 }
 0x1bb   :  { %v2929_v25 = vshll.u32 %v2773_v48, 16  ;;  %v2484_v18 = vpack.c.bf16 %v2468_v31, %v2468_v31  ;;  %v2351_v19 = vadd.f32 %v2350_v13, %v2302_v47  ;;  %v2399_v28 = vpop.f32.mrf.mxu3  ;;  %v14822_v45 = vsel %vm14599_vm12, %v11463_v24, %v3096_v41  ;;  %v2304_v34 = vpop.f32.mrf.mxu1  ;;  %v2726_v26 = vld [vmem:[#allocation2 + $0x7c] sm:$0x1]  ;;  %v224_v36 = vld [vmem:[#allocation2 + $0x94] sm:$0x1] }
 0x1bc   :  { %v3923_v9 = vpack.c.b16 %v3912_v33, %v3911_v56  ;;  %v12906_v55 = vld [vmem:[#allocation2 + $0x64] sm:$0xf0]  ;;  %v2718_v58 = vsel %vm14583_vm9, %v2582_v8, %v2717_v6  ;;  %v2721_v27 = vsel %vm14511_vm5, %v2583_v2, %v2720_v49  ;;  %v2305_v16 = vadd.f32 %v2304_v34, %v14562_v20  ;;  %v12988_v12 = vld [vmem:[#allocation3 + $0x1f8] sm:$0xff]  ;;  %v12979_v40 = vld [vmem:[#allocation3 + $0x1b0] sm:$0xff] }
 0x1bd   :  { %v3014_v0 = vld [vmem:[#allocation2 + $0x68] sm:$0xe]  ;;  %v11524_v43 = vor.u32 %v12906_v55, %v11523_v54  ;;  %v14828_v14 = vld [vmem:[#allocation2 + $0x6c] sm:$0x1]  ;;  %2719 = vst [vmem:[#allocation2 + $0x70] sm:$0xf] %v2718_v58  ;;  %v2400_v57 = vadd.f32 %v2399_v28, %v2351_v19  ;;  %v3945_v8 = vunpack.c.l.b16 %v14822_v45  ;;  %5114 = vmatpush.bf16.msra.mxu0 %v12988_v12 }
 0x1be   :  { %v11464_v7 = vrot.slane %v3014_v0, 9  ;;  %v2758_v10 = vld [vmem:[#allocation2 + $0x68] sm:$0xf]  ;;  %v2585_v3 = vshrl.u32 %v2484_v18, 16  ;;  %v2588_v42 = vshll.u32 %v2484_v18, 16  ;;  %4848 = vmatmul.bf16.gmra.mxu2 %v3923_v9  ;;  %v3100_v60 = vrot.slane %v14828_v14, 5  ;;  %5066 = vmatpush.bf16.msra.mxu3 %v12979_v40 }
 0x1bf   :  { %2722 = vst [vmem:[#allocation2 + $0x74] sm:$0x1] %v2721_v27  ;;  %4804 = vmatmul.bf16.gmra.mxu1 %v11524_v43  ;;  %v2922_v48 = vrot.slane %v2920_v38, 4  ;;  %v2925_v44 = vrot.slane %v2923_v35, 5  ;;  %v14832_v22 = vrot.slane %v2929_v25, 5  ;;  %v2449_v56 = vadd.f32 %v2448_v17, %v2400_v57  ;;  %v12966_v33 = vld [vmem:[#allocation3 + $0x148] sm:$0xff] }
 0x1c0   :  { %v2587_v53 = vrot.slane %v2585_v3, 7  ;;  %v2934_v37 = vshrl.u32 %v2758_v10, 16  ;;  %v2937_v6 = vshll.u32 %v2758_v10, 16  ;;  %v3101_v20 = vsel %vm14599_vm12, %v11464_v7, %v3100_v60  ;;  %v12987_v25 = vld [vmem:[#allocation3 + $0x1f0] sm:$0xff]  ;;  %v12978_v18 = vld [vmem:[#allocation3 + $0x1a8] sm:$0xff]  ;;  %5022 = vmatpush.bf16.msra.mxu2 %v12966_v33  ;;  %v2451_v7 = vpop.f32.mrf.mxu0  ;;  %v12985_v33 = vld [vmem:[#allocation3 + $0x1e0] sm:$0xff] }
 0x1c1   :  { %v2926_v23 = vor.u32 %v2925_v44, %v2922_v48  ;;  %v2943_v21 = vshll.u32 %v14828_v14, 16  ;;  %v163_v24 = vsel %vm14511_vm5, 0, %v162_v39  ;;  %v2469_v31 = vmax.f32 %v2449_v56, 0.0  ;;  %v2353_v38 = vpop.f32.mrf.mxu2  ;;  %v12958_v17 = vld [vmem:[#allocation3 + $0x108] sm:$0xff]  ;;  %5115 = vmatpush.bf16.msra.mxu0 %v12987_v25  ;;  %v2732_v15 = vld [vmem:[#allocation2 + $0x84] sm:$0x1] }
 0x1c2   :  { %v2590_v41 = vor.u32 %v2588_v42, %v2587_v53  ;;  %v2591_v49 = vrot.slane %v2587_v53, 4  ;;  %v3946_v47 = vunpack.c.l.b16 %v3101_v20  ;;  %164 = vst [vmem:[#allocation2 + $0x90] sm:$0x1] %v163_v24  ;;  %v2936_v13 = vrot.slane %v2934_v37, 4  ;;  %v11555_v0 = vld [vmem:[#allocation2 + $0x68] sm:$0xf]  ;;  %4973 = vmatpush.bf16.msra.mxu1 %v12958_v17  ;;  %5067 = vmatpush.bf16.msra.mxu3 %v12978_v18 }
 0x1c3   :  { %v2927_v2 = vrot.slane %v2926_v23, 4  ;;  %v2939_v35 = vrot.slane %v2937_v6, 5  ;;  %v2485_v28 = vpack.c.bf16 %v2469_v31, %v2469_v31  ;;  %v2354_v54 = vadd.f32 %v2353_v38, %v2305_v16  ;;  %v2402_v55 = vpop.f32.mrf.mxu3  ;;  %v12986_v3 = vld [vmem:[#allocation3 + $0x1e8] sm:$0xff]  ;;  %v12977_v42 = vld [vmem:[#allocation3 + $0x1a0] sm:$0xff]  ;;  %v2306_v53 = vpop.f32.mrf.mxu1  ;;  %v12976_v18 = vld [vmem:[#allocation3 + $0x198] sm:$0xff] }
 0x1c4   :  { %v2724_v9 = vsel %vm14583_vm9, %v2590_v41, %v2723_v4  ;;  %v2727_v19 = vsel %vm14511_vm5, %v2591_v49, %v2726_v26  ;;  %v3956_v45 = vpack.c.b16 %v3946_v47, %v3945_v8  ;;  %v12914_v58 = vld [vmem:[#allocation2 + $0x6c] sm:$0xf0]  ;;  %v225_v43 = vsel %vm14525_vm7, 0, %v224_v36  ;;  %v2729_v16 = vld [vmem:[#allocation2 + $0x80] sm:$0xf] }
 0x1c5   :  { %2725 = vst [vmem:[#allocation2 + $0x78] sm:$0xf] %v2724_v9  ;;  %v2932_v27 = vsel %vm13661_vm2, %v2927_v2, %v14832_v22  ;;  %v2940_v34 = vor.u32 %v2939_v35, %v2936_v13  ;;  %v2593_v14 = vshrl.u32 %v2485_v28, 16  ;;  %v2403_v10 = vadd.f32 %v2402_v55, %v2354_v54  ;;  %v3015_v56 = vld [vmem:[#allocation2 + $0x70] sm:$0xe]  ;;  %5116 = vmatpush.bf16.msra.mxu0 %v12986_v3 }
 0x1c6   :  { %2728 = vst [vmem:[#allocation2 + $0x7c] sm:$0x1] %v2727_v19  ;;  %v2945_v46 = vrot.slane %v2943_v21, 5  ;;  %v2596_v57 = vshll.u32 %v2485_v28, 16  ;;  %v2258_v39 = vadd.f32 %v14556_v63, %v14810_v61  ;;  %v11556_v4 = vor.u32 %v12914_v58, %v11555_v0  ;;  %v14851_v48 = vld [vmem:[#allocation2 + $0x74] sm:$0x1]  ;;  %5068 = vmatpush.bf16.msra.mxu3 %v12977_v42 }
 0x1c7   :  { %v2941_v60 = vrot.slane %v2940_v34, 4  ;;  %226 = vst [vmem:[#allocation2 + $0x94] sm:$0x1] %v225_v43  ;;  %v2595_v44 = vrot.slane %v2593_v14, 7  ;;  %v2452_v22 = vadd.f32 %v2451_v7, %v2403_v10  ;;  %v3913_v26 = vunpack.c.l.b16 %v2932_v27  ;;  %v2759_v6 = vld [vmem:[#allocation2 + $0x70] sm:$0xf] }
 0x1c8   :  { %4902 = vmatmul.bf16.gmra.mxu3 %v3956_v45  ;;  %v3104_v37 = vrot.slane %v14851_v48, 5  ;;  %4951 = vmatmul.bf16.gmra.mxu0 %v11556_v4  ;;  %v11465_v61 = vrot.slane %v3015_v56, 9  ;;  %v2948_v20 = vshrl.u32 %v2759_v6, 16  ;;  %v2951_v23 = vshll.u32 %v2759_v6, 16  ;;  %v11527_v49 = vld [vmem:[#allocation2 + $0x70] sm:$0xf]  ;;  %v2453_v42 = vpop.f32.mrf.mxu0 }
 0x1c9   :  { %v2946_v63 = vsel %vm13661_vm2, %v2941_v60, %v2945_v46  ;;  %v2598_v21 = vor.u32 %v2596_v57, %v2595_v44  ;;  %v2599_v24 = vrot.slane %v2595_v44, 4  ;;  %v2470_v36 = vmax.f32 %v2452_v22, 0.0  ;;  %v2355_v41 = vpop.f32.mrf.mxu2  ;;  %v12984_v27 = vld [vmem:[#allocation3 + $0x1d8] sm:$0xff]  ;;  %5117 = vmatpush.bf16.msra.mxu0 %v12985_v33  ;;  %v12965_v46 = vld [vmem:[#allocation3 + $0x140] sm:$0xff]  ;;  %v12975_v4 = vld [vmem:[#allocation3 + $0x190] sm:$0xff] }
 0x1ca   :  { %v3914_v12 = vunpack.c.l.b16 %v2946_v63  ;;  %v2307_v40 = vadd.f32 %v2306_v53, %v2258_v39  ;;  %v2950_v31 = vrot.slane %v2948_v20, 4  ;;  %v2953_v47 = vrot.slane %v2951_v23, 5  ;;  %5069 = vmatpush.bf16.msra.mxu3 %v12976_v18  ;;  %v2735_v60 = vld [vmem:[#allocation2 + $0x88] sm:$0xf]  ;;  %v2738_v32 = vld [vmem:[#allocation2 + $0x8c] sm:$0x1]  ;;  %5023 = vmatpush.bf16.msra.mxu2 %v12965_v46 }
 0x1cb   :  { %v2730_v38 = vsel %vm14583_vm9, %v2598_v21, %v2729_v16  ;;  %v2733_v8 = vsel %vm14511_vm5, %v2599_v24, %v2732_v15  ;;  %v2486_v2 = vpack.c.bf16 %v2470_v36, %v2470_v36  ;;  %v14862_v54 = vrot.slane %v3151_v62, 4  ;;  %v2404_v0 = vpop.f32.mrf.mxu3  ;;  %v12957_v53 = vld [vmem:[#allocation3 + $0x100] sm:$0xff]  ;;  %v12983_v20 = vld [vmem:[#allocation3 + $0x1d0] sm:$0xff]  ;;  %v12974_v33 = vld [vmem:[#allocation3 + $0x188] sm:$0xff] }
 0x1cc   :  { %v3924_v13 = vpack.c.b16 %v3914_v12, %v3913_v26  ;;  %v12907_v35 = vld [vmem:[#allocation2 + $0x74] sm:$0xf0]  ;;  %2731 = vst [vmem:[#allocation2 + $0x80] sm:$0xf] %v2730_v38  ;;  %v2356_v17 = vadd.f32 %v2355_v41, %v2307_v40  ;;  %v3105_v45 = vsel %vm14599_vm12, %v11465_v61, %v3104_v37  ;;  %v2954_v58 = vor.u32 %v2953_v47, %v2950_v31  ;;  %v12982_v18 = vld [vmem:[#allocation3 + $0x1c8] sm:$0xff] }
 0x1cd   :  { %v3016_v25 = vld [vmem:[#allocation2 + $0x78] sm:$0xe]  ;;  %v11528_v9 = vor.u32 %v12907_v35, %v11527_v49  ;;  %v2776_v19 = vld [vmem:[#allocation2 + $0x7c] sm:$0x1]  ;;  %2734 = vst [vmem:[#allocation2 + $0x84] sm:$0x1] %v2733_v8  ;;  %v3947_v56 = vunpack.c.l.b16 %v3105_v45  ;;  %5118 = vmatpush.bf16.msra.mxu0 %v12984_v27  ;;  %4974 = vmatpush.bf16.msra.mxu1 %v12957_v53 }
 0x1ce   :  { %v11466_v28 = vrot.slane %v3016_v25, 9  ;;  %v2601_v55 = vshrl.u32 %v2486_v2, 16  ;;  %4853 = vmatmul.bf16.gmra.mxu2 %v3924_v13  ;;  %v14868_v34 = vrot.slane %v3154_v51, 5  ;;  %v2604_v43 = vshll.u32 %v2486_v2, 16  ;;  %v2760_v10 = vld [vmem:[#allocation2 + $0x78] sm:$0xf]  ;;  %5070 = vmatpush.bf16.msra.mxu3 %v12975_v4 }
 0x1cf   :  { %v2405_v14 = vadd.f32 %v2404_v0, %v2356_v17  ;;  %4809 = vmatmul.bf16.gmra.mxu1 %v11528_v9  ;;  %v3108_v7 = vrot.slane %v2776_v19, 5  ;;  %v2957_v62 = vshll.u32 %v14851_v48, 16  ;;  %v2962_v57 = vshrl.u32 %v2760_v10, 16  ;;  %v11559_v36 = vld [vmem:[#allocation2 + $0x78] sm:$0xf]  ;;  %v12981_v4 = vld [vmem:[#allocation3 + $0x1c0] sm:$0xff] }
 0x1d0   :  { %v2603_v3 = vrot.slane %v2601_v55, 7  ;;  %v2965_v16 = vshll.u32 %v2760_v10, 16  ;;  %v2971_v39 = vshll.u32 %v2776_v19, 16  ;;  %v2955_v22 = vrot.slane %v2954_v58, 4  ;;  %v3119_v19 = vld [vmem:[#allocation2 + $0x10] sm:$0xf] }
 0x1d1   :  { %v2454_v51 = vadd.f32 %v2453_v42, %v2405_v14  ;;  %v3109_v44 = vsel %vm14599_vm12, %v11466_v28, %v3108_v7  ;;  %v2959_v15 = vrot.slane %v2957_v62, 5  ;;  %v2964_v63 = vrot.slane %v2962_v57, 4  ;;  %5119 = vmatpush.bf16.msra.mxu0 %v12983_v20  ;;  %v2741_v45 = vld [vmem:[#allocation2 + $0x90] sm:$0xf]  ;;  %v12973_v14 = vld [vmem:[#allocation3 + $0x180] sm:$0xff] }
 0x1d2   :  { %v2606_v26 = vor.u32 %v2604_v43, %v2603_v3  ;;  %v2607_v48 = vrot.slane %v2603_v3, 4  ;;  %v3948_v37 = vunpack.c.l.b16 %v3109_v44  ;;  %v2967_v61 = vrot.slane %v2965_v16, 5  ;;  %5071 = vmatpush.bf16.msra.mxu3 %v12974_v33  ;;  %v14885_v43 = vld [vmem:[#allocation2 + $0xc] sm:$0x1]  ;;  %v2744_v7 = vld [vmem:[#allocation2 + $0x94] sm:$0x1] }
 0x1d3   :  { %v2471_v6 = vmax.f32 %v2454_v51, 0.0  ;;  %v12915_v12 = vld [vmem:[#allocation2 + $0x7c] sm:$0xf0]  ;;  %v2973_v40 = vrot.slane %v2971_v39, 5  ;;  %v2960_v31 = vsel %vm13661_vm2, %v2955_v22, %v2959_v15  ;;  %v3157_v28 = vor.u32 %v14868_v34, %v14862_v54  ;;  %v14888_v42 = vld [vmem:[#allocation2 + $0x14] sm:$0x1] }
 0x1d4   :  { %v2736_v23 = vsel %vm14583_vm9, %v2606_v26, %v2735_v60  ;;  %v2739_v21 = vsel %vm14511_vm5, %v2607_v48, %v2738_v32  ;;  %v3957_v24 = vpack.c.b16 %v3948_v37, %v3947_v56  ;;  %v11560_v49 = vor.u32 %v12915_v12, %v11559_v36  ;;  %v3017_v38 = vld [vmem:[#allocation2 + $0x80] sm:$0xe]  ;;  %v14879_v35 = vld [vmem:[#allocation2 + $0x84] sm:$0x1]  ;;  %v3488_v33 = vld [vmem:[#allocation2 + $0x18] sm:$0xf] }
 0x1d5   :  { %2737 = vst [vmem:[#allocation2 + $0x88] sm:$0xf] %v2736_v23  ;;  %v2487_v41 = vpack.c.bf16 %v2471_v6, %v2471_v6  ;;  %v2968_v47 = vor.u32 %v2967_v61, %v2964_v63  ;;  %v2761_v8 = vld [vmem:[#allocation2 + $0x80] sm:$0xf]  ;;  %v3915_v17 = vunpack.c.l.b16 %v2960_v31  ;;  %v11467_v62 = vrot.slane %v3017_v38, 9  ;;  %5120 = vmatpush.bf16.msra.mxu0 %v12982_v18  ;;  %v13004_v38 = vld [vmem:[%s16841_s8 + $0x38] sm:$0xff] }
 0x1d6   :  { %2740 = vst [vmem:[#allocation2 + $0x8c] sm:$0x1] %v2739_v21  ;;  %v2976_v25 = vshrl.u32 %v2761_v8, 16  ;;  %v2979_v9 = vshll.u32 %v2761_v8, 16  ;;  %v3112_v46 = vrot.slane %v14879_v35, 5  ;;  %v3165_v16 = vshrl.u32 %v3119_v19, 16  ;;  %5072 = vmatpush.bf16.msra.mxu3 %v12973_v14  ;;  %5280 = vmatpush.bf16.msrb.mxu2 %v13004_v38 }
 0x1d7   :  { %v2609_v2 = vshrl.u32 %v2487_v41, 16  ;;  %v2969_v13 = vrot.slane %v2968_v47, 4  ;;  %v2612_v0 = vshll.u32 %v2487_v41, 16  ;;  %v11531_v57 = vld [vmem:[#allocation2 + $0x80] sm:$0xf]  ;;  %v3168_v39 = vshll.u32 %v3119_v19, 16 }
 0x1d8   :  { %4907 = vmatmul.bf16.gmra.mxu3 %v3957_v24  ;;  %4956 = vmatmul.bf16.gmra.mxu0 %v11560_v49  ;;  %v2978_v27 = vrot.slane %v2976_v25, 4  ;;  %v2981_v3 = vrot.slane %v2979_v9, 5  ;;  %v2985_v22 = vshll.u32 %v14879_v35, 16  ;;  %v14891_v53 = vrot.slane %v3157_v28, 4  ;;  %v3487_v63 = vld [vmem:[#allocation2 + $0x10] sm:$0xf] }
 0x1d9   :  { %v2611_v55 = vrot.slane %v2609_v2, 7  ;;  %v2974_v58 = vsel %vm13661_vm2, %v2969_v13, %v2973_v40  ;;  %v3160_v21 = vshll.u32 %v14885_v43, 16  ;;  %v3113_v24 = vsel %vm14599_vm12, %v11467_v62, %v3112_v46  ;;  %5121 = vmatpush.bf16.msra.mxu0 %v12981_v4  ;;  %v12996_v19 = vld [vmem:[#allocation3 + $0x238] sm:$0xff]  ;;  %v3503_v4 = vld [vmem:[#allocation2 + $0x14] sm:$0x1] }
 0x1da   :  { %v3916_v10 = vunpack.c.l.b16 %v2974_v58  ;;  %v2982_v44 = vor.u32 %v2981_v3, %v2978_v27  ;;  %v3167_v36 = vrot.slane %v3165_v16, 4  ;;  %v3170_v12 = vrot.slane %v3168_v39, 5  ;;  %5163 = vmatpush.bf16.msrb.mxu1 %v12996_v19  ;;  %v3489_v38 = vld [vmem:[#allocation2 + $0x20] sm:$0xf] }
 0x1db   :  { %v2614_v54 = vor.u32 %v2612_v0, %v2611_v55  ;;  %v2615_v34 = vrot.slane %v2611_v55, 4  ;;  %v3174_v40 = vshll.u32 %v14888_v42, 16  ;;  %v2987_v13 = vrot.slane %v2985_v22, 5 }
 0x1dc   :  { %v3925_v60 = vpack.c.b16 %v3916_v10, %v3915_v17  ;;  %v12908_v32 = vld [vmem:[#allocation2 + $0x84] sm:$0xf0]  ;;  %v2983_v2 = vrot.slane %v2982_v44, 4  ;;  %v3171_v35 = vor.u32 %v3170_v12, %v3167_v36  ;;  %v3949_v25 = vunpack.c.l.b16 %v3113_v24  ;;  %v3504_v44 = vld [vmem:[#allocation2 + $0x1c] sm:$0x1] }
 0x1dd   :  { %v3018_v51 = vld [vmem:[#allocation2 + $0x88] sm:$0xe]  ;;  %v2742_v26 = vsel %vm14583_vm9, %v2614_v54, %v2741_v45  ;;  %v2745_v48 = vsel %vm14511_vm5, %v2615_v34, %v2744_v7  ;;  %v11532_v56 = vor.u32 %v12908_v32, %v11531_v57  ;;  %v2778_v37 = vld [vmem:[#allocation2 + $0x8c] sm:$0x1]  ;;  %v3520_v17 = vshrl.u32 %v3487_v63, 16 }
 0x1de   :  { %v11468_v6 = vrot.slane %v3018_v51, 9  ;;  %v2762_v15 = vld [vmem:[#allocation2 + $0x88] sm:$0xf]  ;;  %2743 = vst [vmem:[#allocation2 + $0x90] sm:$0xf] %v2742_v26  ;;  %4858 = vmatmul.bf16.gmra.mxu2 %v3925_v60  ;;  %v3116_v61 = vrot.slane %v2778_v37, 5  ;;  %v2988_v46 = vsel %vm13661_vm2, %v2983_v2, %v2987_v13 }
 0x1df   :  { %v2990_v20 = vshrl.u32 %v2762_v15, 16  ;;  %v2993_v23 = vshll.u32 %v2762_v15, 16  ;;  %2746 = vst [vmem:[#allocation2 + $0x94] sm:$0x1] %v2745_v48  ;;  %4814 = vmatmul.bf16.gmra.mxu1 %v11532_v56  ;;  %v2999_v47 = vshll.u32 %v2778_v37, 16  ;;  %v3523_v9 = vshll.u32 %v3487_v63, 16 }
 0x1e0   :  { %v3117_v41 = vsel %vm14599_vm12, %v11468_v6, %v3116_v61  ;;  %v3162_v28 = vrot.slane %v3160_v21, 5  ;;  %v3172_v55 = vrot.slane %v3171_v35, 4  ;;  %v3534_v0 = vshrl.u32 %v3488_v33, 16  ;;  %v11563_v27 = vld [vmem:[#allocation2 + $0x88] sm:$0xf] }
 0x1e1   :  { %v2992_v49 = vrot.slane %v2990_v20, 4  ;;  %v2995_v31 = vrot.slane %v2993_v23, 5  ;;  %v3950_v8 = vunpack.c.l.b16 %v3117_v41  ;;  %v3537_v45 = vshll.u32 %v3488_v33, 16  ;;  %v3120_v32 = vld [vmem:[#allocation2 + $0x18] sm:$0xf] }
 0x1e2   :  { %v3001_v7 = vrot.slane %v2999_v47, 5  ;;  %v3176_v10 = vrot.slane %v3174_v40, 5  ;;  %v3522_v3 = vrot.slane %v3520_v17, 4  ;;  %v3536_v54 = vrot.slane %v3534_v0, 4  ;;  %v3121_v20 = vld [vmem:[#allocation2 + $0x20] sm:$0xf] }
 0x1e3   :  { %v2996_v18 = vor.u32 %v2995_v31, %v2992_v49  ;;  %v3958_v58 = vpack.c.b16 %v3950_v8, %v3949_v25  ;;  %v3539_v34 = vrot.slane %v3537_v45, 5  ;;  %v3525_v60 = vrot.slane %v3523_v9, 5  ;;  %v3375_v12 = vld [vmem:[#allocation2 + $0x10] sm:$0xe]  ;;  %v3374_v31 = vld [vmem:[#allocation2 + $0x8] sm:$0xe] }
 0x1e4   :  { %v3177_v39 = vsel %vm13661_vm2, %v3172_v55, %v3176_v10  ;;  %v3917_v22 = vunpack.c.l.b16 %v2988_v46  ;;  %v3163_v26 = vsel %vm13661_vm2, %v14891_v53, %v3162_v28  ;;  %v3529_v37 = vshll.u32 %v3503_v4, 16  ;;  %v14917_v53 = vld [vmem:[#allocation2 + $0x24] sm:$0x1]  ;;  %v3490_v35 = vld [vmem:[#allocation2 + $0x28] sm:$0xf]  ;;  %v13003_v25 = vld [vmem:[%s16841_s8 + $0x30] sm:$0xff] }
 0x1e5   :  { %v2997_v14 = vrot.slane %v2996_v18, 4  ;;  %v12916_v62 = vld [vmem:[#allocation2 + $0x8c] sm:$0xf0]  ;;  %v3540_v48 = vor.u32 %v3539_v34, %v3536_v54  ;;  %v4016_v56 = vunpack.c.l.b16 %v3177_v39  ;;  %v3179_v6 = vshrl.u32 %v3120_v32, 16  ;;  %v14923_v9 = vld [vmem:[#allocation2 + $0x1c] sm:$0x1]  ;;  %5281 = vmatpush.bf16.msrb.mxu2 %v13003_v25 }
 0x1e6   :  { %v11564_v57 = vor.u32 %v12916_v62, %v11563_v27  ;;  %v3526_v63 = vor.u32 %v3525_v60, %v3522_v3  ;;  %v3543_v61 = vshll.u32 %v3504_v44, 16  ;;  %v3182_v23 = vshll.u32 %v3120_v32, 16  ;;  %v12917_v27 = vld [vmem:[#allocation2 + $0x14] sm:$0xf0]  ;;  %v11567_v34 = vld [vmem:[#allocation2 + $0x10] sm:$0xf] }
 0x1e7   :  { %v3002_v16 = vsel %vm13661_vm2, %v2997_v14, %v3001_v7  ;;  %v4015_v21 = vunpack.c.l.b16 %v3163_v26  ;;  %v3541_v36 = vrot.slane %v3540_v48, 4  ;;  %v3181_v40 = vrot.slane %v3179_v6, 4  ;;  %v12995_v26 = vld [vmem:[#allocation3 + $0x230] sm:$0xff]  ;;  %v3377_v25 = vld [vmem:[#allocation2 + $0x20] sm:$0xe] }
 0x1e8   :  { %v3918_v51 = vunpack.c.l.b16 %v3002_v16  ;;  %4912 = vmatmul.bf16.gmra.mxu3 %v3958_v58  ;;  %4961 = vmatmul.bf16.gmra.mxu0 %v11564_v57  ;;  %v3184_v41 = vrot.slane %v3182_v23, 5  ;;  %v3193_v47 = vshrl.u32 %v3121_v20, 16  ;;  %v3196_v33 = vshll.u32 %v3121_v20, 16 }
 0x1e9   :  { %v4031_v49 = vpack.c.b16 %v4016_v56, %v4015_v21  ;;  %v3527_v8 = vrot.slane %v3526_v63, 4  ;;  %v3531_v2 = vrot.slane %v3529_v37, 5  ;;  %v3545_v13 = vrot.slane %v3543_v61, 5  ;;  %v3505_v37 = vld [vmem:[#allocation2 + $0x24] sm:$0x1]  ;;  %5164 = vmatpush.bf16.msrb.mxu1 %v12995_v26 }
 0x1ea   :  { %v3926_v15 = vpack.c.b16 %v3918_v51, %v3917_v22  ;;  %v14915_v24 = vpop.f32.mrf.mxu1  ;;  %v11470_v18 = vrot.slane %v3375_v12, 9  ;;  %v3428_v17 = vrot.slane %v14888_v42, 5  ;;  %v3195_v19 = vrot.slane %v3193_v47, 4  ;;  %v3122_v22 = vld [vmem:[#allocation2 + $0x28] sm:$0xf] }
 0x1eb   :  { %v3198_v28 = vrot.slane %v3196_v33, 5  ;;  %v3546_v55 = vsel %vm13661_vm2, %v3541_v36, %v3545_v13  ;;  %v3185_v0 = vor.u32 %v3184_v41, %v3181_v40  ;;  %v3202_v45 = vshll.u32 %v14917_v53, 16  ;;  %v14943_v21 = vld [vmem:[%s16840_s7] ss:$0 sm:$0xff]  ;;  %v3123_v12 = vld [vmem:[#allocation2 + $0x30] sm:$0xf] }
 0x1ec   :  { %v3548_v58 = vshrl.u32 %v3489_v38, 16  ;;  %v3551_v7 = vshll.u32 %v3489_v38, 16  ;;  %v3562_v10 = vshrl.u32 %v3490_v35, 16  ;;  %v3565_v62 = vshll.u32 %v3490_v35, 16 }
 0x1ed   :  { %v3199_v14 = vor.u32 %v3198_v28, %v3195_v19  ;;  %v3532_v42 = vsel %vm13661_vm2, %v3527_v8, %v3531_v2  ;;  %v11469_v46 = vrot.slane %v3374_v31, 9  ;;  %v3424_v3 = vrot.slane %v14885_v43, 5  ;;  %v3506_v43 = vld [vmem:[#allocation2 + $0x2c] sm:$0x1] }
 0x1ee   :  { %4863 = vmatmul.bf16.gmra.mxu2 %v3926_v15  ;;  %v3188_v54 = vshll.u32 %v14923_v9, 16  ;;  %v4128_v57 = vunpack.c.l.b16 %v3546_v55  ;;  %v3564_v39 = vrot.slane %v3562_v10, 4  ;;  %v3567_v4 = vrot.slane %v3565_v62, 5 }
 0x1ef   :  { %4975 = vmatmul.bf16.vlgmr.msra.gmra.mxu1 %v4031_v49  ;;  %v3200_v16 = vrot.slane %v3199_v14, 4  ;;  %v11568_v32 = vor.u32 %v12917_v27, %v11567_v34  ;;  %v3186_v51 = vrot.slane %v3185_v0, 4  ;;  %v3204_v44 = vrot.slane %v3202_v45, 5  ;;  %v3376_v0 = vld [vmem:[#allocation2 + $0x18] sm:$0xe] }
 0x1f0   :  { %v4127_v48 = vunpack.c.l.b16 %v3532_v42  ;;  %v3429_v56 = vsel %vm14599_vm12, %v11470_v18, %v3428_v17  ;;  %v3550_v6 = vrot.slane %v3548_v58, 4  ;;  %v3553_v15 = vrot.slane %v3551_v7, 5  ;;  %v3492_v58 = vld [vmem:[#allocation2 + $0x38] sm:$0xf]  ;;  %v3491_v42 = vld [vmem:[#allocation2 + $0x30] sm:$0xf] }
 0x1f1   :  { %v3425_v63 = vsel %vm14599_vm12, %v11469_v46, %v3424_v3  ;;  %v3190_v61 = vrot.slane %v3188_v54, 5  ;;  %v3205_v20 = vsel %vm13661_vm2, %v3200_v16, %v3204_v44  ;;  %v3568_v23 = vor.u32 %v3567_v4, %v3564_v39  ;;  %v14951_v34 = vld [vmem:[#allocation2 + $0x34] sm:$0x1]  ;;  %v14956_v39 = vld [vmem:[#allocation2 + $0x2c] sm:$0x1] }
 0x1f2   :  { %v14932_v60 = vpop.f32.mrf.mxu1  ;;  %v4143_v36 = vpack.c.b16 %v4128_v57, %v4127_v48  ;;  %v3207_v40 = vshrl.u32 %v3122_v22, 16  ;;  %v3210_v41 = vshll.u32 %v3122_v22, 16  ;;  %v4048_v49 = vunpack.c.l.b16 %v3429_v56 }
 0x1f3   :  { %v3191_v31 = vsel %vm13661_vm2, %v3186_v51, %v3190_v61  ;;  %v3557_v47 = vshll.u32 %v3505_v37, 16  ;;  %v3571_v33 = vshll.u32 %v3506_v43, 16  ;;  %v4047_v38 = vunpack.c.l.b16 %v3425_v63  ;;  %v13002_v51 = vld [vmem:[%s16841_s8 + $0x28] sm:$0xff] }
 0x1f4   :  { %v4018_v8 = vunpack.c.l.b16 %v3205_v20  ;;  %v3554_v2 = vor.u32 %v3553_v15, %v3550_v6  ;;  %v3569_v35 = vrot.slane %v3568_v23, 4  ;;  %v3209_v18 = vrot.slane %v3207_v40, 4  ;;  %5282 = vmatpush.bf16.msrb.mxu2 %v13002_v51 }
 0x1f5   :  { %v3212_v17 = vrot.slane %v3210_v41, 5  ;;  %v3221_v19 = vshrl.u32 %v3123_v12, 16  ;;  %v4781_v28 = vadd.f32 %v14943_v21, %v14915_v24  ;;  %v4017_v55 = vunpack.c.l.b16 %v3191_v31 }
 0x1f6   :  { %v3224_v45 = vshll.u32 %v3123_v12, 16  ;;  %v4063_v27 = vpack.c.b16 %v4048_v49, %v4047_v38  ;;  %v3559_v7 = vrot.slane %v3557_v47, 5  ;;  %v3573_v10 = vrot.slane %v3571_v33, 5  ;;  %v11571_v49 = vld [vmem:[#allocation2 + $0x20] sm:$0xf] }
 0x1f7   :  { %v3223_v62 = vrot.slane %v3221_v19, 4  ;;  %v4032_v46 = vpack.c.b16 %v4018_v8, %v4017_v55  ;;  %v3555_v3 = vrot.slane %v3554_v2, 4  ;;  %v11472_v54 = vrot.slane %v3377_v25, 9  ;;  %v3124_v25 = vld [vmem:[#allocation2 + $0x38] sm:$0xf] }
 0x1f8   :  { %5073 = vmatmul.bf16.vlgmr.msra.gmra.mxu3 %v11568_v32  ;;  %5122 = vmatmul.bf16.vlgmr.msra.gmra.mxu0 %v4143_v36  ;;  %v4878_v13 = vpop.f32.mrf.mxu3  ;;  %v3226_v57 = vrot.slane %v3224_v45, 5  ;;  %v3574_v24 = vsel %vm13661_vm2, %v3569_v35, %v3573_v10  ;;  %v3436_v16 = vrot.slane %v14917_v53, 5  ;;  %v3213_v4 = vor.u32 %v3212_v17, %v3209_v18  ;;  %v12918_v36 = vld [vmem:[#allocation2 + $0x24] sm:$0xf0]  ;;  %v3508_v35 = vld [vmem:[#allocation2 + $0x3c] sm:$0x1] }
 0x1f9   :  { %v3590_v32 = vshrl.u32 %v3492_v58, 16  ;;  %v3576_v26 = vshrl.u32 %v3491_v42, 16  ;;  %v3579_v48 = vshll.u32 %v3491_v42, 16  ;;  %v3593_v56 = vshll.u32 %v3492_v58, 16  ;;  %v3125_v55 = vld [vmem:[#allocation2 + $0x40] sm:$0xf] }
 0x1fa   :  { %v14949_v14 = vpop.f32.mrf.mxu1  ;;  %v3227_v22 = vor.u32 %v3226_v57, %v3223_v62  ;;  %v11471_v43 = vrot.slane %v3376_v0, 9  ;;  %v3230_v6 = vshll.u32 %v14951_v34, 16  ;;  %v3560_v53 = vsel %vm13661_vm2, %v3555_v3, %v3559_v7  ;;  %v135_v3 = vld [vmem:[#allocation2 + $0x48] sm:$0x1] }
 0x1fb   :  { %v4130_v15 = vunpack.c.l.b16 %v3574_v24  ;;  %v3432_v63 = vrot.slane %v14923_v9, 5  ;;  %v3216_v61 = vshll.u32 %v14956_v39, 16  ;;  %v3592_v40 = vrot.slane %v3590_v32, 4 }
 0x1fc   :  { %v3228_v12 = vrot.slane %v3227_v22, 4  ;;  %v3595_v41 = vrot.slane %v3593_v56, 5  ;;  %v3437_v31 = vsel %vm14599_vm12, %v11472_v54, %v3436_v16  ;;  %v3214_v47 = vrot.slane %v3213_v4, 4  ;;  %v197_v4 = vld [vmem:[#allocation2 + $0x4c] sm:$0x1] }
 0x1fd   :  { %v3578_v33 = vrot.slane %v3576_v26, 4  ;;  %v3581_v38 = vrot.slane %v3579_v48, 5  ;;  %v4129_v2 = vunpack.c.l.b16 %v3560_v53  ;;  %v3232_v9 = vrot.slane %v3230_v6, 5  ;;  %v3378_v53 = vld [vmem:[#allocation2 + $0x28] sm:$0xe] }
 0x1fe   :  { %5024 = vmatmul.bf16.vlgmr.msra.gmra.mxu2 %v4063_v27  ;;  %v4829_v44 = vpop.f32.mrf.mxu2  ;;  %v4783_v18 = vadd.f32 %v14943_v21, %v14932_v60  ;;  %v11572_v17 = vor.u32 %v12918_v36, %v11571_v49  ;;  %v3433_v19 = vsel %vm14599_vm12, %v11471_v43, %v3432_v63  ;;  %v4050_v45 = vunpack.c.l.b16 %v3437_v31  ;;  %v3507_v27 = vld [vmem:[#allocation2 + $0x34] sm:$0x1] }
 0x1ff   :  { %4980 = vmatmul.bf16.gmra.mxu1 %v4032_v46  ;;  %v4830_v37 = vadd.f32 %v4829_v44, %v4781_v28  ;;  %v3218_v28 = vrot.slane %v3216_v61, 5  ;;  %v4144_v0 = vpack.c.b16 %v4130_v15, %v4129_v2  ;;  %v3233_v58 = vsel %vm13661_vm2, %v3228_v12, %v3232_v9  ;;  %v3493_v61 = vld [vmem:[#allocation2 + $0x40] sm:$0xf]  ;;  %v14992_v2 = vld [vmem:[#allocation2 + $0x3c] sm:$0x1] }
 0x200   :  { %v4880_v23 = vpop.f32.mrf.mxu3  ;;  %v3596_v7 = vor.u32 %v3595_v41, %v3592_v40  ;;  %v3582_v42 = vor.u32 %v3581_v38, %v3578_v33  ;;  %v3599_v60 = vshll.u32 %v3508_v35, 16  ;;  %v3235_v46 = vshrl.u32 %v3124_v25, 16  ;;  %v14988_v33 = vld [vmem:[#allocation2 + $0x44] sm:$0x1] }
 0x201   :  { %v14966_v20 = vadd.f32 %v4878_v13, %v4830_v37  ;;  %v12994_v13 = vld [vmem:[#allocation3 + $0x228] sm:$0xff]  ;;  %v3219_v62 = vsel %vm13661_vm2, %v3214_v47, %v3218_v28  ;;  %v3238_v57 = vshll.u32 %v3124_v25, 16  ;;  %v3249_v24 = vshrl.u32 %v3125_v55, 16  ;;  %v12919_v28 = vld [vmem:[#allocation2 + $0x34] sm:$0xf0] }
 0x202   :  { %v14970_v8 = vpop.f32.mrf.mxu1  ;;  %5165 = vmatpush.bf16.msrb.mxu1 %v12994_v13  ;;  %v3252_v16 = vshll.u32 %v3125_v55, 16  ;;  %v4049_v32 = vunpack.c.l.b16 %v3433_v19  ;;  %v4020_v51 = vunpack.c.l.b16 %v3233_v58  ;;  %v3585_v44 = vshll.u32 %v3507_v27, 16  ;;  %v13001_v13 = vld [vmem:[%s16841_s8 + $0x20] sm:$0xff] }
 0x203   :  { %v3597_v48 = vrot.slane %v3596_v7, 4  ;;  %v3251_v56 = vrot.slane %v3249_v24, 4  ;;  %v4019_v6 = vunpack.c.l.b16 %v3219_v62  ;;  %v136_v15 = vsel %vm14511_vm5, 0, %v135_v3  ;;  %5283 = vmatpush.bf16.msrb.mxu2 %v13001_v13 }
 0x204   :  { %v3254_v37 = vrot.slane %v3252_v16, 5  ;;  %v4064_v43 = vpack.c.b16 %v4050_v45, %v4049_v32  ;;  %v198_v63 = vsel %vm14525_vm7, 0, %v197_v4  ;;  %v3583_v12 = vrot.slane %v3582_v42, 4  ;;  %137 = vst [vmem:[#allocation2 + $0x48] sm:$0x1] %v136_v15 }
 0x205   :  { %v3601_v40 = vrot.slane %v3599_v60, 5  ;;  %v3237_v41 = vrot.slane %v3235_v46, 4  ;;  %v3240_v49 = vrot.slane %v3238_v57, 5  ;;  %v4033_v31 = vpack.c.b16 %v4020_v51, %v4019_v6  ;;  %199 = vst [vmem:[#allocation2 + $0x4c] sm:$0x1] %v198_v63 }
 0x206   :  { %v4831_v10 = vpop.f32.mrf.mxu2  ;;  %v3587_v47 = vrot.slane %v3585_v44, 5  ;;  %v3255_v9 = vor.u32 %v3254_v37, %v3251_v56  ;;  %v3604_v35 = vshrl.u32 %v3493_v61, 16  ;;  %v3607_v25 = vshll.u32 %v3493_v61, 16  ;;  %v11575_v60 = vld [vmem:[#allocation2 + $0x30] sm:$0xf]  ;;  %v12993_v37 = vld [vmem:[#allocation3 + $0x220] sm:$0xff] }
 0x207   :  { %v4832_v54 = vadd.f32 %v4831_v10, %v4783_v18  ;;  %v3602_v38 = vsel %vm13661_vm2, %v3597_v48, %v3601_v40  ;;  %v11473_v18 = vrot.slane %v3378_v53, 9  ;;  %v4786_v19 = vadd.f32 %v14943_v21, %v14949_v14  ;;  %v3126_v4 = vld [vmem:[#allocation2 + $0x58] sm:$0xf]  ;;  %v3127_v56 = vld [vmem:[#allocation2 + $0x60] sm:$0xf]  ;;  %5166 = vmatpush.bf16.msrb.mxu1 %v12993_v37 }
 0x208   :  { %5078 = vmatmul.bf16.gmra.mxu3 %v11572_v17  ;;  %5127 = vmatmul.bf16.gmra.mxu0 %v4144_v0  ;;  %v4883_v26 = vpop.f32.mrf.mxu3  ;;  %v3440_v17 = vrot.slane %v14956_v39, 5  ;;  %v3588_v55 = vsel %vm13661_vm2, %v3583_v12, %v3587_v47  ;;  %v3241_v0 = vor.u32 %v3240_v49, %v3237_v41  ;;  %v3258_v45 = vshll.u32 %v14988_v33, 16  ;;  %v15015_v61 = vld [vmem:[#allocation2 + $0x44] sm:$0x1]  ;;  %v13000_v37 = vld [vmem:[%s16841_s8 + $0x18] sm:$0xff] }
 0x209   :  { %v14980_v22 = vadd.f32 %v4880_v23, %v4832_v54  ;;  %v3379_v23 = vld [vmem:[#allocation2 + $0x30] sm:$0xe]  ;;  %v4132_v27 = vunpack.c.l.b16 %v3602_v38  ;;  %v3444_v10 = vrot.slane %v14951_v34, 5  ;;  %v3244_v62 = vshll.u32 %v14992_v2, 16  ;;  %5284 = vmatpush.bf16.msrb.mxu2 %v13000_v37 }
 0x20a   :  { %v11474_v7 = vrot.slane %v3379_v23, 9  ;;  %v3256_v46 = vrot.slane %v3255_v9, 4  ;;  %v3606_v14 = vrot.slane %v3604_v35, 4  ;;  %v3609_v3 = vrot.slane %v3607_v25, 5 }
 0x20b   :  { %v14986_v36 = vpop.f32.mrf.mxu1  ;;  %v11576_v54 = vor.u32 %v12919_v28, %v11575_v60  ;;  %v4131_v57 = vunpack.c.l.b16 %v3588_v55  ;;  %v3441_v24 = vsel %vm14599_vm12, %v11473_v18, %v3440_v17  ;;  %v3494_v16 = vld [vmem:[#allocation2 + $0x48] sm:$0xf]  ;;  %v3242_v34 = vrot.slane %v3241_v0, 4 }
 0x20c   :  { %v3260_v44 = vrot.slane %v3258_v45, 5  ;;  %v3618_v48 = vshrl.u32 %v3494_v16, 16  ;;  %v3445_v6 = vsel %vm14599_vm12, %v11474_v7, %v3444_v10  ;;  %v3246_v53 = vrot.slane %v3244_v62, 5  ;;  %v15017_v23 = vld [vmem:[#allocation2 + $0x4c] sm:$0x1] }
 0x20d   :  { %v3621_v15 = vshll.u32 %v3494_v16, 16  ;;  %v3263_v40 = vshrl.u32 %v3126_v4, 16  ;;  %v3266_v49 = vshll.u32 %v3126_v4, 16  ;;  %v3280_v47 = vshll.u32 %v3127_v56, 16  ;;  %v3381_v45 = vld [vmem:[#allocation2 + $0x40] sm:$0xe] }
 0x20e   :  { %5029 = vmatmul.bf16.gmra.mxu2 %v4064_v43  ;;  %v4145_v43 = vpack.c.b16 %v4132_v27, %v4131_v57  ;;  %v3261_v63 = vsel %vm13661_vm2, %v3256_v46, %v3260_v44  ;;  %v3620_v12 = vrot.slane %v3618_v48, 4  ;;  %v4788_v38 = vadd.f32 %v14943_v21, %v14970_v8  ;;  %v3495_v57 = vld [vmem:[#allocation2 + $0x60] sm:$0xf]  ;;  %v3496_v44 = vld [vmem:[#allocation2 + $0x68] sm:$0xf] }
 0x20f   :  { %4985 = vmatmul.bf16.gmra.mxu1 %v4033_v31  ;;  %v4834_v58 = vpop.f32.mrf.mxu2  ;;  %v3623_v41 = vrot.slane %v3621_v15, 5  ;;  %v3277_v31 = vshrl.u32 %v3127_v56, 16  ;;  %v4052_v9 = vunpack.c.l.b16 %v3445_v6  ;;  %v3247_v35 = vsel %vm13661_vm2, %v3242_v34, %v3246_v53  ;;  %v15039_v6 = vld [vmem:[#allocation2 + $0x5c] sm:$0x1] }
 0x210   :  { %v4835_v42 = vadd.f32 %v4834_v58, %v4786_v19  ;;  %v4885_v39 = vpop.f32.mrf.mxu3  ;;  %v3627_v25 = vshll.u32 %v15017_v23, 16  ;;  %v4022_v18 = vunpack.c.l.b16 %v3261_v63  ;;  %v3613_v17 = vshll.u32 %v15015_v61, 16 }
 0x211   :  { %v3624_v19 = vor.u32 %v3623_v41, %v3620_v12  ;;  %v4051_v0 = vunpack.c.l.b16 %v3441_v24  ;;  %v3279_v58 = vrot.slane %v3277_v31, 4  ;;  %v3282_v27 = vrot.slane %v3280_v47, 5  ;;  %v15047_v47 = vpop.f32.mrf.mxu0 }
 0x212   :  { %v15007_v32 = vadd.f32 %v4883_v26, %v4835_v42  ;;  %v3610_v26 = vor.u32 %v3609_v3, %v3606_v14  ;;  %v4021_v8 = vunpack.c.l.b16 %v3247_v35  ;;  %v3265_v10 = vrot.slane %v3263_v40, 4  ;;  %v11579_v35 = vld [vmem:[#allocation2 + $0x40] sm:$0xf] }
 0x213   :  { %v15009_v51 = vpop.f32.mrf.mxu1  ;;  %v3268_v62 = vrot.slane %v3266_v49, 5  ;;  %v4065_v60 = vpack.c.b16 %v4052_v9, %v4051_v0  ;;  %v3625_v14 = vrot.slane %v3624_v19, 4  ;;  %v3629_v3 = vrot.slane %v3627_v25, 5  ;;  %v12920_v25 = vld [vmem:[#allocation2 + $0x44] sm:$0xf0] }
 0x214   :  { %v3611_v7 = vrot.slane %v3610_v26, 4  ;;  %v4034_v16 = vpack.c.b16 %v4022_v18, %v4021_v8  ;;  %v3615_v4 = vrot.slane %v3613_v17, 5  ;;  %v11476_v24 = vrot.slane %v3381_v45, 9 }
 0x215   :  { %v3452_v34 = vrot.slane %v14988_v33, 5  ;;  %v4791_v48 = vadd.f32 %v14943_v21, %v14986_v36  ;;  %v3283_v56 = vor.u32 %v3282_v27, %v3279_v58  ;;  %v3269_v53 = vor.u32 %v3268_v62, %v3265_v10  ;;  %v3129_v58 = vld [vmem:[#allocation2 + $0x70] sm:$0xf]  ;;  %v3128_v62 = vld [vmem:[#allocation2 + $0x68] sm:$0xf] }
 0x216   :  { %v3632_v15 = vshrl.u32 %v3495_v57, 16  ;;  %v3630_v36 = vsel %vm13661_vm2, %v3625_v14, %v3629_v3  ;;  %v3635_v63 = vshll.u32 %v3495_v57, 16  ;;  %v3646_v26 = vshrl.u32 %v3496_v44, 16 }
 0x217   :  { %v4836_v13 = vpop.f32.mrf.mxu2  ;;  %v3649_v12 = vshll.u32 %v3496_v44, 16  ;;  %v3448_v49 = vrot.slane %v14992_v2, 5  ;;  %v3453_v31 = vsel %vm14599_vm12, %v11476_v24, %v3452_v34  ;;  %v3272_v18 = vshll.u32 %v15039_v6, 16  ;;  %v15058_v44 = vld [vmem:[#allocation2 + $0x6c] sm:$0x1] }
 0x218   :  { %5083 = vmatmul.bf16.gmra.mxu3 %v11576_v54  ;;  %5132 = vmatmul.bf16.gmra.mxu0 %v4145_v43  ;;  %v4837_v28 = vadd.f32 %v4836_v13, %v4788_v38  ;;  %v4888_v55 = vpop.f32.mrf.mxu3  ;;  %v15029_v54 = vld [vmem:[#allocation2 + $0x64] sm:$0x1]  ;;  %v3616_v43 = vsel %vm13661_vm2, %v3611_v7, %v3615_v4  ;;  %v3284_v17 = vrot.slane %v3283_v56, 4  ;;  %v4134_v19 = vunpack.c.l.b16 %v3630_v36 }
 0x219   :  { %v3286_v33 = vshll.u32 %v15029_v54, 16  ;;  %v4133_v13 = vunpack.c.l.b16 %v3616_v43  ;;  %v3634_v45 = vrot.slane %v3632_v15, 4  ;;  %v3637_v8 = vrot.slane %v3635_v63, 5  ;;  %v15064_v43 = vld [vmem:[#allocation2 + $0x64] sm:$0x1] }
 0x21a   :  { %v15025_v42 = vadd.f32 %v4885_v39, %v4837_v28  ;;  %v3380_v39 = vld [vmem:[#allocation2 + $0x38] sm:$0xe]  ;;  %v3270_v28 = vrot.slane %v3269_v53, 4  ;;  %v3648_v7 = vrot.slane %v3646_v26, 4  ;;  %v3651_v10 = vrot.slane %v3649_v12, 5 }
 0x21b   :  { %v15027_v46 = vpop.f32.mrf.mxu1  ;;  %v11475_v41 = vrot.slane %v3380_v39, 9  ;;  %v3288_v0 = vrot.slane %v3286_v33, 5  ;;  %v11580_v14 = vor.u32 %v12920_v25, %v11579_v35  ;;  %v3274_v57 = vrot.slane %v3272_v18, 5  ;;  %v3383_v35 = vld [vmem:[#allocation2 + $0x60] sm:$0xe]  ;;  %v15068_v18 = vpop.f32.mrf.mxu0 }
 0x21c   :  { %v3305_v4 = vshrl.u32 %v3129_v58, 16  ;;  %v3308_v24 = vshll.u32 %v3129_v58, 16  ;;  %v4054_v34 = vunpack.c.l.b16 %v3453_v31  ;;  %v3294_v39 = vshll.u32 %v3128_v62, 16  ;;  %v3497_v58 = vld [vmem:[#allocation2 + $0x70] sm:$0xf] }
 0x21d   :  { %v3449_v3 = vsel %vm14599_vm12, %v11475_v41, %v3448_v49  ;;  %v4793_v56 = vadd.f32 %v14943_v21, %v15009_v51  ;;  %v3275_v37 = vsel %vm13661_vm2, %v3270_v28, %v3274_v57  ;;  %v3638_v53 = vor.u32 %v3637_v8, %v3634_v45  ;;  %v3382_v41 = vld [vmem:[#allocation2 + $0x58] sm:$0xe] }
 0x21e   :  { %5034 = vmatmul.bf16.gmra.mxu2 %v4065_v60  ;;  %v12992_v60 = vld [vmem:[#allocation3 + $0x218] sm:$0xff]  ;;  %v3652_v33 = vor.u32 %v3651_v10, %v3648_v7  ;;  %v4053_v36 = vunpack.c.l.b16 %v3449_v3  ;;  %v3307_v49 = vrot.slane %v3305_v4, 4  ;;  %v3310_v31 = vrot.slane %v3308_v24, 5  ;;  %v12999_v4 = vld [vmem:[%s16841_s8 + $0x10] sm:$0xff] }
 0x21f   :  { %4990 = vmatmul.bf16.gmra.mxu1 %v4034_v16  ;;  %v3289_v16 = vsel %vm13661_vm2, %v3284_v17, %v3288_v0  ;;  %v4023_v51 = vunpack.c.l.b16 %v3275_v37  ;;  %v3639_v0 = vrot.slane %v3638_v53, 4  ;;  %v4796_v8 = vadd.f32 %v14943_v21, %v15027_v46  ;;  %v15083_v46 = vld [vmem:[#allocation2 + $0x6c] sm:$0x1]  ;;  %5285 = vmatpush.bf16.msrb.mxu2 %v12999_v4  ;;  %v15103_v4 = vld [vmem:[#allocation2 + $0x74] sm:$0x1] }
 0x220   :  { %v4839_v40 = vpop.f32.mrf.mxu2  ;;  %v4890_v9 = vpop.f32.mrf.mxu3  ;;  %5167 = vmatpush.bf16.msrb.mxu1 %v12992_v60  ;;  %v4024_v63 = vunpack.c.l.b16 %v3289_v16  ;;  %v3653_v45 = vrot.slane %v3652_v33, 4  ;;  %v11477_v10 = vrot.slane %v3382_v41, 9  ;;  %v15077_v60 = vld [vmem:[#allocation2 + $0x74] sm:$0x1]  ;;  %v3460_v57 = vrot.slane %v15029_v54, 5 }
 0x221   :  { %v4840_v38 = vadd.f32 %v4839_v40, %v4791_v48  ;;  %v3291_v48 = vshrl.u32 %v3128_v62, 16  ;;  %v3655_v40 = vshll.u32 %v15058_v44, 16  ;;  %v3456_v62 = vrot.slane %v15039_v6, 5  ;;  %v3131_v41 = vld [vmem:[#allocation2 + $0x80] sm:$0xf] }
 0x222   :  { %v4035_v7 = vpack.c.b16 %v4024_v63, %v4023_v51  ;;  %v3311_v16 = vor.u32 %v3310_v31, %v3307_v49  ;;  %v3663_v6 = vshll.u32 %v3497_v58, 16  ;;  %v12921_v49 = vld [vmem:[#allocation2 + $0x64] sm:$0xf0] }
 0x223   :  { %v15050_v27 = vadd.f32 %v4888_v55, %v4840_v38  ;;  %v15052_v2 = vpop.f32.mrf.mxu1  ;;  %v4146_v55 = vpack.c.b16 %v4134_v19, %v4133_v13  ;;  %v3641_v38 = vshll.u32 %v15064_v43, 16  ;;  %v3293_v25 = vrot.slane %v3291_v48, 4 }
 0x224   :  { %v3296_v13 = vrot.slane %v3294_v39, 5  ;;  %v4066_v19 = vpack.c.b16 %v4054_v34, %v4053_v36  ;;  %v3657_v3 = vrot.slane %v3655_v40, 5  ;;  %v3660_v34 = vshrl.u32 %v3497_v58, 16  ;;  %v12991_v58 = vld [vmem:[#allocation3 + $0x210] sm:$0xff] }
 0x225   :  { %v3643_v24 = vrot.slane %v3641_v38, 5  ;;  %v3314_v39 = vshll.u32 %v15077_v60, 16  ;;  %v3457_v33 = vsel %vm14599_vm12, %v11477_v10, %v3456_v62  ;;  %v3312_v40 = vrot.slane %v3311_v16, 4  ;;  %v3130_v10 = vld [vmem:[#allocation2 + $0x78] sm:$0xf]  ;;  %5168 = vmatpush.bf16.msrb.mxu1 %v12991_v58 }
 0x226   :  { %v3658_v48 = vsel %vm13661_vm2, %v3653_v45, %v3657_v3  ;;  %v3662_v38 = vrot.slane %v3660_v34, 4  ;;  %v3333_v62 = vshrl.u32 %v3131_v41, 16  ;;  %v15099_v3 = vpop.f32.mrf.mxu0  ;;  %v3385_v58 = vld [vmem:[#allocation2 + $0x70] sm:$0xe] }
 0x227   :  { %v3644_v53 = vsel %vm13661_vm2, %v3639_v0, %v3643_v24  ;;  %v4136_v31 = vunpack.c.l.b16 %v3658_v48  ;;  %v4798_v24 = vadd.f32 %v14943_v21, %v15052_v2 }
 0x228   :  { %5088 = vmatmul.bf16.gmra.mxu3 %v11580_v14  ;;  %v4841_v15 = vpop.f32.mrf.mxu2  ;;  %5137 = vmatmul.bf16.gmra.mxu0 %v4146_v55  ;;  %v4893_v12 = vpop.f32.mrf.mxu3  ;;  %v3498_v14 = vld [vmem:[#allocation2 + $0x78] sm:$0xf]  ;;  %v3297_v55 = vor.u32 %v3296_v13, %v3293_v25 }
 0x229   :  { %v4842_v26 = vadd.f32 %v4841_v15, %v4793_v56  ;;  %v3674_v56 = vshrl.u32 %v3498_v14, 16  ;;  %v3677_v37 = vshll.u32 %v3498_v14, 16  ;;  %v3336_v14 = vshll.u32 %v3131_v41, 16 }
 0x22a   :  { %v3298_v51 = vrot.slane %v3297_v55, 4 }
 0x22b   :  { %v15070_v17 = vadd.f32 %v4890_v9, %v4842_v26  ;;  %v15072_v28 = vpop.f32.mrf.mxu1  ;;  %v11478_v9 = vrot.slane %v3383_v35, 9  ;;  %v3300_v26 = vshll.u32 %v15083_v46, 16  ;;  %v3665_v35 = vrot.slane %v3663_v6, 5  ;;  %v15107_v6 = vld [vmem:[#allocation2 + $0x7c] sm:$0x1] }
 0x22c   :  { %v3676_v0 = vrot.slane %v3674_v56, 4  ;;  %v3679_v45 = vrot.slane %v3677_v37, 5  ;;  %v3319_v37 = vshrl.u32 %v3130_v10, 16 }
 0x22d   :  { %v3461_v63 = vsel %vm14599_vm12, %v11478_v9, %v3460_v57  ;;  %v4055_v57 = vunpack.c.l.b16 %v3457_v33  ;;  %v3302_v16 = vrot.slane %v3300_v26, 5  ;;  %v3666_v48 = vor.u32 %v3665_v35, %v3662_v38  ;;  %v3384_v35 = vld [vmem:[#allocation2 + $0x68] sm:$0xe] }
 0x22e   :  { %5039 = vmatmul.bf16.gmra.mxu2 %v4066_v19  ;;  %v3316_v19 = vrot.slane %v3314_v39, 5  ;;  %v4056_v34 = vunpack.c.l.b16 %v3461_v63  ;;  %v3680_v56 = vor.u32 %v3679_v45, %v3676_v0  ;;  %v3335_v26 = vrot.slane %v3333_v62, 4 }
 0x22f   :  { %4995 = vmatmul.bf16.gmra.mxu1 %v4035_v7  ;;  %v4135_v7 = vunpack.c.l.b16 %v3644_v53  ;;  %v3303_v39 = vsel %vm13661_vm2, %v3298_v51, %v3302_v16  ;;  %v3683_v63 = vshll.u32 %v15107_v6, 16  ;;  %v3667_v38 = vrot.slane %v3666_v48, 4  ;;  %v3500_v16 = vld [vmem:[#allocation2 + $0x88] sm:$0xf]  ;;  %v12922_v48 = vld [vmem:[#allocation2 + $0x74] sm:$0xf0] }
 0x230   :  { %v4844_v54 = vpop.f32.mrf.mxu2  ;;  %v4895_v36 = vpop.f32.mrf.mxu3  ;;  %v3681_v45 = vrot.slane %v3680_v56, 4  ;;  %v3464_v56 = vrot.slane %v15083_v46, 5 }
 0x231   :  { %v4845_v15 = vadd.f32 %v4844_v54, %v4796_v8  ;;  %v11583_v8 = vld [vmem:[#allocation2 + $0x60] sm:$0xf]  ;;  %v4147_v55 = vpack.c.b16 %v4136_v31, %v4135_v7  ;;  %v3322_v54 = vshll.u32 %v3130_v10, 16  ;;  %v4025_v31 = vunpack.c.l.b16 %v3303_v39 }
 0x232   :  { %v11584_v9 = vor.u32 %v12921_v49, %v11583_v8  ;;  %v4067_v49 = vpack.c.b16 %v4056_v34, %v4055_v57  ;;  %v3321_v8 = vrot.slane %v3319_v37, 4  ;;  %v4801_v57 = vadd.f32 %v14943_v21, %v15072_v28  ;;  %v12998_v34 = vld [vmem:[%s16841_s8 + $0x8] sm:$0xff] }
 0x233   :  { %v15095_v25 = vadd.f32 %v4893_v12, %v4845_v15  ;;  %v15097_v13 = vpop.f32.mrf.mxu1  ;;  %v3317_v12 = vsel %vm13661_vm2, %v3312_v40, %v3316_v19  ;;  %v3669_v15 = vshll.u32 %v15103_v4, 16  ;;  %v3338_v40 = vrot.slane %v3336_v14, 5  ;;  %v15113_v19 = vld [vmem:[#allocation2 + $0x84] sm:$0x1]  ;;  %v15119_v14 = vld [vmem:[#allocation2 + $0x7c] sm:$0x1]  ;;  %5286 = vmatpush.bf16.msrb.mxu2 %v12998_v34 }
 0x234   :  { %v4026_v33 = vunpack.c.l.b16 %v3317_v12  ;;  %v3324_v7 = vrot.slane %v3322_v54, 5  ;;  %v3685_v12 = vrot.slane %v3683_v63, 5  ;;  %v11480_v37 = vrot.slane %v3385_v58, 9  ;;  %v15131_v54 = vpop.f32.mrf.mxu0 }
 0x235   :  { %v3671_v62 = vrot.slane %v3669_v15, 5  ;;  %v3468_v28 = vrot.slane %v15077_v60, 5  ;;  %v3702_v15 = vshrl.u32 %v3500_v16, 16  ;;  %v3328_v63 = vshll.u32 %v15119_v14, 16 }
 0x236   :  { %v4036_v10 = vpack.c.b16 %v4026_v33, %v4025_v31  ;;  %v3325_v33 = vor.u32 %v3324_v7, %v3321_v8  ;;  %v3133_v7 = vld [vmem:[#allocation2 + $0x90] sm:$0xf] }
 0x237   :  { %v3672_v39 = vsel %vm13661_vm2, %v3667_v38, %v3671_v62  ;;  %v3469_v8 = vsel %vm14599_vm12, %v11480_v37, %v3468_v28  ;;  %v3361_v37 = vshrl.u32 %v3133_v7, 16  ;;  %v3364_v28 = vshll.u32 %v3133_v7, 16 }
 0x238   :  { %5093 = vmatmul.bf16.gmra.mxu3 %v11584_v9  ;;  %v4846_v53 = vpop.f32.mrf.mxu2  ;;  %5142 = vmatmul.bf16.gmra.mxu0 %v4147_v55  ;;  %v3339_v9 = vor.u32 %v3338_v40, %v3335_v26  ;;  %v3499_v55 = vld [vmem:[#allocation2 + $0x80] sm:$0xf]  ;;  %v3705_v26 = vshll.u32 %v3500_v16, 16  ;;  %v165_v16 = vld [vmem:[#allocation2 + $0x98] sm:$0x1] }
 0x239   :  { %v4847_v2 = vadd.f32 %v4846_v53, %v4798_v24  ;;  %v11479_v24 = vrot.slane %v3384_v35, 9  ;;  %v3686_v53 = vsel %vm13661_vm2, %v3681_v45, %v3685_v12  ;;  %v3688_v31 = vshrl.u32 %v3499_v55, 16  ;;  %v227_v12 = vld [vmem:[#allocation2 + $0x9c] sm:$0x1] }
 0x23a   :  { %v3691_v38 = vshll.u32 %v3499_v55, 16  ;;  %v4138_v62 = vunpack.c.l.b16 %v3686_v53  ;;  %v3704_v55 = vrot.slane %v3702_v15, 4 }
 0x23b   :  { %v4898_v41 = vpop.f32.mrf.mxu3  ;;  %v15115_v51 = vadd.f32 %v4895_v36, %v4847_v2  ;;  %v3342_v36 = vshll.u32 %v15113_v19, 16  ;;  %v11587_v2 = vld [vmem:[#allocation2 + $0x70] sm:$0xf]  ;;  %v3465_v45 = vsel %vm14599_vm12, %v11479_v24, %v3464_v56  ;;  %v3690_v24 = vrot.slane %v3688_v31, 4 }
 0x23c   :  { %v15117_v0 = vpop.f32.mrf.mxu1  ;;  %v11588_v35 = vor.u32 %v12922_v48, %v11587_v2  ;;  %v3132_v48 = vld [vmem:[#allocation2 + $0x88] sm:$0xf]  ;;  %v3693_v56 = vrot.slane %v3691_v38, 5  ;;  %v15148_v2 = vld [vmem:[#allocation2 + $0x84] sm:$0x1]  ;;  %v4058_v31 = vunpack.c.l.b16 %v3469_v8  ;;  %v4057_v1 = vunpack.c.l.b16 %v3465_v45 }
 0x23d   :  { %v3344_v58 = vrot.slane %v3342_v36, 5  ;;  %v3707_v36 = vrot.slane %v3705_v26, 5  ;;  %v15154_v26 = vld [vmem:[#allocation2 + $0x8c] sm:$0x1]  ;;  %v3366_v8 = vrot.slane %v3364_v28, 5  ;;  %v3476_v28 = vrot.slane %v15113_v19, 5 }
 0x23e   :  { %5044 = vmatmul.bf16.gmra.mxu2 %v4067_v49  ;;  %v3340_v49 = vrot.slane %v3339_v9, 4 }
 0x23f   :  { %5000 = vmatmul.bf16.gmra.mxu1 %v4036_v10  ;;  %v4137_v10 = vunpack.c.l.b16 %v3672_v39  ;;  %v3330_v39 = vrot.slane %v3328_v63, 5  ;;  %v3347_v63 = vshrl.u32 %v3132_v48, 16 }
 0x240   :  { %v3345_v53 = vsel %vm13661_vm2, %v3340_v49, %v3344_v58  ;;  %v4803_v49 = vadd.f32 %v14943_v21, %v15097_v13  ;;  %v3708_v58 = vor.u32 %v3707_v36, %v3704_v55  ;;  %v3711_v13 = vshll.u32 %v15154_v26, 16 }
 0x241   :  { %v4849_v40 = vpop.f32.mrf.mxu2  ;;  %v4148_v15 = vpack.c.b16 %v4138_v62, %v4137_v10  ;;  %v3694_v10 = vor.u32 %v3693_v56, %v3690_v24  ;;  %v3697_v62 = vshll.u32 %v15148_v2, 16  ;;  %v3349_v55 = vrot.slane %v3347_v63, 4  ;;  %v3501_v24 = vld [vmem:[#allocation2 + $0x90] sm:$0xf]  ;;  %v12997_v63 = vld [vmem:[%s16841_s8] sm:$0xff] }
 0x242   :  { %v4850_v46 = vadd.f32 %v4849_v40, %v4801_v57  ;;  %v3326_v57 = vrot.slane %v3325_v33, 4  ;;  %v12990_v40 = vld [vmem:[#allocation3 + $0x208] sm:$0xff]  ;;  %v228_v33 = vsel %vm14525_vm7, 0, %v227_v12  ;;  %v15161_v12 = vpop.f32.mrf.mxu0  ;;  %v3709_v45 = vrot.slane %v3708_v58, 4  ;;  %5287 = vmatpush.bf16.msrb.mxu2 %v12997_v63 }
 0x243   :  { %v15136_v60 = vpop.f32.mrf.mxu3  ;;  %5169 = vmatpush.bf16.msrb.mxu1 %v12990_v40  ;;  %229 = vst [vmem:[#allocation2 + $0x9c] sm:$0x1] %v228_v33 }
 0x244   :  { %16887 = vst [vmem:[#allocation19_spill] sm:$0xff] %v15136_v60  ;;  %v15142_v34 = vadd.f32 %v4898_v41, %v4850_v46  ;;  %v15144_v9 = vpop.f32.mrf.mxu1  ;;  %v166_v41 = vsel %vm14511_vm5, 0, %v165_v16  ;;  %v3350_v46 = vshll.u32 %v3132_v48, 16  ;;  %v3331_v38 = vsel %vm13661_vm2, %v3326_v57, %v3330_v39  ;;  %v3387_v57 = vld [vmem:[#allocation2 + $0x80] sm:$0xe] }
 0x245   :  { %167 = vst [vmem:[#allocation2 + $0x98] sm:$0x1] %v166_v41  ;;  %v4028_v16 = vunpack.c.l.b16 %v3345_v53  ;;  %v4027_v41 = vunpack.c.l.b16 %v3331_v38  ;;  %v4068_v39 = vpack.c.b16 %v4058_v31, %v4057_v1  ;;  %v15168_v53 = vld [vmem:[#allocation2 + $0x94] sm:$0x1]  ;;  %v3713_v60 = vrot.slane %v3711_v13, 5 }
 0x246   :  { %v3352_v36 = vrot.slane %v3350_v46, 5  ;;  %v4806_v46 = vadd.f32 %v14943_v21, %v15117_v0  ;;  %v15176_v31 = vld [vmem:[#allocation2 + $0x8c] sm:$0x1]  ;;  %v3370_v1 = vshll.u32 %v15168_v53, 16  ;;  %v3472_v0 = vrot.slane %v15119_v14, 5 }
 0x247   :  { %v4037_v56 = vpack.c.b16 %v4028_v16, %v4027_v41  ;;  %v3716_v16 = vshrl.u32 %v3501_v24, 16  ;;  %v3714_v19 = vsel %vm13661_vm2, %v3709_v45, %v3713_v60  ;;  %v12923_v60 = vld [vmem:[#allocation2 + $0x84] sm:$0xf0] }
 0x248   :  { %5098 = vmatmul.bf16.gmra.mxu3 %v11588_v35  ;;  %5147 = vmatmul.bf16.gmra.mxu0 %v4148_v15  ;;  %v3363_v35 = vrot.slane %v3361_v37, 4  ;;  %v3695_v15 = vrot.slane %v3694_v10, 4  ;;  %v11482_v37 = vrot.slane %v3387_v57, 9  ;;  %v3353_v58 = vor.u32 %v3352_v36, %v3349_v55  ;;  %v12989_v10 = vld [vmem:[#allocation3 + $0x200] sm:$0xff] }
 0x249   :  { %v4851_v7 = vpop.f32.mrf.mxu2  ;;  %5170 = vmatpush.bf16.msrb.mxu1 %v12989_v10  ;;  %v3356_v36 = vshll.u32 %v15176_v31, 16  ;;  %v4140_v45 = vunpack.c.l.b16 %v3714_v19 }
 0x24a   :  { %v15163_v48 = vadd.f32 %v4851_v7, %v4803_v49  ;;  %v3699_v49 = vrot.slane %v3697_v62, 5  ;;  %v3386_v7 = vld [vmem:[#allocation2 + $0x78] sm:$0xe]  ;;  %v3367_v38 = vor.u32 %v3366_v8, %v3363_v35  ;;  %v3719_v62 = vshll.u32 %v3501_v24, 16  ;;  %v15187_v63 = vpop.f32.mrf.mxu0 }
 0x24b   :  { %v4903_v40 = vpop.f32.mrf.mxu3  ;;  %v11481_v21 = vrot.slane %v3386_v7, 9  ;;  %v3477_v55 = vsel %vm14599_vm12, %v11482_v37, %v3476_v28  ;;  %v3354_v24 = vrot.slane %v3353_v58, 4  ;;  %v11591_v37 = vld [vmem:[#allocation2 + $0x80] sm:$0xf] }
 0x24c   :  { %16888 = vst [vmem:[#allocation20_spill] sm:$0xff] %v15163_v48  ;;  %v15166_v33 = vpop.f32.mrf.mxu1  ;;  %v3502_v48 = vld [vmem:[#allocation2 + $0x98] sm:$0xf]  ;;  %v3700_v41 = vsel %vm13661_vm2, %v3695_v15, %v3699_v49  ;;  %v3721_v14 = vrot.slane %v3719_v62, 5  ;;  %v11592_v10 = vor.u32 %v12923_v60, %v11591_v37  ;;  %v4060_v62 = vunpack.c.l.b16 %v3477_v55 }
 0x24d   :  { %v3730_v13 = vshrl.u32 %v3502_v48, 16  ;;  %v3733_v35 = vshll.u32 %v3502_v48, 16  ;;  %v3372_v48 = vrot.slane %v3370_v1, 5  ;;  %v4139_v28 = vunpack.c.l.b16 %v3700_v41  ;;  %v15200_v1 = vld [vmem:[%s16840_s7] ss:$0 sm:$0xff] }
 0x24e   :  { %5049 = vmatmul.bf16.gmra.mxu2 %v4068_v39  ;;  %v3368_v39 = vrot.slane %v3367_v38, 4  ;;  %v3358_v38 = vrot.slane %v3356_v36, 5  ;;  %v3473_v19 = vsel %vm14599_vm12, %v11481_v21, %v3472_v0 }
 0x24f   :  { %5005 = vmatmul.bf16.gmra.mxu1 %v4037_v56  ;;  %v3718_v56 = vrot.slane %v3716_v16, 4  ;;  %v3732_v49 = vrot.slane %v3730_v13, 4  ;;  %v3735_v7 = vrot.slane %v3733_v35, 5  ;;  %v4149_v16 = vpack.c.b16 %v4140_v45, %v4139_v28  ;;  %v15206_v13 = vld [vmem:[#allocation2 + $0x94] sm:$0x1] }
 0x250   :  { %v3373_v58 = vsel %vm13661_vm2, %v3368_v39, %v3372_v48  ;;  %v15208_v35 = vld [vmem:[#allocation2 + $0x9c] sm:$0x1]  ;;  %v4059_v45 = vunpack.c.l.b16 %v3473_v19  ;;  %v3725_v21 = vshll.u32 %v15206_v13, 16 }
 0x251   :  { %v4854_v8 = vpop.f32.mrf.mxu2  ;;  %v3722_v41 = vor.u32 %v3721_v14, %v3718_v56  ;;  %v3739_v36 = vshll.u32 %v15208_v35, 16  ;;  %v3389_v14 = vld [vmem:[#allocation2 + $0x90] sm:$0xe] }
 0x252   :  { %v4855_v57 = vadd.f32 %v4854_v8, %v4806_v46  ;;  %v3359_v8 = vsel %vm13661_vm2, %v3354_v24, %v3358_v38  ;;  %v4069_v55 = vpack.c.b16 %v4060_v62, %v4059_v45  ;;  %v15216_v24 = vpop.f32.mrf.mxu0  ;;  %v3727_v56 = vrot.slane %v3725_v21, 5  ;;  %v12924_v45 = vld [vmem:[#allocation2 + $0x94] sm:$0xf0] }
 0x253   :  { %v15193_v46 = vpop.f32.mrf.mxu3  ;;  %v4029_v0 = vunpack.c.l.b16 %v3359_v8  ;;  %v3723_v37 = vrot.slane %v3722_v41, 4  ;;  %v4811_v38 = vadd.f32 %v15200_v1, %v15166_v33  ;;  %v11484_v62 = vrot.slane %v3389_v14, 9  ;;  %v3743_v41 = vld [vmem:[#allocation2 + $0x10] sm:$0xe] }
 0x254   :  { %v15189_v29 = vadd.f32 %v4903_v40, %v4855_v57  ;;  %v15191_v15 = vpop.f32.mrf.mxu1  ;;  %16889 = vst [vmem:[#allocation21_spill] sm:$0xff] %v15193_v46  ;;  %v4808_v40 = vadd.f32 %v15200_v1, %v15144_v9  ;;  %v3736_v57 = vor.u32 %v3735_v7, %v3732_v49  ;;  %v4030_v9 = vunpack.c.l.b16 %v3373_v58  ;;  %v3744_v7 = vld [vmem:[#allocation2 + $0x18] sm:$0xe] }
 0x255   :  { %v3728_v58 = vsel %vm13661_vm2, %v3723_v37, %v3727_v56  ;;  %v3484_v8 = vrot.slane %v15168_v53, 5  ;;  %v13282_v56 = vld [vmem:[#allocation2 + $0x14] sm:$0x1] }
 0x256   :  { %v3737_v28 = vrot.slane %v3736_v57, 4  ;;  %v4038_v46 = vpack.c.b16 %v4030_v9, %v4029_v0  ;;  %v11595_v9 = vld [vmem:[#allocation2 + $0x90] sm:$0xf]  ;;  %v4141_v21 = vunpack.c.l.b16 %v3728_v58  ;;  %v3793_v14 = vrot.slane %v13282_v56, 5 }
 0x257   :  { %v3485_v53 = vsel %vm14599_vm12, %v11484_v62, %v3484_v8 }
 0x258   :  { %5103 = vmatmul.bf16.gmra.mxu3 %v11592_v10  ;;  %5152 = vmatmul.bf16.gmra.mxu0 %v4149_v16  ;;  %v3741_v10 = vrot.slane %v3739_v36, 5  ;;  %v3388_v16 = vld [vmem:[#allocation2 + $0x88] sm:$0xe]  ;;  %v11486_v36 = vrot.slane %v3744_v7, 9 }
 0x259   :  { %v4856_v39 = vpop.f32.mrf.mxu2  ;;  %v11483_v0 = vrot.slane %v3388_v16, 9 }
 0x25a   :  { %v15213_v60 = vadd.f32 %v4856_v39, %v4808_v40  ;;  %v3742_v40 = vsel %vm13661_vm2, %v3737_v28, %v3741_v10  ;;  %v13281_v39 = vld [vmem:[#allocation2 + $0x1c] sm:$0x1]  ;;  %v11485_v10 = vrot.slane %v3743_v41, 9 }
 0x25b   :  { %v4908_v49 = vpop.f32.mrf.mxu3  ;;  %v4142_v33 = vunpack.c.l.b16 %v3742_v40  ;;  %v15234_v40 = vpop.f32.mrf.mxu0 }
 0x25c   :  { %v4815_v48 = vpop.f32.mrf.mxu1  ;;  %v3794_v16 = vsel %vm14599_vm12, %v11485_v10, %v3793_v14  ;;  %v3745_v10 = vld [vmem:[#allocation2 + $0x20] sm:$0xe] }
 0x25e   :  { %5054 = vmatmul.bf16.gmra.mxu2 %v4069_v55  ;;  %v3480_v55 = vrot.slane %v15176_v31, 5  ;;  %v4813_v31 = vadd.f32 %v15200_v1, %v15191_v15 }
 0x25f   :  { %5010 = vmatmul.bf16.gmra.mxu1 %v4038_v46  ;;  %v3797_v46 = vrot.slane %v13281_v39, 5  ;;  %v4928_v39 = vadd.f32 %v15047_v47, %v14966_v20  ;;  %v4930_v20 = vadd.f32 %v15068_v18, %v14980_v22  ;;  %v4933_v22 = vadd.f32 %v15099_v3, %v15007_v32 }
 0x260   :  { %v3481_v58 = vsel %vm14599_vm12, %v11483_v0, %v3480_v55  ;;  %v4816_v0 = vadd.f32 %v15200_v1, %v4815_v48  ;;  %v4935_v32 = vadd.f32 %v15131_v54, %v15025_v42  ;;  %v13035_v54 = vld [vmem:[#allocation6 + $0x30] sm:$0xff] }
 0x261   :  { %v4859_v19 = vpop.f32.mrf.mxu2  ;;  %v3798_v7 = vsel %vm14599_vm12, %v11486_v36, %v3797_v46  ;;  %v4061_v36 = vunpack.c.l.b16 %v3481_v58  ;;  %v4159_v46 = vunpack.c.l.b16 %v3794_v16  ;;  %v11487_v58 = vrot.slane %v3745_v10, 9 }
 0x262   :  { %v4860_v57 = vadd.f32 %v4859_v19, %v4811_v38  ;;  %v11596_v38 = vor.u32 %v12924_v45, %v11595_v9  ;;  %v4150_v19 = vpack.c.b16 %v4142_v33, %v4141_v21  ;;  %v4160_v8 = vunpack.c.l.b16 %v3798_v7  ;;  %v3746_v33 = vld [vmem:[#allocation2 + $0x28] sm:$0xe] }
 0x263   :  { %v15240_v41 = vpop.f32.mrf.mxu3  ;;  %v11488_v14 = vrot.slane %v3746_v33, 9 }
 0x264   :  { %v15226_v37 = vadd.f32 %v4908_v49, %v4860_v57  ;;  %v4817_v28 = vpop.f32.mrf.mxu1  ;;  %v4062_v49 = vunpack.c.l.b16 %v3485_v53  ;;  %v4175_v21 = vpack.c.b16 %v4160_v8, %v4159_v46  ;;  %v13283_v53 = vld [vmem:[#allocation2 + $0x2c] sm:$0x1] }
 0x266   :  { %v4070_v9 = vpack.c.b16 %v4062_v49, %v4061_v36 }
 0x268   :  { %5108 = vmatmul.bf16.gmra.mxu3 %v11596_v38  ;;  %5157 = vmatmul.bf16.gmra.mxu0 %v4150_v19  ;;  %v3805_v38 = vrot.slane %v13283_v53, 5 }
 0x269   :  { %v4861_v62 = vpop.f32.mrf.mxu2 }
 0x26a   :  { %v15242_v57 = vadd.f32 %v4861_v62, %v4813_v31  ;;  %v13284_v31 = vld [vmem:[#allocation2 + $0x24] sm:$0x1]  ;;  %v3806_v48 = vsel %vm14599_vm12, %v11488_v14, %v3805_v38  ;;  %v4818_v62 = vadd.f32 %v15200_v1, %v4817_v28  ;;  %v3748_v1 = vld [vmem:[#allocation2 + $0x38] sm:$0xe]  ;;  %v13286_v38 = vld [vmem:[#allocation2 + $0x34] sm:$0x1] }
 0x26b   :  { %v4913_v7 = vpop.f32.mrf.mxu3  ;;  %v3801_v49 = vrot.slane %v13284_v31, 5  ;;  %v11490_v10 = vrot.slane %v3748_v1, 9 }
 0x26c   :  { %v4976_v45 = vpop.f32.mrf.mxu1 }
 0x26d   :  { %v4977_v15 = vadd.f32 %v4976_v45, %v4928_v39  ;;  %v3802_v8 = vsel %vm14599_vm12, %v11487_v58, %v3801_v49  ;;  %v4162_v39 = vunpack.c.l.b16 %v3806_v48  ;;  %v13036_v45 = vld [vmem:[#allocation6 + $0x38] sm:$0xff]  ;;  %v4938_v49 = vadd.f32 %v15161_v12, %v15050_v27 }
 0x26e   :  { %5059 = vmatmul.bf16.gmra.mxu2 %v4070_v9  ;;  %v4161_v18 = vunpack.c.l.b16 %v3802_v8  ;;  %7652 = vmatpush.bf16.msrb.mxu3 %v13036_v45  ;;  %v3821_v27 = vrot.slane %v15017_v23, 5  ;;  %v4940_v12 = vadd.f32 %v15187_v63, %v15070_v17  ;;  %v4943_v23 = vadd.f32 %v15216_v24, %v15095_v25  ;;  %v13034_v17 = vld [vmem:[#allocation6 + $0x28] sm:$0xff] }
 0x26f   :  { %5171 = vmatmul.bf16.vlgmr.msrb.gmra.mxu1 %v4175_v21 }
 0x270   :  { %v4176_v33 = vpack.c.b16 %v4162_v39, %v4161_v18  ;;  %v3750_v39 = vld [vmem:[#allocation2 + $0x48] sm:$0xe] }
 0x271   :  { %v4864_v55 = vpop.f32.mrf.mxu2 }
 0x272   :  { %v4865_v56 = vadd.f32 %v4864_v55, %v4816_v0  ;;  %v3747_v0 = vld [vmem:[#allocation2 + $0x30] sm:$0xe]  ;;  %7653 = vmatpush.bf16.msrb.mxu3 %v13035_v54 }
 0x273   :  { %v11489_v53 = vrot.slane %v3747_v0, 9 }
 0x274   :  { %v15249_v47 = vadd.f32 %v4913_v7, %v4865_v56  ;;  %v4978_v19 = vpop.f32.mrf.mxu1  ;;  %v13285_v56 = vld [vmem:[#allocation2 + $0x3c] sm:$0x1]  ;;  %v3809_v7 = vrot.slane %v13286_v38, 5 }
 0x275   :  { %v4979_v16 = vadd.f32 %v4978_v19, %v4930_v20  ;;  %v3813_v14 = vrot.slane %v13285_v56, 5 }
 0x276   :  { %v3810_v19 = vsel %vm14599_vm12, %v11489_v53, %v3809_v7  ;;  %7654 = vmatpush.bf16.msrb.mxu3 %v13034_v17  ;;  %v3752_v53 = vld [vmem:[#allocation2 + $0x68] sm:$0xe]  ;;  %v3751_v7 = vld [vmem:[#allocation2 + $0x60] sm:$0xe] }
 0x277   :  { %v4163_v48 = vunpack.c.l.b16 %v3810_v19  ;;  %v11494_v19 = vrot.slane %v3752_v53, 9 }
 0x279   :  { %v4866_v36 = vpop.f32.mrf.mxu2 }
 0x27a   :  { %v15256_v46 = vadd.f32 %v4866_v36, %v4818_v62  ;;  %v3749_v36 = vld [vmem:[#allocation2 + $0x40] sm:$0xe] }
 0x27c   :  { %v4981_v9 = vpop.f32.mrf.mxu1 }
 0x27d   :  { %v4982_v21 = vadd.f32 %v4981_v9, %v4933_v22  ;;  %v4947_v22 = vpop.f32.mrf.mxu0  ;;  %v11491_v9 = vrot.slane %v3749_v36, 9 }
 0x27e   :  { %5288 = vmatmul.bf16.vlgmr.msrb.gmra.mxu2 %v13738_v50  ;;  %v3814_v50 = vsel %vm14599_vm12, %v11490_v10, %v3813_v14 }
 0x27f   :  { %5176 = vmatmul.bf16.gmra.mxu1 %v4176_v33  ;;  %v11492_v33 = vrot.slane %v3750_v39, 9 }
 0x281   :  { %v5025_v28 = vpop.f32.mrf.mxu2  ;;  %v3822_v0 = vsel %vm14599_vm12, %v11492_v33, %v3821_v27  ;;  %v3753_v27 = vld [vmem:[#allocation2 + $0x70] sm:$0xe] }
 0x282   :  { %v15261_v55 = vadd.f32 %v5025_v28, %v4977_v15  ;;  %v4164_v15 = vunpack.c.l.b16 %v3814_v50 }
 0x284   :  { %v4983_v3 = vpop.f32.mrf.mxu1  ;;  %v4177_v8 = vpack.c.b16 %v4164_v15, %v4163_v48  ;;  %v11493_v15 = vrot.slane %v3751_v7, 9  ;;  %v16891_v7 = vld [vmem:[#allocation14_spill] sm:$0xff] }
 0x285   :  { %v4984_v20 = vadd.f32 %v4983_v3, %v4935_v32  ;;  %v15284_v14 = vpop.f32.mrf.mxu0 }
 0x289   :  { %v5027_v58 = vpop.f32.mrf.mxu2 }
 0x28a   :  { %v15269_v31 = vadd.f32 %v5027_v58, %v4979_v16  ;;  %v3817_v16 = vrot.slane %v15015_v61, 5  ;;  %v4945_v58 = vadd.f32 %v15234_v40, %v15115_v51  ;;  %v13033_v40 = vld [vmem:[#allocation6 + $0x20] sm:$0xff] }
 0x28b   :  { %7655 = vmatpush.bf16.msrb.mxu3 %v13033_v40 }
 0x28c   :  { %v4986_v42 = vpop.f32.mrf.mxu1 }
 0x28d   :  { %v4987_v62 = vadd.f32 %v4986_v42, %v4938_v49  ;;  %v4952_v25 = vpop.f32.mrf.mxu0  ;;  %v3825_v49 = vrot.slane %v15064_v43, 5  ;;  %v16890_v43 = vld [vmem:[#allocation13_spill] sm:$0xff] }
 0x28e   :  { %5293 = vmatmul.bf16.gmra.mxu2 %v13799_v30  ;;  %v3818_v30 = vsel %vm14599_vm12, %v11491_v9, %v3817_v16  ;;  %v3754_v16 = vld [vmem:[#allocation2 + $0x78] sm:$0xe]  ;;  %v4953_v17 = vadd.f32 %v4952_v25, %v15189_v29 }
 0x28f   :  { %5181 = vmatmul.bf16.gmra.mxu1 %v4177_v8  ;;  %v4165_v56 = vunpack.c.l.b16 %v3818_v30  ;;  %v3826_v42 = vsel %vm14599_vm12, %v11493_v15, %v3825_v49  ;;  %v3833_v30 = vrot.slane %v15103_v4, 5  ;;  %v3756_v4 = vld [vmem:[#allocation2 + $0x88] sm:$0xe]  ;;  %v3845_v49 = vrot.slane %v15154_v26, 5  ;;  %v13031_v26 = vld [vmem:[#allocation6 + $0x10] sm:$0xff] }
 0x290   :  { %v4167_v36 = vunpack.c.l.b16 %v3826_v42  ;;  %v11498_v15 = vrot.slane %v3756_v4, 9 }
 0x291   :  { %v5030_v18 = vpop.f32.mrf.mxu2 }
 0x292   :  { %v15274_v45 = vadd.f32 %v5030_v18, %v4982_v21  ;;  %v4166_v21 = vunpack.c.l.b16 %v3822_v0 }
 0x294   :  { %v4988_v1 = vpop.f32.mrf.mxu1  ;;  %v4178_v3 = vpack.c.b16 %v4166_v21, %v4165_v56 }
 0x295   :  { %v4989_v28 = vadd.f32 %v4988_v1, %v4940_v12  ;;  %v15304_v9 = vpop.f32.mrf.mxu0  ;;  %v11496_v1 = vrot.slane %v3754_v16, 9  ;;  %v3758_v16 = vld [vmem:[#allocation2 + $0x98] sm:$0xe] }
 0x299   :  { %v5032_v10 = vpop.f32.mrf.mxu2 }
 0x29a   :  { %v15286_v61 = vadd.f32 %v5032_v10, %v4984_v20  ;;  %v3829_v20 = vrot.slane %v15058_v44, 5  ;;  %v4948_v44 = vadd.f32 %v4947_v22, %v15142_v34  ;;  %v11495_v22 = vrot.slane %v3753_v27, 9 }
 0x29c   :  { %v4991_v32 = vpop.f32.mrf.mxu1  ;;  %v3834_v56 = vsel %vm14599_vm12, %v11495_v22, %v3833_v30  ;;  %v11500_v22 = vrot.slane %v3758_v16, 9  ;;  %v3853_v30 = vrot.slane %v15208_v35, 5 }
 0x29d   :  { %v4992_v63 = vadd.f32 %v4991_v32, %v4943_v23  ;;  %v4957_v10 = vpop.f32.mrf.mxu0 }
 0x29e   :  { %5298 = vmatmul.bf16.gmra.mxu2 %v13848_v5  ;;  %v3830_v5 = vsel %vm14599_vm12, %v11494_v19, %v3829_v20  ;;  %v3755_v20 = vld [vmem:[#allocation2 + $0x80] sm:$0xe] }
 0x29f   :  { %5186 = vmatmul.bf16.gmra.mxu1 %v4178_v3  ;;  %v13032_v3 = vld [vmem:[#allocation6 + $0x18] sm:$0xff]  ;;  %v11497_v25 = vrot.slane %v3755_v20, 9 }
 0x2a0   :  { %7656 = vmatpush.bf16.msrb.mxu3 %v13032_v3 }
 0x2a1   :  { %v5035_v38 = vpop.f32.mrf.mxu2 }
 0x2a2   :  { %v15291_v50 = vadd.f32 %v5035_v38, %v4987_v62  ;;  %v4168_v62 = vunpack.c.l.b16 %v3830_v5  ;;  %v3846_v5 = vsel %vm14599_vm12, %v11498_v15, %v3845_v49 }
 0x2a4   :  { %v4993_v24 = vpop.f32.mrf.mxu1  ;;  %v4179_v18 = vpack.c.b16 %v4168_v62, %v4167_v36  ;;  %v4172_v62 = vunpack.c.l.b16 %v3846_v5  ;;  %7657 = vmatpush.bf16.msrb.mxu3 %v13031_v26 }
 0x2a5   :  { %v4994_v48 = vadd.f32 %v4993_v24, %v4945_v58  ;;  %v15321_v58 = vpop.f32.mrf.mxu0 }
 0x2a9   :  { %v5037_v54 = vpop.f32.mrf.mxu2 }
 0x2aa   :  { %v15301_v8 = vadd.f32 %v5037_v54, %v4989_v28  ;;  %v3837_v28 = vrot.slane %v15107_v6, 5 }
 0x2ac   :  { %v4996_v51 = vpop.f32.mrf.mxu1  ;;  %v3838_v0 = vsel %vm14599_vm12, %v11496_v1, %v3837_v28 }
 0x2ad   :  { %v4997_v39 = vadd.f32 %v4996_v51, %v4948_v44  ;;  %v4170_v23 = vunpack.c.l.b16 %v3838_v0  ;;  %v4958_v44 = vadd.f32 %v4957_v10, %v15226_v37  ;;  %v4962_v51 = vpop.f32.mrf.mxu0  ;;  %v3849_v37 = vrot.slane %v15206_v13, 5 }
 0x2ae   :  { %5303 = vmatmul.bf16.gmra.mxu2 %v16890_v43  ;;  %v16892_v43 = vld [vmem:[#allocation15_spill] sm:$0xff]  ;;  %v4963_v13 = vadd.f32 %v4962_v51, %v15249_v47  ;;  %v13060_v51 = vld [vmem:[#allocation6 + $0xf8] sm:$0xff] }
 0x2af   :  { %5191 = vmatmul.bf16.gmra.mxu1 %v4179_v18  ;;  %7799 = vmatpush.bf16.msra.mxu2 %v13060_v51 }
 0x2b1   :  { %v5040_v33 = vpop.f32.mrf.mxu2 }
 0x2b2   :  { %v15307_v12 = vadd.f32 %v5040_v33, %v4992_v63  ;;  %v4169_v63 = vunpack.c.l.b16 %v3834_v56  ;;  %v15337_v33 = vpop.f32.mrf.mxu3 }
 0x2b4   :  { %v15310_v34 = vpop.f32.mrf.mxu1  ;;  %v4180_v38 = vpack.c.b16 %v4170_v23, %v4169_v63 }
 0x2b5   :  { %v15345_v10 = vpop.f32.mrf.mxu0 }
 0x2b9   :  { %v5042_v21 = vpop.f32.mrf.mxu2 }
 0x2ba   :  { %v15317_v32 = vadd.f32 %v5042_v21, %v4994_v48  ;;  %v3841_v48 = vrot.slane %v15148_v2, 5  ;;  %v3757_v2 = vld [vmem:[#allocation2 + $0x90] sm:$0xe]  ;;  %v3854_v21 = vsel %vm14599_vm12, %v11500_v22, %v3853_v30  ;;  %v13058_v22 = vld [vmem:[#allocation6 + $0xe8] sm:$0xff] }
 0x2bb   :  { %v11499_v1 = vrot.slane %v3757_v2, 9  ;;  %v4174_v63 = vunpack.c.l.b16 %v3854_v21  ;;  %v13049_v21 = vld [vmem:[#allocation6 + $0xa0] sm:$0xff] }
 0x2bc   :  { %v5001_v6 = vpop.f32.mrf.mxu1  ;;  %v3842_v42 = vsel %vm14599_vm12, %v11497_v25, %v3841_v48 }
 0x2bd   :  { %v5002_v53 = vadd.f32 %v5001_v6, %v4953_v17  ;;  %v4171_v36 = vunpack.c.l.b16 %v3842_v42  ;;  %v3850_v56 = vsel %vm14599_vm12, %v11499_v1, %v3849_v37  ;;  %v5074_v6 = vpop.f32.mrf.mxu3  ;;  %v5123_v4 = vpop.f32.mrf.mxu0  ;;  %v16894_v42 = vld [vmem:[#allocation17_spill] sm:$0xff]  ;;  %v13043_v37 = vld [vmem:[#allocation6 + $0x70] sm:$0xff] }
 0x2be   :  { %5308 = vmatmul.bf16.gmra.mxu2 %v16891_v7  ;;  %v4173_v17 = vunpack.c.l.b16 %v3850_v56  ;;  %v16893_v7 = vld [vmem:[#allocation16_spill] sm:$0xff]  ;;  %v13029_v1 = vld [vmem:[#allocation6] sm:$0xff]  ;;  %v5075_v30 = vadd.f32 %v5074_v6, %v15261_v55 }
 0x2bf   :  { %5196 = vmatmul.bf16.gmra.mxu1 %v4180_v38  ;;  %v4181_v18 = vpack.c.b16 %v4172_v62, %v4171_v36  ;;  %v13052_v36 = vld [vmem:[#allocation6 + $0xb8] sm:$0xff] }
 0x2c0   :  { %v4182_v38 = vpack.c.b16 %v4174_v63, %v4173_v17  ;;  %7750 = vmatpush.bf16.msra.mxu1 %v13052_v36  ;;  %v13042_v17 = vld [vmem:[#allocation6 + $0x68] sm:$0xff]  ;;  %v13057_v63 = vld [vmem:[#allocation6 + $0xe0] sm:$0xff] }
 0x2c1   :  { %v5045_v19 = vpop.f32.mrf.mxu2 }
 0x2c2   :  { %v15323_v24 = vadd.f32 %v5045_v19, %v4997_v39 }
 0x2c4   :  { %v15326_v29 = vpop.f32.mrf.mxu1 }
 0x2c5   :  { %v5076_v15 = vpop.f32.mrf.mxu3  ;;  %v5125_v48 = vpop.f32.mrf.mxu0 }
 0x2c9   :  { %v15333_v54 = vpop.f32.mrf.mxu2 }
 0x2cc   :  { %v5006_v40 = vpop.f32.mrf.mxu1 }
 0x2cd   :  { %v5007_v39 = vadd.f32 %v5006_v40, %v4958_v44  ;;  %v15361_v47 = vpop.f32.mrf.mxu3  ;;  %v13044_v40 = vld [vmem:[#allocation6 + $0x78] sm:$0xff]  ;;  %v15366_v26 = vpop.f32.mrf.mxu0 }
 0x2ce   :  { %5313 = vmatmul.bf16.gmra.mxu2 %v16892_v43  ;;  %v13059_v43 = vld [vmem:[#allocation6 + $0xf0] sm:$0xff]  ;;  %7701 = vmatpush.bf16.msrb.mxu0 %v13044_v40 }
 0x2cf   :  { %5201 = vmatmul.bf16.gmra.mxu1 %v4181_v18  ;;  %v13051_v18 = vld [vmem:[#allocation6 + $0xb0] sm:$0xff]  ;;  %7800 = vmatpush.bf16.msra.mxu2 %v13059_v43 }
 0x2d0   :  { %7751 = vmatpush.bf16.msra.mxu1 %v13051_v18  ;;  %v13047_v40 = vld [vmem:[#allocation6 + $0x90] sm:$0xff] }
 0x2d1   :  { %v5050_v27 = vpop.f32.mrf.mxu2  ;;  %v13055_v18 = vld [vmem:[#allocation6 + $0xd0] sm:$0xff] }
 0x2d2   :  { %v15339_v28 = vadd.f32 %v5050_v27, %v5002_v53  ;;  %v13030_v53 = vld [vmem:[#allocation6 + $0x8] sm:$0xff]  ;;  %7702 = vmatpush.bf16.msrb.mxu0 %v13043_v37 }
 0x2d3   :  { %7658 = vmatpush.bf16.msrb.mxu3 %v13030_v53  ;;  %v13050_v27 = vld [vmem:[#allocation6 + $0xa8] sm:$0xff]  ;;  %7801 = vmatpush.bf16.msra.mxu2 %v13058_v22  ;;  %v5124_v53 = vadd.f32 %v5123_v4, %v5075_v30  ;;  %v13040_v4 = vld [vmem:[#allocation6 + $0x58] sm:$0xff] }
 0x2d4   :  { %v15343_v0 = vpop.f32.mrf.mxu1  ;;  %7752 = vmatpush.bf16.msra.mxu1 %v13050_v27  ;;  %v13046_v30 = vld [vmem:[#allocation6 + $0x88] sm:$0xff] }
 0x2d5   :  { %v15368_v2 = vpop.f32.mrf.mxu3 }
 0x2d6   :  { %7703 = vmatpush.bf16.msrb.mxu0 %v13042_v17  ;;  %v13068_v17 = vld [vmem:[#allocation6 + $0x138] sm:$0xff] }
 0x2d7   :  { %7659 = vmatpush.bf16.msrb.mxu3 %v13029_v1  ;;  %7802 = vmatpush.bf16.msra.mxu2 %v13057_v63  ;;  %v13054_v63 = vld [vmem:[#allocation6 + $0xc8] sm:$0xff] }
 0x2d8   :  { %7753 = vmatpush.bf16.msra.mxu1 %v13049_v21  ;;  %v13039_v21 = vld [vmem:[#allocation6 + $0x50] sm:$0xff] }
 0x2d9   :  { %v15351_v23 = vpop.f32.mrf.mxu2 }
 0x2db   :  { %7848 = vmatpush.bf16.msra.mxu3 %v13068_v17 }
 0x2dc   :  { %v5011_v3 = vpop.f32.mrf.mxu1 }
 0x2dd   :  { %v5012_v35 = vadd.f32 %v5011_v3, %v4963_v13  ;;  %v15375_v13 = vpop.f32.mrf.mxu0  ;;  %v15380_v3 = vld [vmem:[%s16842_s9] ss:$0 sm:$0xff]  ;;  %v15382_v55 = vpop.f32.mrf.mxu3 }
 0x2de   :  { %5318 = vmatmul.bf16.gmra.mxu2 %v16893_v7  ;;  %v13048_v7 = vld [vmem:[#allocation6 + $0x98] sm:$0xff] }
 0x2df   :  { %5206 = vmatmul.bf16.gmra.mxu1 %v4182_v38 }
 0x2e0   :  { %7754 = vmatpush.bf16.msra.mxu1 %v13048_v7 }
 0x2e1   :  { %v5055_v19 = vpop.f32.mrf.mxu2 }
 0x2e2   :  { %v15355_v20 = vadd.f32 %v5055_v19, %v5007_v39  ;;  %v13041_v19 = vld [vmem:[#allocation6 + $0x60] sm:$0xff] }
 0x2e3   :  { %7704 = vmatpush.bf16.msrb.mxu0 %v13041_v19  ;;  %v13045_v19 = vld [vmem:[#allocation6 + $0x80] sm:$0xff] }
 0x2e4   :  { %v15357_v49 = vpop.f32.mrf.mxu1  ;;  %7755 = vmatpush.bf16.msra.mxu1 %v13047_v40  ;;  %v13053_v40 = vld [vmem:[#allocation6 + $0xc0] sm:$0xff] }
 0x2e5   :  { %v15390_v27 = vpop.f32.mrf.mxu0 }
 0x2e7   :  { %7705 = vmatpush.bf16.msrb.mxu0 %v13040_v4  ;;  %v5539_v4 = vld [vmem:[#allocation2 + $0xc] sm:$0x1] }
 0x2e8   :  { %7756 = vmatpush.bf16.msra.mxu1 %v13046_v30 }
 0x2e9   :  { %v15359_v25 = vpop.f32.mrf.mxu2 }
 0x2eb   :  { %7706 = vmatpush.bf16.msrb.mxu0 %v13039_v21 }
 0x2ec   :  { %v5172_v5 = vpop.f32.mrf.mxu1  ;;  %7757 = vmatpush.bf16.msra.mxu1 %v13045_v19  ;;  %v5632_v19 = vld [vmem:[#allocation2] sm:$0xf] }
 0x2ed   :  { %v5173_v6 = vadd.f32 %v5172_v5, %v5124_v53  ;;  %v5080_v53 = vadd.f32 %v15361_v47, %v15274_v45  ;;  %v13287_v47 = vld [vmem:[#allocation2 + $0x8] sm:$0xf]  ;;  %v15410_v30 = vpop.f32.mrf.mxu0 }
 0x2ee   :  { %5323 = vmatmul.bf16.gmra.mxu2 %v16894_v42  ;;  %v13056_v42 = vld [vmem:[#allocation6 + $0xd8] sm:$0xff] }
 0x2ef   :  { %7803 = vmatpush.bf16.msra.mxu2 %v13056_v42  ;;  %v5129_v45 = vadd.f32 %v15366_v26, %v5080_v53  ;;  %v5082_v53 = vadd.f32 %v15368_v2, %v15286_v61  ;;  %v5542_v2 = vld [vmem:[#allocation2 + $0x10] sm:$0xf] }
 0x2f1   :  { %v5060_v62 = vpop.f32.mrf.mxu2  ;;  %v5131_v61 = vadd.f32 %v15375_v13, %v5082_v53  ;;  %v5085_v13 = vadd.f32 %v15382_v55, %v15291_v50 }
 0x2f2   :  { %v15364_v44 = vadd.f32 %v5060_v62, %v5012_v35  ;;  %v5077_v62 = vadd.f32 %v5076_v15, %v15269_v31 }
 0x2f3   :  { %7804 = vmatpush.bf16.msra.mxu2 %v13055_v18 }
 0x2f4   :  { %v5174_v39 = vpop.f32.mrf.mxu1  ;;  %v5126_v5 = vadd.f32 %v5125_v48, %v5077_v62 }
 0x2f5   :  { %v15435_v55 = vpop.f32.mrf.mxu0 }
 0x2f6   :  { %v5175_v31 = vadd.f32 %v5174_v39, %v5126_v5  ;;  %v13038_v39 = vld [vmem:[#allocation6 + $0x48] sm:$0xff] }
 0x2f7   :  { %7805 = vmatpush.bf16.msra.mxu2 %v13054_v63  ;;  %7707 = vmatpush.bf16.msrb.mxu0 %v13038_v39  ;;  %v13037_v63 = vld [vmem:[#allocation6 + $0x40] sm:$0xff] }
 0x2f9   :  { %v15370_v16 = vpop.f32.mrf.mxu2 }
 0x2fb   :  { %7806 = vmatpush.bf16.msra.mxu2 %v13053_v40  ;;  %7708 = vmatpush.bf16.msrb.mxu0 %v13037_v63 }
 0x2fc   :  { %v15373_v56 = vpop.f32.mrf.mxu1 }
 0x2fd   :  { %v5178_v26 = vadd.f32 %v15373_v56, %v5129_v45 }
 0x301   :  { %v5289_v35 = vpop.f32.mrf.mxu2 }
 0x302   :  { %v5290_v38 = vadd.f32 %v15380_v3, %v5289_v35  ;;  %v15397_v35 = vpop.f32.mrf.mxu3 }
 0x304   :  { %v5329_v36 = vadd.f32 %v5290_v38, %v5173_v6  ;;  %v15386_v51 = vpop.f32.mrf.mxu1 }
 0x306   :  { %v15388_v43 = vmax.f32 %v5329_v36, 0.0 }
 0x308   :  { %16895 = vst [vmem:[#allocation13_spill] sm:$0xff] %v15388_v43  ;;  %v5361_v1 = vpack.c.bf16 %v15388_v43, %v15388_v43 }
 0x309   :  { %v5291_v37 = vpop.f32.mrf.mxu2 }
 0x30a   :  { %v5378_v15 = vshrl.u32 %v5361_v1, 16  ;;  %v5292_v22 = vadd.f32 %v15380_v3, %v5291_v37  ;;  %v5381_v6 = vshll.u32 %v5361_v1, 16  ;;  %v15418_v56 = vpop.f32.mrf.mxu3 }
 0x30c   :  { %v5380_v48 = vrot.slane %v5378_v15, 7  ;;  %v5330_v38 = vadd.f32 %v5292_v22, %v5175_v31  ;;  %v15399_v7 = vpop.f32.mrf.mxu1  ;;  %v5648_v31 = vld [vmem:[#allocation2 + $0x4] sm:$0x1]  ;;  %v5888_v15 = vld [vmem:[#allocation2] sm:$0xe] }
 0x30e   :  { %v5383_v42 = vor.u32 %v5381_v6, %v5380_v48  ;;  %v5384_v62 = vrot.slane %v5380_v48, 4  ;;  %v15401_v36 = vmax.f32 %v5330_v38, 0.0  ;;  %v11917_v6 = vrot.slane %v5888_v15, 9 }
 0x30f   :  { %v5938_v38 = vrot.slane %v5648_v31, 5 }
 0x310   :  { %16896 = vst [vmem:[#allocation14_spill] sm:$0xff] %v15401_v36  ;;  %v5537_v18 = vsel %vm14583_vm9, %v5383_v42, %v13287_v47  ;;  %v5540_v1 = vsel %vm14511_vm5, %v5384_v62, %v5539_v4  ;;  %v5362_v37 = vpack.c.bf16 %v15401_v36, %v15401_v36  ;;  %v5665_v4 = vshrl.u32 %v5632_v19, 16 }
 0x311   :  { %5538 = vst [vmem:[#allocation2 + $0x8] sm:$0xf] %v5537_v18  ;;  %v5294_v22 = vpop.f32.mrf.mxu2  ;;  %v5668_v47 = vshll.u32 %v5632_v19, 16 }
 0x312   :  { %5541 = vst [vmem:[#allocation2 + $0xc] sm:$0x1] %v5540_v1  ;;  %v5386_v21 = vshrl.u32 %v5362_v37, 16  ;;  %v5295_v17 = vadd.f32 %v15380_v3, %v5294_v22  ;;  %v5389_v48 = vshll.u32 %v5362_v37, 16  ;;  %v11967_v1 = vld [vmem:[#allocation2] sm:$0xf] }
 0x313   :  { %v5667_v22 = vrot.slane %v5665_v4, 4  ;;  %v5545_v37 = vld [vmem:[#allocation2 + $0x14] sm:$0x1]  ;;  %v5670_v15 = vrot.slane %v5668_v47, 5 }
 0x314   :  { %v5388_v42 = vrot.slane %v5386_v21, 7  ;;  %v5331_v62 = vadd.f32 %v5295_v17, %v5178_v26  ;;  %v15416_v39 = vpop.f32.mrf.mxu1  ;;  %v5674_v21 = vshll.u32 %v5648_v31, 16 }
 0x315   :  { %v5671_v47 = vor.u32 %v5670_v15, %v5667_v22 }
 0x316   :  { %v5391_v45 = vor.u32 %v5389_v48, %v5388_v42  ;;  %v5392_v18 = vrot.slane %v5388_v42, 4  ;;  %v15420_v40 = vmax.f32 %v5331_v62, 0.0  ;;  %v5939_v42 = vsel %vm14599_vm12, %v11917_v6, %v5938_v38 }
 0x317   :  { %v6816_v6 = vunpack.c.l.b16 %v5939_v42  ;;  %v5672_v43 = vrot.slane %v5671_v47, 4  ;;  %v5676_v50 = vrot.slane %v5674_v21, 5  ;;  %v5134_v21 = vadd.f32 %v15390_v27, %v5085_v13 }
 0x318   :  { %16898 = vst [vmem:[#allocation15_spill] sm:$0xff] %v15420_v40  ;;  %v5543_v26 = vsel %vm14583_vm9, %v5391_v45, %v5542_v2  ;;  %v5546_v17 = vsel %vm14511_vm5, %v5392_v18, %v5545_v37  ;;  %v5363_v63 = vpack.c.bf16 %v15420_v40, %v15420_v40  ;;  %v13005_v48 = vld [vmem:[#allocation2 + $0x4] sm:$0xf0]  ;;  %v5180_v45 = vadd.f32 %v15386_v51, %v5131_v61  ;;  %v13067_v40 = vld [vmem:[#allocation6 + $0x130] sm:$0xff] }
 0x319   :  { %v5889_v19 = vld [vmem:[#allocation2 + $0x8] sm:$0xe]  ;;  %5547 = vst [vmem:[#allocation2 + $0x14] sm:$0x1] %v5546_v17  ;;  %v5296_v53 = vpop.f32.mrf.mxu2  ;;  %v11968_v31 = vor.u32 %v13005_v48, %v11967_v1  ;;  %v5649_v62 = vld [vmem:[#allocation2 + $0xc] sm:$0x1]  ;;  %7849 = vmatpush.bf16.msra.mxu3 %v13067_v40  ;;  %v5677_v27 = vsel %vm13661_vm2, %v5672_v43, %v5676_v50  ;;  %v5087_v13 = vadd.f32 %v15397_v35, %v15301_v8 }
 0x31a   :  { %v11918_v4 = vrot.slane %v5889_v19, 9  ;;  %5544 = vst [vmem:[#allocation2 + $0x10] sm:$0xf] %v5543_v26  ;;  %v5394_v18 = vshrl.u32 %v5363_v63, 16  ;;  %v5297_v2 = vadd.f32 %v15380_v3, %v5296_v53  ;;  %v5942_v37 = vrot.slane %v5649_v62, 5 }
 0x31b   :  { %v5397_v36 = vshll.u32 %v5363_v63, 16  ;;  %7660 = vmatmul.bf16.vlgmr.msrb.gmra.mxu3 %v11968_v31  ;;  %v5633_v38 = vld [vmem:[#allocation2 + $0x8] sm:$0xf]  ;;  %v5548_v53 = vld [vmem:[#allocation2 + $0x18] sm:$0xf] }
 0x31c   :  { %v5396_v1 = vrot.slane %v5394_v18, 7  ;;  %v5332_v17 = vadd.f32 %v5297_v2, %v5180_v45  ;;  %v15437_v48 = vpop.f32.mrf.mxu1  ;;  %v5943_v51 = vsel %vm14599_vm12, %v11918_v4, %v5942_v37  ;;  %v5679_v22 = vshrl.u32 %v5633_v38, 16  ;;  %v5551_v31 = vld [vmem:[#allocation2 + $0x1c] sm:$0x1]  ;;  %v15444_v2 = vpop.f32.mrf.mxu3  ;;  %v11999_v37 = vld [vmem:[#allocation2 + $0x8] sm:$0xf] }
 0x31d   :  { %v6817_v61 = vunpack.c.l.b16 %v5943_v51  ;;  %v5682_v15 = vshll.u32 %v5633_v38, 16  ;;  %v5688_v18 = vshll.u32 %v5649_v62, 16 }
 0x31e   :  { %v5399_v26 = vor.u32 %v5397_v36, %v5396_v1  ;;  %v5400_v63 = vrot.slane %v5396_v1, 4  ;;  %v15441_v19 = vmax.f32 %v5332_v17, 0.0  ;;  %v5681_v42 = vrot.slane %v5679_v22, 4 }
 0x31f   :  { %v6832_v47 = vpack.c.b16 %v6817_v61, %v6816_v6  ;;  %v5684_v45 = vrot.slane %v5682_v15, 5  ;;  %v5183_v17 = vadd.f32 %v15399_v7, %v5134_v21  ;;  %v5690_v50 = vrot.slane %v5688_v18, 5 }
 0x320   :  { %16899 = vst [vmem:[#allocation16_spill] sm:$0xff] %v15441_v19  ;;  %v5549_v4 = vsel %vm14583_vm9, %v5399_v26, %v5548_v53  ;;  %v5552_v40 = vsel %vm14511_vm5, %v5400_v63, %v5551_v31  ;;  %v5364_v36 = vpack.c.bf16 %v15441_v19, %v15441_v19  ;;  %v15456_v1 = vld [vmem:[#allocation2 + $0x14] sm:$0x1]  ;;  %v6784_v63 = vunpack.c.l.b16 %v5677_v27  ;;  %v13296_v19 = vld [vmem:[#allocation2 + $0x8] sm:$0xf] }
 0x321   :  { %5553 = vst [vmem:[#allocation2 + $0x1c] sm:$0x1] %v5552_v40  ;;  %7758 = vmatmul.bf16.vlgmr.msra.gmra.mxu1 %v6832_v47  ;;  %v5299_v62 = vpop.f32.mrf.mxu2  ;;  %v13013_v6 = vld [vmem:[#allocation2 + $0xc] sm:$0xf0]  ;;  %v5685_v38 = vor.u32 %v5684_v45, %v5681_v42  ;;  %v16900_v47 = vld [vmem:[#allocation20_spill] sm:$0xff] }
 0x322   :  { %5550 = vst [vmem:[#allocation2 + $0x18] sm:$0xf] %v5549_v4  ;;  %v5402_v51 = vshrl.u32 %v5364_v36, 16  ;;  %v5300_v22 = vadd.f32 %v15380_v3, %v5299_v62  ;;  %v12000_v61 = vor.u32 %v13013_v6, %v11999_v37  ;;  %v5890_v15 = vld [vmem:[#allocation2 + $0x10] sm:$0xe]  ;;  %v5405_v26 = vshll.u32 %v5364_v36, 16  ;;  %v15467_v36 = vpop.f32.mrf.mxu0 }
 0x323   :  { %v5686_v43 = vrot.slane %v5685_v38, 4  ;;  %v5634_v8 = vld [vmem:[#allocation2 + $0x10] sm:$0xf]  ;;  %v11919_v21 = vrot.slane %v5890_v15, 9  ;;  %v5946_v4 = vrot.slane %v15456_v1, 5  ;;  %v16903_v38 = vld [vmem:[#allocation21_spill] sm:$0xff] }
 0x324   :  { %v5404_v35 = vrot.slane %v5402_v51, 7  ;;  %v5333_v53 = vadd.f32 %v5300_v22, %v5183_v17  ;;  %7807 = vmatmul.bf16.vlgmr.msra.gmra.mxu2 %v12000_v61  ;;  %v5693_v31 = vshrl.u32 %v5634_v8, 16  ;;  %v5696_v42 = vshll.u32 %v5634_v8, 16  ;;  %v16901_v45 = vld [vmem:[#allocation19_spill] sm:$0xff]  ;;  %v15471_v6 = vpop.f32.mrf.mxu1  ;;  %v5554_v22 = vld [vmem:[#allocation2 + $0x20] sm:$0xf] }
 0x325   :  { %v15462_v40 = vadd.f32 %v16901_v45, %v16900_v47  ;;  %v5691_v7 = vsel %vm13661_vm2, %v5686_v43, %v5690_v50  ;;  %v4906_v17 = vadd.f32 %v16903_v38, %v15213_v60  ;;  %v5136_v51 = vadd.f32 %v15410_v30, %v5087_v13  ;;  %v5557_v61 = vld [vmem:[#allocation2 + $0x24] sm:$0x1] }
 0x326   :  { %v5407_v18 = vor.u32 %v5405_v26, %v5404_v35  ;;  %v5408_v37 = vrot.slane %v5404_v35, 4  ;;  %v15469_v27 = vmax.f32 %v5333_v53, 0.0  ;;  %v6785_v62 = vunpack.c.l.b16 %v5691_v7  ;;  %v11971_v53 = vld [vmem:[#allocation2 + $0x10] sm:$0xf] }
 0x327   :  { %v5695_v43 = vrot.slane %v5693_v31, 4  ;;  %v5698_v15 = vrot.slane %v5696_v42, 5  ;;  %v15486_v60 = vadd.f32 %v15240_v41, %v15242_v57  ;;  %v5090_v30 = vadd.f32 %v15418_v56, %v15307_v12 }
 0x328   :  { %16902 = vst [vmem:[#allocation17_spill] sm:$0xff] %v15469_v27  ;;  %v5555_v50 = vsel %vm14583_vm9, %v5407_v18, %v5554_v22  ;;  %v5558_v26 = vsel %vm14511_vm5, %v5408_v37, %v5557_v61  ;;  %v5365_v8 = vpack.c.bf16 %v15469_v27, %v15469_v27  ;;  %v6800_v35 = vpack.c.b16 %v6785_v62, %v6784_v63  ;;  %v15482_v47 = vld [vmem:[#allocation2 + $0x1c] sm:$0x1]  ;;  %v15491_v18 = vpop.f32.mrf.mxu3 }
 0x329   :  { %v5185_v13 = vadd.f32 %v15416_v39, %v5136_v51  ;;  %5559 = vst [vmem:[#allocation2 + $0x24] sm:$0x1] %v5558_v26  ;;  %v5301_v31 = vpop.f32.mrf.mxu2  ;;  %v13006_v42 = vld [vmem:[#allocation2 + $0x14] sm:$0xf0]  ;;  %v5699_v7 = vor.u32 %v5698_v15, %v5695_v43  ;;  %v5947_v41 = vsel %vm14599_vm12, %v11919_v21, %v5946_v4  ;;  %v5950_v39 = vrot.slane %v15482_v47, 5  ;;  %v13066_v15 = vld [vmem:[#allocation6 + $0x128] sm:$0xff] }
 0x32a   :  { %v5891_v45 = vld [vmem:[#allocation2 + $0x18] sm:$0xe]  ;;  %5556 = vst [vmem:[#allocation2 + $0x20] sm:$0xf] %v5555_v50  ;;  %v5410_v63 = vshrl.u32 %v5365_v8, 16  ;;  %7709 = vmatmul.bf16.vlgmr.msrb.gmra.mxu0 %v6800_v35  ;;  %v5302_v37 = vadd.f32 %v15380_v3, %v5301_v31  ;;  %v11972_v62 = vor.u32 %v13006_v42, %v11971_v53  ;;  %v5413_v57 = vshll.u32 %v5365_v8, 16  ;;  %7850 = vmatpush.bf16.msra.mxu3 %v13066_v15 }
 0x32b   :  { %v11920_v12 = vrot.slane %v5891_v45, 9  ;;  %v5635_v56 = vld [vmem:[#allocation2 + $0x18] sm:$0xf]  ;;  %v5702_v38 = vshll.u32 %v15456_v1, 16  ;;  %v5139_v50 = vadd.f32 %v15435_v55, %v5090_v30  ;;  %v6818_v35 = vunpack.c.l.b16 %v5947_v41  ;;  %v5560_v53 = vld [vmem:[#allocation2 + $0x28] sm:$0xf] }
 0x32c   :  { %v5412_v51 = vrot.slane %v5410_v63, 7  ;;  %v5334_v22 = vadd.f32 %v5302_v37, %v5185_v13  ;;  %7665 = vmatmul.bf16.gmra.mxu3 %v11972_v62  ;;  %v5707_v61 = vshrl.u32 %v5635_v56, 16  ;;  %v5710_v43 = vshll.u32 %v5635_v56, 16  ;;  %v5563_v1 = vld [vmem:[#allocation2 + $0x2c] sm:$0x1]  ;;  %v15504_v62 = vpop.f32.mrf.mxu0  ;;  %v15512_v41 = vpop.f32.mrf.mxu1 }
 0x32d   :  { %v5951_v26 = vsel %vm14599_vm12, %v11920_v12, %v5950_v39  ;;  %v5700_v21 = vrot.slane %v5699_v7, 4  ;;  %v5704_v13 = vrot.slane %v5702_v38, 5  ;;  %v5716_v37 = vshll.u32 %v15482_v47, 16  ;;  %v12003_v12 = vld [vmem:[#allocation2 + $0x18] sm:$0xf] }
 0x32e   :  { %v5415_v4 = vor.u32 %v5413_v57, %v5412_v51  ;;  %v5416_v8 = vrot.slane %v5412_v51, 4  ;;  %v15501_v31 = vmax.f32 %v5334_v22, 0.0  ;;  %v6819_v42 = vunpack.c.l.b16 %v5951_v26 }
 0x32f   :  { %v5709_v45 = vrot.slane %v5707_v61, 4  ;;  %v5712_v63 = vrot.slane %v5710_v43, 5  ;;  %v4950_v39 = vadd.f32 %v15284_v14, %v15462_v40  ;;  %v15517_v47 = vadd.f32 %v15304_v9, %v4906_v17 }
 0x330   :  { %16904 = vst [vmem:[#allocation18_spill] sm:$0xff] %v15501_v31  ;;  %v5561_v55 = vsel %vm14583_vm9, %v5415_v4, %v5560_v53  ;;  %v5564_v30 = vsel %vm14511_vm5, %v5416_v8, %v5563_v1  ;;  %v5366_v7 = vpack.c.bf16 %v15501_v31, %v15501_v31  ;;  %v6833_v57 = vpack.c.b16 %v6819_v42, %v6818_v35  ;;  %v15520_v61 = vld [vmem:[#allocation2 + $0x24] sm:$0x1]  ;;  %v15527_v4 = vpop.f32.mrf.mxu3 }
 0x331   :  { %v5188_v56 = vadd.f32 %v15437_v48, %v5139_v50  ;;  %5565 = vst [vmem:[#allocation2 + $0x2c] sm:$0x1] %v5564_v30  ;;  %v5304_v38 = vpop.f32.mrf.mxu2  ;;  %v13014_v51 = vld [vmem:[#allocation2 + $0x1c] sm:$0xf0]  ;;  %v5713_v22 = vor.u32 %v5712_v63, %v5709_v45  ;;  %v5705_v14 = vsel %vm13661_vm2, %v5700_v21, %v5704_v13  ;;  %v5092_v9 = vadd.f32 %v15444_v2, %v15317_v32 }
 0x332   :  { %5562 = vst [vmem:[#allocation2 + $0x28] sm:$0xf] %v5561_v55  ;;  %v5418_v43 = vshrl.u32 %v5366_v7, 16  ;;  %7763 = vmatmul.bf16.gmra.mxu1 %v6833_v57  ;;  %v5305_v15 = vadd.f32 %v15380_v3, %v5304_v38  ;;  %v12004_v26 = vor.u32 %v13014_v51, %v12003_v12  ;;  %v5892_v40 = vld [vmem:[#allocation2 + $0x20] sm:$0xe]  ;;  %v5421_v48 = vshll.u32 %v5366_v7, 16 }
 0x333   :  { %v5714_v17 = vrot.slane %v5713_v22, 4  ;;  %v5718_v50 = vrot.slane %v5716_v37, 5  ;;  %v5636_v35 = vld [vmem:[#allocation2 + $0x20] sm:$0xf]  ;;  %v6786_v63 = vunpack.c.l.b16 %v5705_v14  ;;  %v11921_v21 = vrot.slane %v5892_v40, 9 }
 0x334   :  { %v5420_v8 = vrot.slane %v5418_v43, 7  ;;  %v5335_v53 = vadd.f32 %v5305_v15, %v5188_v56  ;;  %7812 = vmatmul.bf16.gmra.mxu2 %v12004_v26  ;;  %v5721_v42 = vshrl.u32 %v5636_v35, 16  ;;  %v5724_v1 = vshll.u32 %v5636_v35, 16  ;;  %v5566_v57 = vld [vmem:[#allocation2 + $0x30] sm:$0xf] }
 0x335   :  { %v5719_v45 = vsel %vm13661_vm2, %v5714_v17, %v5718_v50  ;;  %v5954_v13 = vrot.slane %v15520_v61, 5  ;;  %v4999_v30 = vadd.f32 %v15310_v34, %v4950_v39  ;;  %v5141_v7 = vadd.f32 %v15467_v36, %v5092_v9  ;;  %v5569_v12 = vld [vmem:[#allocation2 + $0x34] sm:$0x1]  ;;  %v11975_v26 = vld [vmem:[#allocation2 + $0x20] sm:$0xf]  ;;  %v15548_v50 = vpop.f32.mrf.mxu0 }
 0x336   :  { %v5423_v55 = vor.u32 %v5421_v48, %v5420_v8  ;;  %v5424_v32 = vrot.slane %v5420_v8, 4  ;;  %v15532_v2 = vmax.f32 %v5335_v53, 0.0  ;;  %v6787_v37 = vunpack.c.l.b16 %v5719_v45  ;;  %v15550_v8 = vpop.f32.mrf.mxu1 }
 0x337   :  { %v5723_v56 = vrot.slane %v5721_v42, 4  ;;  %v5726_v38 = vrot.slane %v5724_v1, 5  ;;  %v5095_v34 = vadd.f32 %v15491_v18, %v15323_v24  ;;  %v5048_v36 = vadd.f32 %v15333_v54, %v4999_v30  ;;  %v13065_v30 = vld [vmem:[#allocation6 + $0x120] sm:$0xff] }
 0x338   :  { %16905 = vst [vmem:[#allocation20_spill] sm:$0xff] %v15532_v2  ;;  %v5567_v51 = vsel %vm14583_vm9, %v5423_v55, %v5566_v57  ;;  %v5570_v22 = vsel %vm14511_vm5, %v5424_v32, %v5569_v12  ;;  %v5367_v43 = vpack.c.bf16 %v15532_v2, %v15532_v2  ;;  %v6801_v15 = vpack.c.b16 %v6787_v37, %v6786_v63  ;;  %v15542_v14 = vld [vmem:[#allocation2 + $0x2c] sm:$0x1] }
 0x339   :  { %v5190_v39 = vadd.f32 %v15471_v6, %v5141_v7  ;;  %5571 = vst [vmem:[#allocation2 + $0x34] sm:$0x1] %v5570_v22  ;;  %v5306_v40 = vpop.f32.mrf.mxu2  ;;  %v13007_v9 = vld [vmem:[#allocation2 + $0x24] sm:$0xf0]  ;;  %v5727_v17 = vor.u32 %v5726_v38, %v5723_v56  ;;  %v5955_v24 = vsel %vm14599_vm12, %v11921_v21, %v5954_v13  ;;  %v5958_v18 = vrot.slane %v15542_v14, 5  ;;  %v15560_v13 = vpop.f32.mrf.mxu3  ;;  %7851 = vmatpush.bf16.msra.mxu3 %v13065_v30 }
 0x33a   :  { %v5893_v48 = vld [vmem:[#allocation2 + $0x28] sm:$0xe]  ;;  %5568 = vst [vmem:[#allocation2 + $0x30] sm:$0xf] %v5567_v51  ;;  %v5426_v35 = vshrl.u32 %v5367_v43, 16  ;;  %7714 = vmatmul.bf16.gmra.mxu0 %v6801_v15  ;;  %v5307_v53 = vadd.f32 %v15380_v3, %v5306_v40  ;;  %v11976_v42 = vor.u32 %v13007_v9, %v11975_v26  ;;  %v5429_v54 = vshll.u32 %v5367_v43, 16 }
 0x33b   :  { %v11922_v6 = vrot.slane %v5893_v48, 9  ;;  %v5637_v1 = vld [vmem:[#allocation2 + $0x28] sm:$0xf]  ;;  %v5730_v45 = vshll.u32 %v15520_v61, 16  ;;  %v5144_v7 = vadd.f32 %v15504_v62, %v5095_v34  ;;  %v6820_v12 = vunpack.c.l.b16 %v5955_v24  ;;  %v5572_v51 = vld [vmem:[#allocation2 + $0x38] sm:$0xf] }
 0x33c   :  { %v5428_v63 = vrot.slane %v5426_v35, 7  ;;  %v5336_v55 = vadd.f32 %v5307_v53, %v5190_v39  ;;  %7670 = vmatmul.bf16.gmra.mxu3 %v11976_v42  ;;  %v5735_v32 = vshrl.u32 %v5637_v1, 16  ;;  %v5738_v37 = vshll.u32 %v5637_v1, 16  ;;  %v5575_v43 = vld [vmem:[#allocation2 + $0x3c] sm:$0x1] }
 0x33d   :  { %v5959_v57 = vsel %vm14599_vm12, %v11922_v6, %v5958_v18  ;;  %v5728_v21 = vrot.slane %v5727_v17, 4  ;;  %v5732_v15 = vrot.slane %v5730_v45, 5  ;;  %v5744_v62 = vshll.u32 %v15542_v14, 16  ;;  %v12007_v17 = vld [vmem:[#allocation2 + $0x28] sm:$0xf] }
 0x33e   :  { %v5431_v56 = vor.u32 %v5429_v54, %v5428_v63  ;;  %v5432_v38 = vrot.slane %v5428_v63, 4  ;;  %v15562_v22 = vmax.f32 %v5336_v55, 0.0  ;;  %v6821_v61 = vunpack.c.l.b16 %v5959_v57  ;;  %v15583_v30 = vpop.f32.mrf.mxu1 }
 0x33f   :  { %v5737_v26 = vrot.slane %v5735_v32, 4  ;;  %v5740_v39 = vrot.slane %v5738_v37, 5  ;;  %v5004_v35 = vadd.f32 %v15326_v29, %v15517_v47  ;;  %v5097_v53 = vadd.f32 %v15527_v4, %v5048_v36  ;;  %v15581_v32 = vpop.f32.mrf.mxu0 }
 0x340   :  { %16906 = vst [vmem:[#allocation19_spill] sm:$0xff] %v15562_v22  ;;  %v5573_v34 = vsel %vm14583_vm9, %v5431_v56, %v5572_v51  ;;  %v5576_v40 = vsel %vm14511_vm5, %v5432_v38, %v5575_v43  ;;  %v5368_v9 = vpack.c.bf16 %v15562_v22, %v15562_v22  ;;  %v6834_v48 = vpack.c.b16 %v6821_v61, %v6820_v12  ;;  %v15575_v6 = vld [vmem:[#allocation2 + $0x34] sm:$0x1]  ;;  %v5578_v43 = vld [vmem:[#allocation2 + $0x40] sm:$0xf] }
 0x341   :  { %v5193_v42 = vadd.f32 %v15512_v41, %v5144_v7  ;;  %5577 = vst [vmem:[#allocation2 + $0x3c] sm:$0x1] %v5576_v40  ;;  %v5309_v14 = vpop.f32.mrf.mxu2  ;;  %v13015_v24 = vld [vmem:[#allocation2 + $0x2c] sm:$0xf0]  ;;  %v5741_v54 = vor.u32 %v5740_v39, %v5737_v26  ;;  %v5733_v63 = vsel %vm13661_vm2, %v5728_v21, %v5732_v15  ;;  %v5053_v47 = vadd.f32 %v15351_v23, %v5004_v35 }
 0x342   :  { %5574 = vst [vmem:[#allocation2 + $0x38] sm:$0xf] %v5573_v34  ;;  %v5434_v18 = vshrl.u32 %v5368_v9, 16  ;;  %7768 = vmatmul.bf16.gmra.mxu1 %v6834_v48  ;;  %v5310_v1 = vadd.f32 %v15380_v3, %v5309_v14  ;;  %v12008_v45 = vor.u32 %v13015_v24, %v12007_v17  ;;  %v5894_v29 = vld [vmem:[#allocation2 + $0x30] sm:$0xe]  ;;  %v5437_v4 = vshll.u32 %v5368_v9, 16  ;;  %v5101_v48 = vpop.f32.mrf.mxu3 }
 0x343   :  { %v5742_v41 = vrot.slane %v5741_v54, 4  ;;  %v5746_v36 = vrot.slane %v5744_v62, 5  ;;  %v5638_v55 = vld [vmem:[#allocation2 + $0x30] sm:$0xf]  ;;  %v6788_v21 = vunpack.c.l.b16 %v5733_v63  ;;  %v11923_v38 = vrot.slane %v5894_v29, 9 }
 0x344   :  { %v5436_v37 = vrot.slane %v5434_v18, 7  ;;  %v5337_v7 = vadd.f32 %v5310_v1, %v5193_v42  ;;  %7817 = vmatmul.bf16.gmra.mxu2 %v12008_v45  ;;  %v5749_v57 = vshrl.u32 %v5638_v55, 16  ;;  %v5752_v12 = vshll.u32 %v5638_v55, 16  ;;  %v5581_v62 = vld [vmem:[#allocation2 + $0x44] sm:$0x1] }
 0x345   :  { %v5747_v56 = vsel %vm13661_vm2, %v5742_v41, %v5746_v36  ;;  %v5962_v23 = vrot.slane %v15575_v6, 5  ;;  %v5146_v39 = vadd.f32 %v15548_v50, %v5097_v53  ;;  %v5758_v9 = vshll.u32 %v15575_v6, 16  ;;  %v11979_v24 = vld [vmem:[#allocation2 + $0x30] sm:$0xf] }
 0x346   :  { %v5439_v51 = vor.u32 %v5437_v4, %v5436_v37  ;;  %v5440_v61 = vrot.slane %v5436_v37, 4  ;;  %v15588_v15 = vmax.f32 %v5337_v7, 0.0  ;;  %v6789_v26 = vunpack.c.l.b16 %v5747_v56  ;;  %v13064_v56 = vld [vmem:[#allocation6 + $0x118] sm:$0xff] }
 0x347   :  { %v5751_v34 = vrot.slane %v5749_v57, 4  ;;  %v5754_v40 = vrot.slane %v5752_v12, 5  ;;  %v5100_v50 = vadd.f32 %v15560_v13, %v15339_v28  ;;  %v15600_v53 = vadd.f32 %v5101_v48, %v5053_v47  ;;  %7852 = vmatpush.bf16.msra.mxu3 %v13064_v56  ;;  %v5896_v48 = vld [vmem:[#allocation2 + $0x50] sm:$0xe] }
 0x348   :  { %16907 = vst [vmem:[#allocation21_spill] sm:$0xff] %v15588_v15  ;;  %v5579_v17 = vsel %vm14583_vm9, %v5439_v51, %v5578_v43  ;;  %v5582_v35 = vsel %vm14511_vm5, %v5440_v61, %v5581_v62  ;;  %v5369_v42 = vpack.c.bf16 %v15588_v15, %v15588_v15  ;;  %v6802_v14 = vpack.c.b16 %v6789_v26, %v6788_v21  ;;  %v5655_v54 = vld [vmem:[#allocation2 + $0x3c] sm:$0x1]  ;;  %v5150_v26 = vpop.f32.mrf.mxu0 }
 0x349   :  { %v5195_v6 = vadd.f32 %v15550_v8, %v5146_v39  ;;  %5583 = vst [vmem:[#allocation2 + $0x44] sm:$0x1] %v5582_v35  ;;  %v5311_v18 = vpop.f32.mrf.mxu2  ;;  %v13008_v1 = vld [vmem:[#allocation2 + $0x34] sm:$0xf0]  ;;  %v5755_v63 = vor.u32 %v5754_v40, %v5751_v34  ;;  %v5963_v36 = vsel %vm14599_vm12, %v11923_v38, %v5962_v23  ;;  %v5966_v13 = vrot.slane %v5655_v54, 5  ;;  %v15608_v23 = vpop.f32.mrf.mxu1 }
 0x34a   :  { %v5895_v45 = vld [vmem:[#allocation2 + $0x38] sm:$0xe]  ;;  %5580 = vst [vmem:[#allocation2 + $0x40] sm:$0xf] %v5579_v17  ;;  %v5442_v29 = vshrl.u32 %v5369_v42, 16  ;;  %7719 = vmatmul.bf16.gmra.mxu0 %v6802_v14  ;;  %v5312_v4 = vadd.f32 %v15380_v3, %v5311_v18  ;;  %v11980_v41 = vor.u32 %v13008_v1, %v11979_v24  ;;  %v5445_v55 = vshll.u32 %v5369_v42, 16 }
 0x34b   :  { %v11924_v28 = vrot.slane %v5895_v45, 9  ;;  %v5639_v47 = vld [vmem:[#allocation2 + $0x38] sm:$0xf]  ;;  %v5756_v37 = vrot.slane %v5755_v63, 4  ;;  %v6822_v51 = vunpack.c.l.b16 %v5963_v36  ;;  %v5760_v61 = vrot.slane %v5758_v9, 5 }
 0x34c   :  { %v5444_v8 = vrot.slane %v5442_v29, 7  ;;  %v5338_v7 = vadd.f32 %v5312_v4, %v5195_v6  ;;  %7675 = vmatmul.bf16.gmra.mxu3 %v11980_v41  ;;  %v5763_v57 = vshrl.u32 %v5639_v47, 16  ;;  %v5766_v12 = vshll.u32 %v5639_v47, 16  ;;  %v15612_v40 = vld [vmem:[#allocation2 + $0x54] sm:$0x1] }
 0x34d   :  { %v5967_v21 = vsel %vm14599_vm12, %v11924_v28, %v5966_v13  ;;  %v5772_v43 = vshll.u32 %v5655_v54, 16  ;;  %v5149_v17 = vadd.f32 %v15581_v32, %v5100_v50  ;;  %v5584_v35 = vld [vmem:[#allocation2 + $0x58] sm:$0xf]  ;;  %v5587_v42 = vld [vmem:[#allocation2 + $0x5c] sm:$0x1]  ;;  %v5761_v9 = vsel %vm13661_vm2, %v5756_v37, %v5760_v61 }
 0x34e   :  { %v5447_v39 = vor.u32 %v5445_v55, %v5444_v8  ;;  %v5448_v38 = vrot.slane %v5444_v8, 4  ;;  %v15610_v62 = vmax.f32 %v5338_v7, 0.0  ;;  %v6823_v34 = vunpack.c.l.b16 %v5967_v21  ;;  %v12011_v45 = vld [vmem:[#allocation2 + $0x38] sm:$0xf]  ;;  %v5640_v47 = vld [vmem:[#allocation2 + $0x50] sm:$0xf] }
 0x34f   :  { %v5765_v14 = vrot.slane %v5763_v57, 4  ;;  %v5768_v24 = vrot.slane %v5766_v12, 5  ;;  %v5198_v32 = vadd.f32 %v15583_v30, %v5149_v17  ;;  %v11925_v4 = vrot.slane %v5896_v48, 9  ;;  %v5104_v30 = vpop.f32.mrf.mxu3 }
 0x350   :  { %16908 = vst [vmem:[#allocation22_spill] sm:$0xff] %v15610_v62  ;;  %v5585_v54 = vsel %vm14583_vm9, %v5447_v39, %v5584_v35  ;;  %v5588_v6 = vsel %vm14511_vm5, %v5448_v38, %v5587_v42  ;;  %v5370_v18 = vpack.c.bf16 %v15610_v62, %v15610_v62  ;;  %v6835_v1 = vpack.c.b16 %v6823_v34, %v6822_v51 }
 0x351   :  { %5589 = vst [vmem:[#allocation2 + $0x5c] sm:$0x1] %v5588_v6  ;;  %v5314_v50 = vpop.f32.mrf.mxu2  ;;  %v13016_v63 = vld [vmem:[#allocation2 + $0x3c] sm:$0xf0]  ;;  %v5769_v29 = vor.u32 %v5768_v24, %v5765_v14  ;;  %v5970_v41 = vrot.slane %v15612_v40, 5  ;;  %v5774_v13 = vrot.slane %v5772_v43, 5  ;;  %v6790_v8 = vunpack.c.l.b16 %v5761_v9 }
 0x352   :  { %5586 = vst [vmem:[#allocation2 + $0x58] sm:$0xf] %v5585_v54  ;;  %v5450_v36 = vshrl.u32 %v5370_v18, 16  ;;  %7773 = vmatmul.bf16.gmra.mxu1 %v6835_v1  ;;  %v5315_v55 = vadd.f32 %v15380_v3, %v5314_v50  ;;  %v12012_v28 = vor.u32 %v13016_v63, %v12011_v45  ;;  %v5777_v7 = vshrl.u32 %v5640_v47, 16  ;;  %v5590_v14 = vld [vmem:[#allocation2 + $0x60] sm:$0xf]  ;;  %v5202_v45 = vpop.f32.mrf.mxu1 }
 0x353   :  { %v5770_v37 = vrot.slane %v5769_v29, 4  ;;  %v5780_v57 = vshll.u32 %v5640_v47, 16  ;;  %v5453_v56 = vshll.u32 %v5370_v18, 16  ;;  %v15628_v51 = vsel %vm14599_vm12, %v11925_v4, %v5970_v41  ;;  %v5593_v24 = vld [vmem:[#allocation2 + $0x64] sm:$0x1]  ;;  %v5153_v18 = vpop.f32.mrf.mxu0 }
 0x354   :  { %v5452_v12 = vrot.slane %v5450_v36, 7  ;;  %v5339_v21 = vadd.f32 %v5315_v55, %v5198_v32  ;;  %7822 = vmatmul.bf16.gmra.mxu2 %v12012_v28  ;;  %v5779_v39 = vrot.slane %v5777_v7, 4  ;;  %v5786_v43 = vshll.u32 %v15612_v40, 16  ;;  %v11983_v54 = vld [vmem:[#allocation2 + $0x50] sm:$0xf] }
 0x355   :  { %v5775_v61 = vsel %vm13661_vm2, %v5770_v37, %v5774_v13  ;;  %v5782_v38 = vrot.slane %v5780_v57, 5  ;;  %v4960_v42 = vadd.f32 %v15321_v58, %v15486_v60  ;;  %v5151_v9 = vadd.f32 %v5150_v26, %v15600_v53 }
 0x356   :  { %v5455_v34 = vor.u32 %v5453_v56, %v5452_v12  ;;  %v5456_v48 = vrot.slane %v5452_v12, 4  ;;  %v15633_v17 = vmax.f32 %v5339_v21, 0.0  ;;  %v6791_v35 = vunpack.c.l.b16 %v5775_v61  ;;  %v13063_v12 = vld [vmem:[#allocation6 + $0x110] sm:$0xff] }
 0x357   :  { %v5783_v6 = vor.u32 %v5782_v38, %v5779_v39  ;;  %v5009_v58 = vadd.f32 %v15343_v0, %v4960_v42  ;;  %v5105_v60 = vadd.f32 %v5104_v30, %v15355_v20  ;;  %v5200_v53 = vadd.f32 %v15608_v23, %v5151_v9  ;;  %v5596_v38 = vld [vmem:[#allocation2 + $0x68] sm:$0xf]  ;;  %7853 = vmatpush.bf16.msra.mxu3 %v13063_v12 }
 0x358   :  { %16909 = vst [vmem:[#allocation23_spill] sm:$0xff] %v15633_v17  ;;  %v5591_v1 = vsel %vm14583_vm9, %v5455_v34, %v5590_v14  ;;  %v5594_v40 = vsel %vm14511_vm5, %v5456_v48, %v5593_v24  ;;  %v5371_v32 = vpack.c.bf16 %v15633_v17, %v15633_v17  ;;  %v6803_v50 = vpack.c.b16 %v6791_v35, %v6790_v8  ;;  %v15644_v63 = vld [vmem:[#allocation2 + $0x5c] sm:$0x1]  ;;  %v5599_v48 = vld [vmem:[#allocation2 + $0x6c] sm:$0x1] }
 0x359   :  { %5595 = vst [vmem:[#allocation2 + $0x64] sm:$0x1] %v5594_v40  ;;  %v5316_v26 = vpop.f32.mrf.mxu2  ;;  %v13009_v29 = vld [vmem:[#allocation2 + $0x54] sm:$0xf0]  ;;  %v6824_v41 = vunpack.c.l.b16 %v15628_v51  ;;  %v5788_v13 = vrot.slane %v5786_v43, 5  ;;  %v5974_v0 = vrot.slane %v15644_v63, 5  ;;  %v5058_v56 = vadd.f32 %v15359_v25, %v5009_v58  ;;  %v5106_v51 = vpop.f32.mrf.mxu3 }
 0x35a   :  { %v5897_v4 = vld [vmem:[#allocation2 + $0x58] sm:$0xe]  ;;  %5592 = vst [vmem:[#allocation2 + $0x60] sm:$0xf] %v5591_v1  ;;  %v5458_v36 = vshrl.u32 %v5371_v32, 16  ;;  %7724 = vmatmul.bf16.gmra.mxu0 %v6803_v50  ;;  %v5317_v55 = vadd.f32 %v15380_v3, %v5316_v26  ;;  %v11984_v28 = vor.u32 %v13009_v29, %v11983_v54  ;;  %v5461_v47 = vshll.u32 %v5371_v32, 16  ;;  %v5204_v26 = vpop.f32.mrf.mxu1 }
 0x35b   :  { %v11926_v37 = vrot.slane %v5897_v4, 9  ;;  %v5641_v20 = vld [vmem:[#allocation2 + $0x58] sm:$0xf]  ;;  %v5784_v8 = vrot.slane %v5783_v6, 4  ;;  %v5154_v21 = vadd.f32 %v5153_v18, %v5105_v60  ;;  %v5800_v25 = vshll.u32 %v15644_v63, 16  ;;  %v5155_v60 = vpop.f32.mrf.mxu0 }
 0x35c   :  { %v5460_v23 = vrot.slane %v5458_v36, 7  ;;  %v5340_v7 = vadd.f32 %v5317_v55, %v5200_v53  ;;  %7680 = vmatmul.bf16.gmra.mxu3 %v11984_v28  ;;  %v5791_v57 = vshrl.u32 %v5641_v20, 16  ;;  %v5794_v30 = vshll.u32 %v5641_v20, 16  ;;  %v12015_v18 = vld [vmem:[#allocation2 + $0x58] sm:$0xf] }
 0x35d   :  { %v5975_v3 = vsel %vm14599_vm12, %v11926_v37, %v5974_v0  ;;  %v5789_v35 = vsel %vm13661_vm2, %v5784_v8, %v5788_v13  ;;  %v4916_v1 = vadd.f32 %v15337_v33, %v15256_v46  ;;  %v5107_v40 = vadd.f32 %v5106_v51, %v5058_v56  ;;  %v15673_v4 = vld [vmem:[%s16842_s9] ss:$0 sm:$0xff] }
 0x35e   :  { %v5463_v61 = vor.u32 %v5461_v47, %v5460_v23  ;;  %v5464_v39 = vrot.slane %v5460_v23, 4  ;;  %v15655_v43 = vmax.f32 %v5340_v7, 0.0  ;;  %v6825_v34 = vunpack.c.l.b16 %v5975_v3 }
 0x35f   :  { %v5793_v42 = vrot.slane %v5791_v57, 4  ;;  %v5796_v9 = vrot.slane %v5794_v30, 5  ;;  %v5203_v53 = vadd.f32 %v5202_v45, %v5154_v21  ;;  %v5802_v28 = vrot.slane %v5800_v25, 5 }
 0x360   :  { %16910 = vst [vmem:[#allocation24_spill] sm:$0xff] %v15655_v43  ;;  %v5597_v14 = vsel %vm14583_vm9, %v5463_v61, %v5596_v38  ;;  %v5600_v24 = vsel %vm14511_vm5, %v5464_v39, %v5599_v48  ;;  %v5372_v54 = vpack.c.bf16 %v15655_v43, %v15655_v43  ;;  %v6836_v6 = vpack.c.b16 %v6825_v34, %v6824_v41  ;;  %v15668_v63 = vld [vmem:[#allocation2 + $0x64] sm:$0x1]  ;;  %v5602_v61 = vld [vmem:[#allocation2 + $0x70] sm:$0xf] }
 0x361   :  { %5601 = vst [vmem:[#allocation2 + $0x6c] sm:$0x1] %v5600_v24  ;;  %v5319_v32 = vpop.f32.mrf.mxu2  ;;  %v13017_v50 = vld [vmem:[#allocation2 + $0x5c] sm:$0xf0]  ;;  %v5797_v58 = vor.u32 %v5796_v9, %v5793_v42  ;;  %v6792_v13 = vunpack.c.l.b16 %v5789_v35  ;;  %v4965_v8 = vadd.f32 %v15345_v10, %v4916_v1  ;;  %v5978_v57 = vrot.slane %v15668_v63, 5  ;;  %v5109_v48 = vpop.f32.mrf.mxu3 }
 0x362   :  { %5598 = vst [vmem:[#allocation2 + $0x68] sm:$0xf] %v5597_v14  ;;  %v5466_v29 = vshrl.u32 %v5372_v54, 16  ;;  %7778 = vmatmul.bf16.gmra.mxu1 %v6836_v6  ;;  %v5320_v46 = vadd.f32 %v15673_v4, %v5319_v32  ;;  %v12016_v33 = vor.u32 %v13017_v50, %v12015_v18  ;;  %v5898_v41 = vld [vmem:[#allocation2 + $0x60] sm:$0xe]  ;;  %v5469_v36 = vshll.u32 %v5372_v54, 16 }
 0x363   :  { %v5798_v55 = vrot.slane %v5797_v58, 4  ;;  %v5642_v47 = vld [vmem:[#allocation2 + $0x60] sm:$0xf]  ;;  %v11927_v7 = vrot.slane %v5898_v41, 9  ;;  %v5014_v3 = vadd.f32 %v15357_v49, %v4965_v8  ;;  %v5156_v51 = vadd.f32 %v5155_v60, %v5107_v40  ;;  %v5605_v39 = vld [vmem:[#allocation2 + $0x74] sm:$0x1] }
 0x364   :  { %v5468_v37 = vrot.slane %v5466_v29, 7  ;;  %v5341_v45 = vadd.f32 %v5320_v46, %v5203_v53  ;;  %7827 = vmatmul.bf16.gmra.mxu2 %v12016_v33  ;;  %v5805_v0 = vshrl.u32 %v5642_v47, 16  ;;  %v5808_v20 = vshll.u32 %v5642_v47, 16  ;;  %v11987_v25 = vld [vmem:[#allocation2 + $0x60] sm:$0xf]  ;;  %v5158_v46 = vpop.f32.mrf.mxu0  ;;  %v5207_v33 = vpop.f32.mrf.mxu1  ;;  %v13084_v47 = vld [vmem:[#allocation6 + $0x1b8] sm:$0xff] }
 0x365   :  { %v5803_v23 = vsel %vm13661_vm2, %v5798_v55, %v5802_v28  ;;  %v5110_v49 = vadd.f32 %v5109_v48, %v15364_v44  ;;  %v15693_v24 = vadd.f32 %v15370_v16, %v5014_v3  ;;  %v5205_v54 = vadd.f32 %v5204_v26, %v5156_v51  ;;  %7946 = vmatpush.bf16.msrb.mxu1 %v13084_v47  ;;  %v13061_v3 = vld [vmem:[#allocation6 + $0x100] sm:$0xff]  ;;  %v13091_v48 = vld [vmem:[#allocation6 + $0x1f0] sm:$0xff]  ;;  %v13074_v47 = vld [vmem:[#allocation6 + $0x168] sm:$0xff] }
 0x366   :  { %v5471_v30 = vor.u32 %v5469_v36, %v5468_v37  ;;  %v5472_v12 = vrot.slane %v5468_v37, 4  ;;  %v15680_v56 = vmax.f32 %v5341_v45, 0.0  ;;  %v6793_v21 = vunpack.c.l.b16 %v5803_v23  ;;  %v13092_v37 = vld [vmem:[#allocation6 + $0x1f8] sm:$0xff] }
 0x367   :  { %v5807_v38 = vrot.slane %v5805_v0, 4  ;;  %v5810_v34 = vrot.slane %v5808_v20, 5  ;;  %v5979_v60 = vsel %vm14599_vm12, %v11927_v7, %v5978_v57  ;;  %v5814_v26 = vshll.u32 %v15668_v63, 16  ;;  %v5608_v45 = vld [vmem:[#allocation2 + $0x78] sm:$0xf]  ;;  %7995 = vmatpush.bf16.msrb.mxu2 %v13092_v37 }
 0x368   :  { %16911 = vst [vmem:[#allocation25_spill] sm:$0xff] %v15680_v56  ;;  %v5603_v10 = vsel %vm14583_vm9, %v5471_v30, %v5602_v61  ;;  %v5606_v35 = vsel %vm14511_vm5, %v5472_v12, %v5605_v39  ;;  %v5373_v42 = vpack.c.bf16 %v15680_v56, %v15680_v56  ;;  %v6804_v9 = vpack.c.b16 %v6793_v21, %v6792_v13  ;;  %v15689_v14 = vld [vmem:[#allocation2 + $0x6c] sm:$0x1]  ;;  %v13076_v7 = vld [vmem:[#allocation6 + $0x178] sm:$0xff] }
 0x369   :  { %5607 = vst [vmem:[#allocation2 + $0x74] sm:$0x1] %v5606_v35  ;;  %v5321_v6 = vpop.f32.mrf.mxu2  ;;  %v13010_v18 = vld [vmem:[#allocation2 + $0x64] sm:$0xf0]  ;;  %v5811_v40 = vor.u32 %v5810_v34, %v5807_v38  ;;  %v5982_v16 = vrot.slane %v15689_v14, 5  ;;  %v6826_v20 = vunpack.c.l.b16 %v5979_v60  ;;  %v5828_v23 = vshll.u32 %v15689_v14, 16  ;;  %7897 = vmatpush.bf16.msra.mxu0 %v13076_v7 }
 0x36a   :  { %v5899_v1 = vld [vmem:[#allocation2 + $0x68] sm:$0xe]  ;;  %5604 = vst [vmem:[#allocation2 + $0x70] sm:$0xf] %v5603_v10  ;;  %v5474_v32 = vshrl.u32 %v5373_v42, 16  ;;  %7729 = vmatmul.bf16.gmra.mxu0 %v6804_v9  ;;  %v5322_v50 = vadd.f32 %v15673_v4, %v5321_v6  ;;  %v11988_v58 = vor.u32 %v13010_v18, %v11987_v25  ;;  %v5477_v53 = vshll.u32 %v5373_v42, 16 }
 0x36b   :  { %v11928_v44 = vrot.slane %v5899_v1, 9  ;;  %v5643_v29 = vld [vmem:[#allocation2 + $0x68] sm:$0xf]  ;;  %v5812_v8 = vrot.slane %v5811_v40, 4  ;;  %v5611_v30 = vld [vmem:[#allocation2 + $0x7c] sm:$0x1]  ;;  %v5159_v51 = vadd.f32 %v5158_v46, %v5110_v49  ;;  %7996 = vmatpush.bf16.msrb.mxu2 %v13091_v48 }
 0x36c   :  { %v5476_v41 = vrot.slane %v5474_v32, 7  ;;  %v5342_v36 = vadd.f32 %v5322_v50, %v5205_v54  ;;  %7685 = vmatmul.bf16.gmra.mxu3 %v11988_v58  ;;  %v5819_v55 = vshrl.u32 %v5643_v29, 16  ;;  %v5822_v28 = vshll.u32 %v5643_v29, 16  ;;  %v13062_v13 = vld [vmem:[#allocation6 + $0x108] sm:$0xff]  ;;  %v13083_v34 = vld [vmem:[#allocation6 + $0x1b0] sm:$0xff]  ;;  %v5111_v32 = vpop.f32.mrf.mxu3 }
 0x36d   :  { %v5983_v0 = vsel %vm14599_vm12, %v11928_v44, %v5982_v16  ;;  %7854 = vmatpush.bf16.msra.mxu3 %v13062_v13  ;;  %v5816_v61 = vrot.slane %v5814_v26, 5  ;;  %v12019_v25 = vld [vmem:[#allocation2 + $0x68] sm:$0xf]  ;;  %v13075_v14 = vld [vmem:[#allocation6 + $0x170] sm:$0xff]  ;;  %v5208_v49 = vadd.f32 %v5207_v33, %v5159_v51  ;;  %v5112_v16 = vadd.f32 %v5111_v32, %v15693_v24  ;;  %7947 = vmatpush.bf16.msrb.mxu1 %v13083_v34  ;;  %v13089_v34 = vld [vmem:[#allocation6 + $0x1e0] sm:$0xff] }
 0x36e   :  { %v5479_v63 = vor.u32 %v5477_v53, %v5476_v41  ;;  %v5480_v57 = vrot.slane %v5476_v41, 4  ;;  %v15703_v12 = vmax.f32 %v5342_v36, 0.0  ;;  %v6827_v21 = vunpack.c.l.b16 %v5983_v0  ;;  %v13082_v33 = vld [vmem:[#allocation6 + $0x1a8] sm:$0xff]  ;;  %7898 = vmatpush.bf16.msra.mxu0 %v13075_v14  ;;  %v13073_v14 = vld [vmem:[#allocation6 + $0x160] sm:$0xff] }
 0x36f   :  { %v5821_v39 = vrot.slane %v5819_v55, 4  ;;  %v5824_v38 = vrot.slane %v5822_v28, 5  ;;  %v5817_v18 = vsel %vm13661_vm2, %v5812_v8, %v5816_v61  ;;  %v5830_v53 = vrot.slane %v5828_v23, 5  ;;  %v13090_v41 = vld [vmem:[#allocation6 + $0x1e8] sm:$0xff]  ;;  %v5209_v8 = vpop.f32.mrf.mxu1 }
 0x370   :  { %16912 = vst [vmem:[#allocation26_spill] sm:$0xff] %v15703_v12  ;;  %v5609_v10 = vsel %vm14583_vm9, %v5479_v63, %v5608_v45  ;;  %v5612_v35 = vsel %vm14511_vm5, %v5480_v57, %v5611_v30  ;;  %v5374_v42 = vpack.c.bf16 %v15703_v12, %v15703_v12  ;;  %v6837_v9 = vpack.c.b16 %v6827_v21, %v6826_v20  ;;  %v15713_v40 = vld [vmem:[#allocation2 + $0x74] sm:$0x1]  ;;  %v5160_v20 = vpop.f32.mrf.mxu0  ;;  %v5614_v63 = vld [vmem:[#allocation2 + $0x80] sm:$0xf] }
 0x371   :  { %5613 = vst [vmem:[#allocation2 + $0x7c] sm:$0x1] %v5612_v35  ;;  %v5324_v54 = vpop.f32.mrf.mxu2  ;;  %v13018_v6 = vld [vmem:[#allocation2 + $0x6c] sm:$0xf0]  ;;  %v5825_v1 = vor.u32 %v5824_v38, %v5821_v39  ;;  %7855 = vmatpush.bf16.msra.mxu3 %v13061_v3  ;;  %v6794_v45 = vunpack.c.l.b16 %v5817_v18  ;;  %v5986_v24 = vrot.slane %v15713_v40, 5  ;;  %v5161_v3 = vadd.f32 %v5160_v20, %v5112_v16  ;;  %7948 = vmatpush.bf16.msrb.mxu1 %v13082_v33  ;;  %v13081_v38 = vld [vmem:[#allocation6 + $0x1a0] sm:$0xff] }
 0x372   :  { %5610 = vst [vmem:[#allocation2 + $0x78] sm:$0xf] %v5609_v10  ;;  %v5482_v50 = vshrl.u32 %v5374_v42, 16  ;;  %7783 = vmatmul.bf16.gmra.mxu1 %v6837_v9  ;;  %v5325_v58 = vadd.f32 %v15673_v4, %v5324_v54  ;;  %v12020_v60 = vor.u32 %v13018_v6, %v12019_v25  ;;  %v5900_v44 = vld [vmem:[#allocation2 + $0x70] sm:$0xe]  ;;  %v5485_v29 = vshll.u32 %v5374_v42, 16  ;;  %7997 = vmatpush.bf16.msrb.mxu2 %v13090_v41 }
 0x373   :  { %v5826_v26 = vrot.slane %v5825_v1, 4  ;;  %v5644_v46 = vld [vmem:[#allocation2 + $0x70] sm:$0xf]  ;;  %v11929_v0 = vrot.slane %v5900_v44, 9  ;;  %v5617_v57 = vld [vmem:[#allocation2 + $0x84] sm:$0x1]  ;;  %7899 = vmatpush.bf16.msra.mxu0 %v13074_v47 }
 0x374   :  { %v5484_v36 = vrot.slane %v5482_v50, 7  ;;  %v5343_v55 = vadd.f32 %v5325_v58, %v5208_v49  ;;  %7832 = vmatmul.bf16.gmra.mxu2 %v12020_v60  ;;  %v5833_v28 = vshrl.u32 %v5644_v46, 16  ;;  %v5836_v13 = vshll.u32 %v5644_v46, 16  ;;  %v11991_v9 = vld [vmem:[#allocation2 + $0x70] sm:$0xf]  ;;  %v13080_v60 = vld [vmem:[#allocation6 + $0x198] sm:$0xff] }
 0x375   :  { %v5831_v37 = vsel %vm13661_vm2, %v5826_v26, %v5830_v53  ;;  %v5842_v39 = vshll.u32 %v15713_v40, 16  ;;  %v5210_v49 = vadd.f32 %v5209_v8, %v5161_v3  ;;  %v5987_v58 = vsel %vm14599_vm12, %v11929_v0, %v5986_v24  ;;  %7949 = vmatpush.bf16.msrb.mxu1 %v13081_v38  ;;  %v13088_v26 = vld [vmem:[#allocation6 + $0x1d8] sm:$0xff]  ;;  %v5623_v20 = vld [vmem:[#allocation2 + $0x8c] sm:$0x1]  ;;  %v13087_v3 = vld [vmem:[#allocation6 + $0x1d0] sm:$0xff] }
 0x376   :  { %v5487_v23 = vor.u32 %v5485_v29, %v5484_v36  ;;  %v5488_v7 = vrot.slane %v5484_v36, 4  ;;  %v15720_v30 = vmax.f32 %v5343_v55, 0.0  ;;  %v6795_v21 = vunpack.c.l.b16 %v5831_v37  ;;  %7998 = vmatpush.bf16.msrb.mxu2 %v13089_v34  ;;  %v5620_v55 = vld [vmem:[#allocation2 + $0x88] sm:$0xf]  ;;  %v15933_v56 = vld [vmem:[#allocation2 + $0x74] sm:$0x1] }
 0x377   :  { %v5835_v51 = vrot.slane %v5833_v28, 4  ;;  %v5838_v61 = vrot.slane %v5836_v13, 5  ;;  %7900 = vmatpush.bf16.msra.mxu0 %v13073_v14  ;;  %v6828_v13 = vunpack.c.l.b16 %v5987_v58  ;;  %v5844_v37 = vrot.slane %v5842_v39, 5  ;;  %v13086_v58 = vld [vmem:[#allocation6 + $0x1c8] sm:$0xff] }
 0x378   :  { %16913 = vst [vmem:[#allocation27_spill] sm:$0xff] %v15720_v30  ;;  %v5615_v48 = vsel %vm14583_vm9, %v5487_v23, %v5614_v63  ;;  %v5618_v10 = vsel %vm14511_vm5, %v5488_v7, %v5617_v57  ;;  %v5375_v35 = vpack.c.bf16 %v15720_v30, %v15720_v30  ;;  %v6805_v42 = vpack.c.b16 %v6795_v21, %v6794_v45  ;;  %v15729_v25 = vld [vmem:[#allocation2 + $0x7c] sm:$0x1]  ;;  %v15737_v45 = vld [vmem:[#allocation2 + $0x8] sm:$0xf]  ;;  %v13079_v7 = vld [vmem:[#allocation6 + $0x190] sm:$0xff] }
 0x379   :  { %5619 = vst [vmem:[#allocation2 + $0x84] sm:$0x1] %v5618_v10  ;;  %v5326_v54 = vpop.f32.mrf.mxu2  ;;  %v13011_v6 = vld [vmem:[#allocation2 + $0x74] sm:$0xf0]  ;;  %v5839_v1 = vor.u32 %v5838_v61, %v5835_v51  ;;  %v5990_v16 = vrot.slane %v15729_v25, 5  ;;  %v5856_v21 = vshll.u32 %v15729_v25, 16  ;;  %7950 = vmatpush.bf16.msrb.mxu1 %v13080_v60 }
 0x37a   :  { %v5901_v18 = vld [vmem:[#allocation2 + $0x78] sm:$0xe]  ;;  %5616 = vst [vmem:[#allocation2 + $0x80] sm:$0xf] %v5615_v48  ;;  %v5490_v40 = vshrl.u32 %v5375_v35, 16  ;;  %7734 = vmatmul.bf16.gmra.mxu0 %v6805_v42  ;;  %v5327_v32 = vadd.f32 %v15673_v4, %v5326_v54  ;;  %v11992_v50 = vor.u32 %v13011_v6, %v11991_v9  ;;  %v5493_v53 = vshll.u32 %v5375_v35, 16  ;;  %7999 = vmatpush.bf16.msrb.mxu2 %v13088_v26 }
 0x37b   :  { %v11930_v44 = vrot.slane %v5901_v18, 9  ;;  %v5645_v29 = vld [vmem:[#allocation2 + $0x78] sm:$0xf]  ;;  %v5840_v47 = vrot.slane %v5839_v1, 4  ;;  %v6033_v51 = vshrl.u32 %v15737_v45, 16  ;;  %v13071_v35 = vld [vmem:[#allocation6 + $0x150] sm:$0xff] }
 0x37c   :  { %v5492_v46 = vrot.slane %v5490_v40, 7  ;;  %v5344_v33 = vadd.f32 %v5327_v32, %v5210_v49  ;;  %7690 = vmatmul.bf16.gmra.mxu3 %v11992_v50  ;;  %v5847_v41 = vshrl.u32 %v5645_v29, 16  ;;  %v5850_v36 = vshll.u32 %v5645_v29, 16  ;;  %v13072_v4 = vld [vmem:[#allocation6 + $0x158] sm:$0xff]  ;;  %v13078_v6 = vld [vmem:[#allocation6 + $0x188] sm:$0xff] }
 0x37d   :  { %v5991_v28 = vsel %vm14599_vm12, %v11930_v44, %v5990_v16  ;;  %v13100_v61 = vld [vmem:[#allocation6 + $0x238] sm:$0xff]  ;;  %7901 = vmatpush.bf16.msra.mxu0 %v13072_v4  ;;  %v5845_v1 = vsel %vm13661_vm2, %v5840_v47, %v5844_v37  ;;  %v5858_v32 = vrot.slane %v5856_v21, 5  ;;  %7951 = vmatpush.bf16.msrb.mxu1 %v13079_v7  ;;  %v13070_v29 = vld [vmem:[#allocation6 + $0x148] sm:$0xff]  ;;  %v5626_v26 = vld [vmem:[#allocation2 + $0x90] sm:$0xf]  ;;  %v6036_v4 = vshll.u32 %v15737_v45, 16 }
 0x37e   :  { %v5495_v0 = vor.u32 %v5493_v53, %v5492_v46  ;;  %v5496_v24 = vrot.slane %v5492_v46, 4  ;;  %v15739_v8 = vmax.f32 %v5344_v33, 0.0  ;;  %v6829_v23 = vunpack.c.l.b16 %v5991_v28  ;;  %v12023_v10 = vld [vmem:[#allocation2 + $0x78] sm:$0xf]  ;;  %8044 = vmatpush.bf16.msrb.mxu3 %v13100_v61  ;;  %8000 = vmatpush.bf16.msrb.mxu2 %v13087_v3  ;;  %v5629_v46 = vld [vmem:[#allocation2 + $0x94] sm:$0x1] }
 0x37f   :  { %v5849_v63 = vrot.slane %v5847_v41, 4  ;;  %v5852_v57 = vrot.slane %v5850_v36, 5  ;;  %v6035_v36 = vrot.slane %v6033_v51, 4  ;;  %v6001_v37 = vld [vmem:[#allocation2 + $0x10] sm:$0xf]  ;;  %v13077_v7 = vld [vmem:[#allocation6 + $0x180] sm:$0xff] }
 0x380   :  { %16914 = vst [vmem:[#allocation28_spill] sm:$0xff] %v15739_v8  ;;  %v5621_v39 = vsel %vm14583_vm9, %v5495_v0, %v5620_v55  ;;  %v5624_v38 = vsel %vm14511_vm5, %v5496_v24, %v5623_v20  ;;  %v5376_v34 = vpack.c.bf16 %v15739_v8, %v15739_v8  ;;  %v6838_v48 = vpack.c.b16 %v6829_v23, %v6828_v13  ;;  %v15749_v25 = vld [vmem:[#allocation2 + $0x84] sm:$0x1]  ;;  %v15757_v0 = vld [vmem:[#allocation2 + $0xc] sm:$0x1] }
 0x381   :  { %5625 = vst [vmem:[#allocation2 + $0x8c] sm:$0x1] %v5624_v38  ;;  %v13019_v42 = vld [vmem:[#allocation2 + $0x7c] sm:$0xf0]  ;;  %v5853_v9 = vor.u32 %v5852_v57, %v5849_v63  ;;  %7902 = vmatpush.bf16.msra.mxu0 %v13071_v35  ;;  %v5994_v41 = vrot.slane %v15749_v25, 5  ;;  %v6796_v13 = vunpack.c.l.b16 %v5845_v1  ;;  %7952 = vmatpush.bf16.msrb.mxu1 %v13078_v6  ;;  %v6038_v23 = vrot.slane %v6036_v4, 5 }
 0x382   :  { %5622 = vst [vmem:[#allocation2 + $0x88] sm:$0xf] %v5621_v39  ;;  %v5498_v14 = vshrl.u32 %v5376_v34, 16  ;;  %7788 = vmatmul.bf16.gmra.mxu1 %v6838_v48  ;;  %v12024_v49 = vor.u32 %v13019_v42, %v12023_v10  ;;  %v5902_v54 = vld [vmem:[#allocation2 + $0x80] sm:$0xe]  ;;  %v5501_v18 = vshll.u32 %v5376_v34, 16  ;;  %8001 = vmatpush.bf16.msrb.mxu2 %v13086_v58 }
 0x383   :  { %v5854_v40 = vrot.slane %v5853_v9, 4  ;;  %v5646_v50 = vld [vmem:[#allocation2 + $0x80] sm:$0xf]  ;;  %v11931_v53 = vrot.slane %v5902_v54, 9  ;;  %v5870_v61 = vshll.u32 %v15749_v25, 16  ;;  %v6039_v35 = vor.u32 %v6038_v23, %v6035_v36 }
 0x384   :  { %v5500_v60 = vrot.slane %v5498_v14, 7  ;;  %7837 = vmatmul.bf16.gmra.mxu2 %v12024_v49  ;;  %v5861_v44 = vshrl.u32 %v5646_v50, 16  ;;  %v5864_v16 = vshll.u32 %v5646_v50, 16  ;;  %v13085_v63 = vld [vmem:[#allocation6 + $0x1c0] sm:$0xff]  ;;  %v6047_v49 = vshrl.u32 %v6001_v37, 16 }
 0x385   :  { %v5859_v33 = vsel %vm13661_vm2, %v5854_v40, %v5858_v32  ;;  %v11995_v3 = vld [vmem:[#allocation2 + $0x80] sm:$0xf]  ;;  %7903 = vmatpush.bf16.msra.mxu0 %v13070_v29  ;;  %v5995_v48 = vsel %vm14599_vm12, %v11931_v53, %v5994_v41  ;;  %v6042_v25 = vshll.u32 %v15757_v0, 16  ;;  %7953 = vmatpush.bf16.msrb.mxu1 %v13077_v7  ;;  %v5872_v1 = vrot.slane %v5870_v61, 5  ;;  %v6368_v50 = vld [vmem:[#allocation2 + $0x10] sm:$0xf] }
 0x386   :  { %v5503_v55 = vor.u32 %v5501_v18, %v5500_v60  ;;  %v5504_v28 = vrot.slane %v5500_v60, 4  ;;  %v6797_v47 = vunpack.c.l.b16 %v5859_v33  ;;  %v5863_v24 = vrot.slane %v5861_v44, 4  ;;  %v13069_v39 = vld [vmem:[#allocation6 + $0x140] sm:$0xff]  ;;  %8002 = vmatpush.bf16.msrb.mxu2 %v13085_v63  ;;  %v15769_v44 = vld [vmem:[#allocation2 + $0x14] sm:$0x1] }
 0x387   :  { %v5866_v20 = vrot.slane %v5864_v16, 5  ;;  %v6830_v58 = vunpack.c.l.b16 %v5995_v48  ;;  %v6040_v16 = vrot.slane %v6039_v35, 4  ;;  %v6050_v33 = vshll.u32 %v6001_v37, 16  ;;  %v6369_v41 = vld [vmem:[#allocation2 + $0x18] sm:$0xf]  ;;  %v13099_v63 = vld [vmem:[#allocation6 + $0x230] sm:$0xff] }
 0x388   :  { %v5627_v57 = vsel %vm14583_vm9, %v5503_v55, %v5626_v26  ;;  %v5630_v45 = vsel %vm14511_vm5, %v5504_v28, %v5629_v46  ;;  %v6806_v21 = vpack.c.b16 %v6797_v47, %v6796_v13  ;;  %v5663_v51 = vld [vmem:[#allocation2 + $0x8c] sm:$0x1]  ;;  %v6049_v46 = vrot.slane %v6047_v49, 4  ;;  %v6385_v23 = vld [vmem:[#allocation2 + $0x1c] sm:$0x1]  ;;  %8045 = vmatpush.bf16.msrb.mxu3 %v13099_v63 }
 0x389   :  { %5631 = vst [vmem:[#allocation2 + $0x94] sm:$0x1] %v5630_v45  ;;  %v13012_v38 = vld [vmem:[#allocation2 + $0x84] sm:$0xf0]  ;;  %v5867_v10 = vor.u32 %v5866_v20, %v5863_v24  ;;  %v5998_v14 = vrot.slane %v5663_v51, 5  ;;  %7904 = vmatpush.bf16.msra.mxu0 %v13069_v39  ;;  %v5884_v53 = vshll.u32 %v5663_v51, 16 }
 0x38a   :  { %v5903_v34 = vld [vmem:[#allocation2 + $0x88] sm:$0xe]  ;;  %5628 = vst [vmem:[#allocation2 + $0x90] sm:$0xf] %v5627_v57  ;;  %7739 = vmatmul.bf16.gmra.mxu0 %v6806_v21  ;;  %v11996_v42 = vor.u32 %v13012_v38, %v11995_v3  ;;  %v6044_v28 = vrot.slane %v6042_v25, 5  ;;  %v6401_v13 = vshrl.u32 %v6368_v50, 16 }
 0x38b   :  { %v11932_v9 = vrot.slane %v5903_v34, 9  ;;  %v5647_v54 = vld [vmem:[#allocation2 + $0x88] sm:$0xf]  ;;  %v5868_v6 = vrot.slane %v5867_v10, 4  ;;  %v6052_v24 = vrot.slane %v6050_v33, 5  ;;  %v6056_v20 = vshll.u32 %v15769_v44, 16 }
 0x38c   :  { %7695 = vmatmul.bf16.gmra.mxu3 %v11996_v42  ;;  %v5875_v40 = vshrl.u32 %v5647_v54, 16  ;;  %v5878_v32 = vshll.u32 %v5647_v54, 16  ;;  %v12027_v4 = vld [vmem:[#allocation2 + $0x88] sm:$0xf]  ;;  %v6404_v7 = vshll.u32 %v6368_v50, 16  ;;  %v5886_v45 = vrot.slane %v5884_v53, 5 }
 0x38d   :  { %v5999_v18 = vsel %vm14599_vm12, %v11932_v9, %v5998_v14  ;;  %v5873_v55 = vsel %vm13661_vm2, %v5868_v6, %v5872_v1  ;;  %v6403_v21 = vrot.slane %v6401_v13, 4  ;;  %v6415_v3 = vshrl.u32 %v6369_v41, 16  ;;  %v6384_v38 = vld [vmem:[#allocation2 + $0x14] sm:$0x1]  ;;  %v6256_v9 = vld [vmem:[#allocation2 + $0x8] sm:$0xe] }
 0x38e   :  { %v6831_v60 = vunpack.c.l.b16 %v5999_v18  ;;  %v5877_v29 = vrot.slane %v5875_v40, 4  ;;  %v5880_v26 = vrot.slane %v5878_v32, 5  ;;  %v6418_v37 = vshll.u32 %v6369_v41, 16  ;;  %v6257_v32 = vld [vmem:[#allocation2 + $0x10] sm:$0xe] }
 0x38f   :  { %v6053_v39 = vor.u32 %v6052_v24, %v6049_v46  ;;  %v6406_v34 = vrot.slane %v6404_v7, 5  ;;  %v6045_v48 = vsel %vm13661_vm2, %v6040_v16, %v6044_v28  ;;  %v6417_v10 = vrot.slane %v6415_v3, 4  ;;  %v6002_v50 = vld [vmem:[#allocation2 + $0x18] sm:$0xf]  ;;  %v6003_v28 = vld [vmem:[#allocation2 + $0x20] sm:$0xf] }
 0x390   :  { %v6839_v36 = vpack.c.b16 %v6831_v60, %v6830_v58  ;;  %v5881_v47 = vor.u32 %v5880_v26, %v5877_v29  ;;  %v6420_v35 = vrot.slane %v6418_v37, 5  ;;  %v6424_v42 = vshll.u32 %v6385_v23, 16  ;;  %v13021_v46 = vld [vmem:[#allocation2 + $0x14] sm:$0xf0]  ;;  %v15784_v7 = vld [vmem:[#allocation2 + $0x24] sm:$0x1] }
 0x391   :  { %v13020_v57 = vld [vmem:[#allocation2 + $0x8c] sm:$0xf0]  ;;  %v6054_v49 = vrot.slane %v6053_v39, 4  ;;  %v6058_v54 = vrot.slane %v6056_v20, 5  ;;  %v6407_v6 = vor.u32 %v6406_v34, %v6403_v21  ;;  %v6798_v25 = vunpack.c.l.b16 %v5873_v55  ;;  %v15788_v3 = vld [vmem:[#allocation2 + $0x1c] sm:$0x1] }
 0x392   :  { %7793 = vmatmul.bf16.gmra.mxu1 %v6839_v36  ;;  %v12028_v51 = vor.u32 %v13020_v57, %v12027_v4  ;;  %v5882_v61 = vrot.slane %v5881_v47, 4  ;;  %v6410_v1 = vshll.u32 %v6384_v38, 16  ;;  %v6421_v40 = vor.u32 %v6420_v35, %v6417_v10  ;;  %v12031_v47 = vld [vmem:[#allocation2 + $0x10] sm:$0xf]  ;;  %v6269_v2 = vld [vmem:[#allocation2 + $0x80] sm:$0xe] }
 0x393   :  { %v6059_v58 = vsel %vm13661_vm2, %v6054_v49, %v6058_v54  ;;  %v6896_v60 = vunpack.c.l.b16 %v6045_v48  ;;  %v6426_v53 = vrot.slane %v6424_v42, 5  ;;  %v11933_v16 = vrot.slane %v6256_v9, 9  ;;  %v6015_v43 = vld [vmem:[#allocation2 + $0x90] sm:$0xf] }
 0x394   :  { %7842 = vmatmul.bf16.gmra.mxu2 %v12028_v51  ;;  %v5887_v14 = vsel %vm13661_vm2, %v5882_v61, %v5886_v45  ;;  %v6897_v26 = vunpack.c.l.b16 %v6059_v58  ;;  %v6422_v33 = vrot.slane %v6421_v40, 4  ;;  %v6306_v41 = vrot.slane %v15757_v0, 5  ;;  %v6370_v45 = vld [vmem:[#allocation2 + $0x20] sm:$0xf]  ;;  %v6371_v51 = vld [vmem:[#allocation2 + $0x28] sm:$0xf] }
 0x395   :  { %v6799_v18 = vunpack.c.l.b16 %v5887_v14  ;;  %v6408_v36 = vrot.slane %v6407_v6, 4  ;;  %v11934_v4 = vrot.slane %v6257_v32, 9  ;;  %v6310_v55 = vrot.slane %v15769_v44, 5  ;;  %v6386_v40 = vld [vmem:[#allocation2 + $0x24] sm:$0x1] }
 0x396   :  { %v6061_v13 = vshrl.u32 %v6002_v50, 16  ;;  %v6412_v24 = vrot.slane %v6410_v1, 5  ;;  %v6427_v20 = vsel %vm13661_vm2, %v6422_v33, %v6426_v53  ;;  %v6912_v23 = vpack.c.b16 %v6897_v26, %v6896_v60  ;;  %v6387_v53 = vld [vmem:[#allocation2 + $0x2c] sm:$0x1]  ;;  %v15801_v26 = vld [vmem:[%s16844_s11] ss:$0 sm:$0xff] }
 0x397   :  { %v6807_v29 = vpack.c.b16 %v6799_v18, %v6798_v25  ;;  %v6064_v57 = vshll.u32 %v6002_v50, 16  ;;  %v12032_v21 = vor.u32 %v13021_v46, %v12031_v47  ;;  %v6307_v0 = vsel %vm14599_vm12, %v11933_v16, %v6306_v41  ;;  %v6004_v47 = vld [vmem:[#allocation2 + $0x28] sm:$0xf]  ;;  %v6382_v15 = vld [vmem:[#allocation2 + $0x90] sm:$0xf] }
 0x398   :  { %v6063_v63 = vrot.slane %v6061_v13, 4  ;;  %v6075_v44 = vshrl.u32 %v6003_v28, 16  ;;  %v6078_v37 = vshll.u32 %v6003_v28, 16  ;;  %v6413_v61 = vsel %vm13661_vm2, %v6408_v36, %v6412_v24  ;;  %v6258_v13 = vld [vmem:[#allocation2 + $0x18] sm:$0xe] }
 0x399   :  { %v7009_v39 = vunpack.c.l.b16 %v6427_v20  ;;  %v6311_v38 = vsel %vm14599_vm12, %v11934_v4, %v6310_v55  ;;  %v6066_v34 = vrot.slane %v6064_v57, 5  ;;  %v6084_v35 = vshll.u32 %v15784_v7, 16  ;;  %v13098_v57 = vld [vmem:[#allocation6 + $0x228] sm:$0xff] }
 0x39a   :  { %7744 = vmatmul.bf16.gmra.mxu0 %v6807_v29  ;;  %v6077_v48 = vrot.slane %v6075_v44, 4  ;;  %v6080_v10 = vrot.slane %v6078_v37, 5  ;;  %v6429_v42 = vshrl.u32 %v6370_v45, 16  ;;  %v6070_v54 = vshll.u32 %v15788_v3, 16  ;;  %v6259_v37 = vld [vmem:[#allocation2 + $0x20] sm:$0xe]  ;;  %8046 = vmatpush.bf16.msrb.mxu3 %v13098_v57 }
 0x39b   :  { %v6067_v49 = vor.u32 %v6066_v34, %v6063_v63  ;;  %v6432_v6 = vshll.u32 %v6370_v45, 16  ;;  %v6443_v25 = vshrl.u32 %v6371_v51, 16  ;;  %v7008_v18 = vunpack.c.l.b16 %v6413_v61 }
 0x39c   :  { %7856 = vmatmul.bf16.vlgmr.msra.gmra.mxu3 %v6912_v23  ;;  %v6081_v1 = vor.u32 %v6080_v10, %v6077_v48  ;;  %v6431_v32 = vrot.slane %v6429_v42, 4  ;;  %v6446_v50 = vshll.u32 %v6371_v51, 16  ;;  %v6929_v58 = vunpack.c.l.b16 %v6311_v38  ;;  %v15811_v10 = vld [vmem:[#allocation2 + $0x24] sm:$0xf0] }
 0x39d   :  { %v6068_v60 = vrot.slane %v6067_v49, 4  ;;  %v6434_v16 = vrot.slane %v6432_v6, 5  ;;  %v6445_v29 = vrot.slane %v6443_v25, 4  ;;  %v6086_v33 = vrot.slane %v6084_v35, 5  ;;  %v6005_v49 = vld [vmem:[#allocation2 + $0x30] sm:$0xf] }
 0x39e   :  { %v15795_v9 = vpop.f32.mrf.mxu1  ;;  %v7661_v14 = vpop.f32.mrf.mxu3  ;;  %v6082_v46 = vrot.slane %v6081_v1, 4  ;;  %v6448_v41 = vrot.slane %v6446_v50, 5  ;;  %v7024_v36 = vpack.c.b16 %v7009_v39, %v7008_v18  ;;  %v6928_v4 = vunpack.c.l.b16 %v6307_v0  ;;  %v12035_v18 = vld [vmem:[#allocation2 + $0x20] sm:$0xf] }
 0x39f   :  { %v6072_v55 = vrot.slane %v6070_v54, 5  ;;  %v6435_v28 = vor.u32 %v6434_v16, %v6431_v32  ;;  %v6438_v20 = vshll.u32 %v6386_v40, 16  ;;  %v6452_v63 = vshll.u32 %v6387_v53, 16 }
 0x3a0   :  { %v6087_v24 = vsel %vm13661_vm2, %v6082_v46, %v6086_v33  ;;  %v6449_v23 = vor.u32 %v6448_v41, %v6445_v29  ;;  %v6944_v45 = vpack.c.b16 %v6929_v58, %v6928_v4  ;;  %v6314_v0 = vrot.slane %v15788_v3, 5  ;;  %v15817_v29 = vld [vmem:[#allocation2 + $0x34] sm:$0x1] }
 0x3a1   :  { %v6073_v44 = vsel %vm13661_vm2, %v6068_v60, %v6072_v55  ;;  %v6089_v51 = vshrl.u32 %v6004_v47, 16  ;;  %v6092_v61 = vshll.u32 %v6004_v47, 16  ;;  %v7662_v39 = vadd.f32 %v15801_v26, %v7661_v14  ;;  %v6372_v60 = vld [vmem:[#allocation2 + $0x30] sm:$0xf]  ;;  %v15824_v55 = vld [vmem:[#allocation2 + $0x2c] sm:$0x1] }
 0x3a2   :  { %7954 = vmatmul.bf16.vlgmr.msrb.gmra.mxu1 %v12032_v21  ;;  %v11935_v21 = vrot.slane %v6258_v13, 9  ;;  %v6899_v48 = vunpack.c.l.b16 %v6087_v24  ;;  %v6436_v35 = vrot.slane %v6435_v28, 4  ;;  %v6450_v42 = vrot.slane %v6449_v23, 4  ;;  %v6373_v28 = vld [vmem:[#allocation2 + $0x38] sm:$0xf] }
 0x3a3   :  { %v6898_v25 = vunpack.c.l.b16 %v6073_v44  ;;  %v6440_v1 = vrot.slane %v6438_v20, 5  ;;  %v6454_v3 = vrot.slane %v6452_v63, 5  ;;  %v11936_v40 = vrot.slane %v6259_v37, 9 }
 0x3a4   :  { %8003 = vmatmul.bf16.vlgmr.msrb.gmra.mxu2 %v7024_v36  ;;  %v6318_v50 = vrot.slane %v15784_v7, 5  ;;  %v6091_v14 = vrot.slane %v6089_v51, 4  ;;  %v6094_v58 = vrot.slane %v6092_v61, 5  ;;  %v12036_v53 = vor.u32 %v15811_v10, %v12035_v18 }
 0x3a5   :  { %v6315_v16 = vsel %vm14599_vm12, %v11935_v21, %v6314_v0  ;;  %v6103_v46 = vshrl.u32 %v6005_v49, 16  ;;  %v6106_v33 = vshll.u32 %v6005_v49, 16  ;;  %v6913_v36 = vpack.c.b16 %v6899_v48, %v6898_v25 }
 0x3a6   :  { %v15809_v38 = vpop.f32.mrf.mxu1  ;;  %v7663_v34 = vpop.f32.mrf.mxu3  ;;  %v6441_v4 = vsel %vm13661_vm2, %v6436_v35, %v6440_v1  ;;  %v6455_v7 = vsel %vm13661_vm2, %v6450_v42, %v6454_v3  ;;  %v6095_v13 = vor.u32 %v6094_v58, %v6091_v14  ;;  %v6457_v20 = vshrl.u32 %v6372_v60, 16  ;;  %v6389_v58 = vld [vmem:[#allocation2 + $0x3c] sm:$0x1] }
 0x3a7   :  { %v7710_v54 = vpop.f32.mrf.mxu0  ;;  %v7808_v6 = vpop.f32.mrf.mxu2  ;;  %v6105_v47 = vrot.slane %v6103_v46, 4  ;;  %v6108_v24 = vrot.slane %v6106_v33, 5  ;;  %v6112_v63 = vshll.u32 %v15817_v29, 16  ;;  %v6460_v57 = vshll.u32 %v6372_v60, 16  ;;  %v6260_v46 = vld [vmem:[#allocation2 + $0x28] sm:$0xe] }
 0x3a8   :  { %v7711_v32 = vadd.f32 %v7710_v54, %v7662_v39  ;;  %v6459_v37 = vrot.slane %v6457_v20, 4  ;;  %v6471_v21 = vshrl.u32 %v6373_v28, 16  ;;  %v7664_v0 = vadd.f32 %v15801_v26, %v7663_v34 }
 0x3a9   :  { %v6109_v44 = vor.u32 %v6108_v24, %v6105_v47  ;;  %v7011_v51 = vunpack.c.l.b16 %v6455_v7  ;;  %v6462_v61 = vrot.slane %v6460_v57, 5  ;;  %v6474_v39 = vshll.u32 %v6373_v28, 16  ;;  %v6261_v28 = vld [vmem:[#allocation2 + $0x30] sm:$0xe] }
 0x3aa   :  { %v7760_v41 = vadd.f32 %v15795_v9, %v7711_v32  ;;  %7905 = vmatmul.bf16.vlgmr.msra.gmra.mxu0 %v6944_v45  ;;  %v6319_v9 = vsel %vm14599_vm12, %v11936_v40, %v6318_v50  ;;  %v6098_v45 = vshll.u32 %v15824_v55, 16  ;;  %v6096_v42 = vrot.slane %v6095_v13, 4  ;;  %v6388_v40 = vld [vmem:[#allocation2 + $0x34] sm:$0x1]  ;;  %v6006_v50 = vld [vmem:[#allocation2 + $0x38] sm:$0xf] }
 0x3ab   :  { %v6931_v35 = vunpack.c.l.b16 %v6319_v9  ;;  %v6110_v49 = vrot.slane %v6109_v44, 4  ;;  %v6473_v54 = vrot.slane %v6471_v21, 4  ;;  %v7010_v1 = vunpack.c.l.b16 %v6441_v4  ;;  %v13097_v13 = vld [vmem:[#allocation6 + $0x220] sm:$0xff] }
 0x3ac   :  { %v15826_v23 = vadd.f32 %v7808_v6, %v7760_v41  ;;  %7861 = vmatmul.bf16.gmra.mxu3 %v6913_v36  ;;  %v6114_v3 = vrot.slane %v6112_v63, 5  ;;  %v6476_v32 = vrot.slane %v6474_v39, 5  ;;  %v6930_v14 = vunpack.c.l.b16 %v6315_v16 }
 0x3ad   :  { %v6100_v34 = vrot.slane %v6098_v45, 5  ;;  %v6463_v60 = vor.u32 %v6462_v61, %v6459_v37  ;;  %v7025_v41 = vpack.c.b16 %v7011_v51, %v7010_v1  ;;  %v6466_v24 = vshll.u32 %v6388_v40, 16  ;;  %8047 = vmatpush.bf16.msrb.mxu3 %v13097_v13 }
 0x3ae   :  { %v6115_v36 = vsel %vm13661_vm2, %v6110_v49, %v6114_v3  ;;  %v6477_v7 = vor.u32 %v6476_v32, %v6473_v54  ;;  %v6945_v4 = vpack.c.b16 %v6931_v35, %v6930_v14  ;;  %v6117_v16 = vshrl.u32 %v6006_v50, 16  ;;  %v15849_v3 = vld [vmem:[#allocation2 + $0x3c] sm:$0x1]  ;;  %v15853_v14 = vld [vmem:[#allocation2 + $0x44] sm:$0x1] }
 0x3af   :  { %v7712_v48 = vpop.f32.mrf.mxu0  ;;  %v15833_v10 = vpop.f32.mrf.mxu1  ;;  %v6101_v47 = vsel %vm13661_vm2, %v6096_v42, %v6100_v34  ;;  %v6480_v9 = vshll.u32 %v6389_v58, 16  ;;  %v11937_v63 = vrot.slane %v6260_v46, 9  ;;  %v6901_v45 = vunpack.c.l.b16 %v6115_v36 }
 0x3b0   :  { %v7713_v6 = vadd.f32 %v7712_v48, %v7664_v0  ;;  %v7666_v25 = vpop.f32.mrf.mxu3  ;;  %v7810_v18 = vpop.f32.mrf.mxu2  ;;  %v6464_v44 = vrot.slane %v6463_v60, 4  ;;  %v11938_v37 = vrot.slane %v6261_v28, 9  ;;  %v6478_v21 = vrot.slane %v6477_v7, 4  ;;  %v6375_v60 = vld [vmem:[#allocation2 + $0x48] sm:$0xf] }
 0x3b1   :  { %v7667_v57 = vadd.f32 %v15801_v26, %v7666_v25  ;;  %v6326_v0 = vrot.slane %v15817_v29, 5  ;;  %v6119_v51 = vrot.slane %v6117_v16, 4  ;;  %v6120_v61 = vshll.u32 %v6006_v50, 16  ;;  %v6374_v29 = vld [vmem:[#allocation2 + $0x40] sm:$0xf] }
 0x3b2   :  { %v7762_v33 = vadd.f32 %v15809_v38, %v7713_v6  ;;  %7959 = vmatmul.bf16.gmra.mxu1 %v12036_v53  ;;  %v6322_v38 = vrot.slane %v15824_v55, 5  ;;  %v6007_v53 = vld [vmem:[#allocation2 + $0x40] sm:$0xf]  ;;  %v6900_v35 = vunpack.c.l.b16 %v6101_v47  ;;  %v6468_v42 = vrot.slane %v6466_v24, 5  ;;  %v13023_v16 = vld [vmem:[#allocation2 + $0x34] sm:$0xf0] }
 0x3b3   :  { %v6131_v49 = vshrl.u32 %v6007_v53, 16  ;;  %v6134_v54 = vshll.u32 %v6007_v53, 16  ;;  %v6482_v1 = vrot.slane %v6480_v9, 5  ;;  %v6122_v40 = vrot.slane %v6120_v61, 5  ;;  %v15864_v53 = vld [vmem:[#allocation2 + $0x44] sm:$0x1] }
 0x3b4   :  { %v15840_v20 = vadd.f32 %v7810_v18, %v7762_v33  ;;  %8008 = vmatmul.bf16.gmra.mxu2 %v7025_v41  ;;  %v6323_v25 = vsel %vm14599_vm12, %v11937_v63, %v6322_v38  ;;  %v6914_v32 = vpack.c.b16 %v6901_v45, %v6900_v35  ;;  %v6469_v50 = vsel %vm13661_vm2, %v6464_v44, %v6468_v42 }
 0x3b5   :  { %v6133_v34 = vrot.slane %v6131_v49, 4  ;;  %v6136_v58 = vrot.slane %v6134_v54, 5  ;;  %v6483_v33 = vsel %vm13661_vm2, %v6478_v21, %v6482_v1  ;;  %v6327_v41 = vsel %vm14599_vm12, %v11938_v37, %v6326_v0  ;;  %v12039_v37 = vld [vmem:[#allocation2 + $0x30] sm:$0xf] }
 0x3b6   :  { %v6123_v36 = vor.u32 %v6122_v40, %v6119_v51  ;;  %v6126_v7 = vshll.u32 %v15849_v3, 16  ;;  %v6485_v13 = vshrl.u32 %v6374_v29, 16  ;;  %v6488_v47 = vshll.u32 %v6374_v29, 16 }
 0x3b7   :  { %v7715_v39 = vpop.f32.mrf.mxu0  ;;  %v15845_v48 = vpop.f32.mrf.mxu1  ;;  %v6137_v28 = vor.u32 %v6136_v58, %v6133_v34  ;;  %v6140_v9 = vshll.u32 %v15853_v14, 16  ;;  %v7013_v63 = vunpack.c.l.b16 %v6483_v33  ;;  %v12040_v35 = vor.u32 %v13023_v16, %v12039_v37 }
 0x3b8   :  { %v7716_v55 = vadd.f32 %v7715_v39, %v7667_v57  ;;  %v7668_v6 = vpop.f32.mrf.mxu3  ;;  %v7813_v18 = vpop.f32.mrf.mxu2  ;;  %v6124_v38 = vrot.slane %v6123_v36, 4  ;;  %v6487_v57 = vrot.slane %v6485_v13, 4  ;;  %v6490_v45 = vrot.slane %v6488_v47, 5  ;;  %v6009_v13 = vld [vmem:[#allocation2 + $0x60] sm:$0xf] }
 0x3b9   :  { %v7669_v44 = vadd.f32 %v15801_v26, %v7668_v6  ;;  %v6138_v21 = vrot.slane %v6137_v28, 4  ;;  %v7012_v42 = vunpack.c.l.b16 %v6469_v50  ;;  %v6933_v49 = vunpack.c.l.b16 %v6327_v41  ;;  %v13096_v6 = vld [vmem:[#allocation6 + $0x218] sm:$0xff] }
 0x3ba   :  { %v7765_v46 = vadd.f32 %v15833_v10, %v7716_v55  ;;  %7910 = vmatmul.bf16.gmra.mxu0 %v6945_v4  ;;  %v6499_v10 = vshrl.u32 %v6375_v60, 16  ;;  %v6502_v4 = vshll.u32 %v6375_v60, 16  ;;  %v6128_v54 = vrot.slane %v6126_v7, 5  ;;  %v6008_v50 = vld [vmem:[#allocation2 + $0x58] sm:$0xf]  ;;  %8048 = vmatpush.bf16.msrb.mxu3 %v13096_v6 }
 0x3bb   :  { %v6932_v40 = vunpack.c.l.b16 %v6323_v25  ;;  %v6142_v29 = vrot.slane %v6140_v9, 5  ;;  %v6494_v34 = vshll.u32 %v15864_v53, 16  ;;  %v7026_v58 = vpack.c.b16 %v7013_v63, %v7012_v42  ;;  %v6262_v28 = vld [vmem:[#allocation2 + $0x38] sm:$0xe]  ;;  %v6263_v9 = vld [vmem:[#allocation2 + $0x40] sm:$0xe] }
 0x3bc   :  { %v15861_v24 = vadd.f32 %v7813_v18, %v7765_v46  ;;  %7866 = vmatmul.bf16.gmra.mxu3 %v6914_v32  ;;  %v6501_v0 = vrot.slane %v6499_v10, 4  ;;  %v6504_v51 = vrot.slane %v6502_v4, 5  ;;  %v15867_v32 = vld [vmem:[#allocation2 + $0x4c] sm:$0x1]  ;;  %v6129_v60 = vsel %vm13661_vm2, %v6124_v38, %v6128_v54  ;;  %v6377_v6 = vld [vmem:[#allocation2 + $0x68] sm:$0xf] }
 0x3bd   :  { %v6491_v46 = vor.u32 %v6490_v45, %v6487_v57  ;;  %v6508_v33 = vshll.u32 %v15867_v32, 16  ;;  %v6143_v25 = vsel %vm13661_vm2, %v6138_v21, %v6142_v29  ;;  %v6946_v7 = vpack.c.b16 %v6933_v49, %v6932_v40 }
 0x3be   :  { %v6505_v36 = vor.u32 %v6504_v51, %v6501_v0  ;;  %v6496_v16 = vrot.slane %v6494_v34, 5  ;;  %v6145_v10 = vshrl.u32 %v6008_v50, 16  ;;  %v6148_v4 = vshll.u32 %v6008_v50, 16 }
 0x3bf   :  { %v7717_v61 = vpop.f32.mrf.mxu0  ;;  %v7769_v39 = vpop.f32.mrf.mxu1  ;;  %v6902_v63 = vunpack.c.l.b16 %v6129_v60  ;;  %v6903_v38 = vunpack.c.l.b16 %v6143_v25  ;;  %v6492_v57 = vrot.slane %v6491_v46, 4  ;;  %v6159_v37 = vshrl.u32 %v6009_v13, 16 }
 0x3c0   :  { %v7718_v55 = vadd.f32 %v7717_v61, %v7669_v44  ;;  %v7671_v18 = vpop.f32.mrf.mxu3  ;;  %v7815_v1 = vpop.f32.mrf.mxu2  ;;  %v6506_v44 = vrot.slane %v6505_v36, 4  ;;  %v6162_v21 = vshll.u32 %v6009_v13, 16  ;;  %v11939_v61 = vrot.slane %v6262_v28, 9 }
 0x3c1   :  { %v7672_v45 = vadd.f32 %v15801_v26, %v7671_v18  ;;  %v11940_v42 = vrot.slane %v6263_v9, 9  ;;  %v6334_v49 = vrot.slane %v15853_v14, 5  ;;  %v6147_v40 = vrot.slane %v6145_v10, 4  ;;  %v6376_v14 = vld [vmem:[#allocation2 + $0x60] sm:$0xf] }
 0x3c2   :  { %v7767_v41 = vadd.f32 %v15845_v48, %v7718_v55  ;;  %7964 = vmatmul.bf16.gmra.mxu1 %v12040_v35  ;;  %v6510_v48 = vrot.slane %v6508_v33, 5  ;;  %v6330_v35 = vrot.slane %v15849_v3, 5  ;;  %v6150_v29 = vrot.slane %v6148_v4, 5  ;;  %v15885_v33 = vld [vmem:[#allocation2 + $0x64] sm:$0x1] }
 0x3c3   :  { %v6161_v34 = vrot.slane %v6159_v37, 4  ;;  %v6497_v18 = vsel %vm13661_vm2, %v6492_v57, %v6496_v16  ;;  %v6915_v46 = vpack.c.b16 %v6903_v38, %v6902_v63  ;;  %v6527_v36 = vshrl.u32 %v6377_v6, 16  ;;  %v15896_v38 = vld [vmem:[#allocation2 + $0x64] sm:$0x1] }
 0x3c4   :  { %v15876_v47 = vadd.f32 %v7815_v1, %v7767_v41  ;;  %8013 = vmatmul.bf16.gmra.mxu2 %v7026_v58  ;;  %v6164_v58 = vrot.slane %v6162_v21, 5  ;;  %v6511_v3 = vsel %vm13661_vm2, %v6506_v44, %v6510_v48  ;;  %v6331_v50 = vsel %vm14599_vm12, %v11939_v61, %v6330_v35  ;;  %v15889_v41 = vld [vmem:[#allocation2 + $0x5c] sm:$0x1] }
 0x3c5   :  { %v6530_v28 = vshll.u32 %v6377_v6, 16  ;;  %v7014_v16 = vunpack.c.l.b16 %v6497_v18  ;;  %v6335_v9 = vsel %vm14599_vm12, %v11940_v42, %v6334_v49  ;;  %v6151_v10 = vor.u32 %v6150_v29, %v6147_v40  ;;  %v13095_v6 = vld [vmem:[#allocation6 + $0x210] sm:$0xff] }
 0x3c6   :  { %v6165_v25 = vor.u32 %v6164_v58, %v6161_v34  ;;  %v7015_v4 = vunpack.c.l.b16 %v6511_v3  ;;  %v6168_v63 = vshll.u32 %v15885_v33, 16  ;;  %v6513_v57 = vshrl.u32 %v6376_v14, 16  ;;  %8049 = vmatpush.bf16.msrb.mxu3 %v13095_v6 }
 0x3c7   :  { %v7720_v0 = vpop.f32.mrf.mxu0  ;;  %v7771_v51 = vpop.f32.mrf.mxu1  ;;  %v6516_v48 = vshll.u32 %v6376_v14, 16  ;;  %v6154_v44 = vshll.u32 %v15889_v41, 16  ;;  %v6529_v37 = vrot.slane %v6527_v36, 4  ;;  %v6532_v21 = vrot.slane %v6530_v28, 5 }
 0x3c8   :  { %v7721_v54 = vadd.f32 %v7720_v0, %v7672_v45  ;;  %v7673_v55 = vpop.f32.mrf.mxu3  ;;  %v7818_v1 = vpop.f32.mrf.mxu2  ;;  %v6935_v35 = vunpack.c.l.b16 %v6335_v9  ;;  %v6152_v29 = vrot.slane %v6151_v10, 4  ;;  %v6522_v34 = vshll.u32 %v15896_v38, 16  ;;  %v6011_v9 = vld [vmem:[#allocation2 + $0x70] sm:$0xf] }
 0x3c9   :  { %v7674_v45 = vadd.f32 %v15801_v26, %v7673_v55  ;;  %v6934_v18 = vunpack.c.l.b16 %v6331_v50  ;;  %v6170_v58 = vrot.slane %v6168_v63, 5  ;;  %v6515_v55 = vrot.slane %v6513_v57, 4 }
 0x3ca   :  { %v7770_v60 = vadd.f32 %v7769_v39, %v7721_v54  ;;  %7915 = vmatmul.bf16.gmra.mxu0 %v6946_v7  ;;  %v12043_v39 = vld [vmem:[#allocation2 + $0x40] sm:$0xf]  ;;  %v13024_v7 = vld [vmem:[#allocation2 + $0x44] sm:$0xf0]  ;;  %v6166_v54 = vrot.slane %v6165_v25, 4  ;;  %v7027_v14 = vpack.c.b16 %v7015_v4, %v7014_v16  ;;  %v6156_v36 = vrot.slane %v6154_v44, 5 }
 0x3cb   :  { %v12044_v40 = vor.u32 %v13024_v7, %v12043_v39  ;;  %v6533_v28 = vor.u32 %v6532_v21, %v6529_v37  ;;  %v6010_v25 = vld [vmem:[#allocation2 + $0x68] sm:$0xf]  ;;  %v15909_v10 = vrot.slane %v6522_v34, 5  ;;  %v6264_v16 = vld [vmem:[#allocation2 + $0x58] sm:$0xe]  ;;  %v6187_v44 = vshrl.u32 %v6011_v9, 16 }
 0x3cc   :  { %v15891_v13 = vadd.f32 %v7818_v1, %v7770_v60  ;;  %7871 = vmatmul.bf16.gmra.mxu3 %v6915_v46  ;;  %v15901_v60 = vld [vmem:[#allocation2 + $0x6c] sm:$0x1]  ;;  %v6518_v46 = vrot.slane %v6516_v48, 5  ;;  %v6171_v39 = vsel %vm13661_vm2, %v6166_v54, %v6170_v58  ;;  %v6157_v50 = vsel %vm13661_vm2, %v6152_v29, %v6156_v36  ;;  %v6265_v4 = vld [vmem:[#allocation2 + $0x60] sm:$0xe] }
 0x3cd   :  { %v6173_v57 = vshrl.u32 %v6010_v25, 16  ;;  %v6176_v48 = vshll.u32 %v6010_v25, 16  ;;  %v6905_v21 = vunpack.c.l.b16 %v6171_v39  ;;  %v11942_v29 = vrot.slane %v6265_v4, 9  ;;  %v6379_v36 = vld [vmem:[#allocation2 + $0x78] sm:$0xf] }
 0x3ce   :  { %v6519_v63 = vor.u32 %v6518_v46, %v6515_v55  ;;  %v6189_v34 = vrot.slane %v6187_v44, 4 }
 0x3cf   :  { %v7722_v0 = vpop.f32.mrf.mxu0  ;;  %v7774_v61 = vpop.f32.mrf.mxu1  ;;  %v6178_v39 = vrot.slane %v6176_v48, 5 }
 0x3d0   :  { %v7723_v1 = vadd.f32 %v7722_v0, %v7674_v45  ;;  %v7676_v42 = vpop.f32.mrf.mxu3  ;;  %v7820_v49 = vpop.f32.mrf.mxu2  ;;  %v6947_v45 = vpack.c.b16 %v6935_v35, %v6934_v18  ;;  %v6534_v0 = vrot.slane %v6533_v28, 4  ;;  %v6190_v35 = vshll.u32 %v6011_v9, 16  ;;  %v15915_v28 = vld [vmem:[#allocation2 + $0x74] sm:$0x1] }
 0x3d1   :  { %v7677_v37 = vadd.f32 %v15801_v26, %v7676_v42  ;;  %v6520_v25 = vrot.slane %v6519_v63, 4  ;;  %v6342_v42 = vrot.slane %v15885_v33, 5  ;;  %v6175_v9 = vrot.slane %v6173_v57, 4  ;;  %v13025_v57 = vld [vmem:[#allocation2 + $0x64] sm:$0xf0] }
 0x3d2   :  { %v7772_v3 = vadd.f32 %v7771_v51, %v7723_v1  ;;  %7969 = vmatmul.bf16.gmra.mxu1 %v12044_v40  ;;  %v6536_v51 = vshll.u32 %v15901_v60, 16  ;;  %v6338_v40 = vrot.slane %v15889_v41, 5  ;;  %v6192_v46 = vrot.slane %v6190_v35, 5 }
 0x3d3   :  { %v6555_v35 = vshrl.u32 %v6379_v36, 16  ;;  %v6196_v33 = vshll.u32 %v15915_v28, 16  ;;  %v6343_v48 = vsel %vm14599_vm12, %v11942_v29, %v6342_v42 }
 0x3d4   :  { %v15905_v7 = vadd.f32 %v7820_v49, %v7772_v3  ;;  %8018 = vmatmul.bf16.gmra.mxu2 %v7027_v14  ;;  %v11941_v49 = vrot.slane %v6264_v16, 9  ;;  %v6904_v3 = vunpack.c.l.b16 %v6157_v50  ;;  %v6538_v55 = vrot.slane %v6536_v51, 5  ;;  %v6378_v14 = vld [vmem:[#allocation2 + $0x70] sm:$0xf] }
 0x3d5   :  { %v6541_v44 = vshrl.u32 %v6378_v14, 16  ;;  %v6193_v50 = vor.u32 %v6192_v46, %v6189_v34  ;;  %v6544_v51 = vshll.u32 %v6378_v14, 16  ;;  %v12047_v46 = vld [vmem:[#allocation2 + $0x60] sm:$0xf]  ;;  %v6198_v29 = vrot.slane %v6196_v33, 5 }
 0x3d6   :  { %v6916_v41 = vpack.c.b16 %v6905_v21, %v6904_v3  ;;  %v6539_v4 = vsel %vm13661_vm2, %v6534_v0, %v6538_v55  ;;  %v6179_v21 = vor.u32 %v6178_v39, %v6175_v9  ;;  %v6012_v9 = vld [vmem:[#allocation2 + $0x78] sm:$0xf]  ;;  %v13094_v39 = vld [vmem:[#allocation6 + $0x208] sm:$0xff]  ;;  %v6937_v12 = vunpack.c.l.b16 %v6343_v48 }
 0x3d7   :  { %v7725_v54 = vpop.f32.mrf.mxu0  ;;  %v7776_v1 = vpop.f32.mrf.mxu1  ;;  %v7017_v34 = vunpack.c.l.b16 %v6539_v4  ;;  %v6194_v14 = vrot.slane %v6193_v50, 4  ;;  %v15935_v50 = vld [vmem:[#allocation2 + $0x7c] sm:$0x1]  ;;  %8050 = vmatpush.bf16.msrb.mxu3 %v13094_v39 }
 0x3d8   :  { %v7726_v6 = vadd.f32 %v7725_v54, %v7677_v37  ;;  %v7678_v18 = vpop.f32.mrf.mxu3  ;;  %v7823_v58 = vpop.f32.mrf.mxu2  ;;  %v15919_v37 = vld [vmem:[#allocation2 + $0x6c] sm:$0x1]  ;;  %v6558_v54 = vshll.u32 %v6379_v36, 16  ;;  %v6546_v36 = vrot.slane %v6544_v51, 5  ;;  %v6180_v42 = vrot.slane %v6179_v21, 4 }
 0x3d9   :  { %v7679_v0 = vadd.f32 %v15801_v26, %v7678_v18  ;;  %v6013_v18 = vld [vmem:[#allocation2 + $0x80] sm:$0xf]  ;;  %v6564_v48 = vshll.u32 %v15935_v50, 16 }
 0x3da   :  { %v7775_v16 = vadd.f32 %v7774_v61, %v7726_v6  ;;  %7920 = vmatmul.bf16.gmra.mxu0 %v6947_v45  ;;  %v6525_v61 = vsel %vm13661_vm2, %v6520_v25, %v15909_v10  ;;  %v6339_v45 = vsel %vm14599_vm12, %v11941_v49, %v6338_v40  ;;  %v6182_v6 = vshll.u32 %v15919_v37, 16 }
 0x3db   :  { %v6560_v10 = vrot.slane %v6558_v54, 5  ;;  %v12048_v40 = vor.u32 %v13025_v57, %v12047_v46  ;;  %v7016_v8 = vunpack.c.l.b16 %v6525_v61  ;;  %v6936_v30 = vunpack.c.l.b16 %v6339_v45 }
 0x3dc   :  { %v15921_v63 = vadd.f32 %v7823_v58, %v7775_v16  ;;  %7876 = vmatmul.bf16.gmra.mxu3 %v6916_v41  ;;  %v6543_v58 = vrot.slane %v6541_v44, 4  ;;  %v6557_v16 = vrot.slane %v6555_v35, 4  ;;  %v6184_v51 = vrot.slane %v6182_v6, 5 }
 0x3dd   :  { %v7028_v44 = vpack.c.b16 %v7017_v34, %v7016_v8  ;;  %v6199_v35 = vsel %vm13661_vm2, %v6194_v14, %v6198_v29  ;;  %v6201_v61 = vshrl.u32 %v6012_v9, 16  ;;  %v6215_v21 = vshrl.u32 %v6013_v18, 16 }
 0x3de   :  { %v6547_v54 = vor.u32 %v6546_v36, %v6543_v58  ;;  %v6561_v57 = vor.u32 %v6560_v10, %v6557_v16  ;;  %v6185_v8 = vsel %vm13661_vm2, %v6180_v42, %v6184_v51  ;;  %v6550_v45 = vshll.u32 %v15933_v56, 16 }
 0x3df   :  { %v7727_v3 = vpop.f32.mrf.mxu0  ;;  %v7779_v55 = vpop.f32.mrf.mxu1  ;;  %v6948_v6 = vpack.c.b16 %v6937_v12, %v6936_v30  ;;  %v6907_v58 = vunpack.c.l.b16 %v6199_v35  ;;  %v6217_v10 = vrot.slane %v6215_v21, 4  ;;  %v6906_v42 = vunpack.c.l.b16 %v6185_v8  ;;  %v6380_v30 = vld [vmem:[#allocation2 + $0x80] sm:$0xf]  ;;  %v13026_v35 = vld [vmem:[#allocation2 + $0x74] sm:$0xf0] }
 0x3e0   :  { %v7728_v25 = vadd.f32 %v7727_v3, %v7679_v0  ;;  %v7681_v41 = vpop.f32.mrf.mxu3  ;;  %v7825_v49 = vpop.f32.mrf.mxu2  ;;  %v6218_v0 = vshll.u32 %v6013_v18, 16  ;;  %v6267_v3 = vld [vmem:[#allocation2 + $0x70] sm:$0xe]  ;;  %v6548_v36 = vrot.slane %v6547_v54, 4  ;;  %v6562_v16 = vrot.slane %v6561_v57, 4 }
 0x3e1   :  { %v7682_v34 = vadd.f32 %v15801_v26, %v7681_v41  ;;  %v6381_v18 = vld [vmem:[#allocation2 + $0x88] sm:$0xf]  ;;  %v6566_v41 = vrot.slane %v6564_v48, 5  ;;  %v11944_v12 = vrot.slane %v6267_v3, 9  ;;  %v6917_v51 = vpack.c.b16 %v6907_v58, %v6906_v42  ;;  %v15951_v57 = vld [vmem:[#allocation2 + $0x84] sm:$0x1] }
 0x3e2   :  { %v7777_v4 = vadd.f32 %v7776_v1, %v7728_v25  ;;  %7974 = vmatmul.bf16.gmra.mxu1 %v12048_v40  ;;  %v6204_v1 = vshll.u32 %v6012_v9, 16  ;;  %v6220_v25 = vrot.slane %v6218_v0, 5  ;;  %v6203_v9 = vrot.slane %v6201_v61, 4 }
 0x3e3   :  { %v6350_v54 = vrot.slane %v15915_v28, 5  ;;  %v6583_v21 = vshrl.u32 %v6381_v18, 16  ;;  %v6567_v61 = vsel %vm13661_vm2, %v6562_v16, %v6566_v41  ;;  %v6569_v28 = vshrl.u32 %v6380_v30, 16 }
 0x3e4   :  { %v15939_v33 = vadd.f32 %v7825_v49, %v7777_v4  ;;  %8023 = vmatmul.bf16.gmra.mxu2 %v7028_v44  ;;  %v6206_v39 = vrot.slane %v6204_v1, 5  ;;  %v6552_v4 = vrot.slane %v6550_v45, 5  ;;  %v15957_v1 = vld [vmem:[#allocation2 + $0x7c] sm:$0x1]  ;;  %v6221_v8 = vor.u32 %v6220_v25, %v6217_v10 }
 0x3e5   :  { %v6586_v45 = vshll.u32 %v6381_v18, 16  ;;  %v6572_v58 = vshll.u32 %v6380_v30, 16  ;;  %v6585_v42 = vrot.slane %v6583_v21, 4  ;;  %v6571_v30 = vrot.slane %v6569_v28, 4 }
 0x3e6   :  { %v6553_v0 = vsel %vm13661_vm2, %v6548_v36, %v6552_v4  ;;  %v6210_v36 = vshll.u32 %v15957_v1, 16  ;;  %v6222_v18 = vrot.slane %v6221_v8, 4 }
 0x3e7   :  { %v7730_v46 = vpop.f32.mrf.mxu0  ;;  %v15946_v14 = vpop.f32.mrf.mxu1  ;;  %v6588_v16 = vrot.slane %v6586_v45, 5  ;;  %v7018_v10 = vunpack.c.l.b16 %v6553_v0  ;;  %v15970_v45 = vld [vmem:[#allocation2 + $0x84] sm:$0x1] }
 0x3e8   :  { %v7731_v49 = vadd.f32 %v7730_v46, %v7682_v34  ;;  %v15948_v40 = vpop.f32.mrf.mxu3  ;;  %v7828_v29 = vpop.f32.mrf.mxu2  ;;  %v6266_v34 = vld [vmem:[#allocation2 + $0x68] sm:$0xe]  ;;  %v6224_v46 = vshll.u32 %v15951_v57, 16 }
 0x3e9   :  { %v11943_v25 = vrot.slane %v6266_v34, 9  ;;  %v6589_v8 = vor.u32 %v6588_v16, %v6585_v42  ;;  %v6014_v34 = vld [vmem:[#allocation2 + $0x88] sm:$0xf]  ;;  %v6243_v42 = vshrl.u32 %v6015_v43, 16  ;;  %v6246_v16 = vshll.u32 %v6015_v43, 16 }
 0x3ea   :  { %v7780_v44 = vadd.f32 %v7779_v55, %v7731_v49  ;;  %7925 = vmatmul.bf16.gmra.mxu0 %v6948_v6  ;;  %v12051_v55 = vld [vmem:[#allocation2 + $0x70] sm:$0xf]  ;;  %v6207_v6 = vor.u32 %v6206_v39, %v6203_v9  ;;  %v7019_v49 = vunpack.c.l.b16 %v6567_v61  ;;  %v6351_v9 = vsel %vm14599_vm12, %v11944_v12, %v6350_v54 }
 0x3eb   :  { %v12052_v3 = vor.u32 %v13026_v35, %v12051_v55  ;;  %v13093_v35 = vld [vmem:[#allocation6 + $0x200] sm:$0xff]  ;;  %v6226_v21 = vrot.slane %v6224_v46, 5  ;;  %v15972_v55 = vld [vmem:[#allocation2 + $0x8c] sm:$0x1]  ;;  %v6939_v54 = vunpack.c.l.b16 %v6351_v9  ;;  %v6590_v9 = vrot.slane %v6589_v8, 4 }
 0x3ec   :  { %v15959_v48 = vadd.f32 %v7828_v29, %v7780_v44  ;;  %7881 = vmatmul.bf16.gmra.mxu3 %v6917_v51  ;;  %v6346_v29 = vrot.slane %v15919_v37, 5  ;;  %v6208_v39 = vrot.slane %v6207_v6, 4  ;;  %v6574_v51 = vrot.slane %v6572_v58, 5 }
 0x3ed   :  { %v7029_v0 = vpack.c.b16 %v7019_v49, %v7018_v10  ;;  %v6212_v37 = vrot.slane %v6210_v36, 5  ;;  %8051 = vmatpush.bf16.msrb.mxu3 %v13093_v35  ;;  %v6227_v6 = vsel %vm13661_vm2, %v6222_v18, %v6226_v21  ;;  %v6592_v46 = vshll.u32 %v15972_v55, 16  ;;  %v6268_v18 = vld [vmem:[#allocation2 + $0x78] sm:$0xe] }
 0x3ee   :  { %v6347_v12 = vsel %vm14599_vm12, %v11943_v25, %v6346_v29  ;;  %v6575_v58 = vor.u32 %v6574_v51, %v6571_v30  ;;  %v6229_v49 = vshrl.u32 %v6014_v34, 16  ;;  %v6232_v36 = vshll.u32 %v6014_v34, 16  ;;  %v6383_v34 = vld [vmem:[#allocation2 + $0x98] sm:$0xf] }
 0x3ef   :  { %v15963_v4 = vpop.f32.mrf.mxu0  ;;  %v7784_v61 = vpop.f32.mrf.mxu1  ;;  %v6213_v28 = vsel %vm13661_vm2, %v6208_v39, %v6212_v37  ;;  %v6938_v25 = vunpack.c.l.b16 %v6347_v12  ;;  %v6909_v29 = vunpack.c.l.b16 %v6227_v6  ;;  %v6245_v21 = vrot.slane %v6243_v42, 4  ;;  %v15987_v42 = vld [vmem:[#allocation2 + $0x94] sm:$0x1] }
 0x3f0   :  { %v7686_v41 = vpop.f32.mrf.mxu3  ;;  %v15966_v44 = vpop.f32.mrf.mxu2  ;;  %v6908_v37 = vunpack.c.l.b16 %v6213_v28  ;;  %v6594_v62 = vrot.slane %v6592_v46, 5  ;;  %v6576_v22 = vrot.slane %v6575_v58, 4  ;;  %v6597_v28 = vshrl.u32 %v6382_v15, 16 }
 0x3f1   :  { %v7687_v10 = vadd.f32 %v15801_v26, %v7686_v41  ;;  %v6949_v51 = vpack.c.b16 %v6939_v54, %v6938_v25  ;;  %v6231_v26 = vrot.slane %v6229_v49, 4  ;;  %v6234_v41 = vrot.slane %v6232_v36, 5  ;;  %v15991_v54 = vld [vmem:[#allocation2 + $0x8c] sm:$0x1]  ;;  %v13027_v49 = vld [vmem:[#allocation2 + $0x84] sm:$0xf0] }
 0x3f2   :  { %7979 = vmatmul.bf16.gmra.mxu1 %v12052_v3  ;;  %v6578_v3 = vshll.u32 %v15970_v45, 16  ;;  %v6918_v8 = vpack.c.b16 %v6909_v29, %v6908_v37  ;;  %v6595_v6 = vsel %vm13661_vm2, %v6590_v9, %v6594_v62  ;;  %v6600_v46 = vshll.u32 %v6382_v15, 16 }
 0x3f3   :  { %v6611_v58 = vshrl.u32 %v6383_v34, 16  ;;  %v6358_v36 = vrot.slane %v15951_v57, 5  ;;  %v6235_v29 = vor.u32 %v6234_v41, %v6231_v26  ;;  %v6252_v9 = vshll.u32 %v15987_v42, 16 }
 0x3f4   :  { %8028 = vmatmul.bf16.gmra.mxu2 %v7029_v0  ;;  %v6248_v0 = vrot.slane %v6246_v16, 5  ;;  %v6580_v43 = vrot.slane %v6578_v3, 5  ;;  %v6614_v3 = vshll.u32 %v6383_v34, 16  ;;  %v6238_v15 = vshll.u32 %v15991_v54, 16 }
 0x3f5   :  { %v6613_v37 = vrot.slane %v6611_v58, 4  ;;  %v6236_v41 = vrot.slane %v6235_v29, 4 }
 0x3f6   :  { %v6249_v16 = vor.u32 %v6248_v0, %v6245_v21  ;;  %v6581_v62 = vsel %vm13661_vm2, %v6576_v22, %v6580_v43  ;;  %v6354_v21 = vrot.slane %v15957_v1, 5  ;;  %v6616_v34 = vrot.slane %v6614_v3, 5 }
 0x3f7   :  { %v7735_v35 = vpop.f32.mrf.mxu0  ;;  %v7020_v43 = vunpack.c.l.b16 %v6581_v62  ;;  %v6254_v1 = vrot.slane %v6252_v9, 5  ;;  %v16022_v9 = vld [vmem:[%s16844_s11] ss:$0 sm:$0xff] }
 0x3f8   :  { %v7736_v17 = vadd.f32 %v7735_v35, %v7687_v10  ;;  %v15983_v39 = vpop.f32.mrf.mxu3  ;;  %v7833_v30 = vpop.f32.mrf.mxu2  ;;  %v7021_v35 = vunpack.c.l.b16 %v6595_v6  ;;  %v6250_v0 = vrot.slane %v6249_v16, 4  ;;  %v6240_v16 = vrot.slane %v6238_v15, 5 }
 0x3f9   :  { %v15989_v10 = vpop.f32.mrf.mxu1 }
 0x3fa   :  { %v7785_v12 = vadd.f32 %v7784_v61, %v7736_v17  ;;  %7930 = vmatmul.bf16.gmra.mxu0 %v6949_v51  ;;  %v11945_v17 = vrot.slane %v6268_v18, 9  ;;  %v11946_v61 = vrot.slane %v6269_v2, 9  ;;  %v12055_v51 = vld [vmem:[#allocation2 + $0x80] sm:$0xf]  ;;  %v6599_v18 = vrot.slane %v6597_v28, 4 }
 0x3fb   :  { %v6602_v2 = vrot.slane %v6600_v46, 5  ;;  %v12056_v57 = vor.u32 %v13027_v49, %v12055_v51  ;;  %v16009_v28 = vld [vmem:[#allocation2 + $0x94] sm:$0x1]  ;;  %v16011_v46 = vld [vmem:[#allocation2 + $0x9c] sm:$0x1]  ;;  %v6255_v58 = vsel %vm13661_vm2, %v6250_v0, %v6254_v1  ;;  %v6617_v49 = vor.u32 %v6616_v34, %v6613_v37 }
 0x3fc   :  { %v15993_v25 = vadd.f32 %v7833_v30, %v7785_v12  ;;  %7886 = vmatmul.bf16.gmra.mxu3 %v6918_v8  ;;  %v6359_v26 = vsel %vm14599_vm12, %v11946_v61, %v6358_v36  ;;  %v7030_v8 = vpack.c.b16 %v7021_v35, %v7020_v43  ;;  %v6355_v6 = vsel %vm14599_vm12, %v11945_v17, %v6354_v21 }
 0x3fd   :  { %v6603_v3 = vor.u32 %v6602_v2, %v6599_v18  ;;  %v6620_v62 = vshll.u32 %v16011_v46, 16  ;;  %v6941_v61 = vunpack.c.l.b16 %v6359_v26  ;;  %v6241_v29 = vsel %vm13661_vm2, %v6236_v41, %v6240_v16  ;;  %v6271_v16 = vld [vmem:[#allocation2 + $0x90] sm:$0xe] }
 0x3fe   :  { %v6606_v17 = vshll.u32 %v16009_v28, 16  ;;  %v6940_v21 = vunpack.c.l.b16 %v6355_v6  ;;  %v6911_v15 = vunpack.c.l.b16 %v6255_v58  ;;  %v6618_v18 = vrot.slane %v6617_v49, 4  ;;  %v6625_v49 = vld [vmem:[#allocation2 + $0x18] sm:$0xe] }
 0x3ff   :  { %v16001_v30 = vpop.f32.mrf.mxu0  ;;  %v6604_v51 = vrot.slane %v6603_v3, 4  ;;  %v6622_v2 = vrot.slane %v6620_v62, 5  ;;  %v6910_v26 = vunpack.c.l.b16 %v6241_v29  ;;  %v6270_v3 = vld [vmem:[#allocation2 + $0x88] sm:$0xe]  ;;  %v12059_v62 = vld [vmem:[#allocation2 + $0x90] sm:$0xf] }
 0x400   :  { %v7691_v12 = vpop.f32.mrf.mxu3  ;;  %v16003_v22 = vpop.f32.mrf.mxu2  ;;  %v6950_v43 = vpack.c.b16 %v6941_v61, %v6940_v21  ;;  %v6608_v41 = vrot.slane %v6606_v17, 5  ;;  %v11948_v61 = vrot.slane %v6271_v16, 9  ;;  %v6366_v29 = vrot.slane %v15987_v42, 5  ;;  %v6624_v21 = vld [vmem:[#allocation2 + $0x10] sm:$0xe] }
 0x401   :  { %v7789_v36 = vpop.f32.mrf.mxu1  ;;  %v7692_v35 = vadd.f32 %v16022_v9, %v7691_v12  ;;  %v6623_v6 = vsel %vm13661_vm2, %v6618_v18, %v6622_v2  ;;  %v6362_v18 = vrot.slane %v15991_v54, 5  ;;  %v11950_v2 = vrot.slane %v6625_v49, 9 }
 0x402   :  { %7984 = vmatmul.bf16.gmra.mxu1 %v12056_v57  ;;  %v6609_v12 = vsel %vm13661_vm2, %v6604_v51, %v6608_v41  ;;  %v7023_v17 = vunpack.c.l.b16 %v6623_v6  ;;  %v11947_v51 = vrot.slane %v6270_v3, 9  ;;  %v6367_v42 = vsel %vm14599_vm12, %v11948_v61, %v6366_v29 }
 0x403   :  { %v6943_v3 = vunpack.c.l.b16 %v6367_v42  ;;  %v6627_v42 = vld [vmem:[#allocation2 + $0x28] sm:$0xe] }
 0x404   :  { %8033 = vmatmul.bf16.gmra.mxu2 %v7030_v8  ;;  %v6919_v8 = vpack.c.b16 %v6911_v15, %v6910_v26  ;;  %v6363_v6 = vsel %vm14599_vm12, %v11947_v51, %v6362_v18 }
 0x407   :  { %v7740_v0 = vpop.f32.mrf.mxu0 }
 0x408   :  { %v7741_v37 = vadd.f32 %v7740_v0, %v7692_v35  ;;  %v16025_v34 = vpop.f32.mrf.mxu3  ;;  %v7838_v57 = vpop.f32.mrf.mxu2  ;;  %v13028_v35 = vld [vmem:[#allocation2 + $0x94] sm:$0xf0] }
 0x409   :  { %v16034_v15 = vpop.f32.mrf.mxu1  ;;  %v12060_v41 = vor.u32 %v13028_v35, %v12059_v62  ;;  %v6942_v35 = vunpack.c.l.b16 %v6363_v6 }
 0x40a   :  { %v7790_v1 = vadd.f32 %v7789_v36, %v7741_v37  ;;  %7935 = vmatmul.bf16.gmra.mxu0 %v6950_v43  ;;  %v7022_v36 = vunpack.c.l.b16 %v6609_v12  ;;  %v13290_v37 = vld [vmem:[#allocation2 + $0x1c] sm:$0x1] }
 0x40c   :  { %v16031_v58 = vadd.f32 %v7838_v57, %v7790_v1  ;;  %7891 = vmatmul.bf16.gmra.mxu3 %v6919_v8  ;;  %v6678_v57 = vrot.slane %v13290_v37, 5  ;;  %v11949_v1 = vrot.slane %v6624_v21, 9  ;;  %v13291_v8 = vld [vmem:[#allocation2 + $0x14] sm:$0x1]  ;;  %v7031_v12 = vpack.c.b16 %v7023_v17, %v7022_v36 }
 0x40d   :  { %v6674_v16 = vrot.slane %v13291_v8, 5  ;;  %v6951_v36 = vpack.c.b16 %v6943_v3, %v6942_v35  ;;  %v6626_v8 = vld [vmem:[#allocation2 + $0x20] sm:$0xe] }
 0x40e   :  { %v6679_v54 = vsel %vm14599_vm12, %v11950_v2, %v6678_v57  ;;  %v11951_v3 = vrot.slane %v6626_v8, 9 }
 0x40f   :  { %v16036_v0 = vpop.f32.mrf.mxu0  ;;  %v6675_v49 = vsel %vm14599_vm12, %v11949_v1, %v6674_v16  ;;  %v7041_v61 = vunpack.c.l.b16 %v6679_v54  ;;  %v13132_v1 = vld [vmem:[#allocation8 + $0x38] sm:$0xff]  ;;  %v13292_v16 = vld [vmem:[#allocation2 + $0x2c] sm:$0x1] }
 0x410   :  { %v7696_v43 = vpop.f32.mrf.mxu3  ;;  %v16039_v26 = vpop.f32.mrf.mxu2  ;;  %v7040_v17 = vunpack.c.l.b16 %v6675_v49  ;;  %10400 = vmatpush.bf16.msrb.mxu0 %v13132_v1  ;;  %v13293_v49 = vld [vmem:[#allocation2 + $0x24] sm:$0x1] }
 0x411   :  { %v7697_v62 = vadd.f32 %v16022_v9, %v7696_v43  ;;  %v11952_v43 = vrot.slane %v6627_v42, 9  ;;  %v13294_v42 = vld [vmem:[#allocation2 + $0x3c] sm:$0x1] }
 0x412   :  { %7989 = vmatmul.bf16.gmra.mxu1 %v12060_v41  ;;  %v7794_v41 = vpop.f32.mrf.mxu1  ;;  %v7056_v2 = vpack.c.b16 %v7041_v61, %v7040_v17  ;;  %v6694_v1 = vrot.slane %v13294_v42, 5 }
 0x414   :  { %8038 = vmatmul.bf16.gmra.mxu2 %v7031_v12  ;;  %v6686_v12 = vrot.slane %v13292_v16, 5 }
 0x416   :  { %v6687_v35 = vsel %vm14599_vm12, %v11952_v43, %v6686_v12  ;;  %v13295_v12 = vld [vmem:[#allocation2 + $0x34] sm:$0x1] }
 0x417   :  { %v7745_v29 = vpop.f32.mrf.mxu0 }
 0x418   :  { %v7746_v21 = vadd.f32 %v7745_v29, %v7697_v62  ;;  %v16050_v37 = vpop.f32.mrf.mxu3  ;;  %v7843_v51 = vpop.f32.mrf.mxu2  ;;  %v6682_v62 = vrot.slane %v13293_v49, 5  ;;  %v7043_v29 = vunpack.c.l.b16 %v6687_v35 }
 0x41a   :  { %v7795_v18 = vadd.f32 %v7794_v41, %v7746_v21  ;;  %7940 = vmatmul.bf16.gmra.mxu0 %v6951_v36  ;;  %v6683_v61 = vsel %vm14599_vm12, %v11951_v3, %v6682_v62 }
 0x41b   :  { %v7042_v36 = vunpack.c.l.b16 %v6683_v61 }
 0x41c   :  { %v16052_v57 = vadd.f32 %v7843_v51, %v7795_v18  ;;  %8052 = vmatmul.bf16.vlgmr.msrb.gmra.mxu3 %v7056_v2  ;;  %v6629_v51 = vld [vmem:[#allocation2 + $0x38] sm:$0xe]  ;;  %v6628_v18 = vld [vmem:[#allocation2 + $0x30] sm:$0xe] }
 0x41d   :  { %v7057_v41 = vpack.c.b16 %v7043_v29, %v7042_v36  ;;  %v11954_v2 = vrot.slane %v6629_v51, 9  ;;  %v11953_v16 = vrot.slane %v6628_v18, 9  ;;  %v13130_v36 = vld [vmem:[#allocation8 + $0x28] sm:$0xff]  ;;  %v6698_v51 = vrot.slane %v15864_v53, 5 }
 0x41e   :  { %v6702_v18 = vrot.slane %v15867_v32, 5  ;;  %v13129_v32 = vld [vmem:[#allocation8 + $0x20] sm:$0xff] }
 0x420   :  { %v7857_v6 = vpop.f32.mrf.mxu3 }
 0x421   :  { %v16055_v54 = vadd.f32 %v7857_v6, %v15826_v23  ;;  %v13131_v23 = vld [vmem:[#allocation8 + $0x30] sm:$0xff]  ;;  %v6690_v6 = vrot.slane %v13295_v12, 5 }
 0x422   :  { %10401 = vmatpush.bf16.msrb.mxu0 %v13131_v23 }
 0x423   :  { %v6691_v3 = vsel %vm14599_vm12, %v11953_v16, %v6690_v6 }
 0x424   :  { %v7044_v35 = vunpack.c.l.b16 %v6691_v3  ;;  %v6632_v3 = vld [vmem:[#allocation2 + $0x60] sm:$0xe] }
 0x426   :  { %10402 = vmatpush.bf16.msrb.mxu0 %v13130_v36 }
 0x428   :  { %v7859_v21 = vpop.f32.mrf.mxu3 }
 0x429   :  { %v16062_v17 = vadd.f32 %v7859_v21, %v15840_v20  ;;  %v6695_v20 = vsel %vm14599_vm12, %v11954_v2, %v6694_v1  ;;  %v6630_v21 = vld [vmem:[#allocation2 + $0x40] sm:$0xe] }
 0x42a   :  { %v7045_v49 = vunpack.c.l.b16 %v6695_v20  ;;  %v6633_v20 = vld [vmem:[#allocation2 + $0x68] sm:$0xe]  ;;  %10403 = vmatpush.bf16.msrb.mxu0 %v13129_v32 }
 0x42c   :  { %8057 = vmatmul.bf16.gmra.mxu3 %v7057_v41  ;;  %v7058_v29 = vpack.c.b16 %v7045_v49, %v7044_v35  ;;  %v11955_v41 = vrot.slane %v6630_v21, 9  ;;  %v6710_v49 = vrot.slane %v15901_v60, 5  ;;  %v6706_v21 = vrot.slane %v15896_v38, 5 }
 0x42d   :  { %v6718_v38 = vrot.slane %v15935_v50, 5  ;;  %v6637_v50 = vld [vmem:[#allocation2 + $0x88] sm:$0xe] }
 0x430   :  { %v7862_v8 = vpop.f32.mrf.mxu3 }
 0x431   :  { %v16065_v43 = vadd.f32 %v7862_v8, %v15861_v24  ;;  %v6631_v24 = vld [vmem:[#allocation2 + $0x48] sm:$0xe] }
 0x432   :  { %v11956_v23 = vrot.slane %v6631_v24, 9 }
 0x434   :  { %v6703_v1 = vsel %vm14599_vm12, %v11956_v23, %v6702_v18  ;;  %v6635_v18 = vld [vmem:[#allocation2 + $0x78] sm:$0xe] }
 0x435   :  { %v7047_v16 = vunpack.c.l.b16 %v6703_v1 }
 0x438   :  { %v7864_v62 = vpop.f32.mrf.mxu3 }
 0x439   :  { %v16072_v61 = vadd.f32 %v7864_v62, %v15876_v47  ;;  %v6699_v47 = vsel %vm14599_vm12, %v11955_v41, %v6698_v51 }
 0x43a   :  { %v7046_v8 = vunpack.c.l.b16 %v6699_v47  ;;  %v11960_v47 = vrot.slane %v6635_v18, 9 }
 0x43c   :  { %8062 = vmatmul.bf16.gmra.mxu3 %v7058_v29  ;;  %v7059_v53 = vpack.c.b16 %v7047_v16, %v7046_v8  ;;  %v11957_v29 = vrot.slane %v6632_v3, 9 }
 0x43e   :  { %v6707_v24 = vsel %vm14599_vm12, %v11957_v29, %v6706_v21  ;;  %v11962_v29 = vrot.slane %v6637_v50, 9 }
 0x43f   :  { %v7048_v51 = vunpack.c.l.b16 %v6707_v24 }
 0x440   :  { %v7867_v2 = vpop.f32.mrf.mxu3 }
 0x441   :  { %v16077_v42 = vadd.f32 %v7867_v2, %v15891_v13  ;;  %v11958_v13 = vrot.slane %v6633_v20, 9  ;;  %v6634_v2 = vld [vmem:[#allocation2 + $0x70] sm:$0xe] }
 0x442   :  { %v11959_v16 = vrot.slane %v6634_v2, 9 }
 0x448   :  { %v7869_v12 = vpop.f32.mrf.mxu3 }
 0x449   :  { %v16084_v6 = vadd.f32 %v7869_v12, %v15905_v7  ;;  %v6711_v7 = vsel %vm14599_vm12, %v11958_v13, %v6710_v49  ;;  %v6714_v12 = vrot.slane %v15933_v56, 5  ;;  %v16109_v49 = vpop.f32.mrf.mxu0  ;;  %v6726_v56 = vrot.slane %v15972_v55, 5 }
 0x44a   :  { %v7049_v36 = vunpack.c.l.b16 %v6711_v7  ;;  %v16112_v7 = vpop.f32.mrf.mxu1 }
 0x44c   :  { %8067 = vmatmul.bf16.gmra.mxu3 %v7059_v53  ;;  %v7060_v60 = vpack.c.b16 %v7049_v36, %v7048_v51  ;;  %v6715_v53 = vsel %vm14599_vm12, %v11959_v16, %v6714_v12  ;;  %v6727_v51 = vsel %vm14599_vm12, %v11962_v29, %v6726_v56  ;;  %v6639_v16 = vld [vmem:[#allocation2 + $0x98] sm:$0xe]  ;;  %v13126_v12 = vld [vmem:[#allocation8 + $0x8] sm:$0xff] }
 0x44d   :  { %v7050_v3 = vunpack.c.l.b16 %v6715_v53  ;;  %v7053_v2 = vunpack.c.l.b16 %v6727_v51 }
 0x450   :  { %v7872_v62 = vpop.f32.mrf.mxu3 }
 0x451   :  { %v16088_v35 = vadd.f32 %v7872_v62, %v15921_v63  ;;  %v13128_v63 = vld [vmem:[#allocation8 + $0x18] sm:$0xff]  ;;  %v6636_v62 = vld [vmem:[#allocation2 + $0x80] sm:$0xe]  ;;  %v7906_v18 = vpop.f32.mrf.mxu0 }
 0x452   :  { %10404 = vmatpush.bf16.msrb.mxu0 %v13128_v63  ;;  %v11961_v36 = vrot.slane %v6636_v62, 9 }
 0x458   :  { %v7874_v41 = vpop.f32.mrf.mxu3 }
 0x459   :  { %v16096_v23 = vadd.f32 %v7874_v41, %v15939_v33  ;;  %v6719_v33 = vsel %vm14599_vm12, %v11960_v47, %v6718_v38  ;;  %v6722_v41 = vrot.slane %v15970_v45, 5 }
 0x45a   :  { %v7051_v20 = vunpack.c.l.b16 %v6719_v33  ;;  %v7908_v33 = vpop.f32.mrf.mxu0 }
 0x45b   :  { %v6723_v63 = vsel %vm14599_vm12, %v11961_v36, %v6722_v41 }
 0x45c   :  { %8072 = vmatmul.bf16.gmra.mxu3 %v7060_v60  ;;  %v7061_v13 = vpack.c.b16 %v7051_v20, %v7050_v3  ;;  %v16120_v60 = vpop.f32.mrf.mxu2  ;;  %v7052_v47 = vunpack.c.l.b16 %v6723_v63  ;;  %v6730_v20 = vrot.slane %v16009_v28, 5  ;;  %v11964_v3 = vrot.slane %v6639_v16, 9 }
 0x45d   :  { %16915 = vst [vmem:[#allocation29_spill] sm:$0xff] %v16120_v60 }
 0x45e   :  { %v7062_v38 = vpack.c.b16 %v7053_v2, %v7052_v47  ;;  %v13147_v47 = vld [vmem:[#allocation8 + $0xb0] sm:$0xff] }
 0x460   :  { %v7877_v1 = vpop.f32.mrf.mxu3 }
 0x461   :  { %v16100_v8 = vadd.f32 %v7877_v1, %v15959_v48  ;;  %v13127_v48 = vld [vmem:[#allocation8 + $0x10] sm:$0xff]  ;;  %v7955_v1 = vpop.f32.mrf.mxu1 }
 0x462   :  { %10405 = vmatpush.bf16.msrb.mxu0 %v13127_v48  ;;  %v13148_v48 = vld [vmem:[#allocation8 + $0xb8] sm:$0xff]  ;;  %v7911_v63 = vpop.f32.mrf.mxu0 }
 0x463   :  { %10498 = vmatpush.bf16.msra.mxu2 %v13148_v48  ;;  %v13139_v48 = vld [vmem:[#allocation8 + $0x70] sm:$0xff] }
 0x464   :  { %v8004_v45 = vpop.f32.mrf.mxu2 }
 0x466   :  { %10406 = vmatpush.bf16.msrb.mxu0 %v13126_v12  ;;  %v13155_v12 = vld [vmem:[#allocation8 + $0xf0] sm:$0xff] }
 0x467   :  { %10499 = vmatpush.bf16.msra.mxu2 %v13147_v47 }
 0x468   :  { %v16107_v32 = vpop.f32.mrf.mxu3 }
 0x46c   :  { %8077 = vmatmul.bf16.gmra.mxu3 %v7061_v13  ;;  %v6734_v13 = vrot.slane %v16011_v46, 5  ;;  %v8006_v51 = vpop.f32.mrf.mxu2 }
 0x46e   :  { %v6735_v56 = vsel %vm14599_vm12, %v11964_v3, %v6734_v13  ;;  %v16144_v3 = vpop.f32.mrf.mxu0  ;;  %v7907_v13 = vadd.f32 %v7906_v18, %v16055_v54  ;;  %v7909_v18 = vadd.f32 %v7908_v33, %v16062_v17  ;;  %v7912_v33 = vadd.f32 %v7911_v63, %v16065_v43 }
 0x46f   :  { %v7055_v41 = vunpack.c.l.b16 %v6735_v56 }
 0x470   :  { %v7882_v21 = vpop.f32.mrf.mxu3  ;;  %v7956_v47 = vadd.f32 %v7955_v1, %v7907_v13  ;;  %v13151_v1 = vld [vmem:[#allocation8 + $0xd0] sm:$0xff]  ;;  %v13142_v13 = vld [vmem:[#allocation8 + $0x88] sm:$0xff] }
 0x471   :  { %v16115_v24 = vadd.f32 %v7882_v21, %v15993_v25  ;;  %v6638_v25 = vld [vmem:[#allocation2 + $0x90] sm:$0xe]  ;;  %v7957_v21 = vpop.f32.mrf.mxu1 }
 0x472   :  { %v11963_v53 = vrot.slane %v6638_v25, 9  ;;  %v8005_v54 = vadd.f32 %v8004_v45, %v7956_v47 }
 0x474   :  { %v6731_v29 = vsel %vm14599_vm12, %v11963_v53, %v6730_v20  ;;  %v13146_v53 = vld [vmem:[#allocation8 + $0xa8] sm:$0xff]  ;;  %v16142_v20 = vpop.f32.mrf.mxu2 }
 0x475   :  { %v7054_v36 = vunpack.c.l.b16 %v6731_v29  ;;  %10500 = vmatpush.bf16.msra.mxu2 %v13146_v53  ;;  %v13154_v29 = vld [vmem:[#allocation8 + $0xe8] sm:$0xff]  ;;  %v13152_v53 = vld [vmem:[#allocation8 + $0xd8] sm:$0xff] }
 0x477   :  { %v7063_v46 = vpack.c.b16 %v7055_v41, %v7054_v36  ;;  %v13138_v41 = vld [vmem:[#allocation8 + $0x68] sm:$0xff] }
 0x478   :  { %v16124_v55 = vpop.f32.mrf.mxu3 }
 0x479   :  { %v16137_v2 = vpop.f32.mrf.mxu1 }
 0x47c   :  { %8082 = vmatmul.bf16.gmra.mxu3 %v7062_v38  ;;  %v13140_v38 = vld [vmem:[#allocation8 + $0x78] sm:$0xff] }
 0x47d   :  { %10449 = vmatpush.bf16.msra.mxu1 %v13140_v38  ;;  %v16151_v38 = vpop.f32.mrf.mxu2 }
 0x480   :  { %v7887_v50 = vpop.f32.mrf.mxu3 }
 0x481   :  { %v16129_v62 = vadd.f32 %v7887_v50, %v16031_v58  ;;  %v13156_v58 = vld [vmem:[#allocation8 + $0xf8] sm:$0xff]  ;;  %v13125_v50 = vld [vmem:[#allocation8] sm:$0xff]  ;;  %v16149_v36 = vpop.f32.mrf.mxu1  ;;  %10450 = vmatpush.bf16.msra.mxu1 %v13139_v48 }
 0x482   :  { %10547 = vmatpush.bf16.msra.mxu3 %v13156_v58  ;;  %10407 = vmatpush.bf16.msrb.mxu0 %v13125_v50  ;;  %v13144_v58 = vld [vmem:[#allocation8 + $0x98] sm:$0xff]  ;;  %v13143_v50 = vld [vmem:[#allocation8 + $0x90] sm:$0xff] }
 0x485   :  { %10451 = vmatpush.bf16.msra.mxu1 %v13138_v41  ;;  %v16158_v45 = vpop.f32.mrf.mxu2 }
 0x486   :  { %10548 = vmatpush.bf16.msra.mxu3 %v13155_v12  ;;  %v13137_v12 = vld [vmem:[#allocation8 + $0x60] sm:$0xff] }
 0x488   :  { %v16135_v28 = vpop.f32.mrf.mxu3 }
 0x489   :  { %10452 = vmatpush.bf16.msra.mxu1 %v13137_v12  ;;  %v16156_v27 = vpop.f32.mrf.mxu1  ;;  %v13164_v12 = vld [vmem:[#allocation8 + $0x138] sm:$0xff] }
 0x48a   :  { %10549 = vmatpush.bf16.msra.mxu3 %v13154_v29  ;;  %v13136_v29 = vld [vmem:[#allocation8 + $0x58] sm:$0xff]  ;;  %10596 = vmatpush.bf16.msra.mxu0 %v13164_v12  ;;  %v8636_v12 = vld [vmem:[#allocation2] sm:$0xe] }
 0x48c   :  { %8087 = vmatmul.bf16.gmra.mxu3 %v7063_v46  ;;  %v13153_v46 = vld [vmem:[#allocation8 + $0xe0] sm:$0xff] }
 0x48d   :  { %10453 = vmatpush.bf16.msra.mxu1 %v13136_v29  ;;  %v13134_v29 = vld [vmem:[#allocation8 + $0x48] sm:$0xff] }
 0x48e   :  { %10550 = vmatpush.bf16.msra.mxu3 %v13153_v46 }
 0x490   :  { %v7892_v25 = vpop.f32.mrf.mxu3 }
 0x491   :  { %v16140_v16 = vadd.f32 %v7892_v25, %v16052_v57  ;;  %v13145_v57 = vld [vmem:[#allocation8 + $0xa0] sm:$0xff]  ;;  %v16153_v25 = vpop.f32.mrf.mxu0 }
 0x492   :  { %10501 = vmatpush.bf16.msra.mxu2 %v13145_v57  ;;  %10551 = vmatpush.bf16.msra.mxu3 %v13152_v53  ;;  %v7958_v57 = vadd.f32 %v7957_v21, %v7909_v18  ;;  %v13141_v21 = vld [vmem:[#allocation8 + $0x80] sm:$0xff] }
 0x493   :  { %16916 = vst [vmem:[#allocation30_spill] sm:$0xff] %v16140_v16 }
 0x494   :  { %v8007_v17 = vadd.f32 %v8006_v51, %v7958_v57  ;;  %v7961_v51 = vadd.f32 %v16137_v2, %v7912_v33  ;;  %v8287_v57 = vld [vmem:[#allocation2 + $0xc] sm:$0x1]  ;;  %v7914_v2 = vadd.f32 %v16144_v3, %v16072_v61 }
 0x496   :  { %10502 = vmatpush.bf16.msra.mxu2 %v13144_v58  ;;  %10552 = vmatpush.bf16.msra.mxu3 %v13151_v1  ;;  %v13149_v1 = vld [vmem:[#allocation8 + $0xc0] sm:$0xff]  ;;  %v8010_v33 = vadd.f32 %v16142_v20, %v7961_v51 }
 0x498   :  { %v16147_v56 = vpop.f32.mrf.mxu3 }
 0x499   :  { %16917 = vst [vmem:[#allocation31_spill] sm:$0xff] %v16147_v56  ;;  %v16161_v58 = vpop.f32.mrf.mxu0  ;;  %v8293_v56 = vld [vmem:[#allocation2 + $0x14] sm:$0x1] }
 0x49a   :  { %10503 = vmatpush.bf16.msra.mxu2 %v13143_v50  ;;  %v13150_v50 = vld [vmem:[#allocation8 + $0xc8] sm:$0xff] }
 0x49b   :  { %10553 = vmatpush.bf16.msra.mxu3 %v13150_v50  ;;  %v13133_v50 = vld [vmem:[#allocation8 + $0x40] sm:$0xff] }
 0x49e   :  { %10504 = vmatpush.bf16.msra.mxu2 %v13142_v13 }
 0x49f   :  { %10554 = vmatpush.bf16.msra.mxu3 %v13149_v1  ;;  %v7963_v1 = vadd.f32 %v16149_v36, %v7914_v2 }
 0x4a0   :  { %v8053_v48 = vpop.f32.mrf.mxu3 }
 0x4a1   :  { %v8054_v31 = vadd.f32 %v8053_v48, %v8005_v54  ;;  %v13135_v54 = vld [vmem:[#allocation8 + $0x50] sm:$0xff]  ;;  %v8012_v2 = vadd.f32 %v16151_v38, %v7963_v1 }
 0x4a2   :  { %10454 = vmatpush.bf16.msra.mxu1 %v13135_v54  ;;  %10505 = vmatpush.bf16.msra.mxu2 %v13141_v21  ;;  %v8396_v54 = vld [vmem:[#allocation2 + $0x4] sm:$0x1]  ;;  %v16173_v21 = vpop.f32.mrf.mxu2 }
 0x4a3   :  { %v8093_v41 = vmax.f32 %v8054_v31, 0.0  ;;  %v8422_v16 = vshll.u32 %v8396_v54, 16 }
 0x4a5   :  { %v8109_v46 = vpack.c.bf16 %v8093_v41, %v8093_v41  ;;  %v16164_v41 = vpop.f32.mrf.mxu1  ;;  %v8424_v1 = vrot.slane %v8422_v16, 5 }
 0x4a6   :  { %10455 = vmatpush.bf16.msra.mxu1 %v13134_v29  ;;  %v16175_v29 = vpop.f32.mrf.mxu0 }
 0x4a7   :  { %v8126_v47 = vshrl.u32 %v8109_v46, 16  ;;  %v8129_v48 = vshll.u32 %v8109_v46, 16 }
 0x4a8   :  { %v8055_v53 = vpop.f32.mrf.mxu3 }
 0x4a9   :  { %v8128_v18 = vrot.slane %v8126_v47, 7  ;;  %v8056_v31 = vadd.f32 %v8055_v53, %v8007_v17 }
 0x4aa   :  { %10456 = vmatpush.bf16.msra.mxu1 %v13133_v50 }
 0x4ab   :  { %v8131_v43 = vor.u32 %v8129_v48, %v8128_v18  ;;  %v8132_v63 = vrot.slane %v8128_v18, 4  ;;  %v8094_v13 = vmax.f32 %v8056_v31, 0.0  ;;  %v12349_v48 = vrot.slane %v8636_v12, 9 }
 0x4ac   :  { %v8686_v31 = vrot.slane %v8396_v54, 5 }
 0x4ad   :  { %v8285_v47 = vsel %vm14583_vm9, %v8131_v43, %v13296_v19  ;;  %v8288_v46 = vsel %vm14511_vm5, %v8132_v63, %v8287_v57  ;;  %v8110_v17 = vpack.c.bf16 %v8094_v13, %v8094_v13  ;;  %v8380_v43 = vld [vmem:[#allocation2] sm:$0xf]  ;;  %v8290_v57 = vld [vmem:[#allocation2 + $0x10] sm:$0xf] }
 0x4ae   :  { %8289 = vst [vmem:[#allocation2 + $0xc] sm:$0x1] %v8288_v46  ;;  %v8413_v61 = vshrl.u32 %v8380_v43, 16  ;;  %v8416_v3 = vshll.u32 %v8380_v43, 16  ;;  %v8687_v12 = vsel %vm14599_vm12, %v12349_v48, %v8686_v31  ;;  %v16187_v48 = vpop.f32.mrf.mxu1 }
 0x4af   :  { %8286 = vst [vmem:[#allocation2 + $0x8] sm:$0xf] %v8285_v47  ;;  %v8134_v53 = vshrl.u32 %v8110_v17, 16  ;;  %v8137_v19 = vshll.u32 %v8110_v17, 16  ;;  %v12399_v17 = vld [vmem:[#allocation2] sm:$0xf] }
 0x4b0   :  { %v8058_v18 = vpop.f32.mrf.mxu3  ;;  %v8415_v46 = vrot.slane %v8413_v61, 4  ;;  %v8418_v60 = vrot.slane %v8416_v3, 5  ;;  %v9564_v61 = vunpack.c.l.b16 %v8687_v12  ;;  %v13163_v3 = vld [vmem:[#allocation8 + $0x130] sm:$0xff] }
 0x4b1   :  { %v8136_v63 = vrot.slane %v8134_v53, 7  ;;  %v8059_v13 = vadd.f32 %v8058_v18, %v8010_v33  ;;  %10597 = vmatpush.bf16.msra.mxu0 %v13163_v3 }
 0x4b3   :  { %v8139_v20 = vor.u32 %v8137_v19, %v8136_v63  ;;  %v8140_v51 = vrot.slane %v8136_v63, 4  ;;  %v8095_v47 = vmax.f32 %v8059_v13, 0.0  ;;  %v7917_v19 = vadd.f32 %v16153_v25, %v16077_v42 }
 0x4b4   :  { %v8419_v63 = vor.u32 %v8418_v60, %v8415_v46  ;;  %v7919_v46 = vadd.f32 %v16161_v58, %v16084_v6 }
 0x4b5   :  { %v8291_v33 = vsel %vm14583_vm9, %v8139_v20, %v8290_v57  ;;  %v8294_v53 = vsel %vm14511_vm5, %v8140_v51, %v8293_v56  ;;  %v8111_v50 = vpack.c.bf16 %v8095_v47, %v8095_v47  ;;  %v8397_v36 = vld [vmem:[#allocation2 + $0xc] sm:$0x1]  ;;  %v7966_v60 = vadd.f32 %v16156_v27, %v7917_v19 }
 0x4b6   :  { %8292 = vst [vmem:[#allocation2 + $0x10] sm:$0xf] %v8291_v33  ;;  %v13101_v18 = vld [vmem:[#allocation2 + $0x4] sm:$0xf0]  ;;  %v8690_v51 = vrot.slane %v8397_v36, 5  ;;  %v8420_v38 = vrot.slane %v8419_v63, 4 }
 0x4b7   :  { %v8637_v43 = vld [vmem:[#allocation2 + $0x8] sm:$0xe]  ;;  %8295 = vst [vmem:[#allocation2 + $0x14] sm:$0x1] %v8294_v53  ;;  %v8142_v54 = vshrl.u32 %v8111_v50, 16  ;;  %v12400_v31 = vor.u32 %v13101_v18, %v12399_v17  ;;  %v8145_v56 = vshll.u32 %v8111_v50, 16  ;;  %v16192_v17 = vpop.f32.mrf.mxu2  ;;  %v16196_v53 = vpop.f32.mrf.mxu0 }
 0x4b8   :  { %v12350_v13 = vrot.slane %v8637_v43, 9  ;;  %v8060_v20 = vpop.f32.mrf.mxu3  ;;  %v8381_v57 = vld [vmem:[#allocation2 + $0x8] sm:$0xf]  ;;  %v8296_v18 = vld [vmem:[#allocation2 + $0x18] sm:$0xf]  ;;  %v8425_v27 = vsel %vm13661_vm2, %v8420_v38, %v8424_v1  ;;  %v8436_v6 = vshll.u32 %v8397_v36, 16  ;;  %v7684_v38 = vadd.f32 %v16022_v9, %v15948_v40 }
 0x4b9   :  { %v8144_v47 = vrot.slane %v8142_v54, 7  ;;  %v8061_v42 = vadd.f32 %v8060_v20, %v8012_v2  ;;  %10408 = vmatmul.bf16.vlgmr.msrb.gmra.mxu0 %v12400_v31  ;;  %v8427_v25 = vshrl.u32 %v8381_v57, 16  ;;  %v8430_v33 = vshll.u32 %v8381_v57, 16  ;;  %v8299_v63 = vld [vmem:[#allocation2 + $0x1c] sm:$0x1] }
 0x4ba   :  { %v8691_v12 = vsel %vm14599_vm12, %v12350_v13, %v8690_v51  ;;  %v8015_v1 = vadd.f32 %v16158_v45, %v7966_v60 }
 0x4bb   :  { %v8147_v50 = vor.u32 %v8145_v56, %v8144_v47  ;;  %v8148_v16 = vrot.slane %v8144_v47, 4  ;;  %v8096_v2 = vmax.f32 %v8061_v42, 0.0  ;;  %v9565_v43 = vunpack.c.l.b16 %v8691_v12  ;;  %v12431_v56 = vld [vmem:[#allocation2 + $0x8] sm:$0xf] }
 0x4bc   :  { %v8429_v19 = vrot.slane %v8427_v25, 4  ;;  %v8432_v54 = vrot.slane %v8430_v33, 5  ;;  %v7968_v25 = vadd.f32 %v16164_v41, %v7919_v46  ;;  %v8438_v12 = vrot.slane %v8436_v6, 5 }
 0x4bd   :  { %v8297_v58 = vsel %vm14583_vm9, %v8147_v50, %v8296_v18  ;;  %v8300_v31 = vsel %vm14511_vm5, %v8148_v16, %v8299_v63  ;;  %v8112_v13 = vpack.c.bf16 %v8096_v2, %v8096_v2  ;;  %v9580_v3 = vpack.c.b16 %v9565_v43, %v9564_v61  ;;  %v13109_v20 = vld [vmem:[#allocation2 + $0xc] sm:$0xf0]  ;;  %v16208_v18 = vpop.f32.mrf.mxu1 }
 0x4be   :  { %8298 = vst [vmem:[#allocation2 + $0x18] sm:$0xf] %v8297_v58  ;;  %v12432_v51 = vor.u32 %v13109_v20, %v12431_v56  ;;  %v8433_v57 = vor.u32 %v8432_v54, %v8429_v19  ;;  %v8638_v47 = vld [vmem:[#allocation2 + $0x10] sm:$0xe]  ;;  %v8398_v42 = vld [vmem:[#allocation2 + $0x14] sm:$0x1]  ;;  %v9532_v50 = vunpack.c.l.b16 %v8425_v27  ;;  %v16213_v6 = vadd.f32 %v15963_v4, %v7684_v38 }
 0x4bf   :  { %8301 = vst [vmem:[#allocation2 + $0x1c] sm:$0x1] %v8300_v31  ;;  %v8150_v36 = vshrl.u32 %v8112_v13, 16  ;;  %10506 = vmatmul.bf16.vlgmr.msra.gmra.mxu2 %v9580_v3  ;;  %v8382_v16 = vld [vmem:[#allocation2 + $0x10] sm:$0xf]  ;;  %v8153_v43 = vshll.u32 %v8112_v13, 16  ;;  %v7922_v27 = vadd.f32 %v16175_v29, %v16088_v35  ;;  %v16217_v3 = vpop.f32.mrf.mxu2 }
 0x4c0   :  { %v8063_v33 = vpop.f32.mrf.mxu3  ;;  %10555 = vmatmul.bf16.vlgmr.msra.gmra.mxu3 %v12432_v51  ;;  %v8434_v61 = vrot.slane %v8433_v57, 4  ;;  %v8441_v40 = vshrl.u32 %v8382_v16, 16  ;;  %v12351_v60 = vrot.slane %v8638_v47, 9  ;;  %v8694_v19 = vrot.slane %v8398_v42, 5  ;;  %v8302_v13 = vld [vmem:[#allocation2 + $0x20] sm:$0xf]  ;;  %v16219_v57 = vpop.f32.mrf.mxu0 }
 0x4c1   :  { %v8152_v2 = vrot.slane %v8150_v36, 7  ;;  %v8064_v63 = vadd.f32 %v8063_v33, %v8015_v1  ;;  %v8444_v54 = vshll.u32 %v8382_v16, 16  ;;  %v8305_v56 = vld [vmem:[#allocation2 + $0x24] sm:$0x1]  ;;  %v12403_v38 = vld [vmem:[#allocation2 + $0x10] sm:$0xf] }
 0x4c2   :  { %v8439_v45 = vsel %vm13661_vm2, %v8434_v61, %v8438_v12  ;;  %v8443_v20 = vrot.slane %v8441_v40, 4  ;;  %v8695_v40 = vsel %vm14599_vm12, %v12351_v60, %v8694_v19 }
 0x4c3   :  { %v8155_v58 = vor.u32 %v8153_v43, %v8152_v2  ;;  %v8156_v41 = vrot.slane %v8152_v2, 4  ;;  %v8097_v46 = vmax.f32 %v8064_v63, 0.0  ;;  %v9533_v31 = vunpack.c.l.b16 %v8439_v45 }
 0x4c4   :  { %v8446_v51 = vrot.slane %v8444_v54, 5  ;;  %v8450_v2 = vshll.u32 %v8398_v42, 16  ;;  %v8017_v43 = vadd.f32 %v16173_v21, %v7968_v25  ;;  %v7971_v54 = vadd.f32 %v16187_v48, %v7922_v27 }
 0x4c5   :  { %v8303_v47 = vsel %vm14583_vm9, %v8155_v58, %v8302_v13  ;;  %v8306_v1 = vsel %vm14511_vm5, %v8156_v41, %v8305_v56  ;;  %v8113_v36 = vpack.c.bf16 %v8097_v46, %v8097_v46  ;;  %v9548_v4 = vpack.c.b16 %v9533_v31, %v9532_v50  ;;  %v13102_v33 = vld [vmem:[#allocation2 + $0x14] sm:$0xf0]  ;;  %v13162_v13 = vld [vmem:[#allocation8 + $0x128] sm:$0xff] }
 0x4c6   :  { %v8639_v61 = vld [vmem:[#allocation2 + $0x18] sm:$0xe]  ;;  %8304 = vst [vmem:[#allocation2 + $0x20] sm:$0xf] %v8303_v47  ;;  %v12404_v35 = vor.u32 %v13102_v33, %v12403_v38  ;;  %v8399_v29 = vld [vmem:[#allocation2 + $0x1c] sm:$0x1]  ;;  %v8447_v16 = vor.u32 %v8446_v51, %v8443_v20  ;;  %v7689_v50 = vadd.f32 %v16022_v9, %v15983_v39  ;;  %v9566_v20 = vunpack.c.l.b16 %v8695_v40  ;;  %10598 = vmatpush.bf16.msra.mxu0 %v13162_v13  ;;  %v16233_v39 = vpop.f32.mrf.mxu1 }
 0x4c7   :  { %v12352_v12 = vrot.slane %v8639_v61, 9  ;;  %8307 = vst [vmem:[#allocation2 + $0x24] sm:$0x1] %v8306_v1  ;;  %v8158_v63 = vshrl.u32 %v8113_v36, 16  ;;  %10457 = vmatmul.bf16.vlgmr.msra.gmra.mxu1 %v9548_v4  ;;  %v8698_v45 = vrot.slane %v8399_v29, 5  ;;  %v8161_v58 = vshll.u32 %v8113_v36, 16  ;;  %v16243_v40 = vpop.f32.mrf.mxu2 }
 0x4c8   :  { %v8065_v41 = vpop.f32.mrf.mxu3  ;;  %v8383_v46 = vld [vmem:[#allocation2 + $0x18] sm:$0xf]  ;;  %v8448_v31 = vrot.slane %v8447_v16, 4  ;;  %v8452_v19 = vrot.slane %v8450_v2, 5  ;;  %v7924_v1 = vadd.f32 %v16196_v53, %v16096_v23  ;;  %v8308_v36 = vld [vmem:[#allocation2 + $0x28] sm:$0xf] }
 0x4c9   :  { %v8160_v42 = vrot.slane %v8158_v63, 7  ;;  %v8066_v56 = vadd.f32 %v8065_v41, %v8017_v43  ;;  %10413 = vmatmul.bf16.gmra.mxu0 %v12404_v35  ;;  %v8699_v21 = vsel %vm14599_vm12, %v12352_v12, %v8698_v45  ;;  %v8455_v25 = vshrl.u32 %v8383_v46, 16  ;;  %v8311_v4 = vld [vmem:[#allocation2 + $0x2c] sm:$0x1]  ;;  %v12435_v2 = vld [vmem:[#allocation2 + $0x18] sm:$0xf] }
 0x4ca   :  { %v9567_v60 = vunpack.c.l.b16 %v8699_v21  ;;  %v8458_v51 = vshll.u32 %v8383_v46, 16  ;;  %v8464_v61 = vshll.u32 %v8399_v29, 16  ;;  %v8453_v63 = vsel %vm13661_vm2, %v8448_v31, %v8452_v19  ;;  %v16249_v46 = vpop.f32.mrf.mxu0 }
 0x4cb   :  { %v8163_v9 = vor.u32 %v8161_v58, %v8160_v42  ;;  %v8164_v48 = vrot.slane %v8160_v42, 4  ;;  %v8098_v27 = vmax.f32 %v8066_v56, 0.0  ;;  %v8457_v47 = vrot.slane %v8455_v25, 4 }
 0x4cc   :  { %v9581_v38 = vpack.c.b16 %v9567_v60, %v9566_v20  ;;  %v8460_v33 = vrot.slane %v8458_v51, 5  ;;  %v7782_v29 = vadd.f32 %v15946_v14, %v16213_v6  ;;  %v7738_v58 = vadd.f32 %v16001_v30, %v7689_v50 }
 0x4cd   :  { %v8309_v35 = vsel %vm14583_vm9, %v8163_v9, %v8308_v36  ;;  %v8312_v12 = vsel %vm14511_vm5, %v8164_v48, %v8311_v4  ;;  %v8114_v16 = vpack.c.bf16 %v8098_v27, %v8098_v27  ;;  %v13110_v43 = vld [vmem:[#allocation2 + $0x1c] sm:$0xf0]  ;;  %v8020_v41 = vadd.f32 %v16192_v17, %v7971_v54  ;;  %v8314_v36 = vld [vmem:[#allocation2 + $0x30] sm:$0xf]  ;;  %v8317_v4 = vld [vmem:[#allocation2 + $0x34] sm:$0x1] }
 0x4ce   :  { %8310 = vst [vmem:[#allocation2 + $0x28] sm:$0xf] %v8309_v35  ;;  %v12436_v23 = vor.u32 %v13110_v43, %v12435_v2  ;;  %v8461_v53 = vor.u32 %v8460_v33, %v8457_v47  ;;  %v8640_v45 = vld [vmem:[#allocation2 + $0x20] sm:$0xe]  ;;  %v16251_v42 = vld [vmem:[#allocation2 + $0x24] sm:$0x1]  ;;  %v7973_v31 = vadd.f32 %v16208_v18, %v7924_v1  ;;  %v9534_v20 = vunpack.c.l.b16 %v8453_v63 }
 0x4cf   :  { %8313 = vst [vmem:[#allocation2 + $0x2c] sm:$0x1] %v8312_v12  ;;  %v8166_v13 = vshrl.u32 %v8114_v16, 16  ;;  %10511 = vmatmul.bf16.gmra.mxu2 %v9581_v38  ;;  %v8466_v25 = vrot.slane %v8464_v61, 5  ;;  %v8384_v60 = vld [vmem:[#allocation2 + $0x20] sm:$0xf]  ;;  %v7831_v47 = vadd.f32 %v15966_v44, %v7782_v29  ;;  %v7927_v1 = vadd.f32 %v16219_v57, %v16100_v8  ;;  %v16260_v61 = vpop.f32.mrf.mxu1 }
 0x4d0   :  { %v8068_v56 = vpop.f32.mrf.mxu3  ;;  %10560 = vmatmul.bf16.gmra.mxu3 %v12436_v23  ;;  %v8462_v21 = vrot.slane %v8461_v53, 4  ;;  %v8169_v6 = vshll.u32 %v8114_v16, 16  ;;  %v8469_v50 = vshrl.u32 %v8384_v60, 16  ;;  %v12353_v54 = vrot.slane %v8640_v45, 9  ;;  %v12407_v43 = vld [vmem:[#allocation2 + $0x20] sm:$0xf] }
 0x4d1   :  { %v8168_v14 = vrot.slane %v8166_v13, 7  ;;  %v8069_v30 = vadd.f32 %v8068_v56, %v8020_v41  ;;  %v8702_v19 = vrot.slane %v16251_v42, 5  ;;  %v8472_v51 = vshll.u32 %v8384_v60, 16 }
 0x4d2   :  { %v8467_v17 = vsel %vm13661_vm2, %v8462_v21, %v8466_v25  ;;  %v8471_v38 = vrot.slane %v8469_v50, 4  ;;  %v7787_v23 = vadd.f32 %v15989_v10, %v7738_v58  ;;  %v8022_v29 = vadd.f32 %v16217_v3, %v7973_v31  ;;  %v7931_v3 = vpop.f32.mrf.mxu0 }
 0x4d3   :  { %v8171_v9 = vor.u32 %v8169_v6, %v8168_v14  ;;  %v8172_v48 = vrot.slane %v8168_v14, 4  ;;  %v8099_v18 = vmax.f32 %v8069_v30, 0.0  ;;  %v9535_v27 = vunpack.c.l.b16 %v8467_v17  ;;  %v13161_v6 = vld [vmem:[#allocation8 + $0x120] sm:$0xff] }
 0x4d4   :  { %v8474_v33 = vrot.slane %v8472_v51, 5  ;;  %v8703_v13 = vsel %vm14599_vm12, %v12353_v54, %v8702_v19  ;;  %v7880_v21 = vadd.f32 %v16107_v32, %v7831_v47  ;;  %v7976_v25 = vadd.f32 %v16233_v39, %v7927_v1  ;;  %10599 = vmatpush.bf16.msra.mxu0 %v13161_v6 }
 0x4d5   :  { %v8315_v35 = vsel %vm14583_vm9, %v8171_v9, %v8314_v36  ;;  %v8318_v12 = vsel %vm14511_vm5, %v8172_v48, %v8317_v4  ;;  %v8115_v16 = vpack.c.bf16 %v8099_v18, %v8099_v18  ;;  %v9549_v2 = vpack.c.b16 %v9535_v27, %v9534_v20  ;;  %v13103_v63 = vld [vmem:[#allocation2 + $0x24] sm:$0xf0]  ;;  %v16272_v20 = vpop.f32.mrf.mxu2  ;;  %v8320_v48 = vld [vmem:[#allocation2 + $0x38] sm:$0xf] }
 0x4d6   :  { %v8641_v44 = vld [vmem:[#allocation2 + $0x28] sm:$0xe]  ;;  %8316 = vst [vmem:[#allocation2 + $0x30] sm:$0xf] %v8315_v35  ;;  %v12408_v8 = vor.u32 %v13103_v63, %v12407_v43  ;;  %v8401_v57 = vld [vmem:[#allocation2 + $0x2c] sm:$0x1]  ;;  %v8475_v45 = vor.u32 %v8474_v33, %v8471_v38  ;;  %v9568_v54 = vunpack.c.l.b16 %v8703_v13  ;;  %v7836_v43 = vadd.f32 %v16003_v22, %v7787_v23 }
 0x4d7   :  { %v12354_v53 = vrot.slane %v8641_v44, 9  ;;  %8319 = vst [vmem:[#allocation2 + $0x34] sm:$0x1] %v8318_v12  ;;  %v8174_v41 = vshrl.u32 %v8115_v16, 16  ;;  %10462 = vmatmul.bf16.gmra.mxu1 %v9549_v2  ;;  %v8706_v56 = vrot.slane %v8401_v57, 5  ;;  %v8177_v10 = vshll.u32 %v8115_v16, 16 }
 0x4d8   :  { %v8070_v58 = vpop.f32.mrf.mxu3  ;;  %v8385_v60 = vld [vmem:[#allocation2 + $0x28] sm:$0xf]  ;;  %v8478_v14 = vshll.u32 %v16251_v42, 16  ;;  %v8476_v19 = vrot.slane %v8475_v45, 4  ;;  %v8323_v42 = vld [vmem:[#allocation2 + $0x3c] sm:$0x1]  ;;  %v7929_v63 = vadd.f32 %v16249_v46, %v7880_v21 }
 0x4d9   :  { %v8176_v31 = vrot.slane %v8174_v41, 7  ;;  %v8071_v30 = vadd.f32 %v8070_v58, %v8022_v29  ;;  %10418 = vmatmul.bf16.gmra.mxu0 %v12408_v8  ;;  %v8707_v50 = vsel %vm14599_vm12, %v12354_v53, %v8706_v56  ;;  %v8483_v17 = vshrl.u32 %v8385_v60, 16  ;;  %v12439_v12 = vld [vmem:[#allocation2 + $0x28] sm:$0xf]  ;;  %v7980_v41 = vpop.f32.mrf.mxu1 }
 0x4da   :  { %v9569_v32 = vunpack.c.l.b16 %v8707_v50  ;;  %v8486_v39 = vshll.u32 %v8385_v60, 16  ;;  %v8480_v1 = vrot.slane %v8478_v14, 5  ;;  %v8492_v4 = vshll.u32 %v8401_v57, 16  ;;  %v16288_v57 = vld [vmem:[%s16844_s11] ss:$0 sm:$0xff] }
 0x4db   :  { %v8179_v51 = vor.u32 %v8177_v10, %v8176_v31  ;;  %v8180_v9 = vrot.slane %v8176_v31, 4  ;;  %v8100_v18 = vmax.f32 %v8071_v30, 0.0  ;;  %v8485_v27 = vrot.slane %v8483_v17, 4  ;;  %v7933_v17 = vpop.f32.mrf.mxu0 }
 0x4dc   :  { %v9582_v47 = vpack.c.b16 %v9569_v32, %v9568_v54  ;;  %v8488_v36 = vrot.slane %v8486_v39, 5  ;;  %v7694_v45 = vadd.f32 %v16288_v57, %v16025_v34  ;;  %v8025_v29 = vadd.f32 %v16243_v40, %v7976_v25 }
 0x4dd   :  { %v8321_v38 = vsel %vm14583_vm9, %v8179_v51, %v8320_v48  ;;  %v8324_v33 = vsel %vm14511_vm5, %v8180_v9, %v8323_v42  ;;  %v8116_v35 = vpack.c.bf16 %v8100_v18, %v8100_v18  ;;  %v13111_v16 = vld [vmem:[#allocation2 + $0x2c] sm:$0xf0]  ;;  %v8481_v46 = vsel %vm13661_vm2, %v8476_v19, %v8480_v1  ;;  %v16297_v25 = vpop.f32.mrf.mxu2  ;;  %v8326_v9 = vld [vmem:[#allocation2 + $0x40] sm:$0xf]  ;;  %v8329_v48 = vld [vmem:[#allocation2 + $0x44] sm:$0x1] }
 0x4de   :  { %v8642_v2 = vld [vmem:[#allocation2 + $0x30] sm:$0xe]  ;;  %8322 = vst [vmem:[#allocation2 + $0x38] sm:$0xf] %v8321_v38  ;;  %v12440_v44 = vor.u32 %v13111_v16, %v12439_v12  ;;  %v8489_v8 = vor.u32 %v8488_v36, %v8485_v27  ;;  %v16283_v53 = vld [vmem:[#allocation2 + $0x34] sm:$0x1]  ;;  %v7978_v40 = vadd.f32 %v16260_v61, %v7929_v63  ;;  %v9536_v30 = vunpack.c.l.b16 %v8481_v46 }
 0x4df   :  { %8325 = vst [vmem:[#allocation2 + $0x3c] sm:$0x1] %v8324_v33  ;;  %v8182_v22 = vshrl.u32 %v8116_v35, 16  ;;  %10516 = vmatmul.bf16.gmra.mxu2 %v9582_v47  ;;  %v8494_v56 = vrot.slane %v8492_v4, 5  ;;  %v12355_v21 = vrot.slane %v8642_v2, 9  ;;  %v8710_v10 = vrot.slane %v16283_v53, 5 }
 0x4e0   :  { %v8073_v23 = vpop.f32.mrf.mxu3  ;;  %10565 = vmatmul.bf16.gmra.mxu3 %v12440_v44  ;;  %v8490_v13 = vrot.slane %v8489_v8, 4  ;;  %v8386_v58 = vld [vmem:[#allocation2 + $0x30] sm:$0xf]  ;;  %v8185_v14 = vshll.u32 %v8116_v35, 16  ;;  %v7932_v51 = vadd.f32 %v7931_v3, %v16115_v24  ;;  %v7743_v24 = vadd.f32 %v16036_v0, %v7694_v45  ;;  %v13160_v45 = vld [vmem:[#allocation8 + $0x118] sm:$0xff] }
 0x4e1   :  { %v8184_v60 = vrot.slane %v8182_v22, 7  ;;  %v8074_v34 = vadd.f32 %v8073_v23, %v8025_v29  ;;  %v8497_v6 = vshrl.u32 %v8386_v58, 16  ;;  %v8500_v50 = vshll.u32 %v8386_v58, 16  ;;  %v12411_v4 = vld [vmem:[#allocation2 + $0x30] sm:$0xf]  ;;  %10600 = vmatpush.bf16.msra.mxu0 %v13160_v45 }
 0x4e2   :  { %v8495_v31 = vsel %vm13661_vm2, %v8490_v13, %v8494_v56  ;;  %v8711_v18 = vsel %vm14599_vm12, %v12355_v21, %v8710_v10  ;;  %v8027_v2 = vadd.f32 %v16272_v20, %v7978_v40  ;;  %v7885_v63 = vadd.f32 %v16124_v55, %v7836_v43  ;;  %v7982_v56 = vpop.f32.mrf.mxu1 }
 0x4e3   :  { %v8187_v54 = vor.u32 %v8185_v14, %v8184_v60  ;;  %v8188_v32 = vrot.slane %v8184_v60, 4  ;;  %v8101_v19 = vmax.f32 %v8074_v34, 0.0  ;;  %v9537_v39 = vunpack.c.l.b16 %v8495_v31 }
 0x4e4   :  { %v8499_v61 = vrot.slane %v8497_v6, 4  ;;  %v8502_v27 = vrot.slane %v8500_v50, 5  ;;  %v7981_v29 = vadd.f32 %v7980_v41, %v7932_v51  ;;  %v9570_v23 = vunpack.c.l.b16 %v8711_v18  ;;  %v8332_v6 = vld [vmem:[#allocation2 + $0x58] sm:$0xf]  ;;  %v8335_v50 = vld [vmem:[#allocation2 + $0x5c] sm:$0x1] }
 0x4e5   :  { %v8327_v42 = vsel %vm14583_vm9, %v8187_v54, %v8326_v9  ;;  %v8330_v47 = vsel %vm14511_vm5, %v8188_v32, %v8329_v48  ;;  %v8117_v1 = vpack.c.bf16 %v8101_v19, %v8101_v19  ;;  %v9550_v36 = vpack.c.b16 %v9537_v39, %v9536_v30  ;;  %v13104_v38 = vld [vmem:[#allocation2 + $0x34] sm:$0xf0]  ;;  %v8031_v30 = vpop.f32.mrf.mxu2  ;;  %v8644_v19 = vld [vmem:[#allocation2 + $0x50] sm:$0xe]  ;;  %v7936_v39 = vpop.f32.mrf.mxu0 }
 0x4e6   :  { %v8643_v33 = vld [vmem:[#allocation2 + $0x38] sm:$0xe]  ;;  %8331 = vst [vmem:[#allocation2 + $0x44] sm:$0x1] %v8330_v47  ;;  %v12412_v3 = vor.u32 %v13104_v38, %v12411_v4  ;;  %v8403_v35 = vld [vmem:[#allocation2 + $0x3c] sm:$0x1]  ;;  %v8503_v16 = vor.u32 %v8502_v27, %v8499_v61 }
 0x4e7   :  { %v12356_v12 = vrot.slane %v8643_v33, 9  ;;  %8328 = vst [vmem:[#allocation2 + $0x40] sm:$0xf] %v8327_v42  ;;  %v8190_v44 = vshrl.u32 %v8117_v1, 16  ;;  %10467 = vmatmul.bf16.gmra.mxu1 %v9550_v36  ;;  %v8714_v8 = vrot.slane %v8403_v35, 5  ;;  %v8193_v22 = vshll.u32 %v8117_v1, 16 }
 0x4e8   :  { %v8075_v46 = vpop.f32.mrf.mxu3  ;;  %v8387_v13 = vld [vmem:[#allocation2 + $0x38] sm:$0xf]  ;;  %v8506_v0 = vshll.u32 %v16283_v53, 16  ;;  %v8504_v58 = vrot.slane %v8503_v16, 4  ;;  %v8520_v14 = vshll.u32 %v8403_v35, 16  ;;  %v7934_v53 = vadd.f32 %v7933_v17, %v7885_v63 }
 0x4e9   :  { %v8192_v21 = vrot.slane %v8190_v44, 7  ;;  %v8076_v10 = vadd.f32 %v8075_v46, %v8027_v2  ;;  %10423 = vmatmul.bf16.gmra.mxu0 %v12412_v3  ;;  %v8715_v20 = vsel %vm14599_vm12, %v12356_v12, %v8714_v8  ;;  %v8511_v55 = vshrl.u32 %v8387_v13, 16  ;;  %v12443_v18 = vld [vmem:[#allocation2 + $0x38] sm:$0xf]  ;;  %v16318_v27 = vld [vmem:[#allocation2 + $0x54] sm:$0x1] }
 0x4ea   :  { %v9571_v43 = vunpack.c.l.b16 %v8715_v20  ;;  %v8514_v60 = vshll.u32 %v8387_v13, 16  ;;  %v8508_v61 = vrot.slane %v8506_v0, 5  ;;  %v7792_v42 = vadd.f32 %v16034_v15, %v7743_v24  ;;  %v8388_v35 = vld [vmem:[#allocation2 + $0x50] sm:$0xf]  ;;  %v7985_v13 = vpop.f32.mrf.mxu1 }
 0x4eb   :  { %v8195_v41 = vor.u32 %v8193_v22, %v8192_v21  ;;  %v8196_v34 = vrot.slane %v8192_v21, 4  ;;  %v8102_v40 = vmax.f32 %v8076_v10, 0.0  ;;  %v8513_v31 = vrot.slane %v8511_v55, 4  ;;  %v8338_v21 = vld [vmem:[#allocation2 + $0x60] sm:$0xf] }
 0x4ec   :  { %v9583_v54 = vpack.c.b16 %v9571_v43, %v9570_v23  ;;  %v8516_v32 = vrot.slane %v8514_v60, 5  ;;  %v8030_v17 = vadd.f32 %v16297_v25, %v7981_v29  ;;  %v8522_v36 = vrot.slane %v8520_v14, 5  ;;  %v8341_v55 = vld [vmem:[#allocation2 + $0x64] sm:$0x1]  ;;  %v12415_v43 = vld [vmem:[#allocation2 + $0x50] sm:$0xf] }
 0x4ed   :  { %v8333_v51 = vsel %vm14583_vm9, %v8195_v41, %v8332_v6  ;;  %v8336_v9 = vsel %vm14511_vm5, %v8196_v34, %v8335_v50  ;;  %v8118_v48 = vpack.c.bf16 %v8102_v40, %v8102_v40  ;;  %v8509_v33 = vsel %vm13661_vm2, %v8504_v58, %v8508_v61 }
 0x4ee   :  { %8337 = vst [vmem:[#allocation2 + $0x5c] sm:$0x1] %v8336_v9  ;;  %v13112_v47 = vld [vmem:[#allocation2 + $0x3c] sm:$0xf0]  ;;  %v8517_v1 = vor.u32 %v8516_v32, %v8513_v31  ;;  %v12357_v3 = vrot.slane %v8644_v19, 9  ;;  %v8718_v2 = vrot.slane %v16318_v27, 5  ;;  %v7983_v25 = vadd.f32 %v7982_v56, %v7934_v53 }
 0x4ef   :  { %8334 = vst [vmem:[#allocation2 + $0x58] sm:$0xf] %v8333_v51  ;;  %v8198_v4 = vshrl.u32 %v8118_v48, 16  ;;  %10521 = vmatmul.bf16.gmra.mxu2 %v9583_v54  ;;  %v12444_v38 = vor.u32 %v13112_v47, %v12443_v18  ;;  %v8525_v15 = vshrl.u32 %v8388_v35, 16  ;;  %v8528_v24 = vshll.u32 %v8388_v35, 16  ;;  %v8034_v54 = vpop.f32.mrf.mxu2  ;;  %v7938_v51 = vpop.f32.mrf.mxu0 }
 0x4f0   :  { %v8078_v12 = vpop.f32.mrf.mxu3  ;;  %v8518_v16 = vrot.slane %v8517_v1, 4  ;;  %v8201_v44 = vshll.u32 %v8118_v48, 16  ;;  %v9538_v22 = vunpack.c.l.b16 %v8509_v33  ;;  %v8719_v56 = vsel %vm14599_vm12, %v12357_v3, %v8718_v2 }
 0x4f1   :  { %v8200_v63 = vrot.slane %v8198_v4, 7  ;;  %v8079_v8 = vadd.f32 %v8078_v12, %v8030_v17  ;;  %10570 = vmatmul.bf16.gmra.mxu3 %v12444_v38  ;;  %v8527_v46 = vrot.slane %v8525_v15, 4  ;;  %v8530_v23 = vrot.slane %v8528_v24, 5 }
 0x4f2   :  { %v8523_v29 = vsel %vm13661_vm2, %v8518_v16, %v8522_v36  ;;  %v8534_v60 = vshll.u32 %v16318_v27, 16  ;;  %v7841_v31 = vadd.f32 %v16039_v26, %v7792_v42  ;;  %v8032_v53 = vadd.f32 %v8031_v30, %v7983_v25  ;;  %v13159_v27 = vld [vmem:[#allocation8 + $0x110] sm:$0xff]  ;;  %v8344_v25 = vld [vmem:[#allocation2 + $0x68] sm:$0xf] }
 0x4f3   :  { %v8203_v0 = vor.u32 %v8201_v44, %v8200_v63  ;;  %v8204_v45 = vrot.slane %v8200_v63, 4  ;;  %v8103_v10 = vmax.f32 %v8079_v8, 0.0  ;;  %v9539_v20 = vunpack.c.l.b16 %v8523_v29  ;;  %10601 = vmatpush.bf16.msra.mxu0 %v13159_v27  ;;  %v8347_v63 = vld [vmem:[#allocation2 + $0x6c] sm:$0x1] }
 0x4f4   :  { %v8531_v58 = vor.u32 %v8530_v23, %v8527_v46  ;;  %v7937_v50 = vadd.f32 %v7936_v39, %v16129_v62  ;;  %v9572_v61 = vunpack.c.l.b16 %v8719_v56  ;;  %v8536_v30 = vrot.slane %v8534_v60, 5 }
 0x4f5   :  { %v8339_v14 = vsel %vm14583_vm9, %v8203_v0, %v8338_v21  ;;  %v8342_v41 = vsel %vm14511_vm5, %v8204_v45, %v8341_v55  ;;  %v8119_v34 = vpack.c.bf16 %v8103_v10, %v8103_v10  ;;  %v9551_v6 = vpack.c.b16 %v9539_v20, %v9538_v22  ;;  %v8405_v40 = vld [vmem:[#allocation2 + $0x5c] sm:$0x1] }
 0x4f6   :  { %8340 = vst [vmem:[#allocation2 + $0x60] sm:$0xf] %v8339_v14  ;;  %v13105_v32 = vld [vmem:[#allocation2 + $0x54] sm:$0xf0]  ;;  %v8722_v1 = vrot.slane %v8405_v40, 5  ;;  %v8532_v26 = vrot.slane %v8531_v58, 4  ;;  %v7699_v38 = vadd.f32 %v16288_v57, %v16050_v37  ;;  %v7986_v33 = vadd.f32 %v7985_v13, %v7937_v50  ;;  %v7987_v37 = vpop.f32.mrf.mxu1 }
 0x4f7   :  { %v8645_v19 = vld [vmem:[#allocation2 + $0x58] sm:$0xe]  ;;  %8343 = vst [vmem:[#allocation2 + $0x64] sm:$0x1] %v8342_v41  ;;  %v8206_v9 = vshrl.u32 %v8119_v34, 16  ;;  %10472 = vmatmul.bf16.gmra.mxu1 %v9551_v6  ;;  %v12416_v48 = vor.u32 %v13105_v32, %v12415_v43  ;;  %v8209_v17 = vshll.u32 %v8119_v34, 16  ;;  %v7890_v24 = vadd.f32 %v16135_v28, %v7841_v31  ;;  %v8036_v60 = vpop.f32.mrf.mxu2 }
 0x4f8   :  { %v12358_v18 = vrot.slane %v8645_v19, 9  ;;  %v8080_v47 = vpop.f32.mrf.mxu3  ;;  %v8389_v36 = vld [vmem:[#allocation2 + $0x58] sm:$0xf]  ;;  %v8548_v35 = vshll.u32 %v8405_v40, 16  ;;  %v8537_v44 = vsel %vm13661_vm2, %v8532_v26, %v8536_v30  ;;  %v7748_v28 = vadd.f32 %v16109_v49, %v7699_v38  ;;  %v7941_v49 = vpop.f32.mrf.mxu0  ;;  %v8353_v26 = vld [vmem:[#allocation2 + $0x74] sm:$0x1] }
 0x4f9   :  { %v8208_v42 = vrot.slane %v8206_v9, 7  ;;  %v8081_v62 = vadd.f32 %v8080_v47, %v8032_v53  ;;  %10428 = vmatmul.bf16.gmra.mxu0 %v12416_v48  ;;  %v8539_v39 = vshrl.u32 %v8389_v36, 16  ;;  %v8542_v4 = vshll.u32 %v8389_v36, 16  ;;  %v12447_v13 = vld [vmem:[#allocation2 + $0x58] sm:$0xf]  ;;  %v16918_v47 = vld [vmem:[#allocation30_spill] sm:$0xff] }
 0x4fa   :  { %v8723_v3 = vsel %vm14599_vm12, %v12358_v18, %v8722_v1  ;;  %v7939_v21 = vadd.f32 %v7938_v51, %v7890_v24  ;;  %v8035_v43 = vadd.f32 %v8034_v54, %v7986_v33  ;;  %v8550_v58 = vrot.slane %v8548_v35, 5  ;;  %v8350_v36 = vld [vmem:[#allocation2 + $0x70] sm:$0xf]  ;;  %v16919_v24 = vld [vmem:[#allocation29_spill] sm:$0xff] }
 0x4fb   :  { %v8211_v12 = vor.u32 %v8209_v17, %v8208_v42  ;;  %v8212_v16 = vrot.slane %v8208_v42, 4  ;;  %v8104_v2 = vmax.f32 %v8081_v62, 0.0  ;;  %v9573_v15 = vunpack.c.l.b16 %v8723_v3 }
 0x4fc   :  { %v8541_v8 = vrot.slane %v8539_v39, 4  ;;  %v8544_v29 = vrot.slane %v8542_v4, 5  ;;  %v9540_v34 = vunpack.c.l.b16 %v8537_v44  ;;  %v7797_v54 = vadd.f32 %v16112_v7, %v7748_v28 }
 0x4fd   :  { %v8345_v57 = vsel %vm14583_vm9, %v8211_v12, %v8344_v25  ;;  %v8348_v22 = vsel %vm14511_vm5, %v8212_v16, %v8347_v63  ;;  %v8120_v46 = vpack.c.bf16 %v8104_v2, %v8104_v2  ;;  %v9584_v23 = vpack.c.b16 %v9573_v15, %v9572_v61  ;;  %v13113_v0 = vld [vmem:[#allocation2 + $0x5c] sm:$0xf0] }
 0x4fe   :  { %v8646_v45 = vld [vmem:[#allocation2 + $0x60] sm:$0xe]  ;;  %8346 = vst [vmem:[#allocation2 + $0x68] sm:$0xf] %v8345_v57  ;;  %v12448_v10 = vor.u32 %v13113_v0, %v12447_v13  ;;  %v8545_v20 = vor.u32 %v8544_v29, %v8541_v8  ;;  %v16348_v55 = vld [vmem:[#allocation2 + $0x64] sm:$0x1]  ;;  %v7988_v51 = vadd.f32 %v7987_v37, %v7939_v21  ;;  %v7942_v1 = vadd.f32 %v7941_v49, %v16918_v47  ;;  %v7990_v63 = vpop.f32.mrf.mxu1 }
 0x4ff   :  { %8349 = vst [vmem:[#allocation2 + $0x6c] sm:$0x1] %v8348_v22  ;;  %v8214_v56 = vshrl.u32 %v8120_v46, 16  ;;  %10526 = vmatmul.bf16.gmra.mxu2 %v9584_v23  ;;  %v12359_v6 = vrot.slane %v8646_v45, 9  ;;  %v8726_v40 = vrot.slane %v16348_v55, 5  ;;  %v8217_v50 = vshll.u32 %v8120_v46, 16 }
 0x500   :  { %v8083_v14 = vpop.f32.mrf.mxu3  ;;  %v8546_v41 = vrot.slane %v8545_v20, 4  ;;  %v8390_v31 = vld [vmem:[#allocation2 + $0x60] sm:$0xf]  ;;  %v7846_v25 = vadd.f32 %v16919_v24, %v7797_v54  ;;  %v8037_v44 = vadd.f32 %v8036_v60, %v7988_v51  ;;  %v7991_v37 = vadd.f32 %v7990_v63, %v7942_v1  ;;  %v13158_v0 = vld [vmem:[#allocation8 + $0x108] sm:$0xff]  ;;  %v13180_v45 = vld [vmem:[#allocation8 + $0x1b8] sm:$0xff] }
 0x501   :  { %v8216_v53 = vrot.slane %v8214_v56, 7  ;;  %v8084_v32 = vadd.f32 %v8083_v14, %v8035_v43  ;;  %10575 = vmatmul.bf16.gmra.mxu3 %v12448_v10  ;;  %v8553_v19 = vshrl.u32 %v8390_v31, 16  ;;  %v8556_v48 = vshll.u32 %v8390_v31, 16  ;;  %v12419_v33 = vld [vmem:[#allocation2 + $0x60] sm:$0xf]  ;;  %v13188_v43 = vld [vmem:[#allocation8 + $0x1f8] sm:$0xff]  ;;  %10602 = vmatpush.bf16.msra.mxu0 %v13158_v0 }
 0x502   :  { %v8551_v9 = vsel %vm13661_vm2, %v8546_v41, %v8550_v58  ;;  %v8727_v30 = vsel %vm14599_vm12, %v12359_v6, %v8726_v40  ;;  %v8562_v13 = vshll.u32 %v16348_v55, 16  ;;  %v13172_v56 = vld [vmem:[#allocation8 + $0x178] sm:$0xff]  ;;  %v8039_v58 = vpop.f32.mrf.mxu2  ;;  %10694 = vmatpush.bf16.msrb.mxu2 %v13180_v45  ;;  %v13179_v55 = vld [vmem:[#allocation8 + $0x1b0] sm:$0xff]  ;;  %v13157_v6 = vld [vmem:[#allocation8 + $0x100] sm:$0xff]  ;;  %v7943_v40 = vpop.f32.mrf.mxu0  ;;  %10743 = vmatpush.bf16.msrb.mxu3 %v13188_v43 }
 0x503   :  { %v8219_v18 = vor.u32 %v8217_v50, %v8216_v53  ;;  %v8220_v61 = vrot.slane %v8216_v53, 4  ;;  %v8105_v27 = vmax.f32 %v8084_v32, 0.0  ;;  %v9541_v17 = vunpack.c.l.b16 %v8551_v9  ;;  %v8356_v53 = vld [vmem:[#allocation2 + $0x78] sm:$0xf]  ;;  %10645 = vmatpush.bf16.msrb.mxu1 %v13172_v56  ;;  %v16920_v54 = vld [vmem:[#allocation31_spill] sm:$0xff]  ;;  %v13170_v63 = vld [vmem:[#allocation8 + $0x168] sm:$0xff] }
 0x504   :  { %v8555_v42 = vrot.slane %v8553_v19, 4  ;;  %v8558_v62 = vrot.slane %v8556_v48, 5  ;;  %v9574_v46 = vunpack.c.l.b16 %v8727_v30  ;;  %v13187_v19 = vld [vmem:[#allocation8 + $0x1f0] sm:$0xff]  ;;  %v7895_v51 = vadd.f32 %v16920_v54, %v7846_v25  ;;  %v8359_v9 = vld [vmem:[#allocation2 + $0x7c] sm:$0x1]  ;;  %v13177_v0 = vld [vmem:[#allocation8 + $0x1a0] sm:$0xff] }
 0x505   :  { %v8351_v7 = vsel %vm14583_vm9, %v8219_v18, %v8350_v36  ;;  %v8354_v39 = vsel %vm14511_vm5, %v8220_v61, %v8353_v26  ;;  %v8121_v4 = vpack.c.bf16 %v8105_v27, %v8105_v27  ;;  %v9552_v38 = vpack.c.b16 %v9541_v17, %v9540_v34  ;;  %v13106_v3 = vld [vmem:[#allocation2 + $0x64] sm:$0xf0]  ;;  %v13171_v27 = vld [vmem:[#allocation8 + $0x170] sm:$0xff]  ;;  %10603 = vmatpush.bf16.msra.mxu0 %v13157_v6  ;;  %v13185_v43 = vld [vmem:[#allocation8 + $0x1e0] sm:$0xff] }
 0x506   :  { %v8647_v35 = vld [vmem:[#allocation2 + $0x68] sm:$0xe]  ;;  %8352 = vst [vmem:[#allocation2 + $0x70] sm:$0xf] %v8351_v7  ;;  %v12420_v12 = vor.u32 %v13106_v3, %v12419_v33  ;;  %v16361_v16 = vld [vmem:[#allocation2 + $0x6c] sm:$0x1]  ;;  %v8559_v15 = vor.u32 %v8558_v62, %v8555_v42  ;;  %v7944_v42 = vadd.f32 %v7943_v40, %v7895_v51  ;;  %10695 = vmatpush.bf16.msrb.mxu2 %v13179_v55 }
 0x507   :  { %v12360_v2 = vrot.slane %v8647_v35, 9  ;;  %8355 = vst [vmem:[#allocation2 + $0x74] sm:$0x1] %v8354_v39  ;;  %v8222_v8 = vshrl.u32 %v8121_v4, 16  ;;  %10477 = vmatmul.bf16.gmra.mxu1 %v9552_v38  ;;  %v8730_v29 = vrot.slane %v16361_v16, 5  ;;  %v8225_v57 = vshll.u32 %v8121_v4, 16  ;;  %10744 = vmatpush.bf16.msrb.mxu3 %v13187_v19 }
 0x508   :  { %v8085_v22 = vpop.f32.mrf.mxu3  ;;  %v8391_v23 = vld [vmem:[#allocation2 + $0x68] sm:$0xf]  ;;  %v8560_v14 = vrot.slane %v8559_v15, 4  ;;  %v8576_v34 = vshll.u32 %v16361_v16, 16  ;;  %v8564_v18 = vrot.slane %v8562_v13, 5  ;;  %v8040_v38 = vadd.f32 %v8039_v58, %v7991_v37  ;;  %10646 = vmatpush.bf16.msrb.mxu1 %v13171_v27  ;;  %v13184_v27 = vld [vmem:[#allocation8 + $0x1d8] sm:$0xff] }
 0x509   :  { %v8224_v28 = vrot.slane %v8222_v8, 7  ;;  %v8086_v21 = vadd.f32 %v8085_v22, %v8037_v44  ;;  %10433 = vmatmul.bf16.gmra.mxu0 %v12420_v12  ;;  %v8731_v10 = vsel %vm14599_vm12, %v12360_v2, %v8730_v29  ;;  %v8567_v20 = vshrl.u32 %v8391_v23, 16  ;;  %v12451_v36 = vld [vmem:[#allocation2 + $0x68] sm:$0xf]  ;;  %v7992_v44 = vpop.f32.mrf.mxu1  ;;  %v8365_v58 = vld [vmem:[#allocation2 + $0x84] sm:$0x1] }
 0x50a   :  { %v9575_v60 = vunpack.c.l.b16 %v8731_v10  ;;  %v8570_v41 = vshll.u32 %v8391_v23, 16  ;;  %v13178_v4 = vld [vmem:[#allocation8 + $0x1a8] sm:$0xff]  ;;  %v8565_v3 = vsel %vm13661_vm2, %v8560_v14, %v8564_v18  ;;  %v8578_v35 = vrot.slane %v8576_v34, 5  ;;  %v8041_v56 = vpop.f32.mrf.mxu2  ;;  %v13169_v34 = vld [vmem:[#allocation8 + $0x160] sm:$0xff] }
 0x50b   :  { %v8227_v31 = vor.u32 %v8225_v57, %v8224_v28  ;;  %v8228_v49 = vrot.slane %v8224_v28, 4  ;;  %v8106_v50 = vmax.f32 %v8086_v21, 0.0  ;;  %v8569_v32 = vrot.slane %v8567_v20, 4  ;;  %v13186_v12 = vld [vmem:[#allocation8 + $0x1e8] sm:$0xff]  ;;  %10696 = vmatpush.bf16.msrb.mxu2 %v13178_v4  ;;  %v8362_v21 = vld [vmem:[#allocation2 + $0x80] sm:$0xf] }
 0x50c   :  { %v9585_v48 = vpack.c.b16 %v9575_v60, %v9574_v46  ;;  %v8572_v61 = vrot.slane %v8570_v41, 5  ;;  %v7993_v22 = vadd.f32 %v7992_v44, %v7944_v42  ;;  %v9542_v23 = vunpack.c.l.b16 %v8565_v3  ;;  %10745 = vmatpush.bf16.msrb.mxu3 %v13186_v12  ;;  %10647 = vmatpush.bf16.msrb.mxu1 %v13170_v63  ;;  %v13183_v63 = vld [vmem:[#allocation8 + $0x1d0] sm:$0xff]  ;;  %v8748_v44 = vld [vmem:[#allocation2 + $0x8] sm:$0xf] }
 0x50d   :  { %v8357_v17 = vsel %vm14583_vm9, %v8227_v31, %v8356_v53  ;;  %v8360_v47 = vsel %vm14511_vm5, %v8228_v49, %v8359_v9  ;;  %v8122_v1 = vpack.c.bf16 %v8106_v50, %v8106_v50  ;;  %v13114_v26 = vld [vmem:[#allocation2 + $0x6c] sm:$0xf0]  ;;  %v13176_v9 = vld [vmem:[#allocation8 + $0x198] sm:$0xff] }
 0x50e   :  { %v8648_v30 = vld [vmem:[#allocation2 + $0x70] sm:$0xe]  ;;  %8358 = vst [vmem:[#allocation2 + $0x78] sm:$0xf] %v8357_v17  ;;  %v12452_v62 = vor.u32 %v13114_v26, %v12451_v36  ;;  %v8573_v7 = vor.u32 %v8572_v61, %v8569_v32  ;;  %v16374_v39 = vld [vmem:[#allocation2 + $0x74] sm:$0x1] }
 0x50f   :  { %8361 = vst [vmem:[#allocation2 + $0x7c] sm:$0x1] %v8360_v47  ;;  %v8230_v33 = vshrl.u32 %v8122_v1, 16  ;;  %10531 = vmatmul.bf16.gmra.mxu2 %v9585_v48  ;;  %v12361_v15 = vrot.slane %v8648_v30, 9  ;;  %v8734_v24 = vrot.slane %v16374_v39, 5  ;;  %v8233_v29 = vshll.u32 %v8122_v1, 16 }
 0x510   :  { %v8088_v16 = vpop.f32.mrf.mxu3  ;;  %v8574_v2 = vrot.slane %v8573_v7, 4  ;;  %v8392_v25 = vld [vmem:[#allocation2 + $0x70] sm:$0xf]  ;;  %10697 = vmatpush.bf16.msrb.mxu2 %v13177_v0  ;;  %v8042_v48 = vadd.f32 %v8041_v56, %v7993_v22  ;;  %10746 = vmatpush.bf16.msrb.mxu3 %v13185_v43  ;;  %v8590_v26 = vshll.u32 %v16374_v39, 16  ;;  %v13168_v30 = vld [vmem:[#allocation8 + $0x158] sm:$0xff] }
 0x511   :  { %v8232_v8 = vrot.slane %v8230_v33, 7  ;;  %v8089_v37 = vadd.f32 %v8088_v16, %v8040_v38  ;;  %10580 = vmatmul.bf16.gmra.mxu3 %v12452_v62  ;;  %v8581_v57 = vshrl.u32 %v8392_v25, 16  ;;  %v8584_v13 = vshll.u32 %v8392_v25, 16  ;;  %v12423_v49 = vld [vmem:[#allocation2 + $0x70] sm:$0xf]  ;;  %10648 = vmatpush.bf16.msrb.mxu1 %v13169_v34  ;;  %v13196_v22 = vld [vmem:[#allocation8 + $0x238] sm:$0xff] }
 0x512   :  { %v8579_v46 = vsel %vm13661_vm2, %v8574_v2, %v8578_v35  ;;  %v8735_v60 = vsel %vm14599_vm12, %v12361_v15, %v8734_v24  ;;  %v8368_v38 = vld [vmem:[#allocation2 + $0x88] sm:$0xf]  ;;  %v8371_v33 = vld [vmem:[#allocation2 + $0x8c] sm:$0x1]  ;;  %v13175_v2 = vld [vmem:[#allocation8 + $0x190] sm:$0xff]  ;;  %10792 = vmatpush.bf16.msrb.mxu0 %v13196_v22 }
 0x513   :  { %v8235_v45 = vor.u32 %v8233_v29, %v8232_v8  ;;  %v8236_v28 = vrot.slane %v8232_v8, 4  ;;  %v8107_v10 = vmax.f32 %v8089_v37, 0.0  ;;  %v9543_v20 = vunpack.c.l.b16 %v8579_v46  ;;  %v13182_v34 = vld [vmem:[#allocation8 + $0x1c8] sm:$0xff]  ;;  %v16414_v22 = vld [vmem:[#allocation2 + $0x14] sm:$0x1] }
 0x514   :  { %v8583_v14 = vrot.slane %v8581_v57, 4  ;;  %v8586_v41 = vrot.slane %v8584_v13, 5  ;;  %v9576_v1 = vunpack.c.l.b16 %v8735_v60  ;;  %10698 = vmatpush.bf16.msrb.mxu2 %v13176_v9  ;;  %10747 = vmatpush.bf16.msrb.mxu3 %v13184_v27  ;;  %v13167_v57 = vld [vmem:[#allocation8 + $0x150] sm:$0xff]  ;;  %v13173_v27 = vld [vmem:[#allocation8 + $0x180] sm:$0xff] }
 0x515   :  { %v8363_v55 = vsel %vm14583_vm9, %v8235_v45, %v8362_v21  ;;  %v8366_v6 = vsel %vm14511_vm5, %v8236_v28, %v8365_v58  ;;  %v8123_v40 = vpack.c.bf16 %v8107_v10, %v8107_v10  ;;  %v9553_v31 = vpack.c.b16 %v9543_v20, %v9542_v23  ;;  %v13107_v53 = vld [vmem:[#allocation2 + $0x74] sm:$0xf0]  ;;  %10649 = vmatpush.bf16.msrb.mxu1 %v13168_v30  ;;  %v13174_v21 = vld [vmem:[#allocation8 + $0x188] sm:$0xff]  ;;  %v13181_v30 = vld [vmem:[#allocation8 + $0x1c0] sm:$0xff] }
 0x516   :  { %v8649_v50 = vld [vmem:[#allocation2 + $0x78] sm:$0xe]  ;;  %8364 = vst [vmem:[#allocation2 + $0x80] sm:$0xf] %v8363_v55  ;;  %v12424_v32 = vor.u32 %v13107_v53, %v12423_v49  ;;  %v8409_v19 = vld [vmem:[#allocation2 + $0x7c] sm:$0x1]  ;;  %v8587_v51 = vor.u32 %v8586_v41, %v8583_v14 }
 0x517   :  { %v12362_v54 = vrot.slane %v8649_v50, 9  ;;  %8367 = vst [vmem:[#allocation2 + $0x84] sm:$0x1] %v8366_v6  ;;  %v8238_v18 = vshrl.u32 %v8123_v40, 16  ;;  %10482 = vmatmul.bf16.gmra.mxu1 %v9553_v31  ;;  %v8738_v61 = vrot.slane %v8409_v19, 5  ;;  %v8241_v17 = vshll.u32 %v8123_v40, 16 }
 0x518   :  { %v8090_v47 = vpop.f32.mrf.mxu3  ;;  %v8393_v36 = vld [vmem:[#allocation2 + $0x78] sm:$0xf]  ;;  %v8588_v35 = vrot.slane %v8587_v51, 4  ;;  %v8604_v16 = vshll.u32 %v8409_v19, 16  ;;  %v8592_v45 = vrot.slane %v8590_v26, 5  ;;  %10699 = vmatpush.bf16.msrb.mxu2 %v13175_v2  ;;  %v8781_v58 = vshrl.u32 %v8748_v44, 16  ;;  %10748 = vmatpush.bf16.msrb.mxu3 %v13183_v63 }
 0x519   :  { %v8240_v42 = vrot.slane %v8238_v18, 7  ;;  %v8091_v62 = vadd.f32 %v8090_v47, %v8042_v48  ;;  %10438 = vmatmul.bf16.gmra.mxu0 %v12424_v32  ;;  %v8739_v7 = vsel %vm14599_vm12, %v12362_v54, %v8738_v61  ;;  %v8595_v4 = vshrl.u32 %v8393_v36, 16  ;;  %v12455_v29 = vld [vmem:[#allocation2 + $0x78] sm:$0xf]  ;;  %v16398_v41 = vld [vmem:[#allocation2 + $0x10] sm:$0xf]  ;;  %10650 = vmatpush.bf16.msrb.mxu1 %v13167_v57 }
 0x51a   :  { %v9577_v3 = vunpack.c.l.b16 %v8739_v7  ;;  %v8598_v12 = vshll.u32 %v8393_v36, 16  ;;  %v8606_v43 = vrot.slane %v8604_v16, 5  ;;  %v8593_v14 = vsel %vm13661_vm2, %v8588_v35, %v8592_v45  ;;  %v13166_v54 = vld [vmem:[#allocation8 + $0x148] sm:$0xff]  ;;  %v8374_v51 = vld [vmem:[#allocation2 + $0x90] sm:$0xf] }
 0x51b   :  { %v8243_v15 = vor.u32 %v8241_v17, %v8240_v42  ;;  %v8244_v24 = vrot.slane %v8240_v42, 4  ;;  %v8108_v39 = vmax.f32 %v8091_v62, 0.0  ;;  %v8597_v25 = vrot.slane %v8595_v4, 4  ;;  %v16404_v7 = vld [vmem:[#allocation2 + $0xc] sm:$0x1] }
 0x51c   :  { %v9586_v8 = vpack.c.b16 %v9577_v3, %v9576_v1  ;;  %v8600_v37 = vrot.slane %v8598_v12, 5  ;;  %v8784_v49 = vshll.u32 %v8748_v44, 16  ;;  %v9544_v48 = vunpack.c.l.b16 %v8593_v14  ;;  %10700 = vmatpush.bf16.msrb.mxu2 %v13174_v21  ;;  %v8377_v1 = vld [vmem:[#allocation2 + $0x94] sm:$0x1]  ;;  %10749 = vmatpush.bf16.msrb.mxu3 %v13182_v34 }
 0x51d   :  { %v8369_v46 = vsel %vm14583_vm9, %v8243_v15, %v8368_v38  ;;  %v8372_v23 = vsel %vm14511_vm5, %v8244_v24, %v8371_v33  ;;  %v8124_v13 = vpack.c.bf16 %v8108_v39, %v8108_v39  ;;  %v13115_v0 = vld [vmem:[#allocation2 + $0x7c] sm:$0xf0]  ;;  %v8783_v18 = vrot.slane %v8781_v58, 4  ;;  %10651 = vmatpush.bf16.msrb.mxu1 %v13166_v54 }
 0x51e   :  { %v8650_v28 = vld [vmem:[#allocation2 + $0x80] sm:$0xe]  ;;  %8370 = vst [vmem:[#allocation2 + $0x88] sm:$0xf] %v8369_v46  ;;  %v12456_v10 = vor.u32 %v13115_v0, %v12455_v29  ;;  %v8601_v20 = vor.u32 %v8600_v37, %v8597_v25  ;;  %v16394_v56 = vld [vmem:[#allocation2 + $0x84] sm:$0x1] }
 0x51f   :  { %8373 = vst [vmem:[#allocation2 + $0x8c] sm:$0x1] %v8372_v23  ;;  %v8246_v60 = vshrl.u32 %v8124_v13, 16  ;;  %10536 = vmatmul.bf16.gmra.mxu2 %v9586_v8  ;;  %v8249_v55 = vshll.u32 %v8124_v13, 16  ;;  %v12363_v40 = vrot.slane %v8650_v28, 9  ;;  %v8742_v50 = vrot.slane %v16394_v56, 5 }
 0x520   :  { %v8602_v6 = vrot.slane %v8601_v20, 4  ;;  %v8394_v31 = vld [vmem:[#allocation2 + $0x80] sm:$0xf]  ;;  %v8786_v61 = vrot.slane %v8784_v49, 5  ;;  %v8618_v62 = vshll.u32 %v16394_v56, 16  ;;  %v8795_v4 = vshrl.u32 %v16398_v41, 16  ;;  %10701 = vmatpush.bf16.msrb.mxu2 %v13173_v27  ;;  %10750 = vmatpush.bf16.msrb.mxu3 %v13181_v30 }
 0x521   :  { %v8248_v53 = vrot.slane %v8246_v60, 7  ;;  %10585 = vmatmul.bf16.gmra.mxu3 %v12456_v10  ;;  %v8609_v32 = vshrl.u32 %v8394_v31, 16  ;;  %v8612_v19 = vshll.u32 %v8394_v31, 16  ;;  %v12427_v35 = vld [vmem:[#allocation2 + $0x80] sm:$0xf]  ;;  %v8743_v2 = vsel %vm14599_vm12, %v12363_v40, %v8742_v50 }
 0x522   :  { %v8607_v9 = vsel %vm13661_vm2, %v8602_v6, %v8606_v43  ;;  %v8787_v44 = vor.u32 %v8786_v61, %v8783_v18  ;;  %v8790_v5 = vshll.u32 %v16404_v7, 16  ;;  %v9578_v8 = vunpack.c.l.b16 %v8743_v2  ;;  %v13165_v46 = vld [vmem:[#allocation8 + $0x140] sm:$0xff]  ;;  %v9116_v28 = vld [vmem:[#allocation2 + $0x10] sm:$0xf]  ;;  %v9117_v56 = vld [vmem:[#allocation2 + $0x18] sm:$0xf] }
 0x523   :  { %v8251_v17 = vor.u32 %v8249_v55, %v8248_v53  ;;  %v8252_v47 = vrot.slane %v8248_v53, 4  ;;  %v9545_v36 = vunpack.c.l.b16 %v8607_v9  ;;  %v8611_v26 = vrot.slane %v8609_v32, 4  ;;  %10652 = vmatpush.bf16.msrb.mxu1 %v13165_v46  ;;  %v9005_v2 = vld [vmem:[#allocation2 + $0x10] sm:$0xe] }
 0x524   :  { %v8614_v42 = vrot.slane %v8612_v19, 5  ;;  %v8620_v29 = vrot.slane %v8618_v62, 5  ;;  %v8797_v0 = vrot.slane %v8795_v4, 4  ;;  %v8798_v45 = vshll.u32 %v16398_v41, 16  ;;  %v9132_v41 = vld [vmem:[#allocation2 + $0x14] sm:$0x1] }
 0x525   :  { %v8375_v38 = vsel %vm14583_vm9, %v8251_v17, %v8374_v51  ;;  %v8378_v33 = vsel %vm14511_vm5, %v8252_v47, %v8377_v1  ;;  %v9554_v3 = vpack.c.b16 %v9545_v36, %v9544_v48  ;;  %v13108_v12 = vld [vmem:[#allocation2 + $0x84] sm:$0xf0]  ;;  %v8788_v58 = vrot.slane %v8787_v44, 4  ;;  %v9133_v47 = vld [vmem:[#allocation2 + $0x1c] sm:$0x1]  ;;  %v13195_v36 = vld [vmem:[#allocation8 + $0x230] sm:$0xff] }
 0x526   :  { %v8651_v16 = vld [vmem:[#allocation2 + $0x88] sm:$0xe]  ;;  %8379 = vst [vmem:[#allocation2 + $0x94] sm:$0x1] %v8378_v33  ;;  %v12428_v15 = vor.u32 %v13108_v12, %v12427_v35  ;;  %v8411_v24 = vld [vmem:[#allocation2 + $0x8c] sm:$0x1]  ;;  %v8615_v25 = vor.u32 %v8614_v42, %v8611_v26  ;;  %10793 = vmatpush.bf16.msrb.mxu0 %v13195_v36 }
 0x527   :  { %v12364_v39 = vrot.slane %v8651_v16, 9  ;;  %8376 = vst [vmem:[#allocation2 + $0x90] sm:$0xf] %v8375_v38  ;;  %10487 = vmatmul.bf16.gmra.mxu1 %v9554_v3  ;;  %v8746_v59 = vrot.slane %v8411_v24, 5  ;;  %v8395_v63 = vld [vmem:[#allocation2 + $0x88] sm:$0xf] }
 0x528   :  { %v8623_v37 = vshrl.u32 %v8395_v63, 16  ;;  %v8626_v57 = vshll.u32 %v8395_v63, 16  ;;  %v8632_v13 = vshll.u32 %v8411_v24, 16  ;;  %v8616_v10 = vrot.slane %v8615_v25, 4  ;;  %v12459_v6 = vld [vmem:[#allocation2 + $0x88] sm:$0xf] }
 0x529   :  { %10443 = vmatmul.bf16.gmra.mxu0 %v12428_v15  ;;  %v8747_v23 = vsel %vm14599_vm12, %v12364_v39, %v8746_v59  ;;  %v8792_v60 = vrot.slane %v8790_v5, 5  ;;  %v8800_v14 = vrot.slane %v8798_v45, 5  ;;  %v8804_v34 = vshll.u32 %v16414_v22, 16  ;;  %v8750_v62 = vld [vmem:[#allocation2 + $0x18] sm:$0xf] }
 0x52a   :  { %v9579_v21 = vunpack.c.l.b16 %v8747_v23  ;;  %v8625_v20 = vrot.slane %v8623_v37, 4  ;;  %v8628_v43 = vrot.slane %v8626_v57, 5  ;;  %v9149_v31 = vshrl.u32 %v9116_v28, 16  ;;  %v8751_v39 = vld [vmem:[#allocation2 + $0x20] sm:$0xf] }
 0x52b   :  { %v9152_v49 = vshll.u32 %v9116_v28, 16  ;;  %v8634_v53 = vrot.slane %v8632_v13, 5  ;;  %v8801_v50 = vor.u32 %v8800_v14, %v8797_v0  ;;  %v9163_v32 = vshrl.u32 %v9117_v56, 16  ;;  %v12463_v63 = vld [vmem:[#allocation2 + $0x10] sm:$0xf] }
 0x52c   :  { %v9587_v55 = vpack.c.b16 %v9579_v21, %v9578_v8  ;;  %v8629_v40 = vor.u32 %v8628_v43, %v8625_v20  ;;  %v9166_v19 = vshll.u32 %v9117_v56, 16  ;;  %v8621_v51 = vsel %vm13661_vm2, %v8616_v10, %v8620_v29  ;;  %v13117_v44 = vld [vmem:[#allocation2 + $0x14] sm:$0xf0]  ;;  %v9004_v29 = vld [vmem:[#allocation2 + $0x8] sm:$0xe] }
 0x52d   :  { %v9151_v48 = vrot.slane %v9149_v31, 4  ;;  %v9154_v18 = vrot.slane %v9152_v49, 5  ;;  %v8802_v27 = vrot.slane %v8801_v50, 4  ;;  %v8806_v17 = vrot.slane %v8804_v34, 5  ;;  %v16429_v28 = vld [vmem:[#allocation2 + $0x1c] sm:$0x1] }
 0x52e   :  { %v13116_v54 = vld [vmem:[#allocation2 + $0x8c] sm:$0xf0]  ;;  %v8630_v9 = vrot.slane %v8629_v40, 4  ;;  %v9165_v1 = vrot.slane %v9163_v32, 4  ;;  %v9168_v42 = vrot.slane %v9166_v19, 5  ;;  %v9546_v4 = vunpack.c.l.b16 %v8621_v51 }
 0x52f   :  { %10541 = vmatmul.bf16.gmra.mxu2 %v9587_v55  ;;  %v12460_v61 = vor.u32 %v13116_v54, %v12459_v6  ;;  %v9155_v30 = vor.u32 %v9154_v18, %v9151_v48  ;;  %v8793_v33 = vsel %vm13661_vm2, %v8788_v58, %v8792_v60  ;;  %v8807_v3 = vsel %vm13661_vm2, %v8802_v27, %v8806_v17  ;;  %v16431_v43 = vld [vmem:[#allocation2 + $0x24] sm:$0x1]  ;;  %v9118_v60 = vld [vmem:[#allocation2 + $0x20] sm:$0xf]  ;;  %v9119_v6 = vld [vmem:[#allocation2 + $0x28] sm:$0xf] }
 0x530   :  { %v8635_v26 = vsel %vm13661_vm2, %v8630_v9, %v8634_v53  ;;  %v9158_v35 = vshll.u32 %v9132_v41, 16  ;;  %v9169_v12 = vor.u32 %v9168_v42, %v9165_v1  ;;  %v9172_v16 = vshll.u32 %v9133_v47, 16 }
 0x531   :  { %10590 = vmatmul.bf16.gmra.mxu3 %v12460_v61  ;;  %v9547_v38 = vunpack.c.l.b16 %v8635_v26  ;;  %v9645_v24 = vunpack.c.l.b16 %v8807_v3  ;;  %v8809_v25 = vshrl.u32 %v8750_v62, 16  ;;  %v9644_v59 = vunpack.c.l.b16 %v8793_v33  ;;  %v9134_v61 = vld [vmem:[#allocation2 + $0x24] sm:$0x1]  ;;  %v9135_v33 = vld [vmem:[#allocation2 + $0x2c] sm:$0x1] }
 0x532   :  { %v9156_v5 = vrot.slane %v9155_v30, 4  ;;  %v9170_v8 = vrot.slane %v9169_v12, 4  ;;  %v12366_v37 = vrot.slane %v9005_v2, 9  ;;  %v9058_v57 = vrot.slane %v16414_v22, 5  ;;  %v16447_v30 = vld [vmem:[%s16846_s13] ss:$0 sm:$0xff] }
 0x533   :  { %v9555_v15 = vpack.c.b16 %v9547_v38, %v9546_v4  ;;  %v8811_v46 = vrot.slane %v8809_v25, 4  ;;  %v8812_v23 = vshll.u32 %v8750_v62, 16  ;;  %v9160_v0 = vrot.slane %v9158_v35, 5  ;;  %v13194_v2 = vld [vmem:[#allocation8 + $0x228] sm:$0xff] }
 0x534   :  { %v9174_v45 = vrot.slane %v9172_v16, 5  ;;  %v8823_v21 = vshrl.u32 %v8751_v39, 16  ;;  %v9660_v10 = vpack.c.b16 %v9645_v24, %v9644_v59  ;;  %v12464_v20 = vor.u32 %v13117_v44, %v12463_v63  ;;  %v8752_v16 = vld [vmem:[#allocation2 + $0x28] sm:$0xf]  ;;  %v8753_v63 = vld [vmem:[#allocation2 + $0x30] sm:$0xf]  ;;  %10794 = vmatpush.bf16.msrb.mxu0 %v13194_v2 }
 0x535   :  { %v8814_v56 = vrot.slane %v8812_v23, 5  ;;  %v8826_v58 = vshll.u32 %v8751_v39, 16  ;;  %v12365_v22 = vrot.slane %v9004_v29, 9  ;;  %v9054_v34 = vrot.slane %v16404_v7, 5 }
 0x536   :  { %v10409_v13 = vpop.f32.mrf.mxu0  ;;  %v9175_v14 = vsel %vm13661_vm2, %v9170_v8, %v9174_v45  ;;  %v8825_v55 = vrot.slane %v8823_v21, 4  ;;  %v9161_v40 = vsel %vm13661_vm2, %v9156_v5, %v9160_v0  ;;  %v9059_v31 = vsel %vm14599_vm12, %v12366_v37, %v9058_v57  ;;  %v9007_v57 = vld [vmem:[#allocation2 + $0x20] sm:$0xe] }
 0x537   :  { %10492 = vmatmul.bf16.gmra.mxu1 %v9555_v15  ;;  %v8815_v49 = vor.u32 %v8814_v56, %v8811_v46  ;;  %v8828_v53 = vrot.slane %v8826_v58, 5  ;;  %v8818_v50 = vshll.u32 %v16429_v28, 16  ;;  %v8832_v41 = vshll.u32 %v16431_v43, 16 }
 0x538   :  { %v9177_v32 = vshrl.u32 %v9118_v60, 16  ;;  %v9180_v19 = vshll.u32 %v9118_v60, 16  ;;  %v9757_v54 = vunpack.c.l.b16 %v9175_v14  ;;  %v9191_v7 = vshrl.u32 %v9119_v6, 16 }
 0x539   :  { %10604 = vmatmul.bf16.vlgmr.msra.gmra.mxu0 %v9660_v10  ;;  %v8829_v51 = vor.u32 %v8828_v53, %v8825_v55  ;;  %v9194_v9 = vshll.u32 %v9119_v6, 16  ;;  %v9055_v48 = vsel %vm14599_vm12, %v12365_v22, %v9054_v34  ;;  %v8816_v18 = vrot.slane %v8815_v49, 4  ;;  %v9006_v34 = vld [vmem:[#allocation2 + $0x18] sm:$0xe]  ;;  %v16461_v49 = vld [vmem:[#allocation2 + $0x34] sm:$0x1] }
 0x53a   :  { %v9179_v27 = vrot.slane %v9177_v32, 4  ;;  %v9182_v17 = vrot.slane %v9180_v19, 5  ;;  %v9756_v47 = vunpack.c.l.b16 %v9161_v40  ;;  %v9193_v36 = vrot.slane %v9191_v7, 4 }
 0x53b   :  { %v8830_v1 = vrot.slane %v8829_v51, 4  ;;  %v9196_v26 = vrot.slane %v9194_v9, 5  ;;  %v9677_v62 = vunpack.c.l.b16 %v9059_v31  ;;  %v8820_v4 = vrot.slane %v8818_v50, 5  ;;  %v16459_v31 = vld [vmem:[#allocation2 + $0x2c] sm:$0x1] }
 0x53c   :  { %v8834_v38 = vrot.slane %v8832_v41, 5  ;;  %v9772_v3 = vpack.c.b16 %v9757_v54, %v9756_v47  ;;  %v9676_v35 = vunpack.c.l.b16 %v9055_v48  ;;  %v9186_v12 = vshll.u32 %v9134_v61, 16  ;;  %v9120_v54 = vld [vmem:[#allocation2 + $0x30] sm:$0xf]  ;;  %v9121_v51 = vld [vmem:[#allocation2 + $0x38] sm:$0xf] }
 0x53d   :  { %v8821_v15 = vsel %vm13661_vm2, %v8816_v18, %v8820_v4  ;;  %v9183_v39 = vor.u32 %v9182_v17, %v9179_v27  ;;  %v9197_v25 = vor.u32 %v9196_v26, %v9193_v36  ;;  %v9200_v59 = vshll.u32 %v9135_v33, 16  ;;  %v13118_v61 = vld [vmem:[#allocation2 + $0x24] sm:$0xf0] }
 0x53e   :  { %v16449_v42 = vpop.f32.mrf.mxu0  ;;  %v8835_v24 = vsel %vm13661_vm2, %v8830_v1, %v8834_v38  ;;  %v8837_v44 = vshrl.u32 %v8752_v16, 16  ;;  %v8840_v5 = vshll.u32 %v8752_v16, 16  ;;  %v10410_v8 = vadd.f32 %v16447_v30, %v10409_v13 }
 0x53f   :  { %10702 = vmatmul.bf16.vlgmr.msrb.gmra.mxu2 %v12464_v20  ;;  %v9692_v37 = vpack.c.b16 %v9677_v62, %v9676_v35  ;;  %v9646_v23 = vunpack.c.l.b16 %v8821_v15  ;;  %v9647_v0 = vunpack.c.l.b16 %v8835_v24  ;;  %v9188_v45 = vrot.slane %v9186_v12, 5  ;;  %v9136_v24 = vld [vmem:[#allocation2 + $0x34] sm:$0x1] }
 0x540   :  { %v8839_v21 = vrot.slane %v8837_v44, 4  ;;  %v9184_v20 = vrot.slane %v9183_v39, 4  ;;  %v9198_v56 = vrot.slane %v9197_v25, 4  ;;  %v8842_v58 = vrot.slane %v8840_v5, 5 }
 0x541   :  { %10751 = vmatmul.bf16.vlgmr.msrb.gmra.mxu3 %v9772_v3  ;;  %v8851_v60 = vshrl.u32 %v8753_v63, 16  ;;  %v9202_v22 = vrot.slane %v9200_v59, 5  ;;  %v12368_v55 = vrot.slane %v9007_v57, 9  ;;  %v8854_v6 = vshll.u32 %v8753_v63, 16  ;;  %v12467_v3 = vld [vmem:[#allocation2 + $0x20] sm:$0xf] }
 0x542   :  { %v10507_v29 = vpop.f32.mrf.mxu2  ;;  %v9066_v13 = vrot.slane %v16431_v43, 5  ;;  %v9661_v41 = vpack.c.b16 %v9647_v0, %v9646_v23  ;;  %v8843_v32 = vor.u32 %v8842_v58, %v8839_v21  ;;  %v9189_v7 = vsel %vm13661_vm2, %v9184_v20, %v9188_v45  ;;  %v13193_v20 = vld [vmem:[#allocation8 + $0x220] sm:$0xff] }
 0x543   :  { %v10556_v46 = vpop.f32.mrf.mxu3  ;;  %v8853_v53 = vrot.slane %v8851_v60, 4  ;;  %v8856_v19 = vrot.slane %v8854_v6, 5  ;;  %v9203_v9 = vsel %vm13661_vm2, %v9198_v56, %v9202_v22  ;;  %v12367_v48 = vrot.slane %v9006_v34, 9  ;;  %10795 = vmatpush.bf16.msrb.mxu0 %v13193_v20 }
 0x544   :  { %v10458_v10 = vpop.f32.mrf.mxu1  ;;  %v9062_v43 = vrot.slane %v16429_v28, 5  ;;  %v8846_v27 = vshll.u32 %v16459_v31, 16  ;;  %v8860_v47 = vshll.u32 %v16461_v49, 16  ;;  %v9205_v36 = vshrl.u32 %v9120_v54, 16 }
 0x545   :  { %v10459_v14 = vadd.f32 %v10458_v10, %v10410_v8  ;;  %v8857_v17 = vor.u32 %v8856_v19, %v8853_v53  ;;  %v9208_v26 = vshll.u32 %v9120_v54, 16  ;;  %v9219_v62 = vshrl.u32 %v9121_v51, 16  ;;  %v8754_v10 = vld [vmem:[#allocation2 + $0x38] sm:$0xf]  ;;  %v9009_v54 = vld [vmem:[#allocation2 + $0x30] sm:$0xe] }
 0x546   :  { %v16456_v40 = vpop.f32.mrf.mxu0  ;;  %v9222_v4 = vshll.u32 %v9121_v51, 16  ;;  %v10412_v38 = vadd.f32 %v16447_v30, %v16449_v42  ;;  %v9759_v28 = vunpack.c.l.b16 %v9203_v9  ;;  %v9067_v35 = vsel %vm14599_vm12, %v12368_v55, %v9066_v13  ;;  %v8755_v55 = vld [vmem:[#allocation2 + $0x40] sm:$0xf] }
 0x547   :  { %v10508_v50 = vadd.f32 %v10507_v29, %v10459_v14  ;;  %10653 = vmatmul.bf16.vlgmr.msrb.gmra.mxu1 %v9692_v37  ;;  %v8844_v12 = vrot.slane %v8843_v32, 4  ;;  %v12468_v2 = vor.u32 %v13118_v61, %v12467_v3  ;;  %v8858_v15 = vrot.slane %v8857_v17, 4  ;;  %v9137_v37 = vld [vmem:[#allocation2 + $0x3c] sm:$0x1]  ;;  %v9008_v14 = vld [vmem:[#allocation2 + $0x28] sm:$0xe] }
 0x548   :  { %v9221_v39 = vrot.slane %v9219_v62, 4  ;;  %v9224_v25 = vrot.slane %v9222_v4, 5  ;;  %v9758_v63 = vunpack.c.l.b16 %v9189_v7  ;;  %v9063_v44 = vsel %vm14599_vm12, %v12367_v48, %v9062_v43 }
 0x549   :  { %v16468_v18 = vadd.f32 %v10556_v46, %v10508_v50  ;;  %10609 = vmatmul.bf16.gmra.mxu0 %v9661_v41  ;;  %v8848_v5 = vrot.slane %v8846_v27, 5  ;;  %v9679_v8 = vunpack.c.l.b16 %v9067_v35  ;;  %v8862_v29 = vrot.slane %v8860_v47, 5 }
 0x54a   :  { %v10509_v1 = vpop.f32.mrf.mxu2  ;;  %v9207_v57 = vrot.slane %v9205_v36, 4  ;;  %v9210_v46 = vrot.slane %v9208_v26, 5  ;;  %v9773_v0 = vpack.c.b16 %v9759_v28, %v9758_v63  ;;  %v9214_v21 = vshll.u32 %v9136_v24, 16  ;;  %v13119_v26 = vld [vmem:[#allocation2 + $0x34] sm:$0xf0] }
 0x54b   :  { %v10558_v33 = vpop.f32.mrf.mxu3  ;;  %v8849_v45 = vsel %vm13661_vm2, %v8844_v12, %v8848_v5  ;;  %v9678_v56 = vunpack.c.l.b16 %v9063_v44  ;;  %v8863_v58 = vsel %vm13661_vm2, %v8858_v15, %v8862_v29  ;;  %v9225_v60 = vor.u32 %v9224_v25, %v9221_v39  ;;  %v16492_v28 = vld [vmem:[#allocation2 + $0x3c] sm:$0x1]  ;;  %v16494_v15 = vld [vmem:[#allocation2 + $0x44] sm:$0x1]  ;;  %v9122_v39 = vld [vmem:[#allocation2 + $0x40] sm:$0xf] }
 0x54c   :  { %v10460_v16 = vpop.f32.mrf.mxu1  ;;  %v9228_v34 = vshll.u32 %v9137_v37, 16  ;;  %v8865_v6 = vshrl.u32 %v8754_v10, 16  ;;  %v8868_v13 = vshll.u32 %v8754_v10, 16  ;;  %v10415_v53 = vadd.f32 %v16447_v30, %v16456_v40  ;;  %v9123_v25 = vld [vmem:[#allocation2 + $0x48] sm:$0xf] }
 0x54d   :  { %v10461_v59 = vadd.f32 %v10460_v16, %v10412_v38  ;;  %v9693_v41 = vpack.c.b16 %v9679_v8, %v9678_v56  ;;  %v9648_v32 = vunpack.c.l.b16 %v8849_v45  ;;  %v9211_v19 = vor.u32 %v9210_v46, %v9207_v57 }
 0x54e   :  { %v16478_v42 = vpop.f32.mrf.mxu0  ;;  %v9649_v7 = vunpack.c.l.b16 %v8863_v58  ;;  %v9216_v9 = vrot.slane %v9214_v21, 5  ;;  %v8867_v48 = vrot.slane %v8865_v6, 4  ;;  %v8870_v43 = vrot.slane %v8868_v13, 5 }
 0x54f   :  { %v10510_v23 = vadd.f32 %v10509_v1, %v10461_v59  ;;  %10707 = vmatmul.bf16.gmra.mxu2 %v12468_v2  ;;  %v9226_v27 = vrot.slane %v9225_v60, 4  ;;  %v12369_v17 = vrot.slane %v9008_v14, 9  ;;  %v8879_v47 = vshrl.u32 %v8755_v55, 16  ;;  %v12471_v59 = vld [vmem:[#allocation2 + $0x30] sm:$0xf] }
 0x550   :  { %v8882_v1 = vshll.u32 %v8755_v55, 16  ;;  %v9230_v62 = vrot.slane %v9228_v34, 5  ;;  %v9070_v40 = vrot.slane %v16459_v31, 5  ;;  %v12370_v4 = vrot.slane %v9009_v54, 9  ;;  %v16512_v54 = vld [vmem:[#allocation2 + $0x44] sm:$0x1] }
 0x551   :  { %v16484_v22 = vadd.f32 %v10558_v33, %v10510_v23  ;;  %10756 = vmatmul.bf16.gmra.mxu3 %v9773_v0  ;;  %v9212_v33 = vrot.slane %v9211_v19, 4  ;;  %v9074_v3 = vrot.slane %v16461_v49, 5  ;;  %v8881_v35 = vrot.slane %v8879_v47, 4 }
 0x552   :  { %v10512_v50 = vpop.f32.mrf.mxu2  ;;  %v8884_v12 = vrot.slane %v8882_v1, 5  ;;  %v9662_v2 = vpack.c.b16 %v9649_v7, %v9648_v32  ;;  %v8871_v24 = vor.u32 %v8870_v43, %v8867_v48  ;;  %v9231_v31 = vsel %vm13661_vm2, %v9226_v27, %v9230_v62  ;;  %v16516_v43 = vld [vmem:[#allocation2 + $0x4c] sm:$0x1]  ;;  %v8757_v27 = vld [vmem:[#allocation2 + $0x60] sm:$0xf] }
 0x553   :  { %v10561_v51 = vpop.f32.mrf.mxu3  ;;  %v9233_v44 = vshrl.u32 %v9122_v39, 16  ;;  %v9236_v5 = vshll.u32 %v9122_v39, 16  ;;  %v12472_v8 = vor.u32 %v13119_v26, %v12471_v59  ;;  %v8874_v29 = vshll.u32 %v16492_v28, 16  ;;  %v13192_v26 = vld [vmem:[#allocation8 + $0x218] sm:$0xff]  ;;  %v9011_v59 = vld [vmem:[#allocation2 + $0x40] sm:$0xe] }
 0x554   :  { %v10463_v61 = vpop.f32.mrf.mxu1  ;;  %v8885_v63 = vor.u32 %v8884_v12, %v8881_v35  ;;  %v9247_v37 = vshrl.u32 %v9123_v25, 16  ;;  %v10417_v57 = vadd.f32 %v16447_v30, %v16478_v42  ;;  %v9217_v23 = vsel %vm13661_vm2, %v9212_v33, %v9216_v9  ;;  %10796 = vmatpush.bf16.msrb.mxu0 %v13192_v26 }
 0x555   :  { %v10464_v36 = vadd.f32 %v10463_v61, %v10415_v53  ;;  %v9071_v0 = vsel %vm14599_vm12, %v12369_v17, %v9070_v40  ;;  %v8888_v45 = vshll.u32 %v16494_v15, 16  ;;  %v9761_v10 = vunpack.c.l.b16 %v9231_v31  ;;  %v8756_v61 = vld [vmem:[#allocation2 + $0x58] sm:$0xf] }
 0x556   :  { %v16489_v38 = vpop.f32.mrf.mxu0  ;;  %v9075_v20 = vsel %vm14599_vm12, %v12370_v4, %v9074_v3  ;;  %v8872_v56 = vrot.slane %v8871_v24, 4  ;;  %v9250_v58 = vshll.u32 %v9123_v25, 16  ;;  %v8886_v14 = vrot.slane %v8885_v63, 4  ;;  %v9010_v25 = vld [vmem:[#allocation2 + $0x38] sm:$0xe] }
 0x557   :  { %v10513_v16 = vadd.f32 %v10512_v50, %v10464_v36  ;;  %10658 = vmatmul.bf16.gmra.mxu1 %v9693_v41  ;;  %v9235_v34 = vrot.slane %v9233_v44, 4  ;;  %v9238_v42 = vrot.slane %v9236_v5, 5  ;;  %v9249_v55 = vrot.slane %v9247_v37, 4 }
 0x558   :  { %v9760_v13 = vunpack.c.l.b16 %v9217_v23  ;;  %v8876_v53 = vrot.slane %v8874_v29, 5  ;;  %v9252_v50 = vrot.slane %v9250_v58, 5  ;;  %v9681_v32 = vunpack.c.l.b16 %v9075_v20  ;;  %v16529_v58 = vld [vmem:[#allocation2 + $0x64] sm:$0x1] }
 0x559   :  { %v16498_v49 = vadd.f32 %v10561_v51, %v10513_v16  ;;  %10614 = vmatmul.bf16.gmra.mxu0 %v9662_v2  ;;  %v8890_v19 = vrot.slane %v8888_v45, 5  ;;  %v9680_v9 = vunpack.c.l.b16 %v9071_v0  ;;  %v9239_v47 = vor.u32 %v9238_v42, %v9235_v34 }
 0x55a   :  { %v10514_v46 = vpop.f32.mrf.mxu2  ;;  %v9774_v7 = vpack.c.b16 %v9761_v10, %v9760_v13  ;;  %v8877_v48 = vsel %vm13661_vm2, %v8872_v56, %v8876_v53  ;;  %v9253_v1 = vor.u32 %v9252_v50, %v9249_v55  ;;  %v9256_v36 = vshll.u32 %v16516_v43, 16 }
 0x55b   :  { %v10563_v21 = vpop.f32.mrf.mxu3  ;;  %v8891_v17 = vsel %vm13661_vm2, %v8886_v14, %v8890_v19  ;;  %v8893_v40 = vshrl.u32 %v8756_v61, 16  ;;  %v9694_v33 = vpack.c.b16 %v9681_v32, %v9680_v9  ;;  %v9242_v3 = vshll.u32 %v16512_v54, 16  ;;  %v9125_v14 = vld [vmem:[#allocation2 + $0x68] sm:$0xf] }
 0x55c   :  { %v10465_v60 = vpop.f32.mrf.mxu1  ;;  %v8896_v35 = vshll.u32 %v8756_v61, 16  ;;  %v8907_v12 = vshrl.u32 %v8757_v27, 16  ;;  %v10420_v16 = vadd.f32 %v16447_v30, %v16489_v38  ;;  %v9650_v24 = vunpack.c.l.b16 %v8877_v48  ;;  %v13120_v9 = vld [vmem:[#allocation2 + $0x44] sm:$0xf0] }
 0x55d   :  { %v10466_v6 = vadd.f32 %v10465_v60, %v10417_v57  ;;  %v9651_v39 = vunpack.c.l.b16 %v8891_v17  ;;  %v8910_v31 = vshll.u32 %v8757_v27, 16  ;;  %v9240_v44 = vrot.slane %v9239_v47, 4  ;;  %v9124_v60 = vld [vmem:[#allocation2 + $0x60] sm:$0xf] }
 0x55e   :  { %v16510_v41 = vpop.f32.mrf.mxu0  ;;  %v9254_v5 = vrot.slane %v9253_v1, 4  ;;  %v8909_v29 = vrot.slane %v8907_v12, 4  ;;  %v8895_v57 = vrot.slane %v8893_v40, 4  ;;  %v9244_v45 = vrot.slane %v9242_v3, 5 }
 0x55f   :  { %v10515_v51 = vadd.f32 %v10514_v46, %v10466_v6  ;;  %10712 = vmatmul.bf16.gmra.mxu2 %v12472_v8  ;;  %v9258_v8 = vrot.slane %v9256_v36, 5  ;;  %v8898_v46 = vrot.slane %v8896_v35, 5  ;;  %v8912_v23 = vrot.slane %v8910_v31, 5  ;;  %v16536_v6 = vld [vmem:[#allocation2 + $0x5c] sm:$0x1] }
 0x560   :  { %v12372_v38 = vrot.slane %v9011_v59, 9  ;;  %v9082_v10 = vrot.slane %v16494_v15, 5  ;;  %v9663_v56 = vpack.c.b16 %v9651_v39, %v9650_v24  ;;  %v9245_v34 = vsel %vm13661_vm2, %v9240_v44, %v9244_v45  ;;  %v12475_v15 = vld [vmem:[#allocation2 + $0x40] sm:$0xf]  ;;  %v8759_v45 = vld [vmem:[#allocation2 + $0x70] sm:$0xf] }
 0x561   :  { %v16521_v62 = vadd.f32 %v10563_v21, %v10515_v51  ;;  %10761 = vmatmul.bf16.gmra.mxu3 %v9774_v7  ;;  %v12371_v21 = vrot.slane %v9010_v25, 9  ;;  %v9259_v42 = vsel %vm13661_vm2, %v9254_v5, %v9258_v8  ;;  %v9078_v55 = vrot.slane %v16492_v28, 5  ;;  %v16552_v8 = vld [vmem:[#allocation2 + $0x6c] sm:$0x1] }
 0x562   :  { %v10517_v4 = vpop.f32.mrf.mxu2  ;;  %v8913_v13 = vor.u32 %v8912_v23, %v8909_v29  ;;  %v8899_v50 = vor.u32 %v8898_v46, %v8895_v57  ;;  %v9275_v32 = vshrl.u32 %v9125_v14, 16  ;;  %v9278_v19 = vshll.u32 %v9125_v14, 16  ;;  %v8758_v29 = vld [vmem:[#allocation2 + $0x68] sm:$0xf] }
 0x563   :  { %v10566_v2 = vpop.f32.mrf.mxu3  ;;  %v10422_v51 = vadd.f32 %v16447_v30, %v16510_v41  ;;  %v8916_v48 = vshll.u32 %v16529_v58, 16  ;;  %v9261_v61 = vshrl.u32 %v9124_v60, 16  ;;  %v9264_v27 = vshll.u32 %v9124_v60, 16 }
 0x564   :  { %v10468_v63 = vpop.f32.mrf.mxu1  ;;  %v9762_v17 = vunpack.c.l.b16 %v9245_v34  ;;  %v9763_v47 = vunpack.c.l.b16 %v9259_v42  ;;  %v9083_v1 = vsel %vm14599_vm12, %v12372_v38, %v9082_v10  ;;  %v8902_v36 = vshll.u32 %v16536_v6, 16 }
 0x565   :  { %v10469_v37 = vadd.f32 %v10468_v63, %v10420_v16  ;;  %v9079_v40 = vsel %vm14599_vm12, %v12371_v21, %v9078_v55  ;;  %v9277_v41 = vrot.slane %v9275_v32, 4  ;;  %v12476_v35 = vor.u32 %v13120_v9, %v12475_v15  ;;  %v16548_v16 = vld [vmem:[#allocation2 + $0x64] sm:$0x1] }
 0x566   :  { %v16526_v0 = vpop.f32.mrf.mxu0  ;;  %v8900_v12 = vrot.slane %v8899_v50, 4  ;;  %v9683_v24 = vunpack.c.l.b16 %v9083_v1  ;;  %v8918_v39 = vrot.slane %v8916_v48, 5  ;;  %v9263_v25 = vrot.slane %v9261_v61, 4 }
 0x567   :  { %v10518_v20 = vadd.f32 %v10517_v4, %v10469_v37  ;;  %10663 = vmatmul.bf16.gmra.mxu1 %v9694_v33  ;;  %v8914_v4 = vrot.slane %v8913_v13, 4  ;;  %v9280_v33 = vrot.slane %v9278_v19, 5  ;;  %v9266_v59 = vrot.slane %v9264_v27, 5  ;;  %v13191_v37 = vld [vmem:[#allocation8 + $0x210] sm:$0xff]  ;;  %v9013_v13 = vld [vmem:[#allocation2 + $0x60] sm:$0xe] }
 0x568   :  { %v9775_v63 = vpack.c.b16 %v9763_v47, %v9762_v17  ;;  %v9682_v44 = vunpack.c.l.b16 %v9079_v40  ;;  %v8904_v5 = vrot.slane %v8902_v36, 5  ;;  %v9270_v46 = vshll.u32 %v16548_v16, 16  ;;  %10797 = vmatpush.bf16.msrb.mxu0 %v13191_v37  ;;  %v9012_v27 = vld [vmem:[#allocation2 + $0x58] sm:$0xe] }
 0x569   :  { %v16538_v53 = vadd.f32 %v10566_v2, %v10518_v20  ;;  %10619 = vmatmul.bf16.gmra.mxu0 %v9663_v56  ;;  %v8919_v57 = vsel %vm13661_vm2, %v8914_v4, %v8918_v39  ;;  %v9281_v23 = vor.u32 %v9280_v33, %v9277_v41  ;;  %v8921_v21 = vshrl.u32 %v8758_v29, 16  ;;  %v16567_v33 = vld [vmem:[#allocation2 + $0x74] sm:$0x1] }
 0x56a   :  { %v10519_v7 = vpop.f32.mrf.mxu2  ;;  %v8905_v10 = vsel %vm13661_vm2, %v8900_v12, %v8904_v5  ;;  %v9695_v56 = vpack.c.b16 %v9683_v24, %v9682_v44  ;;  %v9267_v60 = vor.u32 %v9266_v59, %v9263_v25  ;;  %v9284_v14 = vshll.u32 %v16552_v8, 16  ;;  %v16572_v25 = vld [vmem:[#allocation2 + $0x6c] sm:$0x1] }
 0x56b   :  { %v10568_v28 = vpop.f32.mrf.mxu3  ;;  %v8924_v34 = vshll.u32 %v8758_v29, 16  ;;  %v10425_v42 = vadd.f32 %v16447_v30, %v16526_v0  ;;  %v9653_v55 = vunpack.c.l.b16 %v8919_v57  ;;  %v8935_v15 = vshrl.u32 %v8759_v45, 16  ;;  %v13121_v29 = vld [vmem:[#allocation2 + $0x64] sm:$0xf0] }
 0x56c   :  { %v10470_v26 = vpop.f32.mrf.mxu1  ;;  %v8938_v50 = vshll.u32 %v8759_v45, 16  ;;  %v9282_v9 = vrot.slane %v9281_v23, 4  ;;  %v8923_v48 = vrot.slane %v8921_v21, 4  ;;  %v9268_v36 = vrot.slane %v9267_v60, 4  ;;  %v12479_v60 = vld [vmem:[#allocation2 + $0x60] sm:$0xf] }
 0x56d   :  { %v10471_v3 = vadd.f32 %v10470_v26, %v10422_v51  ;;  %v9652_v51 = vunpack.c.l.b16 %v8905_v10  ;;  %v8937_v17 = vrot.slane %v8935_v15, 4  ;;  %v9286_v26 = vrot.slane %v9284_v14, 5 }
 0x56e   :  { %v16550_v2 = vpop.f32.mrf.mxu0  ;;  %v8940_v47 = vrot.slane %v8938_v50, 5  ;;  %v12374_v0 = vrot.slane %v9013_v13, 9  ;;  %v9090_v40 = vrot.slane %v16529_v58, 5  ;;  %v12373_v24 = vrot.slane %v9012_v27, 9 }
 0x56f   :  { %v10520_v31 = vadd.f32 %v10519_v7, %v10471_v3  ;;  %10717 = vmatmul.bf16.gmra.mxu2 %v12476_v35  ;;  %v9272_v7 = vrot.slane %v9270_v46, 5  ;;  %v9664_v41 = vpack.c.b16 %v9653_v55, %v9652_v51  ;;  %v9126_v3 = vld [vmem:[#allocation2 + $0x70] sm:$0xf]  ;;  %v9127_v35 = vld [vmem:[#allocation2 + $0x78] sm:$0xf]  ;;  %v9287_v12 = vsel %vm13661_vm2, %v9282_v9, %v9286_v26  ;;  %v13190_v26 = vld [vmem:[#allocation8 + $0x208] sm:$0xff] }
 0x570   :  { %v9086_v39 = vrot.slane %v16536_v6, 5  ;;  %v8941_v59 = vor.u32 %v8940_v47, %v8937_v17  ;;  %v9306_v44 = vshll.u32 %v9127_v35, 16  ;;  %v8944_v57 = vshll.u32 %v16567_v33, 16  ;;  %v16590_v47 = vld [vmem:[#allocation2 + $0x7c] sm:$0x1]  ;;  %10798 = vmatpush.bf16.msrb.mxu0 %v13190_v26 }
 0x571   :  { %v16557_v38 = vadd.f32 %v10568_v28, %v10520_v31  ;;  %10766 = vmatmul.bf16.gmra.mxu3 %v9775_v63  ;;  %v8926_v28 = vrot.slane %v8924_v34, 5  ;;  %v9303_v63 = vshrl.u32 %v9127_v35, 16  ;;  %v9273_v37 = vsel %vm13661_vm2, %v9268_v36, %v9272_v7  ;;  %v8760_v36 = vld [vmem:[#allocation2 + $0x78] sm:$0xf] }
 0x572   :  { %v10522_v20 = vpop.f32.mrf.mxu2  ;;  %v9289_v46 = vshrl.u32 %v9126_v3, 16  ;;  %v9292_v23 = vshll.u32 %v9126_v3, 16  ;;  %v10427_v6 = vadd.f32 %v16447_v30, %v16550_v2  ;;  %v9765_v45 = vunpack.c.l.b16 %v9287_v12  ;;  %v16586_v2 = vld [vmem:[#allocation2 + $0x74] sm:$0x1] }
 0x573   :  { %v8927_v58 = vor.u32 %v8926_v28, %v8923_v48  ;;  %v9091_v21 = vsel %vm14599_vm12, %v12374_v0, %v9090_v40  ;;  %v8930_v10 = vshll.u32 %v16572_v25, 16  ;;  %v9087_v14 = vsel %vm14599_vm12, %v12373_v24, %v9086_v39 }
 0x574   :  { %v10473_v32 = vpop.f32.mrf.mxu1  ;;  %v10571_v19 = vpop.f32.mrf.mxu3  ;;  %v8942_v34 = vrot.slane %v8941_v59, 4  ;;  %v9308_v55 = vrot.slane %v9306_v44, 5  ;;  %v12480_v15 = vor.u32 %v13121_v29, %v12479_v60  ;;  %v9764_v50 = vunpack.c.l.b16 %v9273_v37  ;;  %v9014_v29 = vld [vmem:[#allocation2 + $0x68] sm:$0xe] }
 0x575   :  { %v10474_v61 = vadd.f32 %v10473_v32, %v10425_v42  ;;  %v9305_v42 = vrot.slane %v9303_v63, 4  ;;  %v8928_v32 = vrot.slane %v8927_v58, 4  ;;  %v9685_v51 = vunpack.c.l.b16 %v9091_v21 }
 0x576   :  { %v16564_v1 = vpop.f32.mrf.mxu0  ;;  %v8946_v7 = vrot.slane %v8944_v57, 5  ;;  %v9291_v9 = vrot.slane %v9289_v46, 4  ;;  %v9294_v48 = vrot.slane %v9292_v23, 5  ;;  %v9776_v27 = vpack.c.b16 %v9765_v45, %v9764_v50 }
 0x577   :  { %v10523_v4 = vadd.f32 %v10522_v20, %v10474_v61  ;;  %10668 = vmatmul.bf16.gmra.mxu1 %v9695_v56  ;;  %v9684_v28 = vunpack.c.l.b16 %v9087_v14  ;;  %v8932_v17 = vrot.slane %v8930_v10, 5  ;;  %v9298_v40 = vshll.u32 %v16586_v2, 16 }
 0x578   :  { %v8947_v0 = vsel %vm13661_vm2, %v8942_v34, %v8946_v7  ;;  %v8949_v3 = vshrl.u32 %v8760_v36, 16  ;;  %v9295_v59 = vor.u32 %v9294_v48, %v9291_v9  ;;  %v9312_v58 = vshll.u32 %v16590_v47, 16  ;;  %v9128_v7 = vld [vmem:[#allocation2 + $0x80] sm:$0xf]  ;;  %v9129_v9 = vld [vmem:[#allocation2 + $0x88] sm:$0xf] }
 0x579   :  { %v16574_v31 = vadd.f32 %v10571_v19, %v10523_v4  ;;  %10624 = vmatmul.bf16.gmra.mxu0 %v9664_v41  ;;  %v9309_v4 = vor.u32 %v9308_v55, %v9305_v42  ;;  %v8761_v41 = vld [vmem:[#allocation2 + $0x80] sm:$0xf]  ;;  %v8933_v12 = vsel %vm13661_vm2, %v8928_v32, %v8932_v17  ;;  %v9696_v39 = vpack.c.b16 %v9685_v51, %v9684_v28  ;;  %v16605_v51 = vld [vmem:[#allocation2 + $0x84] sm:$0x1]  ;;  %v16610_v28 = vld [vmem:[#allocation2 + $0x7c] sm:$0x1] }
 0x57a   :  { %v10524_v5 = vpop.f32.mrf.mxu2  ;;  %v8952_v63 = vshll.u32 %v8760_v36, 16  ;;  %v10430_v44 = vadd.f32 %v16447_v30, %v16564_v1  ;;  %v8963_v37 = vshrl.u32 %v8761_v41, 16  ;;  %v8966_v57 = vshll.u32 %v8761_v41, 16 }
 0x57b   :  { %v9300_v45 = vrot.slane %v9298_v40, 5  ;;  %v9310_v21 = vrot.slane %v9309_v4, 4  ;;  %v8951_v10 = vrot.slane %v8949_v3, 4  ;;  %v9296_v55 = vrot.slane %v9295_v59, 4 }
 0x57c   :  { %v10475_v20 = vpop.f32.mrf.mxu1  ;;  %v10573_v56 = vpop.f32.mrf.mxu3  ;;  %v8954_v60 = vrot.slane %v8952_v63, 5  ;;  %v8965_v14 = vrot.slane %v8963_v37, 4  ;;  %v8968_v34 = vrot.slane %v8966_v57, 5  ;;  %v12375_v1 = vrot.slane %v9014_v29, 9 }
 0x57d   :  { %v10476_v13 = vadd.f32 %v10475_v20, %v10427_v6  ;;  %v9654_v6 = vunpack.c.l.b16 %v8933_v12  ;;  %v9334_v40 = vshll.u32 %v9129_v9, 16  ;;  %v9301_v41 = vsel %vm13661_vm2, %v9296_v55, %v9300_v45 }
 0x57e   :  { %v16588_v19 = vpop.f32.mrf.mxu0  ;;  %v8969_v17 = vor.u32 %v8968_v34, %v8965_v14  ;;  %v8955_v26 = vor.u32 %v8954_v60, %v8951_v10  ;;  %v8972_v3 = vshll.u32 %v16605_v51, 16  ;;  %v9317_v12 = vshrl.u32 %v9128_v7, 16 }
 0x57f   :  { %v10525_v61 = vadd.f32 %v10524_v5, %v10476_v13  ;;  %10722 = vmatmul.bf16.gmra.mxu2 %v12480_v15  ;;  %v9655_v5 = vunpack.c.l.b16 %v8947_v0  ;;  %v9314_v13 = vrot.slane %v9312_v58, 5  ;;  %v9094_v15 = vrot.slane %v16572_v25, 5  ;;  %v13122_v25 = vld [vmem:[#allocation2 + $0x74] sm:$0xf0] }
 0x580   :  { %v9331_v0 = vshrl.u32 %v9129_v9, 16  ;;  %v8958_v58 = vshll.u32 %v16610_v28, 16  ;;  %v8970_v29 = vrot.slane %v8969_v17, 4  ;;  %v9336_v57 = vrot.slane %v9334_v40, 5  ;;  %v16638_v40 = vld [vmem:[#allocation2 + $0x78] sm:$0xe] }
 0x581   :  { %v16595_v35 = vadd.f32 %v10573_v56, %v10525_v61  ;;  %10771 = vmatmul.bf16.gmra.mxu3 %v9776_v27  ;;  %v9015_v56 = vld [vmem:[#allocation2 + $0x70] sm:$0xe]  ;;  %v9665_v32 = vpack.c.b16 %v9655_v5, %v9654_v6  ;;  %v9315_v48 = vsel %vm13661_vm2, %v9310_v21, %v9314_v13  ;;  %v9098_v27 = vrot.slane %v16567_v33, 5  ;;  %v16622_v21 = vld [vmem:[#allocation2 + $0x84] sm:$0x1] }
 0x582   :  { %v10527_v24 = vpop.f32.mrf.mxu2  ;;  %v12376_v61 = vrot.slane %v9015_v56, 9  ;;  %v10432_v33 = vadd.f32 %v16447_v30, %v16588_v19  ;;  %v9767_v59 = vunpack.c.l.b16 %v9315_v48  ;;  %v9333_v37 = vrot.slane %v9331_v0, 4  ;;  %v16628_v13 = vld [vmem:[#allocation2 + $0x8c] sm:$0x1] }
 0x583   :  { %v8956_v45 = vrot.slane %v8955_v26, 4  ;;  %v9095_v19 = vsel %vm14599_vm12, %v12375_v1, %v9094_v15  ;;  %v9319_v56 = vrot.slane %v9317_v12, 4  ;;  %v8960_v55 = vrot.slane %v8958_v58, 5 }
 0x584   :  { %v10478_v46 = vpop.f32.mrf.mxu1  ;;  %v10576_v23 = vpop.f32.mrf.mxu3  ;;  %v9099_v6 = vsel %vm14599_vm12, %v12376_v61, %v9098_v27  ;;  %v9326_v48 = vshll.u32 %v16622_v21, 16  ;;  %v9337_v61 = vor.u32 %v9336_v57, %v9333_v37  ;;  %v8763_v27 = vld [vmem:[#allocation2 + $0x90] sm:$0xf]  ;;  %v9686_v15 = vunpack.c.l.b16 %v9095_v19  ;;  %v9017_v19 = vld [vmem:[#allocation2 + $0x80] sm:$0xe] }
 0x585   :  { %v10479_v20 = vadd.f32 %v10478_v46, %v10430_v44  ;;  %v8961_v17 = vsel %vm13661_vm2, %v8956_v45, %v8960_v55  ;;  %v9340_v0 = vshll.u32 %v16628_v13, 16  ;;  %v12377_v37 = vrot.slane %v16638_v40, 9  ;;  %v9130_v55 = vld [vmem:[#allocation2 + $0x90] sm:$0xf] }
 0x586   :  { %v16602_v42 = vpop.f32.mrf.mxu0 }
 0x587   :  { %v10528_v50 = vadd.f32 %v10527_v24, %v10479_v20  ;;  %10673 = vmatmul.bf16.gmra.mxu1 %v9696_v39  ;;  %v9320_v24 = vshll.u32 %v9128_v7, 16  ;;  %v12483_v39 = vld [vmem:[#allocation2 + $0x70] sm:$0xf]  ;;  %v8974_v20 = vrot.slane %v8972_v3, 5  ;;  %v9687_v7 = vunpack.c.l.b16 %v9099_v6 }
 0x588   :  { %v12484_v5 = vor.u32 %v13122_v25, %v12483_v39  ;;  %v10435_v3 = vadd.f32 %v16447_v30, %v16602_v42  ;;  %v9342_v45 = vrot.slane %v9340_v0, 5  ;;  %v13123_v0 = vld [vmem:[#allocation2 + $0x84] sm:$0xf0] }
 0x589   :  { %v16612_v36 = vadd.f32 %v10576_v23, %v10528_v50  ;;  %10629 = vmatmul.bf16.gmra.mxu0 %v9665_v32  ;;  %v9766_v23 = vunpack.c.l.b16 %v9301_v41  ;;  %v9322_v60 = vrot.slane %v9320_v24, 5  ;;  %v8762_v50 = vld [vmem:[#allocation2 + $0x88] sm:$0xf]  ;;  %v13189_v32 = vld [vmem:[#allocation8 + $0x200] sm:$0xff]  ;;  %v8975_v9 = vsel %vm13661_vm2, %v8970_v29, %v8974_v20 }
 0x58a   :  { %v10529_v4 = vpop.f32.mrf.mxu2  ;;  %10799 = vmatpush.bf16.msrb.mxu0 %v13189_v32  ;;  %v8980_v41 = vshll.u32 %v8762_v50, 16  ;;  %v9657_v12 = vunpack.c.l.b16 %v8975_v9  ;;  %v8991_v24 = vshrl.u32 %v8763_v27, 16  ;;  %v9697_v58 = vpack.c.b16 %v9687_v7, %v9686_v15  ;;  %v16650_v9 = vld [vmem:[#allocation2 + $0x8c] sm:$0x1] }
 0x58b   :  { %v9777_v34 = vpack.c.b16 %v9767_v59, %v9766_v23  ;;  %v9323_v26 = vor.u32 %v9322_v60, %v9319_v56  ;;  %v9102_v7 = vrot.slane %v16610_v28, 5  ;;  %v12378_v15 = vrot.slane %v9017_v19, 9 }
 0x58c   :  { %v10480_v63 = vpop.f32.mrf.mxu1  ;;  %v10578_v44 = vpop.f32.mrf.mxu3  ;;  %v8993_v57 = vrot.slane %v8991_v24, 4  ;;  %v8982_v20 = vrot.slane %v8980_v41, 5  ;;  %v8986_v24 = vshll.u32 %v16650_v9, 16 }
 0x58d   :  { %v10481_v46 = vadd.f32 %v10480_v63, %v10432_v33  ;;  %v8994_v33 = vshll.u32 %v8763_v27, 16  ;;  %v9656_v63 = vunpack.c.l.b16 %v8961_v17  ;;  %v9324_v6 = vrot.slane %v9323_v26, 4 }
 0x58e   :  { %v16624_v10 = vpop.f32.mrf.mxu0 }
 0x58f   :  { %v10530_v14 = vadd.f32 %v10529_v4, %v10481_v46  ;;  %10727 = vmatmul.bf16.gmra.mxu2 %v12484_v5  ;;  %v8977_v4 = vshrl.u32 %v8762_v50, 16  ;;  %v9338_v5 = vrot.slane %v9337_v61, 4  ;;  %v8996_v46 = vrot.slane %v8994_v33, 5  ;;  %v9131_v50 = vld [vmem:[#allocation2 + $0x98] sm:$0xf] }
 0x590   :  { %v9666_v60 = vpack.c.b16 %v9657_v12, %v9656_v63  ;;  %v9348_v61 = vshll.u32 %v9130_v55, 16  ;;  %v9359_v17 = vshrl.u32 %v9131_v50, 16 }
 0x591   :  { %v16633_v1 = vadd.f32 %v10578_v44, %v10530_v14  ;;  %10776 = vmatmul.bf16.gmra.mxu3 %v9777_v34  ;;  %v9328_v44 = vrot.slane %v9326_v48, 5  ;;  %v8979_v42 = vrot.slane %v8977_v4, 4  ;;  %v16645_v14 = vld [vmem:[#allocation2 + $0x94] sm:$0x1]  ;;  %v8997_v34 = vor.u32 %v8996_v46, %v8993_v57 }
 0x592   :  { %v10532_v25 = vpop.f32.mrf.mxu2  ;;  %v9343_v32 = vsel %vm13661_vm2, %v9338_v5, %v9342_v45  ;;  %v9345_v48 = vshrl.u32 %v9130_v55, 16  ;;  %v9106_v4 = vrot.slane %v16605_v51, 5  ;;  %v9000_v28 = vshll.u32 %v16645_v14, 16 }
 0x593   :  { %v9329_v40 = vsel %vm13661_vm2, %v9324_v6, %v9328_v44  ;;  %v8983_v41 = vor.u32 %v8982_v20, %v8979_v42  ;;  %v9769_v12 = vunpack.c.l.b16 %v9343_v32  ;;  %v8998_v33 = vrot.slane %v8997_v34, 4  ;;  %v16667_v34 = vld [vmem:[#allocation2 + $0x9c] sm:$0x1] }
 0x594   :  { %v10483_v39 = vpop.f32.mrf.mxu1  ;;  %v10581_v59 = vpop.f32.mrf.mxu3  ;;  %v9347_v63 = vrot.slane %v9345_v48, 4  ;;  %v9350_v5 = vrot.slane %v9348_v61, 5  ;;  %v9768_v51 = vunpack.c.l.b16 %v9329_v40  ;;  %v9107_v45 = vsel %vm14599_vm12, %v12378_v15, %v9106_v4 }
 0x595   :  { %v10484_v29 = vadd.f32 %v10483_v39, %v10435_v3  ;;  %v10437_v3 = vadd.f32 %v16447_v30, %v16624_v10  ;;  %v8984_v19 = vrot.slane %v8983_v41, 4  ;;  %v9002_v30 = vrot.slane %v9000_v28, 5 }
 0x596   :  { %v16643_v23 = vpop.f32.mrf.mxu0  ;;  %v9778_v42 = vpack.c.b16 %v9769_v12, %v9768_v51  ;;  %v9103_v20 = vsel %vm14599_vm12, %v12377_v37, %v9102_v7  ;;  %v9368_v48 = vshll.u32 %v16667_v34, 16  ;;  %v9689_v15 = vunpack.c.l.b16 %v9107_v45  ;;  %v9373_v51 = vld [vmem:[#allocation2 + $0x18] sm:$0xe] }
 0x597   :  { %v10533_v56 = vadd.f32 %v10532_v25, %v10484_v29  ;;  %10678 = vmatmul.bf16.gmra.mxu1 %v9697_v58  ;;  %v9362_v25 = vshll.u32 %v9131_v50, 16  ;;  %v12487_v58 = vld [vmem:[#allocation2 + $0x80] sm:$0xf]  ;;  %v9361_v29 = vrot.slane %v9359_v17, 4  ;;  %v9003_v55 = vsel %vm13661_vm2, %v8998_v33, %v9002_v30  ;;  %v13124_v30 = vld [vmem:[#allocation2 + $0x94] sm:$0xf0] }
 0x598   :  { %v12488_v46 = vor.u32 %v13123_v0, %v12487_v58  ;;  %v9351_v50 = vor.u32 %v9350_v5, %v9347_v63  ;;  %v9688_v0 = vunpack.c.l.b16 %v9103_v20  ;;  %v9659_v40 = vunpack.c.l.b16 %v9003_v55 }
 0x599   :  { %v16652_v27 = vadd.f32 %v10581_v59, %v10533_v56  ;;  %10634 = vmatmul.bf16.gmra.mxu0 %v9666_v60  ;;  %v9364_v57 = vrot.slane %v9362_v25, 5  ;;  %v8988_v56 = vrot.slane %v8986_v24, 5  ;;  %v16665_v60 = vld [vmem:[#allocation2 + $0x94] sm:$0x1]  ;;  %v16680_v25 = vld [vmem:[%s16846_s13] ss:$0 sm:$0xff] }
 0x59a   :  { %v10534_v26 = vpop.f32.mrf.mxu2  ;;  %v9354_v7 = vshll.u32 %v16665_v60, 16  ;;  %v9352_v28 = vrot.slane %v9351_v50, 4  ;;  %v9370_v12 = vrot.slane %v9368_v48, 5  ;;  %v9698_v33 = vpack.c.b16 %v9689_v15, %v9688_v0  ;;  %v9372_v50 = vld [vmem:[#allocation2 + $0x10] sm:$0xe]  ;;  %s13413_s13 = smov [#allocation9]  }
 0x59b   :  { %v9365_v32 = vor.u32 %v9364_v57, %v9361_v29  ;;  %v8989_v37 = vsel %vm13661_vm2, %v8984_v19, %v8988_v56  ;;  %v9019_v29 = vld [vmem:[#allocation2 + $0x90] sm:$0xe]  ;;  %v9110_v15 = vrot.slane %v16650_v9, 5  ;;  %s10909_s3 = sshll.u32 %s13413_s13, 4  ;;  %s10910_s3 = int_to_ptr.vmem [resolvable:$true] %s10909_s3 }
 0x59c   :  { %v10485_v39 = vpop.f32.mrf.mxu1  ;;  %v10583_v59 = vpop.f32.mrf.mxu3  ;;  %v9356_v58 = vrot.slane %v9354_v7, 5  ;;  %v12491_v19 = vld [vmem:[#allocation2 + $0x90] sm:$0xf] }
 0x59d   :  { %v10486_v44 = vadd.f32 %v10485_v39, %v10437_v3  ;;  %v9366_v3 = vrot.slane %v9365_v32, 4  ;;  %v9658_v39 = vunpack.c.l.b16 %v8989_v37  ;;  %v13299_v37 = vld [vmem:[#allocation2 + $0x1c] sm:$0x1]  ;;  %v12492_v0 = vor.u32 %v13124_v30, %v12491_v19 }
 0x59e   :  { %v10441_v6 = vpop.f32.mrf.mxu0  ;;  %v9357_v57 = vsel %vm13661_vm2, %v9352_v28, %v9356_v58  ;;  %v9426_v7 = vrot.slane %v13299_v37, 5 }
 0x59f   :  { %v10535_v10 = vadd.f32 %v10534_v26, %v10486_v44  ;;  %10732 = vmatmul.bf16.gmra.mxu2 %v12488_v46  ;;  %v10440_v26 = vadd.f32 %v16680_v25, %v16643_v23  ;;  %v9667_v5 = vpack.c.b16 %v9659_v40, %v9658_v39  ;;  %v9371_v23 = vsel %vm13661_vm2, %v9366_v3, %v9370_v12  ;;  %v9018_v46 = vld [vmem:[#allocation2 + $0x88] sm:$0xe] }
 0x5a0   :  { %v10442_v20 = vadd.f32 %v16680_v25, %v10441_v6  ;;  %v9770_v56 = vunpack.c.l.b16 %v9357_v57  ;;  %v9771_v55 = vunpack.c.l.b16 %v9371_v23  ;;  %v12379_v11 = vrot.slane %v9018_v46, 9 }
 0x5a1   :  { %v16672_v61 = vadd.f32 %v10583_v59, %v10535_v10  ;;  %10781 = vmatmul.bf16.gmra.mxu3 %v9778_v42  ;;  %v12380_v10 = vrot.slane %v9019_v29, 9  ;;  %v9114_v42 = vrot.slane %v16645_v14, 5  ;;  %v12381_v14 = vrot.slane %v9372_v50, 9 }
 0x5a2   :  { %v10537_v17 = vpop.f32.mrf.mxu2  ;;  %v9779_v3 = vpack.c.b16 %v9771_v55, %v9770_v56  ;;  %v9111_v12 = vsel %vm14599_vm12, %v12379_v11, %v9110_v15  ;;  %v9375_v56 = vld [vmem:[#allocation2 + $0x28] sm:$0xe]  ;;  %v9374_v55 = vld [vmem:[#allocation2 + $0x20] sm:$0xe] }
 0x5a4   :  { %v10488_v4 = vpop.f32.mrf.mxu1  ;;  %v10586_v41 = vpop.f32.mrf.mxu3 }
 0x5a5   :  { %v10489_v24 = vadd.f32 %v10488_v4, %v10440_v26  ;;  %v9115_v4 = vsel %vm14599_vm12, %v12380_v10, %v9114_v42 }
 0x5a6   :  { %v10444_v59 = vpop.f32.mrf.mxu0 }
 0x5a7   :  { %v10538_v63 = vadd.f32 %v10537_v17, %v10489_v24  ;;  %10683 = vmatmul.bf16.gmra.mxu1 %v9698_v33  ;;  %v12382_v17 = vrot.slane %v9373_v51, 9  ;;  %v9691_v33 = vunpack.c.l.b16 %v9115_v4  ;;  %v10445_v58 = vadd.f32 %v16680_v25, %v10444_v59 }
 0x5a9   :  { %v16688_v44 = vadd.f32 %v10586_v41, %v10538_v63  ;;  %10639 = vmatmul.bf16.gmra.mxu0 %v9667_v5  ;;  %v13300_v41 = vld [vmem:[#allocation2 + $0x14] sm:$0x1]  ;;  %v9427_v9 = vsel %vm14599_vm12, %v12382_v17, %v9426_v7  ;;  %v9690_v5 = vunpack.c.l.b16 %v9111_v12 }
 0x5aa   :  { %v10539_v45 = vpop.f32.mrf.mxu2  ;;  %v9422_v6 = vrot.slane %v13300_v41, 5  ;;  %v9789_v29 = vunpack.c.l.b16 %v9427_v9 }
 0x5ab   :  { %v9699_v51 = vpack.c.b16 %v9691_v33, %v9690_v5  ;;  %v9377_v33 = vld [vmem:[#allocation2 + $0x38] sm:$0xe] }
 0x5ac   :  { %v10490_v32 = vpop.f32.mrf.mxu1  ;;  %v10588_v48 = vpop.f32.mrf.mxu3  ;;  %v9423_v39 = vsel %vm14599_vm12, %v12381_v14, %v9422_v6 }
 0x5ad   :  { %v10491_v26 = vadd.f32 %v10490_v32, %v10442_v20  ;;  %v12384_v32 = vrot.slane %v9375_v56, 9 }
 0x5ae   :  { %v10446_v40 = vpop.f32.mrf.mxu0 }
 0x5af   :  { %v10540_v28 = vadd.f32 %v10539_v45, %v10491_v26  ;;  %10737 = vmatmul.bf16.gmra.mxu2 %v12492_v0  ;;  %v9788_v45 = vunpack.c.l.b16 %v9423_v39  ;;  %v10447_v59 = vadd.f32 %v16680_v25, %v10446_v40  ;;  %v12383_v26 = vrot.slane %v9374_v55, 9  ;;  %v13302_v0 = vld [vmem:[#allocation2 + $0x24] sm:$0x1]  ;;  %v9376_v39 = vld [vmem:[#allocation2 + $0x30] sm:$0xe] }
 0x5b0   :  { %v9379_v55 = vld [vmem:[#allocation2 + $0x48] sm:$0xe] }
 0x5b1   :  { %v16699_v24 = vadd.f32 %v10588_v48, %v10540_v28  ;;  %10786 = vmatmul.bf16.gmra.mxu3 %v9779_v3  ;;  %v9804_v42 = vpack.c.b16 %v9789_v29, %v9788_v45  ;;  %v13301_v48 = vld [vmem:[#allocation2 + $0x2c] sm:$0x1]  ;;  %v12385_v29 = vrot.slane %v9376_v39, 9 }
 0x5b2   :  { %v10542_v63 = vpop.f32.mrf.mxu2  ;;  %v9434_v11 = vrot.slane %v13301_v48, 5  ;;  %v9450_v48 = vrot.slane %v16516_v43, 5  ;;  %v9380_v43 = vld [vmem:[#allocation2 + $0x60] sm:$0xe] }
 0x5b4   :  { %v10493_v57 = vpop.f32.mrf.mxu1  ;;  %v10591_v23 = vpop.f32.mrf.mxu3  ;;  %v9435_v41 = vsel %vm14599_vm12, %v12384_v32, %v9434_v11  ;;  %v12388_v32 = vrot.slane %v9379_v55, 9 }
 0x5b5   :  { %v10494_v46 = vadd.f32 %v10493_v57, %v10445_v58  ;;  %v9791_v6 = vunpack.c.l.b16 %v9435_v41  ;;  %v13303_v58 = vld [vmem:[#allocation2 + $0x3c] sm:$0x1]  ;;  %v13304_v57 = vld [vmem:[#allocation2 + $0x34] sm:$0x1] }
 0x5b6   :  { %v10605_v19 = vpop.f32.mrf.mxu0 }
 0x5b7   :  { %v10543_v30 = vadd.f32 %v10542_v63, %v10494_v46  ;;  %10688 = vmatmul.bf16.gmra.mxu1 %v9699_v51  ;;  %v16705_v10 = vadd.f32 %v10605_v19, %v16468_v18  ;;  %v9430_v18 = vrot.slane %v13302_v0, 5  ;;  %v9442_v63 = vrot.slane %v13303_v58, 5  ;;  %v9383_v58 = vld [vmem:[#allocation2 + $0x78] sm:$0xe] }
 0x5b9   :  { %v16707_v20 = vadd.f32 %v10591_v23, %v10543_v30  ;;  %10800 = vmatmul.bf16.vlgmr.msrb.gmra.mxu0 %v9804_v42  ;;  %v9431_v40 = vsel %vm14599_vm12, %v12383_v26, %v9430_v18  ;;  %v9438_v23 = vrot.slane %v13304_v57, 5  ;;  %v9381_v18 = vld [vmem:[#allocation2 + $0x68] sm:$0xe]  ;;  %v9462_v57 = vrot.slane %v16586_v2, 5 }
 0x5ba   :  { %v10544_v17 = vpop.f32.mrf.mxu2  ;;  %v9790_v28 = vunpack.c.l.b16 %v9431_v40  ;;  %v12389_v40 = vrot.slane %v9380_v43, 9 }
 0x5bc   :  { %v10495_v50 = vpop.f32.mrf.mxu1  ;;  %v10593_v37 = vpop.f32.mrf.mxu3  ;;  %v9805_v9 = vpack.c.b16 %v9791_v6, %v9790_v28  ;;  %v9454_v6 = vrot.slane %v16548_v16, 5  ;;  %v12392_v16 = vrot.slane %v9383_v58, 9 }
 0x5bd   :  { %v10496_v15 = vadd.f32 %v10495_v50, %v10447_v59  ;;  %v9378_v59 = vld [vmem:[#allocation2 + $0x40] sm:$0xe] }
 0x5be   :  { %v10607_v7 = vpop.f32.mrf.mxu0  ;;  %v12387_v50 = vrot.slane %v9378_v59, 9  ;;  %v9384_v59 = vld [vmem:[#allocation2 + $0x80] sm:$0xe] }
 0x5bf   :  { %v10545_v4 = vadd.f32 %v10544_v17, %v10496_v15  ;;  %v16711_v14 = vadd.f32 %v10607_v7, %v16484_v22  ;;  %v12386_v22 = vrot.slane %v9377_v33, 9 }
 0x5c1   :  { %v16715_v25 = vadd.f32 %v10593_v37, %v10545_v4  ;;  %v9443_v51 = vsel %vm14599_vm12, %v12386_v22, %v9442_v63  ;;  %v12390_v4 = vrot.slane %v9381_v18, 9  ;;  %v9382_v63 = vld [vmem:[#allocation2 + $0x70] sm:$0xe] }
 0x5c2   :  { %v9793_v45 = vunpack.c.l.b16 %v9443_v51 }
 0x5c4   :  { %v10654_v2 = vpop.f32.mrf.mxu1 }
 0x5c6   :  { %v10610_v3 = vpop.f32.mrf.mxu0 }
 0x5c7   :  { %v16720_v12 = vadd.f32 %v10610_v3, %v16498_v49  ;;  %v9439_v49 = vsel %vm14599_vm12, %v12385_v29, %v9438_v23  ;;  %v12391_v29 = vrot.slane %v9382_v63, 9 }
 0x5c8   :  { %v9792_v19 = vunpack.c.l.b16 %v9439_v49 }
 0x5c9   :  { %10805 = vmatmul.bf16.gmra.mxu0 %v9805_v9 }
 0x5ca   :  { %v9806_v56 = vpack.c.b16 %v9793_v45, %v9792_v19 }
 0x5ce   :  { %v10612_v5 = vpop.f32.mrf.mxu0 }
 0x5cf   :  { %v16723_v46 = vadd.f32 %v10612_v5, %v16521_v62  ;;  %v9446_v62 = vrot.slane %v16512_v54, 5 }
 0x5d1   :  { %v9447_v17 = vsel %vm14599_vm12, %v12387_v50, %v9446_v62  ;;  %v12393_v62 = vrot.slane %v9384_v59, 9 }
 0x5d2   :  { %v9794_v37 = vunpack.c.l.b16 %v9447_v17 }
 0x5d6   :  { %v10615_v30 = vpop.f32.mrf.mxu0 }
 0x5d7   :  { %v16730_v42 = vadd.f32 %v10615_v30, %v16538_v53  ;;  %v9451_v53 = vsel %vm14599_vm12, %v12388_v32, %v9450_v48  ;;  %v9470_v32 = vrot.slane %v16622_v21, 5  ;;  %v9386_v21 = vld [vmem:[#allocation2 + $0x90] sm:$0xe] }
 0x5d8   :  { %v9795_v7 = vunpack.c.l.b16 %v9451_v53 }
 0x5d9   :  { %10810 = vmatmul.bf16.gmra.mxu0 %v9806_v56  ;;  %v9385_v56 = vld [vmem:[#allocation2 + $0x88] sm:$0xe]  ;;  %v9471_v17 = vsel %vm14599_vm12, %v12393_v62, %v9470_v32  ;;  %v16921_v62 = vld [vmem:[#allocation13_spill] sm:$0xff] }
 0x5da   :  { %v9807_v54 = vpack.c.b16 %v9795_v7, %v9794_v37  ;;  %v12394_v55 = vrot.slane %v9385_v56, 9  ;;  %v10752_v37 = vpop.f32.mrf.mxu3  ;;  %v9800_v7 = vunpack.c.l.b16 %v9471_v17 }
 0x5de   :  { %v10617_v11 = vpop.f32.mrf.mxu0 }
 0x5df   :  { %v16735_v15 = vadd.f32 %v10617_v11, %v16557_v38  ;;  %v9458_v38 = vrot.slane %v16552_v8, 5 }
 0x5e1   :  { %v9459_v3 = vsel %vm14599_vm12, %v12390_v4, %v9458_v38  ;;  %v12395_v4 = vrot.slane %v9386_v21, 9  ;;  %v9478_v38 = vrot.slane %v16665_v60, 5 }
 0x5e2   :  { %v9797_v9 = vunpack.c.l.b16 %v9459_v3 }
 0x5e6   :  { %v10620_v26 = vpop.f32.mrf.mxu0 }
 0x5e7   :  { %v16742_v0 = vadd.f32 %v10620_v26, %v16574_v31  ;;  %v9455_v31 = vsel %vm14599_vm12, %v12389_v40, %v9454_v6  ;;  %v10656_v26 = vpop.f32.mrf.mxu1  ;;  %v9482_v40 = vrot.slane %v16667_v34, 5  ;;  %v10754_v6 = vpop.f32.mrf.mxu3 }
 0x5e8   :  { %v9796_v33 = vunpack.c.l.b16 %v9455_v31 }
 0x5e9   :  { %10815 = vmatmul.bf16.gmra.mxu0 %v9807_v54 }
 0x5ea   :  { %v9808_v8 = vpack.c.b16 %v9797_v9, %v9796_v33 }
 0x5ee   :  { %v10622_v41 = vpop.f32.mrf.mxu0 }
 0x5ef   :  { %v16747_v28 = vadd.f32 %v10622_v41, %v16595_v35  ;;  %v9466_v35 = vrot.slane %v16590_v47, 5  ;;  %v10659_v9 = vpop.f32.mrf.mxu1 }
 0x5f1   :  { %v9467_v51 = vsel %vm14599_vm12, %v12392_v16, %v9466_v35  ;;  %v10757_v16 = vpop.f32.mrf.mxu3 }
 0x5f2   :  { %v9799_v49 = vunpack.c.l.b16 %v9467_v51 }
 0x5f6   :  { %v10625_v39 = vpop.f32.mrf.mxu0 }
 0x5f7   :  { %v16754_v22 = vadd.f32 %v10625_v39, %v16612_v36  ;;  %v9463_v36 = vsel %vm14599_vm12, %v12391_v29, %v9462_v57  ;;  %v10661_v35 = vpop.f32.mrf.mxu1  ;;  %v10655_v57 = vadd.f32 %v10654_v2, %v16705_v10  ;;  %v16922_v10 = vld [vmem:[#allocation14_spill] sm:$0xff] }
 0x5f8   :  { %v9798_v45 = vunpack.c.l.b16 %v9463_v36 }
 0x5f9   :  { %10820 = vmatmul.bf16.gmra.mxu0 %v9808_v8  ;;  %v10759_v52 = vpop.f32.mrf.mxu3 }
 0x5fa   :  { %v9809_v47 = vpack.c.b16 %v9799_v49, %v9798_v45  ;;  %v10657_v49 = vadd.f32 %v10656_v26, %v16711_v14 }
 0x5fe   :  { %v10627_v5 = vpop.f32.mrf.mxu0 }
 0x5ff   :  { %v16759_v23 = vadd.f32 %v10627_v5, %v16633_v1  ;;  %v9474_v1 = vrot.slane %v16628_v13, 5  ;;  %v10664_v51 = vpop.f32.mrf.mxu1 }
 0x601   :  { %v9475_v11 = vsel %vm14599_vm12, %v12394_v55, %v9474_v1  ;;  %v10762_v59 = vpop.f32.mrf.mxu3 }
 0x602   :  { %v9801_v53 = vunpack.c.l.b16 %v9475_v11  ;;  %v10660_v11 = vadd.f32 %v10659_v9, %v16720_v12  ;;  %v16923_v12 = vld [vmem:[#allocation15_spill] sm:$0xff]  ;;  %v10665_v9 = vadd.f32 %v10664_v51, %v16730_v42  ;;  %v16925_v42 = vld [vmem:[#allocation17_spill] sm:$0xff] }
 0x604   :  { %v9810_v18 = vpack.c.b16 %v9801_v53, %v9800_v7 }
 0x606   :  { %v10630_v19 = vpop.f32.mrf.mxu0 }
 0x607   :  { %v16766_v30 = vadd.f32 %v10630_v19, %v16652_v27  ;;  %v10703_v27 = vpop.f32.mrf.mxu2  ;;  %v10666_v1 = vpop.f32.mrf.mxu1 }
 0x608   :  { %v10704_v36 = vadd.f32 %v10703_v27, %v10655_v57 }
 0x609   :  { %10825 = vmatmul.bf16.gmra.mxu0 %v9809_v47  ;;  %v10764_v26 = vpop.f32.mrf.mxu3 }
 0x60a   :  { %v10753_v19 = vadd.f32 %v10752_v37, %v10704_v36  ;;  %v10662_v37 = vadd.f32 %v10661_v35, %v16723_v46 }
 0x60e   :  { %v10632_v50 = vpop.f32.mrf.mxu0 }
 0x60f   :  { %v16771_v48 = vadd.f32 %v10632_v50, %v16672_v61  ;;  %v9387_v61 = vld [vmem:[#allocation2 + $0x98] sm:$0xe]  ;;  %v10705_v43 = vpop.f32.mrf.mxu2 }
 0x610   :  { %v12396_v41 = vrot.slane %v9387_v61, 9 }
 0x612   :  { %v9483_v33 = vsel %vm14599_vm12, %v12396_v41, %v9482_v40 }
 0x613   :  { %v9803_v8 = vunpack.c.l.b16 %v9483_v33 }
 0x616   :  { %v10635_v54 = vpop.f32.mrf.mxu0 }
 0x617   :  { %v16778_v13 = vadd.f32 %v10635_v54, %v16688_v44  ;;  %v9479_v44 = vsel %vm14599_vm12, %v12395_v4, %v9478_v38  ;;  %v10708_v58 = vpop.f32.mrf.mxu2 }
 0x618   :  { %v9802_v39 = vunpack.c.l.b16 %v9479_v44  ;;  %v10709_v14 = vadd.f32 %v10708_v58, %v10660_v11  ;;  %v16924_v44 = vld [vmem:[#allocation16_spill] sm:$0xff] }
 0x619   :  { %10830 = vmatmul.bf16.gmra.mxu0 %v9810_v18  ;;  %v10669_v18 = vpop.f32.mrf.mxu1 }
 0x61a   :  { %v9811_v34 = vpack.c.b16 %v9803_v8, %v9802_v39  ;;  %v10758_v21 = vadd.f32 %v10757_v16, %v10709_v14 }
 0x61e   :  { %v10637_v3 = vpop.f32.mrf.mxu0 }
 0x61f   :  { %v16783_v31 = vadd.f32 %v10637_v3, %v16699_v24  ;;  %v10710_v29 = vpop.f32.mrf.mxu2  ;;  %v10767_v3 = vpop.f32.mrf.mxu3 }
 0x620   :  { %v10711_v61 = vadd.f32 %v10710_v29, %v10662_v37  ;;  %v16927_v37 = vld [vmem:[#allocation20_spill] sm:$0xff] }
 0x621   :  { %v10671_v46 = vpop.f32.mrf.mxu1 }
 0x622   :  { %v10760_v4 = vadd.f32 %v10759_v52, %v10711_v61 }
 0x626   :  { %v10640_v63 = vpop.f32.mrf.mxu0 }
 0x627   :  { %v16790_v60 = vadd.f32 %v10640_v63, %v16707_v20  ;;  %v10706_v20 = vadd.f32 %v10705_v43, %v10657_v49  ;;  %v10713_v47 = vpop.f32.mrf.mxu2  ;;  %v10667_v63 = vadd.f32 %v10666_v1, %v16735_v15  ;;  %v10769_v57 = vpop.f32.mrf.mxu3 }
 0x628   :  { %v10714_v58 = vadd.f32 %v10713_v47, %v10665_v9 }
 0x629   :  { %10835 = vmatmul.bf16.gmra.mxu0 %v9811_v34  ;;  %v10755_v55 = vadd.f32 %v10754_v6, %v10706_v20  ;;  %v10674_v36 = vpop.f32.mrf.mxu1  ;;  %v10670_v20 = vadd.f32 %v10669_v18, %v16742_v0 }
 0x62a   :  { %v10675_v18 = vadd.f32 %v10674_v36, %v16754_v22 }
 0x62e   :  { %v10642_v24 = vpop.f32.mrf.mxu0 }
 0x62f   :  { %v16793_v5 = vadd.f32 %v10642_v24, %v16715_v25  ;;  %v10715_v53 = vpop.f32.mrf.mxu2  ;;  %v10763_v24 = vadd.f32 %v10762_v59, %v10714_v58  ;;  %v10672_v59 = vadd.f32 %v10671_v46, %v16747_v28 }
 0x630   :  { %v10716_v29 = vadd.f32 %v10715_v53, %v10667_v63 }
 0x632   :  { %v10765_v49 = vadd.f32 %v10764_v26, %v10716_v29 }
 0x636   :  { %v10801_v45 = vpop.f32.mrf.mxu0 }
 0x637   :  { %v10802_v56 = vadd.f32 %v10801_v45, %v10753_v19  ;;  %v10718_v38 = vpop.f32.mrf.mxu2 }
 0x639   :  { %v10841_v25 = vadd.f32 %v10802_v56, %v16921_v62  ;;  %v16926_v56 = vld [vmem:[#allocation18_spill] sm:$0xff]  ;;  %v10719_v62 = vadd.f32 %v10718_v38, %v10670_v20 }
 0x63b   :  { %v10857_v17 = vmax.f32 %v10841_v25, 0.0 }
 0x63e   :  { %v10803_v50 = vpop.f32.mrf.mxu0 }
 0x63f   :  { %v10804_v32 = vadd.f32 %v10803_v50, %v10755_v55  ;;  %v10720_v35 = vpop.f32.mrf.mxu2  ;;  %v10772_v50 = vpop.f32.mrf.mxu3 }
 0x641   :  { %v10842_v2 = vadd.f32 %v10804_v32, %v16922_v10  ;;  %v10676_v32 = vpop.f32.mrf.mxu1  ;;  %v10768_v10 = vadd.f32 %v10767_v3, %v10719_v62 }
 0x642   :  { %v10677_v38 = vadd.f32 %v10676_v32, %v16759_v23 }
 0x643   :  { %v10858_v27 = vmax.f32 %v10842_v2, 0.0  ;;  %v10721_v2 = vadd.f32 %v10720_v35, %v10672_v59  ;;  %v16932_v59 = vld [vmem:[#allocation24_spill] sm:$0xff] }
 0x645   :  { %v13200_v7 = vpack.c.bf16 %v10858_v27, %v10857_v17  ;;  %v10770_v53 = vadd.f32 %v10769_v57, %v10721_v2 }
 0x646   :  { %v10806_v54 = vpop.f32.mrf.mxu0 }
 0x647   :  { %13201 = vst [vmem:[#allocation9] sm:$0xff] %v13200_v7   ;;  %v10807_v43 = vadd.f32 %v10806_v54, %v10758_v21  ;;  %v10723_v55 = vpop.f32.mrf.mxu2  ;;  %v10774_v14 = vpop.f32.mrf.mxu3  ;;  %v16928_v21 = vld [vmem:[#allocation19_spill] sm:$0xff] }
 0x649   :  { %v10843_v40 = vadd.f32 %v10807_v43, %v16923_v12  ;;  %v10679_v54 = vpop.f32.mrf.mxu1 }
 0x64b   :  { %v10859_v39 = vmax.f32 %v10843_v40, 0.0 }
 0x64e   :  { %v10808_v41 = vpop.f32.mrf.mxu0 }
 0x64f   :  { %v10809_v6 = vadd.f32 %v10808_v41, %v10760_v4  ;;  %v10725_v27 = vpop.f32.mrf.mxu2  ;;  %v10724_v4 = vadd.f32 %v10723_v55, %v10675_v18 }
 0x650   :  { %v10726_v9 = vadd.f32 %v10725_v27, %v10677_v38 }
 0x651   :  { %v10844_v33 = vadd.f32 %v10809_v6, %v16924_v44  ;;  %v10777_v6 = vpop.f32.mrf.mxu3  ;;  %v10773_v3 = vadd.f32 %v10772_v50, %v10724_v4  ;;  %v10681_v44 = vpop.f32.mrf.mxu1  ;;  %v16934_v4 = vld [vmem:[#allocation26_spill] sm:$0xff] }
 0x652   :  { %v10775_v46 = vadd.f32 %v10774_v14, %v10726_v9  ;;  %v10682_v36 = vadd.f32 %v10681_v44, %v16771_v48 }
 0x653   :  { %v10860_v8 = vmax.f32 %v10844_v33, 0.0 }
 0x655   :  { %v13205_v34 = vpack.c.bf16 %v10860_v8, %v10859_v39  ;;  %v16929_v8 = vld [vmem:[#allocation21_spill] sm:$0xff] }
 0x656   :  { %v10811_v16 = vpop.f32.mrf.mxu0 }
 0x657   :  { %13237 = vst [vmem:[#allocation9 + $0x8] sm:$0xff] %v13205_v34   ;;  %v10812_v52 = vadd.f32 %v10811_v16, %v10763_v24  ;;  %v10728_v12 = vpop.f32.mrf.mxu2  ;;  %v10680_v34 = vadd.f32 %v10679_v54, %v16766_v30  ;;  %v16930_v16 = vld [vmem:[#allocation22_spill] sm:$0xff] }
 0x659   :  { %v10845_v51 = vadd.f32 %v10812_v52, %v16925_v42  ;;  %v10779_v23 = vpop.f32.mrf.mxu3  ;;  %v10684_v57 = vpop.f32.mrf.mxu1  ;;  %v10729_v52 = vadd.f32 %v10728_v12, %v10680_v34 }
 0x65a   :  { %v10685_v62 = vadd.f32 %v10684_v57, %v16778_v13  ;;  %v16933_v13 = vld [vmem:[#allocation25_spill] sm:$0xff] }
 0x65b   :  { %v10861_v15 = vmax.f32 %v10845_v51, 0.0  ;;  %v10778_v42 = vadd.f32 %v10777_v6, %v10729_v52 }
 0x65e   :  { %v10813_v45 = vpop.f32.mrf.mxu0 }
 0x65f   :  { %v10814_v19 = vadd.f32 %v10813_v45, %v10765_v49  ;;  %v10730_v63 = vpop.f32.mrf.mxu2 }
 0x660   :  { %v10731_v51 = vadd.f32 %v10730_v63, %v10682_v36  ;;  %v16935_v63 = vld [vmem:[#allocation27_spill] sm:$0xff] }
 0x661   :  { %v10846_v47 = vadd.f32 %v10814_v19, %v16926_v56  ;;  %v10782_v56 = vpop.f32.mrf.mxu3  ;;  %v10686_v55 = vpop.f32.mrf.mxu1 }
 0x662   :  { %v10687_v2 = vadd.f32 %v10686_v55, %v16783_v31 }
 0x663   :  { %v10862_v1 = vmax.f32 %v10846_v47, 0.0  ;;  %v10780_v47 = vadd.f32 %v10779_v23, %v10731_v51 }
 0x665   :  { %v13210_v25 = vpack.c.bf16 %v10862_v1, %v10861_v15  ;;  %v16931_v15 = vld [vmem:[#allocation23_spill] sm:$0xff] }
 0x666   :  { %v10816_v11 = vpop.f32.mrf.mxu0 }
 0x667   :  { %13238 = vst [vmem:[#allocation9 + $0x10] sm:$0xff] %v13210_v25   ;;  %v10817_v17 = vadd.f32 %v10816_v11, %v10768_v10  ;;  %v10733_v19 = vpop.f32.mrf.mxu2 }
 0x668   :  { %v10734_v10 = vadd.f32 %v10733_v19, %v10685_v62 }
 0x669   :  { %v10847_v7 = vadd.f32 %v10817_v17, %v16927_v37  ;;  %v10784_v27 = vpop.f32.mrf.mxu3  ;;  %v10689_v14 = vpop.f32.mrf.mxu1 }
 0x66b   :  { %v10863_v28 = vmax.f32 %v10847_v7, 0.0 }
 0x66e   :  { %v10818_v0 = vpop.f32.mrf.mxu0 }
 0x66f   :  { %v10819_v26 = vadd.f32 %v10818_v0, %v10770_v53  ;;  %v10735_v11 = vpop.f32.mrf.mxu2  ;;  %v10783_v0 = vadd.f32 %v10782_v56, %v10734_v10 }
 0x670   :  { %v10736_v37 = vadd.f32 %v10735_v11, %v10687_v2 }
 0x671   :  { %v10848_v61 = vadd.f32 %v10819_v26, %v16928_v21  ;;  %v10691_v31 = vpop.f32.mrf.mxu1 }
 0x672   :  { %v10785_v26 = vadd.f32 %v10784_v27, %v10736_v37  ;;  %v10692_v6 = vadd.f32 %v10691_v31, %v16793_v5 }
 0x673   :  { %v10864_v43 = vmax.f32 %v10848_v61, 0.0 }
 0x675   :  { %v13215_v41 = vpack.c.bf16 %v10864_v43, %v10863_v28  ;;  %v10787_v28 = vpop.f32.mrf.mxu3  ;;  %v10690_v43 = vadd.f32 %v10689_v14, %v16790_v60 }
 0x676   :  { %v10821_v40 = vpop.f32.mrf.mxu0 }
 0x677   :  { %13239 = vst [vmem:[#allocation9 + $0x18] sm:$0xff] %v13215_v41   ;;  %v10822_v33 = vadd.f32 %v10821_v40, %v10773_v3  ;;  %v10738_v54 = vpop.f32.mrf.mxu2 }
 0x678   :  { %v10739_v40 = vadd.f32 %v10738_v54, %v10690_v43 }
 0x679   :  { %v10849_v22 = vadd.f32 %v10822_v33, %v16929_v8 }
 0x67a   :  { %v10788_v33 = vadd.f32 %v10787_v28, %v10739_v40 }
 0x67b   :  { %v10865_v24 = vmax.f32 %v10849_v22, 0.0 }
 0x67e   :  { %v10823_v39 = vpop.f32.mrf.mxu0 }
 0x67f   :  { %v10824_v58 = vadd.f32 %v10823_v39, %v10775_v46  ;;  %v10740_v44 = vpop.f32.mrf.mxu2  ;;  %v10789_v39 = vpop.f32.mrf.mxu3 }
 0x680   :  { %v10741_v46 = vadd.f32 %v10740_v44, %v10692_v6 }
 0x681   :  { %v10850_v35 = vadd.f32 %v10824_v58, %v16930_v16  ;;  %v16936_v16 = vld [vmem:[#allocation28_spill] sm:$0xff] }
 0x682   :  { %v10790_v22 = vadd.f32 %v10789_v39, %v10741_v46 }
 0x683   :  { %v10866_v29 = vmax.f32 %v10850_v35, 0.0 }
 0x685   :  { %v13220_v49 = vpack.c.bf16 %v10866_v29, %v10865_v24 }
 0x686   :  { %v10826_v45 = vpop.f32.mrf.mxu0 }
 0x687   :  { %13240 = vst [vmem:[#allocation9 + $0x20] sm:$0xff] %v13220_v49   ;;  %v10827_v20 = vadd.f32 %v10826_v45, %v10778_v42 }
 0x689   :  { %v10851_v1 = vadd.f32 %v10827_v20, %v16931_v15 }
 0x68b   :  { %v10867_v32 = vmax.f32 %v10851_v1, 0.0 }
 0x68e   :  { %v10828_v30 = vpop.f32.mrf.mxu0 }
 0x68f   :  { %v10829_v50 = vadd.f32 %v10828_v30, %v10780_v47 }
 0x691   :  { %v10852_v25 = vadd.f32 %v10829_v50, %v16932_v59 }
 0x693   :  { %v10868_v48 = vmax.f32 %v10852_v25, 0.0 }
 0x695   :  { %v13225_v17 = vpack.c.bf16 %v10868_v48, %v10867_v32 }
 0x696   :  { %v10831_v53 = vpop.f32.mrf.mxu0 }
 0x697   :  { %13241 = vst [vmem:[#allocation9 + $0x28] sm:$0xff] %v13225_v17   ;;  %v10832_v7 = vadd.f32 %v10831_v53, %v10783_v0 }
 0x699   :  { %v10853_v21 = vadd.f32 %v10832_v7, %v16933_v13 }
 0x69b   :  { %v10869_v41 = vmax.f32 %v10853_v21, 0.0 }
 0x69e   :  { %v10833_v18 = vpop.f32.mrf.mxu0 }
 0x69f   :  { %v10834_v61 = vadd.f32 %v10833_v18, %v10785_v26 }
 0x6a1   :  { %v10854_v38 = vadd.f32 %v10834_v61, %v16934_v4 }
 0x6a3   :  { %v10870_v12 = vmax.f32 %v10854_v38, 0.0 }
 0x6a5   :  { %v13230_v3 = vpack.c.bf16 %v10870_v12, %v10869_v41 }
 0x6a6   :  { %v10836_v9 = vpop.f32.mrf.mxu0 }
 0x6a7   :  { %13242 = vst [vmem:[#allocation9 + $0x30] sm:$0xff] %v13230_v3   ;;  %v10837_v8 = vadd.f32 %v10836_v9, %v10788_v33 }
 0x6a9   :  { %v10855_v60 = vadd.f32 %v10837_v8, %v16935_v63 }
 0x6ab   :  { %v10871_v5 = vmax.f32 %v10855_v60, 0.0 }
 0x6ae   :  { %v10838_v58 = vpop.f32.mrf.mxu0 }
 0x6af   :  { %v10839_v34 = vadd.f32 %v10838_v58, %v10790_v22 }
 0x6b1   :  { %v10856_v35 = vadd.f32 %v10839_v34, %v16936_v16 }
 0x6b3   :  { %v10872_v23 = vmax.f32 %v10856_v35, 0.0 }
 0x6b5   :  { %v13235_v24 = vpack.c.bf16 %v10872_v23, %v10871_v5 }
 0x6b7   :  { %13243 = vst [vmem:[#allocation9 + $0x38] sm:$0xff] %v13235_v24  }
 0x6b8   :  { %10917 = dma.vmem_to_hbm [thread:$0]  %s10910_s3, 1024, %s10912_s25, [#allocation5], %s13408_s21, %s13408_s21, %s13409_s22  }
 0x6b9   :  { %13405 = dma.done.wait [#allocation5], 1024  }
 0x6ba   :  { %13406 = vsyncadd [#allocation5], 4294966272 }
 0x6bb   :  { %10922 = vsyncpa [#allocation4], 1 }
 0x6bc   :  { %10923 = vsyncpa [#allocation7], 1 }
 0x6bd   :  { %10924 = vsyncpa [#allocation5], 1 }

</bundles_post_ra>
